<compile_context>
chip_gen: v5e
topology: v5e:2x2
jax: 0.10.0
libtpu: 0.0.40
codegen_flags: <defaults>
</compile_context>

<pallas_src>
import functools

import jax
import jax.numpy as jnp
from jax.experimental import pallas as pl
from jax.experimental.pallas import tpu as pltpu


def _decatt_v2_kernel(inp_ref, masks_ref, w_ref, b_ref, out_ref, mix_ref,
                      *, num_heads, mask_special_tokens, c_padded):
    f32 = jnp.float32
    bf16 = jnp.bfloat16

    TB, L, E = inp_ref.shape
    H = num_heads
    Dh = E // H
    Cp = c_padded
    scale = 1.0 / float(Dh) ** 0.5

    # cast f32 -> bf16 in-kernel (input travels HBM->VMEM once, as f32)
    x = inp_ref[...].astype(bf16)                                    # (TB, L, E)

    m = masks_ref[...]                                               # (TB, L, 2) int32
    sp = m[:, :, 0:1]                                                # (TB, L, 1)
    m1 = sp == 0
    m2 = sp == 1
    if mask_special_tokens:
        reg_ok = m[:, :, 1:2] == 1
        m1 = jnp.logical_and(m1, reg_ok)
        m2 = jnp.logical_and(m2, reg_ok)

    zeros = jnp.zeros_like(x)
    x1 = jnp.where(m1, x, zeros).reshape(TB * L, E)                  # bf16
    x2 = jnp.where(m2, x, zeros).reshape(TB * L, E)                  # bf16

    # fused in-projections (2 matmuls, K=E, N=3E); bias add in f32, then one
    # bf16 cast for q/k/v.
    #   proj_a = [q12 | k21 | v21]   (from x1)
    #   proj_b = [k12 | v12 | q21]   (from x2)
    proj_a = (jnp.dot(x1, w_ref[:, 0:3 * E], preferred_element_type=f32)
              + b_ref[:, 0:3 * E]).astype(bf16)
    proj_b = (jnp.dot(x2, w_ref[:, 3 * E:6 * E], preferred_element_type=f32)
              + b_ref[:, 3 * E:6 * E]).astype(bf16)

    def att_core(q, k, v, wo, bo):
        # per-head scaled dot-product attention (H is small -> static unroll),
        # per-head mixes staged into mix_ref, then ONE K=E out-projection.
        # TODO(synk): attention dropout (p=0.3) applies only in training mode.
        for h in range(H):
            lo, hi = h * Dh, (h + 1) * Dh
            qh = q[:, lo:hi].reshape(TB, L, Dh)
            kh = k[:, lo:hi].reshape(TB, L, Dh)
            vh = v[:, lo:hi].reshape(TB, L, Dh)
            s = jnp.einsum('bqd,bkd->bqk', qh, kh,
                           preferred_element_type=f32) * scale      # (TB, L, L) f32
            smax = jnp.max(s, axis=-1, keepdims=True)
            e = jnp.exp(s - smax)
            inv = pl.reciprocal(jnp.sum(e, axis=-1, keepdims=True), approx=True)
            attw = (e * inv).astype(bf16)
            mix = jnp.einsum('bqk,bkd->bqd', attw, vh,
                             preferred_element_type=f32)            # (TB, L, Dh) f32
            mix_ref[:, lo:hi] = mix.reshape(TB * L, Dh).astype(bf16)
        att = (jnp.dot(mix_ref[...], wo, preferred_element_type=f32)
               + bo).reshape(TB, L, E)                               # f32
        # abs-max pooling over the sequence axis (inside the core so the full
        # (TB, L, E) output is never live for both attention blocks at once).
        tmax = jnp.max(att, axis=1)
        tmin = jnp.min(att, axis=1)
        return jnp.where(tmax >= -tmin, tmax, tmin)                  # (TB, E) f32

    # att12: query = x1-proj, key/value = x2-proj
    agg1 = att_core(proj_a[:, 0:E], proj_b[:, 0:E], proj_b[:, E:2 * E],
                    w_ref[:, 6 * E:7 * E], b_ref[:, 6 * E:7 * E]).astype(bf16)
    # att21: query = x2-proj, key/value = x1-proj
    agg2 = att_core(proj_b[:, 2 * E:3 * E], proj_a[:, E:2 * E], proj_a[:, 2 * E:3 * E],
                    w_ref[:, 7 * E:8 * E], b_ref[:, 7 * E:8 * E]).astype(bf16)

    # classifier: split-weight form of cat([agg1, agg2]) @ Wc^T + bc, padded to
    # Cp lanes. Padded bias columns hold -1e30, so padded logits contribute
    # nothing to the log-softmax normalization.
    logits = (jnp.dot(agg1, w_ref[:, 8 * E:8 * E + Cp], preferred_element_type=f32)
              + jnp.dot(agg2, w_ref[:, 8 * E + Cp:8 * E + 2 * Cp],
                        preferred_element_type=f32)
              + b_ref[:, 8 * E:8 * E + Cp])                          # (TB, Cp) f32
    lmax = jnp.max(logits, axis=-1, keepdims=True)
    lse = jnp.log(jnp.sum(jnp.exp(logits - lmax), axis=-1, keepdims=True)) + lmax
    out_ref[...] = logits - lse


def pack_params(params, embedding_dim, num_classes):
    """One-time re-layout of PyTorch-convention params into two packed kernel
    operands (weights bf16 (E, 8E+2Cp), biases f32 (1, 8E+Cp)). Do this once at
    model-load time, not per forward call."""
    (wqkv12, bqkv12, wo12, bo12, wqkv21, bqkv21, wo21, bo21, wc, bc) = params
    E = embedding_dim
    C = num_classes
    Cp = max(128, ((C + 127) // 128) * 128)
    f32, bf16 = jnp.float32, jnp.bfloat16

    # PyTorch in_proj_weight = [Wq; Wk; Wv] (3E, E); projections are x @ W.T.
    wq12, wkv12 = wqkv12[:E], wqkv12[E:]
    wq21, wkv21 = wqkv21[:E], wqkv21[E:]
    bq12, bkv12 = bqkv12[:E], bqkv12[E:]
    bq21, bkv21 = bqkv21[:E], bqkv21[E:]

    w_a = jnp.concatenate([wq12, wkv21], axis=0).T.astype(f32)   # (E, 3E): x1 -> [q12|k21|v21]
    w_b = jnp.concatenate([wkv12, wq21], axis=0).T.astype(f32)   # (E, 3E): x2 -> [k12|v12|q21]
    b_a = jnp.concatenate([bq12, bkv21]).astype(f32)
    b_b = jnp.concatenate([bkv12, bq21]).astype(f32)

    wc1 = wc[:, :E].T.astype(f32)                                # (E, C) half for agg1
    wc2 = wc[:, E:].T.astype(f32)                                # (E, C) half for agg2
    wc1p = jnp.zeros((E, Cp), f32).at[:, :C].set(wc1)
    wc2p = jnp.zeros((E, Cp), f32).at[:, :C].set(wc2)
    bcp = jnp.full((Cp,), -1e30, f32).at[:C].set(bc.astype(f32))

    w_packed = jnp.concatenate(
        [w_a, w_b, wo12.T.astype(f32), wo21.T.astype(f32), wc1p, wc2p],
        axis=1).astype(bf16)                                     # (E, 8E + 2Cp)
    b_packed = jnp.concatenate(
        [b_a, b_b, bo12.astype(f32), bo21.astype(f32), bcp]
    ).reshape(1, -1).astype(f32)                                 # (1, 8E + Cp)
    return w_packed, b_packed


def dec_att_classifier_v2(inp, masks_dict, packed_params, *, num_classes,
                          num_heads=4, mask_special_tokens=True, tb=None):
    """JAX/Pallas equivalent of DecAttClassifiter_v2.forward (eval mode)."""
    w_packed, b_packed = packed_params
    B, L, E = inp.shape
    assert E % num_heads == 0
    Cp = (w_packed.shape[1] - 8 * E) // 2

    # ---- batch tile: multiple of 8 when it does not cover B, grid >= 2 when
    # B allows it (v7x megacore), capped at 128 per step (v7x 64 MiB VMEM). On
    # single-core 128 MiB parts (v5e/v6e) larger tb can be passed explicitly.
    if tb is None:
        if B <= 8:
            tb = B
        else:
            tb = max(8, min(128, (B // 2 // 8) * 8))
    tb = min(tb, B)
    if tb < B:
        tb = max(8, (tb // 8) * 8)
    n_blocks = pl.cdiv(B, tb)
    Bp = n_blocks * tb

    masks = jnp.stack([masks_dict['seq_pair_mask'].astype(jnp.int32),
                       masks_dict['regular_tokens_mask'].astype(jnp.int32)],
                      axis=-1)                                   # (B, L, 2)

    x = inp.astype(jnp.float32)   # stays f32; bf16 cast happens inside the kernel
    if Bp != B:                   # pad batch so the grid tiles evenly
        pad = Bp - B
        x = jnp.pad(x, ((0, pad), (0, 0), (0, 0)))
        masks = jnp.pad(masks, ((0, pad), (0, 0), (0, 0)), constant_values=2)

    kernel = functools.partial(_decatt_v2_kernel,
                               num_heads=num_heads,
                               mask_special_tokens=mask_special_tokens,
                               c_padded=Cp)

    out = pl.pallas_call(
        kernel,
        out_shape=jax.ShapeDtypeStruct((Bp, Cp), jnp.float32),
        grid=(Bp // tb,),
        in_specs=[
            pl.BlockSpec((tb, L, E), lambda b: (b, 0, 0)),        # inp (f32)
            pl.BlockSpec((tb, L, 2), lambda b: (b, 0, 0)),        # packed masks
            pl.BlockSpec((E, 8 * E + 2 * Cp), lambda b: (0, 0)),  # packed weights (bf16)
            pl.BlockSpec((1, 8 * E + Cp), lambda b: (0, 0)),      # packed biases (f32)
        ],
        out_specs=pl.BlockSpec((tb, Cp), lambda b: (b, 0)),
        scratch_shapes=[pltpu.VMEM((tb * L, E), jnp.bfloat16)],   # per-head mix staging
        compiler_params=pltpu.CompilerParams(
            dimension_semantics=("parallel",),
            # safe across v5e/v6e (128 MiB) and v7x (64 MiB); raise on 128 MiB
            # parts when scaling tb up.
            vmem_limit_bytes=48 * 1024 * 1024),
    )(x, masks, w_packed, b_packed)
    return out[:B, :num_classes]


def init_params(key, embedding_dim, num_classes):
    """Deterministic init, PyTorch conventions:
    in_proj_weight (3E, E), in_proj_bias (3E,), out_proj (E, E)+(E,), classifier (C, 2E)+(C,)."""
    E, C = embedding_dim, num_classes
    ks = jax.random.split(key, 10)
    s = 1.0 / (E ** 0.5)
    wqkv12 = jax.random.normal(ks[0], (3 * E, E), jnp.float32) * s
    bqkv12 = jax.random.normal(ks[1], (3 * E,), jnp.float32) * 0.02
    wo12 = jax.random.normal(ks[2], (E, E), jnp.float32) * s
    bo12 = jax.random.normal(ks[3], (E,), jnp.float32) * 0.02
    wqkv21 = jax.random.normal(ks[4], (3 * E, E), jnp.float32) * s
    bqkv21 = jax.random.normal(ks[5], (3 * E,), jnp.float32) * 0.02
    wo21 = jax.random.normal(ks[6], (E, E), jnp.float32) * s
    bo21 = jax.random.normal(ks[7], (E,), jnp.float32) * 0.02
    wc = jax.random.normal(ks[8], (C, 2 * E), jnp.float32) * s
    bc = jax.random.normal(ks[9], (C,), jnp.float32) * 0.02
    return (wqkv12, bqkv12, wo12, bo12, wqkv21, bqkv21, wo21, bo21, wc, bc)


def _reference(inp, seq_pair, regular, params, num_heads=4, mask_special_tokens=True):
    """Pure-JAX f32 reference of the module's forward pass (eval mode)."""
    (wqkv12, bqkv12, wo12, bo12, wqkv21, bqkv21, wo21, bo21, wc, bc) = params
    E = inp.shape[-1]
    H = num_heads
    Dh = E // H
    m1 = seq_pair == 0
    m2 = seq_pair == 1
    if mask_special_tokens:
        m1 = m1 & (regular == 1)
        m2 = m2 & (regular == 1)
    x1 = inp * m1[..., None].astype(inp.dtype)
    x2 = inp * m2[..., None].astype(inp.dtype)

    def mha(qx, kvx, wqkv, bqkv, wo, bo):
        B, L, _ = qx.shape
        q = qx @ wqkv[:E].T + bqkv[:E]
        k = kvx @ wqkv[E:2 * E].T + bqkv[E:2 * E]
        v = kvx @ wqkv[2 * E:].T + bqkv[2 * E:]
        qh = q.reshape(B, L, H, Dh).transpose(0, 2, 1, 3)
        kh = k.reshape(B, L, H, Dh).transpose(0, 2, 1, 3)
        vh = v.reshape(B, L, H, Dh).transpose(0, 2, 1, 3)
        s = jnp.einsum('bhqd,bhkd->bhqk', qh, kh) / (Dh ** 0.5)
        a = jax.nn.softmax(s, axis=-1)
        mix = jnp.einsum('bhqk,bhkd->bhqd', a, vh)
        mix = mix.transpose(0, 2, 1, 3).reshape(B, L, E)
        return mix @ wo.T + bo

    att1 = mha(x1, x2, wqkv12, bqkv12, wo12, bo12)
    att2 = mha(x2, x1, wqkv21, bqkv21, wo21, bo21)

    def pool(t):
        tmax = t.max(axis=1)
        tmin = t.min(axis=1)
        return jnp.where(tmax >= -tmin, tmax, tmin)

    feat = jnp.concatenate([pool(att1), pool(att2)], axis=-1)
    logits = feat @ wc.T + bc
    return jax.nn.log_softmax(logits, axis=-1)


if __name__ == "__main__":
    B, L, E, C, H = 16, 16, 128, 4, 4

    key = jax.random.PRNGKey(0)
    k_inp, k_par = jax.random.split(key)
    inp = jax.random.normal(k_inp, (B, L, E), jnp.float32)

    # masks: [CLS] s1-tokens [SEP] s2-tokens [SEP] padding (two patterns, tiled over B)
    row_a_sp = jnp.array([0, 0, 0, 0, 0, 0, 0, 1, 1, 1, 1, 1, 2, 2, 2, 2], jnp.int32)
    row_b_sp = jnp.array([0, 0, 0, 0, 0, 0, 0, 1, 1, 1, 1, 1, 1, 1, 2, 2], jnp.int32)
    row_a_rg = jnp.array([0, 1, 1, 1, 1, 1, 0, 1, 1, 1, 1, 0, 0, 0, 0, 0], jnp.int32)
    row_b_rg = jnp.array([0, 1, 1, 1, 1, 1, 0, 1, 1, 1, 1, 1, 1, 0, 0, 0], jnp.int32)
    seq_pair = jnp.stack([row_a_sp, row_b_sp] * (B // 2), axis=0)
    regular = jnp.stack([row_a_rg, row_b_rg] * (B // 2), axis=0)
    masks_dict = {'seq_pair_mask': seq_pair, 'regular_tokens_mask': regular}

    params = init_params(k_par, E, C)
    packed = pack_params(params, E, C)   # one-time weight/bias re-layout

    log_scores = dec_att_classifier_v2(inp, masks_dict, packed, num_classes=C,
                                       num_heads=H, mask_special_tokens=True, tb=8)
    jax.block_until_ready(log_scores)

    assert log_scores.shape == (B, C)
    assert bool(jnp.all(jnp.isfinite(log_scores)))
    # rows of exp(log_softmax) must sum to ~1
    assert bool(jnp.allclose(jnp.sum(jnp.exp(log_scores), axis=-1), 1.0, atol=1e-3))
    # compare against pure-JAX f32 reference (loose tolerance: bf16 MXU operands
    # + approx-reciprocal softmax normalization)
    ref = _reference(inp, seq_pair, regular, params, num_heads=H,
                     mask_special_tokens=True)
    max_err = float(jnp.max(jnp.abs(log_scores - ref)))
    assert max_err < 0.2, f"mismatch vs reference: {max_err}"
    print("KERNEL_OK")
</pallas_src>

<mosaic_0001>
module attributes {stable_mosaic.version = 11 : i64} {
  func.func @_decatt_v2_kernel(%arg0: i32, %arg1: memref<8x16x128xf32, #tpu.memory_space<vmem>>, %arg2: memref<8x16x2xi32, #tpu.memory_space<vmem>>, %arg3: memref<128x1280xbf16, #tpu.memory_space<vmem>>, %arg4: memref<1x1152xf32, #tpu.memory_space<vmem>>, %arg5: memref<8x128xf32, #tpu.memory_space<vmem>>, %arg6: memref<128x128xbf16, #tpu.memory_space<vmem>>) attributes {dimension_semantics = [#tpu.dimension_semantics<parallel>], iteration_bounds = array<i64: 2>, scalar_prefetch = 0 : i64, scratch_operands = 1 : i64, tpu.core_type = #tpu.core_type<tc>, window_params = [{transform_indices = @transform_0, window_bounds = array<i64: 8, 16, 128>}, {transform_indices = @transform_1, window_bounds = array<i64: 8, 16, 2>}, {pipeline_mode = #tpu.pipeline_mode<synchronous>, transform_indices = @transform_2, window_bounds = array<i64: 128, 1280>}, {pipeline_mode = #tpu.pipeline_mode<synchronous>, transform_indices = @transform_3, window_bounds = array<i64: 1, 1152>}, {transform_indices = @transform_4, window_bounds = array<i64: 8, 128>}]} {
    %c0 = arith.constant 0 : index
    %c0_0 = arith.constant 0 : index
    %c0_1 = arith.constant 0 : index
    %0 = vector.load %arg1[%c0, %c0_0, %c0_1] : memref<8x16x128xf32, #tpu.memory_space<vmem>>, vector<8x16x128xf32>
    %1 = arith.truncf %0 : vector<8x16x128xf32> to vector<8x16x128xbf16>
    %c0_2 = arith.constant 0 : index
    %c0_3 = arith.constant 0 : index
    %c0_4 = arith.constant 0 : index
    %2 = vector.load %arg2[%c0_2, %c0_3, %c0_4] : memref<8x16x2xi32, #tpu.memory_space<vmem>>, vector<8x16x2xi32>
    %3 = vector.extract_strided_slice %2 {offsets = [0, 0, 0], sizes = [8, 16, 1], strides = [1, 1, 1]} : vector<8x16x2xi32> to vector<8x16x1xi32>
    %c0_i32 = arith.constant 0 : i32
    %4 = vector.broadcast %c0_i32 : i32 to vector<8x16x1xi32>
    %5 = arith.cmpi eq, %3, %4 : vector<8x16x1xi32>
    %c1_i32 = arith.constant 1 : i32
    %6 = vector.broadcast %c1_i32 : i32 to vector<8x16x1xi32>
    %7 = arith.cmpi eq, %3, %6 : vector<8x16x1xi32>
    %8 = vector.extract_strided_slice %2 {offsets = [0, 0, 1], sizes = [8, 16, 1], strides = [1, 1, 1]} : vector<8x16x2xi32> to vector<8x16x1xi32>
    %c1_i32_5 = arith.constant 1 : i32
    %9 = vector.broadcast %c1_i32_5 : i32 to vector<8x16x1xi32>
    %10 = arith.cmpi eq, %8, %9 : vector<8x16x1xi32>
    %11 = arith.andi %5, %10 : vector<8x16x1xi1>
    %12 = arith.andi %7, %10 : vector<8x16x1xi1>
    %cst = arith.constant 0.000000e+00 : bf16
    %13 = vector.broadcast %cst : bf16 to vector<8x16x128xbf16>
    %14 = vector.shape_cast %11 : vector<8x16x1xi1> to vector<8x16x1xi1>
    %15 = vector.broadcast %14 : vector<8x16x1xi1> to vector<8x16x128xi1>
    %16 = arith.select %15, %1, %13 : vector<8x16x128xi1>, vector<8x16x128xbf16>
    %17 = vector.shape_cast %16 : vector<8x16x128xbf16> to vector<128x128xbf16>
    %18 = vector.shape_cast %12 : vector<8x16x1xi1> to vector<8x16x1xi1>
    %19 = vector.broadcast %18 : vector<8x16x1xi1> to vector<8x16x128xi1>
    %20 = arith.select %19, %1, %13 : vector<8x16x128xi1>, vector<8x16x128xbf16>
    %21 = vector.shape_cast %20 : vector<8x16x128xbf16> to vector<128x128xbf16>
    %c0_6 = arith.constant 0 : index
    %c0_7 = arith.constant 0 : index
    %22 = vector.load %arg3[%c0_6, %c0_7] : memref<128x1280xbf16, #tpu.memory_space<vmem>>, vector<128x384xbf16>
    %cst_8 = arith.constant dense<0.000000e+00> : vector<128x384xf32>
    %23 = tpu.matmul %17, %22, %cst_8 {dimension_numbers = #tpu.dot_dimension_numbers<[1], [0], [0], [1], [0, 0, 1, 1], [], []>} : vector<128x128xbf16>, vector<128x384xbf16>, vector<128x384xf32> -> vector<128x384xf32>
    %c0_9 = arith.constant 0 : index
    %c0_10 = arith.constant 0 : index
    %24 = vector.load %arg4[%c0_9, %c0_10] : memref<1x1152xf32, #tpu.memory_space<vmem>>, vector<1x384xf32>
    %25 = vector.broadcast %24 : vector<1x384xf32> to vector<128x384xf32>
    %26 = arith.addf %23, %25 : vector<128x384xf32>
    %27 = arith.truncf %26 : vector<128x384xf32> to vector<128x384xbf16>
    %c0_11 = arith.constant 0 : index
    %c384 = arith.constant 384 : index
    %28 = vector.load %arg3[%c0_11, %c384] : memref<128x1280xbf16, #tpu.memory_space<vmem>>, vector<128x384xbf16>
    %cst_12 = arith.constant dense<0.000000e+00> : vector<128x384xf32>
    %29 = tpu.matmul %21, %28, %cst_12 {dimension_numbers = #tpu.dot_dimension_numbers<[1], [0], [0], [1], [0, 0, 1, 1], [], []>} : vector<128x128xbf16>, vector<128x384xbf16>, vector<128x384xf32> -> vector<128x384xf32>
    %c0_13 = arith.constant 0 : index
    %c384_14 = arith.constant 384 : index
    %30 = vector.load %arg4[%c0_13, %c384_14] : memref<1x1152xf32, #tpu.memory_space<vmem>>, vector<1x384xf32>
    %31 = vector.broadcast %30 : vector<1x384xf32> to vector<128x384xf32>
    %32 = arith.addf %29, %31 : vector<128x384xf32>
    %33 = arith.truncf %32 : vector<128x384xf32> to vector<128x384xbf16>
    %34 = vector.extract_strided_slice %27 {offsets = [0, 0], sizes = [128, 128], strides = [1, 1]} : vector<128x384xbf16> to vector<128x128xbf16>
    %35 = vector.extract_strided_slice %33 {offsets = [0, 0], sizes = [128, 128], strides = [1, 1]} : vector<128x384xbf16> to vector<128x128xbf16>
    %36 = vector.extract_strided_slice %33 {offsets = [0, 128], sizes = [128, 128], strides = [1, 1]} : vector<128x384xbf16> to vector<128x128xbf16>
    %c0_15 = arith.constant 0 : index
    %c768 = arith.constant 768 : index
    %37 = vector.load %arg3[%c0_15, %c768] : memref<128x1280xbf16, #tpu.memory_space<vmem>>, vector<128x128xbf16>
    %c0_16 = arith.constant 0 : index
    %c768_17 = arith.constant 768 : index
    %38 = vector.load %arg4[%c0_16, %c768_17] : memref<1x1152xf32, #tpu.memory_space<vmem>>, vector<1x128xf32>
    %39 = vector.extract_strided_slice %34 {offsets = [0, 0], sizes = [128, 32], strides = [1, 1]} : vector<128x128xbf16> to vector<128x32xbf16>
    %40 = vector.shape_cast %39 : vector<128x32xbf16> to vector<8x16x32xbf16>
    %41 = vector.extract_strided_slice %35 {offsets = [0, 0], sizes = [128, 32], strides = [1, 1]} : vector<128x128xbf16> to vector<128x32xbf16>
    %42 = vector.shape_cast %41 : vector<128x32xbf16> to vector<8x16x32xbf16>
    %43 = vector.extract_strided_slice %36 {offsets = [0, 0], sizes = [128, 32], strides = [1, 1]} : vector<128x128xbf16> to vector<128x32xbf16>
    %44 = vector.shape_cast %43 : vector<128x32xbf16> to vector<8x16x32xbf16>
    "tpu.trace_start"() <{level = 10 : i32, message = "bqd,bkd->bqk"}> : () -> ()
    %cst_18 = arith.constant dense<0.000000e+00> : vector<8x16x16xf32>
    %45 = tpu.matmul %40, %42, %cst_18 {dimension_numbers = #tpu.dot_dimension_numbers<[2], [2], [1], [1], [0, 0, 0, 1, 1, 1], [0], [0]>} : vector<8x16x32xbf16>, vector<8x16x32xbf16>, vector<8x16x16xf32> -> vector<8x16x16xf32>
    "tpu.trace_stop"() : () -> ()
    %cst_19 = arith.constant 0.176776692 : f32
    %46 = vector.broadcast %cst_19 : f32 to vector<8x16x16xf32>
    %47 = arith.mulf %45, %46 : vector<8x16x16xf32>
    %cst_20 = arith.constant dense<0xFF800000> : vector<8x16xf32>
    %48 = vector.multi_reduction <maximumf>, %47, %cst_20 [2] : vector<8x16x16xf32> to vector<8x16xf32>
    %49 = vector.shape_cast %48 : vector<8x16xf32> to vector<8x16x1xf32>
    %50 = vector.broadcast %49 : vector<8x16x1xf32> to vector<8x16x16xf32>
    %51 = arith.subf %47, %50 : vector<8x16x16xf32>
    %52 = math.exp %51 : vector<8x16x16xf32>
    %cst_21 = arith.constant dense<0.000000e+00> : vector<8x16xf32>
    %53 = vector.multi_reduction <add>, %52, %cst_21 [2] : vector<8x16x16xf32> to vector<8x16xf32>
    %54 = vector.shape_cast %53 : vector<8x16xf32> to vector<8x16x1xf32>
    %55 = tpu.reciprocal %54 {approx = true} : vector<8x16x1xf32> -> vector<8x16x1xf32>
    %56 = vector.broadcast %55 : vector<8x16x1xf32> to vector<8x16x16xf32>
    %57 = arith.mulf %52, %56 : vector<8x16x16xf32>
    %58 = arith.truncf %57 : vector<8x16x16xf32> to vector<8x16x16xbf16>
    "tpu.trace_start"() <{level = 10 : i32, message = "bqk,bkd->bqd"}> : () -> ()
    %cst_22 = arith.constant dense<0.000000e+00> : vector<8x16x32xf32>
    %59 = tpu.matmul %58, %44, %cst_22 {dimension_numbers = #tpu.dot_dimension_numbers<[2], [1], [1], [2], [0, 0, 0, 1, 1, 2], [0], [0]>} : vector<8x16x16xbf16>, vector<8x16x32xbf16>, vector<8x16x32xf32> -> vector<8x16x32xf32>
    "tpu.trace_stop"() : () -> ()
    %60 = vector.shape_cast %59 : vector<8x16x32xf32> to vector<128x32xf32>
    %61 = arith.truncf %60 : vector<128x32xf32> to vector<128x32xbf16>
    %c0_23 = arith.constant 0 : index
    %c0_24 = arith.constant 0 : index
    %62 = vector.load %arg6[%c0_23, %c0_24] : memref<128x128xbf16, #tpu.memory_space<vmem>>, vector<128x32xbf16>
    tpu.vector_store %arg6[%c0_23, %c0_24], %61 {strides = array<i32>} : memref<128x128xbf16, #tpu.memory_space<vmem>>, vector<128x32xbf16>,
    %63 = vector.extract_strided_slice %34 {offsets = [0, 32], sizes = [128, 32], strides = [1, 1]} : vector<128x128xbf16> to vector<128x32xbf16>
    %64 = vector.shape_cast %63 : vector<128x32xbf16> to vector<8x16x32xbf16>
    %65 = vector.extract_strided_slice %35 {offsets = [0, 32], sizes = [128, 32], strides = [1, 1]} : vector<128x128xbf16> to vector<128x32xbf16>
    %66 = vector.shape_cast %65 : vector<128x32xbf16> to vector<8x16x32xbf16>
    %67 = vector.extract_strided_slice %36 {offsets = [0, 32], sizes = [128, 32], strides = [1, 1]} : vector<128x128xbf16> to vector<128x32xbf16>
    %68 = vector.shape_cast %67 : vector<128x32xbf16> to vector<8x16x32xbf16>
    "tpu.trace_start"() <{level = 10 : i32, message = "bqd,bkd->bqk"}> : () -> ()
    %cst_25 = arith.constant dense<0.000000e+00> : vector<8x16x16xf32>
    %69 = tpu.matmul %64, %66, %cst_25 {dimension_numbers = #tpu.dot_dimension_numbers<[2], [2], [1], [1], [0, 0, 0, 1, 1, 1], [0], [0]>} : vector<8x16x32xbf16>, vector<8x16x32xbf16>, vector<8x16x16xf32> -> vector<8x16x16xf32>
    "tpu.trace_stop"() : () -> ()
    %cst_26 = arith.constant 0.176776692 : f32
    %70 = vector.broadcast %cst_26 : f32 to vector<8x16x16xf32>
    %71 = arith.mulf %69, %70 : vector<8x16x16xf32>
    %cst_27 = arith.constant dense<0xFF800000> : vector<8x16xf32>
    %72 = vector.multi_reduction <maximumf>, %71, %cst_27 [2] : vector<8x16x16xf32> to vector<8x16xf32>
    %73 = vector.shape_cast %72 : vector<8x16xf32> to vector<8x16x1xf32>
    %74 = vector.broadcast %73 : vector<8x16x1xf32> to vector<8x16x16xf32>
    %75 = arith.subf %71, %74 : vector<8x16x16xf32>
    %76 = math.exp %75 : vector<8x16x16xf32>
    %cst_28 = arith.constant dense<0.000000e+00> : vector<8x16xf32>
    %77 = vector.multi_reduction <add>, %76, %cst_28 [2] : vector<8x16x16xf32> to vector<8x16xf32>
    %78 = vector.shape_cast %77 : vector<8x16xf32> to vector<8x16x1xf32>
    %79 = tpu.reciprocal %78 {approx = true} : vector<8x16x1xf32> -> vector<8x16x1xf32>
    %80 = vector.broadcast %79 : vector<8x16x1xf32> to vector<8x16x16xf32>
    %81 = arith.mulf %76, %80 : vector<8x16x16xf32>
    %82 = arith.truncf %81 : vector<8x16x16xf32> to vector<8x16x16xbf16>
    "tpu.trace_start"() <{level = 10 : i32, message = "bqk,bkd->bqd"}> : () -> ()
    %cst_29 = arith.constant dense<0.000000e+00> : vector<8x16x32xf32>
    %83 = tpu.matmul %82, %68, %cst_29 {dimension_numbers = #tpu.dot_dimension_numbers<[2], [1], [1], [2], [0, 0, 0, 1, 1, 2], [0], [0]>} : vector<8x16x16xbf16>, vector<8x16x32xbf16>, vector<8x16x32xf32> -> vector<8x16x32xf32>
    "tpu.trace_stop"() : () -> ()
    %84 = vector.shape_cast %83 : vector<8x16x32xf32> to vector<128x32xf32>
    %85 = arith.truncf %84 : vector<128x32xf32> to vector<128x32xbf16>
    %c0_30 = arith.constant 0 : index
    %c32 = arith.constant 32 : index
    %86 = vector.load %arg6[%c0_30, %c32] : memref<128x128xbf16, #tpu.memory_space<vmem>>, vector<128x32xbf16>
    tpu.vector_store %arg6[%c0_30, %c32], %85 {strides = array<i32>} : memref<128x128xbf16, #tpu.memory_space<vmem>>, vector<128x32xbf16>,
    %87 = vector.extract_strided_slice %34 {offsets = [0, 64], sizes = [128, 32], strides = [1, 1]} : vector<128x128xbf16> to vector<128x32xbf16>
    %88 = vector.shape_cast %87 : vector<128x32xbf16> to vector<8x16x32xbf16>
    %89 = vector.extract_strided_slice %35 {offsets = [0, 64], sizes = [128, 32], strides = [1, 1]} : vector<128x128xbf16> to vector<128x32xbf16>
    %90 = vector.shape_cast %89 : vector<128x32xbf16> to vector<8x16x32xbf16>
    %91 = vector.extract_strided_slice %36 {offsets = [0, 64], sizes = [128, 32], strides = [1, 1]} : vector<128x128xbf16> to vector<128x32xbf16>
    %92 = vector.shape_cast %91 : vector<128x32xbf16> to vector<8x16x32xbf16>
    "tpu.trace_start"() <{level = 10 : i32, message = "bqd,bkd->bqk"}> : () -> ()
    %cst_31 = arith.constant dense<0.000000e+00> : vector<8x16x16xf32>
    %93 = tpu.matmul %88, %90, %cst_31 {dimension_numbers = #tpu.dot_dimension_numbers<[2], [2], [1], [1], [0, 0, 0, 1, 1, 1], [0], [0]>} : vector<8x16x32xbf16>, vector<8x16x32xbf16>, vector<8x16x16xf32> -> vector<8x16x16xf32>
    "tpu.trace_stop"() : () -> ()
    %cst_32 = arith.constant 0.176776692 : f32
    %94 = vector.broadcast %cst_32 : f32 to vector<8x16x16xf32>
    %95 = arith.mulf %93, %94 : vector<8x16x16xf32>
    %cst_33 = arith.constant dense<0xFF800000> : vector<8x16xf32>
    %96 = vector.multi_reduction <maximumf>, %95, %cst_33 [2] : vector<8x16x16xf32> to vector<8x16xf32>
    %97 = vector.shape_cast %96 : vector<8x16xf32> to vector<8x16x1xf32>
    %98 = vector.broadcast %97 : vector<8x16x1xf32> to vector<8x16x16xf32>
    %99 = arith.subf %95, %98 : vector<8x16x16xf32>
    %100 = math.exp %99 : vector<8x16x16xf32>
    %cst_34 = arith.constant dense<0.000000e+00> : vector<8x16xf32>
    %101 = vector.multi_reduction <add>, %100, %cst_34 [2] : vector<8x16x16xf32> to vector<8x16xf32>
    %102 = vector.shape_cast %101 : vector<8x16xf32> to vector<8x16x1xf32>
    %103 = tpu.reciprocal %102 {approx = true} : vector<8x16x1xf32> -> vector<8x16x1xf32>
    %104 = vector.broadcast %103 : vector<8x16x1xf32> to vector<8x16x16xf32>
    %105 = arith.mulf %100, %104 : vector<8x16x16xf32>
    %106 = arith.truncf %105 : vector<8x16x16xf32> to vector<8x16x16xbf16>
    "tpu.trace_start"() <{level = 10 : i32, message = "bqk,bkd->bqd"}> : () -> ()
    %cst_35 = arith.constant dense<0.000000e+00> : vector<8x16x32xf32>
    %107 = tpu.matmul %106, %92, %cst_35 {dimension_numbers = #tpu.dot_dimension_numbers<[2], [1], [1], [2], [0, 0, 0, 1, 1, 2], [0], [0]>} : vector<8x16x16xbf16>, vector<8x16x32xbf16>, vector<8x16x32xf32> -> vector<8x16x32xf32>
    "tpu.trace_stop"() : () -> ()
    %108 = vector.shape_cast %107 : vector<8x16x32xf32> to vector<128x32xf32>
    %109 = arith.truncf %108 : vector<128x32xf32> to vector<128x32xbf16>
    %c0_36 = arith.constant 0 : index
    %c64 = arith.constant 64 : index
    %110 = vector.load %arg6[%c0_36, %c64] : memref<128x128xbf16, #tpu.memory_space<vmem>>, vector<128x32xbf16>
    tpu.vector_store %arg6[%c0_36, %c64], %109 {strides = array<i32>} : memref<128x128xbf16, #tpu.memory_space<vmem>>, vector<128x32xbf16>,
    %111 = vector.extract_strided_slice %34 {offsets = [0, 96], sizes = [128, 32], strides = [1, 1]} : vector<128x128xbf16> to vector<128x32xbf16>
    %112 = vector.shape_cast %111 : vector<128x32xbf16> to vector<8x16x32xbf16>
    %113 = vector.extract_strided_slice %35 {offsets = [0, 96], sizes = [128, 32], strides = [1, 1]} : vector<128x128xbf16> to vector<128x32xbf16>
    %114 = vector.shape_cast %113 : vector<128x32xbf16> to vector<8x16x32xbf16>
    %115 = vector.extract_strided_slice %36 {offsets = [0, 96], sizes = [128, 32], strides = [1, 1]} : vector<128x128xbf16> to vector<128x32xbf16>
    %116 = vector.shape_cast %115 : vector<128x32xbf16> to vector<8x16x32xbf16>
    "tpu.trace_start"() <{level = 10 : i32, message = "bqd,bkd->bqk"}> : () -> ()
    %cst_37 = arith.constant dense<0.000000e+00> : vector<8x16x16xf32>
    %117 = tpu.matmul %112, %114, %cst_37 {dimension_numbers = #tpu.dot_dimension_numbers<[2], [2], [1], [1], [0, 0, 0, 1, 1, 1], [0], [0]>} : vector<8x16x32xbf16>, vector<8x16x32xbf16>, vector<8x16x16xf32> -> vector<8x16x16xf32>
    "tpu.trace_stop"() : () -> ()
    %cst_38 = arith.constant 0.176776692 : f32
    %118 = vector.broadcast %cst_38 : f32 to vector<8x16x16xf32>
    %119 = arith.mulf %117, %118 : vector<8x16x16xf32>
    %cst_39 = arith.constant dense<0xFF800000> : vector<8x16xf32>
    %120 = vector.multi_reduction <maximumf>, %119, %cst_39 [2] : vector<8x16x16xf32> to vector<8x16xf32>
    %121 = vector.shape_cast %120 : vector<8x16xf32> to vector<8x16x1xf32>
    %122 = vector.broadcast %121 : vector<8x16x1xf32> to vector<8x16x16xf32>
    %123 = arith.subf %119, %122 : vector<8x16x16xf32>
    %124 = math.exp %123 : vector<8x16x16xf32>
    %cst_40 = arith.constant dense<0.000000e+00> : vector<8x16xf32>
    %125 = vector.multi_reduction <add>, %124, %cst_40 [2] : vector<8x16x16xf32> to vector<8x16xf32>
    %126 = vector.shape_cast %125 : vector<8x16xf32> to vector<8x16x1xf32>
    %127 = tpu.reciprocal %126 {approx = true} : vector<8x16x1xf32> -> vector<8x16x1xf32>
    %128 = vector.broadcast %127 : vector<8x16x1xf32> to vector<8x16x16xf32>
    %129 = arith.mulf %124, %128 : vector<8x16x16xf32>
    %130 = arith.truncf %129 : vector<8x16x16xf32> to vector<8x16x16xbf16>
    "tpu.trace_start"() <{level = 10 : i32, message = "bqk,bkd->bqd"}> : () -> ()
    %cst_41 = arith.constant dense<0.000000e+00> : vector<8x16x32xf32>
    %131 = tpu.matmul %130, %116, %cst_41 {dimension_numbers = #tpu.dot_dimension_numbers<[2], [1], [1], [2], [0, 0, 0, 1, 1, 2], [0], [0]>} : vector<8x16x16xbf16>, vector<8x16x32xbf16>, vector<8x16x32xf32> -> vector<8x16x32xf32>
    "tpu.trace_stop"() : () -> ()
    %132 = vector.shape_cast %131 : vector<8x16x32xf32> to vector<128x32xf32>
    %133 = arith.truncf %132 : vector<128x32xf32> to vector<128x32xbf16>
    %c0_42 = arith.constant 0 : index
    %c96 = arith.constant 96 : index
    %134 = vector.load %arg6[%c0_42, %c96] : memref<128x128xbf16, #tpu.memory_space<vmem>>, vector<128x32xbf16>
    tpu.vector_store %arg6[%c0_42, %c96], %133 {strides = array<i32>} : memref<128x128xbf16, #tpu.memory_space<vmem>>, vector<128x32xbf16>,
    %c0_43 = arith.constant 0 : index
    %c0_44 = arith.constant 0 : index
    %135 = vector.load %arg6[%c0_43, %c0_44] : memref<128x128xbf16, #tpu.memory_space<vmem>>, vector<128x128xbf16>
    %cst_45 = arith.constant dense<0.000000e+00> : vector<128x128xf32>
    %136 = tpu.matmul %135, %37, %cst_45 {dimension_numbers = #tpu.dot_dimension_numbers<[1], [0], [0], [1], [0, 0, 1, 1], [], []>} : vector<128x128xbf16>, vector<128x128xbf16>, vector<128x128xf32> -> vector<128x128xf32>
    %137 = vector.broadcast %38 : vector<1x128xf32> to vector<128x128xf32>
    %138 = arith.addf %136, %137 : vector<128x128xf32>
    %139 = vector.shape_cast %138 : vector<128x128xf32> to vector<8x16x128xf32>
    %cst_46 = arith.constant dense<0xFF800000> : vector<8x128xf32>
    %140 = vector.multi_reduction <maximumf>, %139, %cst_46 [1] : vector<8x16x128xf32> to vector<8x128xf32>
    %cst_47 = arith.constant dense<0x7F800000> : vector<8x128xf32>
    %141 = vector.multi_reduction <minimumf>, %139, %cst_47 [1] : vector<8x16x128xf32> to vector<8x128xf32>
    %cst_48 = arith.constant 0.000000e+00 : f32
    %142 = vector.broadcast %cst_48 : f32 to vector<8x128xf32>
    %143 = arith.subf %142, %141 : vector<8x128xf32>
    %144 = arith.cmpf oge, %140, %143 : vector<8x128xf32>
    %145 = arith.select %144, %140, %141 : vector<8x128xi1>, vector<8x128xf32>
    %146 = arith.truncf %145 : vector<8x128xf32> to vector<8x128xbf16>
    %147 = vector.extract_strided_slice %33 {offsets = [0, 256], sizes = [128, 128], strides = [1, 1]} : vector<128x384xbf16> to vector<128x128xbf16>
    %148 = vector.extract_strided_slice %27 {offsets = [0, 128], sizes = [128, 128], strides = [1, 1]} : vector<128x384xbf16> to vector<128x128xbf16>
    %149 = vector.extract_strided_slice %27 {offsets = [0, 256], sizes = [128, 128], strides = [1, 1]} : vector<128x384xbf16> to vector<128x128xbf16>
    %c0_49 = arith.constant 0 : index
    %c896 = arith.constant 896 : index
    %150 = vector.load %arg3[%c0_49, %c896] : memref<128x1280xbf16, #tpu.memory_space<vmem>>, vector<128x128xbf16>
    %c0_50 = arith.constant 0 : index
    %c896_51 = arith.constant 896 : index
    %151 = vector.load %arg4[%c0_50, %c896_51] : memref<1x1152xf32, #tpu.memory_space<vmem>>, vector<1x128xf32>
    %152 = vector.extract_strided_slice %147 {offsets = [0, 0], sizes = [128, 32], strides = [1, 1]} : vector<128x128xbf16> to vector<128x32xbf16>
    %153 = vector.shape_cast %152 : vector<128x32xbf16> to vector<8x16x32xbf16>
    %154 = vector.extract_strided_slice %148 {offsets = [0, 0], sizes = [128, 32], strides = [1, 1]} : vector<128x128xbf16> to vector<128x32xbf16>
    %155 = vector.shape_cast %154 : vector<128x32xbf16> to vector<8x16x32xbf16>
    %156 = vector.extract_strided_slice %149 {offsets = [0, 0], sizes = [128, 32], strides = [1, 1]} : vector<128x128xbf16> to vector<128x32xbf16>
    %157 = vector.shape_cast %156 : vector<128x32xbf16> to vector<8x16x32xbf16>
    "tpu.trace_start"() <{level = 10 : i32, message = "bqd,bkd->bqk"}> : () -> ()
    %cst_52 = arith.constant dense<0.000000e+00> : vector<8x16x16xf32>
    %158 = tpu.matmul %153, %155, %cst_52 {dimension_numbers = #tpu.dot_dimension_numbers<[2], [2], [1], [1], [0, 0, 0, 1, 1, 1], [0], [0]>} : vector<8x16x32xbf16>, vector<8x16x32xbf16>, vector<8x16x16xf32> -> vector<8x16x16xf32>
    "tpu.trace_stop"() : () -> ()
    %cst_53 = arith.constant 0.176776692 : f32
    %159 = vector.broadcast %cst_53 : f32 to vector<8x16x16xf32>
    %160 = arith.mulf %158, %159 : vector<8x16x16xf32>
    %cst_54 = arith.constant dense<0xFF800000> : vector<8x16xf32>
    %161 = vector.multi_reduction <maximumf>, %160, %cst_54 [2] : vector<8x16x16xf32> to vector<8x16xf32>
    %162 = vector.shape_cast %161 : vector<8x16xf32> to vector<8x16x1xf32>
    %163 = vector.broadcast %162 : vector<8x16x1xf32> to vector<8x16x16xf32>
    %164 = arith.subf %160, %163 : vector<8x16x16xf32>
    %165 = math.exp %164 : vector<8x16x16xf32>
    %cst_55 = arith.constant dense<0.000000e+00> : vector<8x16xf32>
    %166 = vector.multi_reduction <add>, %165, %cst_55 [2] : vector<8x16x16xf32> to vector<8x16xf32>
    %167 = vector.shape_cast %166 : vector<8x16xf32> to vector<8x16x1xf32>
    %168 = tpu.reciprocal %167 {approx = true} : vector<8x16x1xf32> -> vector<8x16x1xf32>
    %169 = vector.broadcast %168 : vector<8x16x1xf32> to vector<8x16x16xf32>
    %170 = arith.mulf %165, %169 : vector<8x16x16xf32>
    %171 = arith.truncf %170 : vector<8x16x16xf32> to vector<8x16x16xbf16>
    "tpu.trace_start"() <{level = 10 : i32, message = "bqk,bkd->bqd"}> : () -> ()
    %cst_56 = arith.constant dense<0.000000e+00> : vector<8x16x32xf32>
    %172 = tpu.matmul %171, %157, %cst_56 {dimension_numbers = #tpu.dot_dimension_numbers<[2], [1], [1], [2], [0, 0, 0, 1, 1, 2], [0], [0]>} : vector<8x16x16xbf16>, vector<8x16x32xbf16>, vector<8x16x32xf32> -> vector<8x16x32xf32>
    "tpu.trace_stop"() : () -> ()
    %173 = vector.shape_cast %172 : vector<8x16x32xf32> to vector<128x32xf32>
    %174 = arith.truncf %173 : vector<128x32xf32> to vector<128x32xbf16>
    %c0_57 = arith.constant 0 : index
    %c0_58 = arith.constant 0 : index
    %175 = vector.load %arg6[%c0_57, %c0_58] : memref<128x128xbf16, #tpu.memory_space<vmem>>, vector<128x32xbf16>
    tpu.vector_store %arg6[%c0_57, %c0_58], %174 {strides = array<i32>} : memref<128x128xbf16, #tpu.memory_space<vmem>>, vector<128x32xbf16>,
    %176 = vector.extract_strided_slice %147 {offsets = [0, 32], sizes = [128, 32], strides = [1, 1]} : vector<128x128xbf16> to vector<128x32xbf16>
    %177 = vector.shape_cast %176 : vector<128x32xbf16> to vector<8x16x32xbf16>
    %178 = vector.extract_strided_slice %148 {offsets = [0, 32], sizes = [128, 32], strides = [1, 1]} : vector<128x128xbf16> to vector<128x32xbf16>
    %179 = vector.shape_cast %178 : vector<128x32xbf16> to vector<8x16x32xbf16>
    %180 = vector.extract_strided_slice %149 {offsets = [0, 32], sizes = [128, 32], strides = [1, 1]} : vector<128x128xbf16> to vector<128x32xbf16>
    %181 = vector.shape_cast %180 : vector<128x32xbf16> to vector<8x16x32xbf16>
    "tpu.trace_start"() <{level = 10 : i32, message = "bqd,bkd->bqk"}> : () -> ()
    %cst_59 = arith.constant dense<0.000000e+00> : vector<8x16x16xf32>
    %182 = tpu.matmul %177, %179, %cst_59 {dimension_numbers = #tpu.dot_dimension_numbers<[2], [2], [1], [1], [0, 0, 0, 1, 1, 1], [0], [0]>} : vector<8x16x32xbf16>, vector<8x16x32xbf16>, vector<8x16x16xf32> -> vector<8x16x16xf32>
    "tpu.trace_stop"() : () -> ()
    %cst_60 = arith.constant 0.176776692 : f32
    %183 = vector.broadcast %cst_60 : f32 to vector<8x16x16xf32>
    %184 = arith.mulf %182, %183 : vector<8x16x16xf32>
    %cst_61 = arith.constant dense<0xFF800000> : vector<8x16xf32>
    %185 = vector.multi_reduction <maximumf>, %184, %cst_61 [2] : vector<8x16x16xf32> to vector<8x16xf32>
    %186 = vector.shape_cast %185 : vector<8x16xf32> to vector<8x16x1xf32>
    %187 = vector.broadcast %186 : vector<8x16x1xf32> to vector<8x16x16xf32>
    %188 = arith.subf %184, %187 : vector<8x16x16xf32>
    %189 = math.exp %188 : vector<8x16x16xf32>
    %cst_62 = arith.constant dense<0.000000e+00> : vector<8x16xf32>
    %190 = vector.multi_reduction <add>, %189, %cst_62 [2] : vector<8x16x16xf32> to vector<8x16xf32>
    %191 = vector.shape_cast %190 : vector<8x16xf32> to vector<8x16x1xf32>
    %192 = tpu.reciprocal %191 {approx = true} : vector<8x16x1xf32> -> vector<8x16x1xf32>
    %193 = vector.broadcast %192 : vector<8x16x1xf32> to vector<8x16x16xf32>
    %194 = arith.mulf %189, %193 : vector<8x16x16xf32>
    %195 = arith.truncf %194 : vector<8x16x16xf32> to vector<8x16x16xbf16>
    "tpu.trace_start"() <{level = 10 : i32, message = "bqk,bkd->bqd"}> : () -> ()
    %cst_63 = arith.constant dense<0.000000e+00> : vector<8x16x32xf32>
    %196 = tpu.matmul %195, %181, %cst_63 {dimension_numbers = #tpu.dot_dimension_numbers<[2], [1], [1], [2], [0, 0, 0, 1, 1, 2], [0], [0]>} : vector<8x16x16xbf16>, vector<8x16x32xbf16>, vector<8x16x32xf32> -> vector<8x16x32xf32>
    "tpu.trace_stop"() : () -> ()
    %197 = vector.shape_cast %196 : vector<8x16x32xf32> to vector<128x32xf32>
    %198 = arith.truncf %197 : vector<128x32xf32> to vector<128x32xbf16>
    %c0_64 = arith.constant 0 : index
    %c32_65 = arith.constant 32 : index
    %199 = vector.load %arg6[%c0_64, %c32_65] : memref<128x128xbf16, #tpu.memory_space<vmem>>, vector<128x32xbf16>
    tpu.vector_store %arg6[%c0_64, %c32_65], %198 {strides = array<i32>} : memref<128x128xbf16, #tpu.memory_space<vmem>>, vector<128x32xbf16>,
    %200 = vector.extract_strided_slice %147 {offsets = [0, 64], sizes = [128, 32], strides = [1, 1]} : vector<128x128xbf16> to vector<128x32xbf16>
    %201 = vector.shape_cast %200 : vector<128x32xbf16> to vector<8x16x32xbf16>
    %202 = vector.extract_strided_slice %148 {offsets = [0, 64], sizes = [128, 32], strides = [1, 1]} : vector<128x128xbf16> to vector<128x32xbf16>
    %203 = vector.shape_cast %202 : vector<128x32xbf16> to vector<8x16x32xbf16>
    %204 = vector.extract_strided_slice %149 {offsets = [0, 64], sizes = [128, 32], strides = [1, 1]} : vector<128x128xbf16> to vector<128x32xbf16>
    %205 = vector.shape_cast %204 : vector<128x32xbf16> to vector<8x16x32xbf16>
    "tpu.trace_start"() <{level = 10 : i32, message = "bqd,bkd->bqk"}> : () -> ()
    %cst_66 = arith.constant dense<0.000000e+00> : vector<8x16x16xf32>
    %206 = tpu.matmul %201, %203, %cst_66 {dimension_numbers = #tpu.dot_dimension_numbers<[2], [2], [1], [1], [0, 0, 0, 1, 1, 1], [0], [0]>} : vector<8x16x32xbf16>, vector<8x16x32xbf16>, vector<8x16x16xf32> -> vector<8x16x16xf32>
    "tpu.trace_stop"() : () -> ()
    %cst_67 = arith.constant 0.176776692 : f32
    %207 = vector.broadcast %cst_67 : f32 to vector<8x16x16xf32>
    %208 = arith.mulf %206, %207 : vector<8x16x16xf32>
    %cst_68 = arith.constant dense<0xFF800000> : vector<8x16xf32>
    %209 = vector.multi_reduction <maximumf>, %208, %cst_68 [2] : vector<8x16x16xf32> to vector<8x16xf32>
    %210 = vector.shape_cast %209 : vector<8x16xf32> to vector<8x16x1xf32>
    %211 = vector.broadcast %210 : vector<8x16x1xf32> to vector<8x16x16xf32>
    %212 = arith.subf %208, %211 : vector<8x16x16xf32>
    %213 = math.exp %212 : vector<8x16x16xf32>
    %cst_69 = arith.constant dense<0.000000e+00> : vector<8x16xf32>
    %214 = vector.multi_reduction <add>, %213, %cst_69 [2] : vector<8x16x16xf32> to vector<8x16xf32>
    %215 = vector.shape_cast %214 : vector<8x16xf32> to vector<8x16x1xf32>
    %216 = tpu.reciprocal %215 {approx = true} : vector<8x16x1xf32> -> vector<8x16x1xf32>
    %217 = vector.broadcast %216 : vector<8x16x1xf32> to vector<8x16x16xf32>
    %218 = arith.mulf %213, %217 : vector<8x16x16xf32>
    %219 = arith.truncf %218 : vector<8x16x16xf32> to vector<8x16x16xbf16>
    "tpu.trace_start"() <{level = 10 : i32, message = "bqk,bkd->bqd"}> : () -> ()
    %cst_70 = arith.constant dense<0.000000e+00> : vector<8x16x32xf32>
    %220 = tpu.matmul %219, %205, %cst_70 {dimension_numbers = #tpu.dot_dimension_numbers<[2], [1], [1], [2], [0, 0, 0, 1, 1, 2], [0], [0]>} : vector<8x16x16xbf16>, vector<8x16x32xbf16>, vector<8x16x32xf32> -> vector<8x16x32xf32>
    "tpu.trace_stop"() : () -> ()
    %221 = vector.shape_cast %220 : vector<8x16x32xf32> to vector<128x32xf32>
    %222 = arith.truncf %221 : vector<128x32xf32> to vector<128x32xbf16>
    %c0_71 = arith.constant 0 : index
    %c64_72 = arith.constant 64 : index
    %223 = vector.load %arg6[%c0_71, %c64_72] : memref<128x128xbf16, #tpu.memory_space<vmem>>, vector<128x32xbf16>
    tpu.vector_store %arg6[%c0_71, %c64_72], %222 {strides = array<i32>} : memref<128x128xbf16, #tpu.memory_space<vmem>>, vector<128x32xbf16>,
    %224 = vector.extract_strided_slice %147 {offsets = [0, 96], sizes = [128, 32], strides = [1, 1]} : vector<128x128xbf16> to vector<128x32xbf16>
    %225 = vector.shape_cast %224 : vector<128x32xbf16> to vector<8x16x32xbf16>
    %226 = vector.extract_strided_slice %148 {offsets = [0, 96], sizes = [128, 32], strides = [1, 1]} : vector<128x128xbf16> to vector<128x32xbf16>
    %227 = vector.shape_cast %226 : vector<128x32xbf16> to vector<8x16x32xbf16>
    %228 = vector.extract_strided_slice %149 {offsets = [0, 96], sizes = [128, 32], strides = [1, 1]} : vector<128x128xbf16> to vector<128x32xbf16>
    %229 = vector.shape_cast %228 : vector<128x32xbf16> to vector<8x16x32xbf16>
    "tpu.trace_start"() <{level = 10 : i32, message = "bqd,bkd->bqk"}> : () -> ()
    %cst_73 = arith.constant dense<0.000000e+00> : vector<8x16x16xf32>
    %230 = tpu.matmul %225, %227, %cst_73 {dimension_numbers = #tpu.dot_dimension_numbers<[2], [2], [1], [1], [0, 0, 0, 1, 1, 1], [0], [0]>} : vector<8x16x32xbf16>, vector<8x16x32xbf16>, vector<8x16x16xf32> -> vector<8x16x16xf32>
    "tpu.trace_stop"() : () -> ()
    %cst_74 = arith.constant 0.176776692 : f32
    %231 = vector.broadcast %cst_74 : f32 to vector<8x16x16xf32>
    %232 = arith.mulf %230, %231 : vector<8x16x16xf32>
    %cst_75 = arith.constant dense<0xFF800000> : vector<8x16xf32>
    %233 = vector.multi_reduction <maximumf>, %232, %cst_75 [2] : vector<8x16x16xf32> to vector<8x16xf32>
    %234 = vector.shape_cast %233 : vector<8x16xf32> to vector<8x16x1xf32>
    %235 = vector.broadcast %234 : vector<8x16x1xf32> to vector<8x16x16xf32>
    %236 = arith.subf %232, %235 : vector<8x16x16xf32>
    %237 = math.exp %236 : vector<8x16x16xf32>
    %cst_76 = arith.constant dense<0.000000e+00> : vector<8x16xf32>
    %238 = vector.multi_reduction <add>, %237, %cst_76 [2] : vector<8x16x16xf32> to vector<8x16xf32>
    %239 = vector.shape_cast %238 : vector<8x16xf32> to vector<8x16x1xf32>
    %240 = tpu.reciprocal %239 {approx = true} : vector<8x16x1xf32> -> vector<8x16x1xf32>
    %241 = vector.broadcast %240 : vector<8x16x1xf32> to vector<8x16x16xf32>
    %242 = arith.mulf %237, %241 : vector<8x16x16xf32>
    %243 = arith.truncf %242 : vector<8x16x16xf32> to vector<8x16x16xbf16>
    "tpu.trace_start"() <{level = 10 : i32, message = "bqk,bkd->bqd"}> : () -> ()
    %cst_77 = arith.constant dense<0.000000e+00> : vector<8x16x32xf32>
    %244 = tpu.matmul %243, %229, %cst_77 {dimension_numbers = #tpu.dot_dimension_numbers<[2], [1], [1], [2], [0, 0, 0, 1, 1, 2], [0], [0]>} : vector<8x16x16xbf16>, vector<8x16x32xbf16>, vector<8x16x32xf32> -> vector<8x16x32xf32>
    "tpu.trace_stop"() : () -> ()
    %245 = vector.shape_cast %244 : vector<8x16x32xf32> to vector<128x32xf32>
    %246 = arith.truncf %245 : vector<128x32xf32> to vector<128x32xbf16>
    %c0_78 = arith.constant 0 : index
    %c96_79 = arith.constant 96 : index
    %247 = vector.load %arg6[%c0_78, %c96_79] : memref<128x128xbf16, #tpu.memory_space<vmem>>, vector<128x32xbf16>
    tpu.vector_store %arg6[%c0_78, %c96_79], %246 {strides = array<i32>} : memref<128x128xbf16, #tpu.memory_space<vmem>>, vector<128x32xbf16>,
    %c0_80 = arith.constant 0 : index
    %c0_81 = arith.constant 0 : index
    %248 = vector.load %arg6[%c0_80, %c0_81] : memref<128x128xbf16, #tpu.memory_space<vmem>>, vector<128x128xbf16>
    %cst_82 = arith.constant dense<0.000000e+00> : vector<128x128xf32>
    %249 = tpu.matmul %248, %150, %cst_82 {dimension_numbers = #tpu.dot_dimension_numbers<[1], [0], [0], [1], [0, 0, 1, 1], [], []>} : vector<128x128xbf16>, vector<128x128xbf16>, vector<128x128xf32> -> vector<128x128xf32>
    %250 = vector.broadcast %151 : vector<1x128xf32> to vector<128x128xf32>
    %251 = arith.addf %249, %250 : vector<128x128xf32>
    %252 = vector.shape_cast %251 : vector<128x128xf32> to vector<8x16x128xf32>
    %cst_83 = arith.constant dense<0xFF800000> : vector<8x128xf32>
    %253 = vector.multi_reduction <maximumf>, %252, %cst_83 [1] : vector<8x16x128xf32> to vector<8x128xf32>
    %cst_84 = arith.constant dense<0x7F800000> : vector<8x128xf32>
    %254 = vector.multi_reduction <minimumf>, %252, %cst_84 [1] : vector<8x16x128xf32> to vector<8x128xf32>
    %cst_85 = arith.constant 0.000000e+00 : f32
    %255 = vector.broadcast %cst_85 : f32 to vector<8x128xf32>
    %256 = arith.subf %255, %254 : vector<8x128xf32>
    %257 = arith.cmpf oge, %253, %256 : vector<8x128xf32>
    %258 = arith.select %257, %253, %254 : vector<8x128xi1>, vector<8x128xf32>
    %259 = arith.truncf %258 : vector<8x128xf32> to vector<8x128xbf16>
    %c0_86 = arith.constant 0 : index
    %c1024 = arith.constant 1024 : index
    %260 = vector.load %arg3[%c0_86, %c1024] : memref<128x1280xbf16, #tpu.memory_space<vmem>>, vector<128x128xbf16>
    %cst_87 = arith.constant dense<0.000000e+00> : vector<8x128xf32>
    %261 = tpu.matmul %146, %260, %cst_87 {dimension_numbers = #tpu.dot_dimension_numbers<[1], [0], [0], [1], [0, 0, 1, 1], [], []>} : vector<8x128xbf16>, vector<128x128xbf16>, vector<8x128xf32> -> vector<8x128xf32>
    %c0_88 = arith.constant 0 : index
    %c1152 = arith.constant 1152 : index
    %262 = vector.load %arg3[%c0_88, %c1152] : memref<128x1280xbf16, #tpu.memory_space<vmem>>, vector<128x128xbf16>
    %cst_89 = arith.constant dense<0.000000e+00> : vector<8x128xf32>
    %263 = tpu.matmul %259, %262, %cst_89 {dimension_numbers = #tpu.dot_dimension_numbers<[1], [0], [0], [1], [0, 0, 1, 1], [], []>} : vector<8x128xbf16>, vector<128x128xbf16>, vector<8x128xf32> -> vector<8x128xf32>
    %264 = arith.addf %261, %263 : vector<8x128xf32>
    %c0_90 = arith.constant 0 : index
    %c1024_91 = arith.constant 1024 : index
    %265 = vector.load %arg4[%c0_90, %c1024_91] : memref<1x1152xf32, #tpu.memory_space<vmem>>, vector<1x128xf32>
    %266 = vector.broadcast %265 : vector<1x128xf32> to vector<8x128xf32>
    %267 = arith.addf %264, %266 : vector<8x128xf32>
    %cst_92 = arith.constant dense<0xFF800000> : vector<8xf32>
    %268 = vector.multi_reduction <maximumf>, %267, %cst_92 [1] : vector<8x128xf32> to vector<8xf32>
    %269 = vector.shape_cast %268 : vector<8xf32> to vector<8x1xf32>
    %270 = vector.broadcast %269 : vector<8x1xf32> to vector<8x128xf32>
    %271 = arith.subf %267, %270 : vector<8x128xf32>
    %272 = math.exp %271 : vector<8x128xf32>
    %cst_93 = arith.constant dense<0.000000e+00> : vector<8xf32>
    %273 = vector.multi_reduction <add>, %272, %cst_93 [1] : vector<8x128xf32> to vector<8xf32>
    %274 = vector.shape_cast %273 : vector<8xf32> to vector<8x1xf32>
    %275 = math.log %274 : vector<8x1xf32>
    %276 = arith.addf %275, %269 : vector<8x1xf32>
    %277 = vector.broadcast %276 : vector<8x1xf32> to vector<8x128xf32>
    %278 = arith.subf %267, %277 : vector<8x128xf32>
    %c0_94 = arith.constant 0 : index
    %c0_95 = arith.constant 0 : index
    %279 = vector.load %arg5[%c0_94, %c0_95] : memref<8x128xf32, #tpu.memory_space<vmem>>, vector<8x128xf32>
    tpu.vector_store %arg5[%c0_94, %c0_95], %278 {strides = array<i32>} : memref<8x128xf32, #tpu.memory_space<vmem>>, vector<8x128xf32>,
    return
  }
  func.func @transform_0(%arg0: i32) -> (i32, i32, i32) {
    %c0_i32 = arith.constant 0 : i32
    %c0_i32_0 = arith.constant 0 : i32
    %c0_i32_1 = arith.constant 0 : i32
    return %arg0, %c0_i32, %c0_i32_0 : i32, i32, i32
  }
  func.func @transform_1(%arg0: i32) -> (i32, i32, i32) {
    %c0_i32 = arith.constant 0 : i32
    %c0_i32_0 = arith.constant 0 : i32
    %c0_i32_1 = arith.constant 0 : i32
    return %arg0, %c0_i32, %c0_i32_0 : i32, i32, i32
  }
  func.func @transform_2(%arg0: i32) -> (i32, i32) {
    %c0_i32 = arith.constant 0 : i32
    %c0_i32_0 = arith.constant 0 : i32
    %c0_i32_1 = arith.constant 0 : i32
    return %c0_i32, %c0_i32_0 : i32, i32
  }
  func.func @transform_3(%arg0: i32) -> (i32, i32) {
    %c0_i32 = arith.constant 0 : i32
    %c0_i32_0 = arith.constant 0 : i32
    %c0_i32_1 = arith.constant 0 : i32
    return %c0_i32, %c0_i32_0 : i32, i32
  }
  func.func @transform_4(%arg0: i32) -> (i32, i32) {
    %c0_i32 = arith.constant 0 : i32
    %c0_i32_0 = arith.constant 0 : i32
    return %arg0, %c0_i32 : i32, i32
  }
}

</mosaic_0001>

<bundles_post_ra>
// kernel: tpu_custom_call.1
= control target key start
LH: loop header
LB: loop body
LE: loop exit
PB: predicated region body
PF: predicated region fallthrough
CT: control target
= control target key end

     0   :  { %9 = vsyncpa [#allocation4], 0  ;;  %s13653_s0 = inlined_call_operand.vmem [shape: f32[16,16,128], index: 0, kind: input, shape index: {}]   ;;  %s13654_s1 = inlined_call_operand.vmem [shape: s32[16,16,2], index: 1, kind: input, shape index: {}]   ;;  %s13655_s2 = inlined_call_operand.hbm [shape: bf16[128,1280], index: 2, kind: input, shape index: {}]   ;;  %s13656_s3 = inlined_call_operand.vmem [shape: f32[1,1152], index: 3, kind: input, shape index: {}]   ;;  %s13657_s4 = inlined_call_operand.hbm [shape: f32[16,128], index: 4, kind: output, shape index: {}]  }
   0x1   :  { %10 = vsyncpa [#allocation5], 0 }
   0x2   :  { %12 = vsyncpa [#allocation5 + $0x1], 0  ;;  %s9693_s15 = smov 0   ;;  %s9695_s16 = smov 0  }
   0x3   :  { %s9697_s17 = smov 0   ;;  %s9699_s18 = smov 0  }
   0x4 LB: > { %s9714_s19 = sadd.s32 4294967295, %s9658_s18   ;;  %s8337_s20 = sadd.s32 4294967294, %s9658_s18   ;;  %s9658_s18 = sphi %s9699_s18, %s14090_s18   ;;  %s9654_s17 = sphi %s9697_s17, %s14089_s17   ;;  %s9650_s16 = sphi %s9695_s16, %s14088_s16   ;;  %s9646_s15 = sphi %s9693_s15, %s14087_s15  }
   0x5   : > { %s9718_s21 = sadd.s32 1, %s9658_s18   ;;  %s119_s22 = sadd.s32 1, %s9654_s17 }
   0x6   : > { %s116_s23 = ssub.s32 %s9658_s18, %s9718_s21  ;;  %p129_p0 = scmp.ne.s32.totalorder %s9654_s17, %s9650_s16 }
   0x7   : > { %p117_p1 = scmp.eq.s32.totalorder %s116_s23, 0  ;;  %p130_p2 = scmp.eq.s32.totalorder %s9714_s19, 1 }
   0x8   : > { %p135_p3 = scmp.ne.s32.totalorder %s9650_s16, %s9646_s15  ;;  %p136_p4 = scmp.eq.s32.totalorder %s8337_s20, 1 }
   0x9   : > { %s9729_s24 = scalar_select %p117_p1, %s9654_s17, %s119_s22  }
   0xa   : > { %p9731_p5 = por %p130_p2, %p129_p0  ;;  %p9735_p6 = por %p136_p4, %p135_p3 }
   0xb   : > { %p8338_p7 = scmp.ge.s32.totalorder %s9658_s18, 1  ;;  %p143_p8 = scmp.lt.s32.totalorder %s9658_s18, 3 }
   0xc   : > { %p8994_p9 = scmp.eq.s32.totalorder %s9714_s19, 0  ;;  %s154_s29 = sshll.u32 %s13655_s2, 4  ;;  %s155_s29 = int_to_ptr.hbm [resolvable:$true] %s154_s29 }
   0xd   : > { %p144_p10 = pnand %p8338_p7, %p143_p8  ;;  %s9660_s30 = smov [#allocation3]  }
   0xe   : > { %s156_s5 = sshll.u32 %s9660_s30, 4  ;;  %s9661_s6 = smov 640   ;;  %s157_s5 = int_to_ptr.vmem [resolvable:$true] %s156_s5 }
   0xf   : > { %p8986_p11 = pneg %p144_p10  ;;  %s9662_s7 = smov 40  }
  0x10   : > { %195 = sbr.rel (%p144_p10) target bundleno = 6497 (0x1961), region = 36 }
  0x11   : > { %p8987_p12 = pnand %p8994_p9, %p8986_p11 }
  0x13   : > { %8989 = dma.hbm_to_vmem [thread:$0]  (!%p8987_p12), %s155_s29, 10240, %s157_s5, [#allocation4], %s9661_s6, %s9661_s6, %s9662_s7  }
  0x15   : > { %9637 = dma.done.wait (%p8994_p9), [#allocation4], 10240  }
  0x16   : > { %9639 = vsyncadd (%p8994_p9), [#allocation4], 4294957056  ;;  %s9752_s8 = sshll.u32 %s9714_s19, 3  ;;  %v9663_v0 = vmov 0   ;;  %s9664_s14 = smov 127  }
  0x17   : > { %p230_p13 = scmp.lt.s32.totalorder %s9752_s8, 15  ;;  %9039 = vset.pattern.permute.xlu2 %v9663_v0  ;;  %9037 = vset.pattern.permute.xlu0 %v9663_v0  ;;  %v8436_v39 = vld [vmem:[#allocation3 + $0x230] sm:$0xf]  ;;  %v8890_v40 = vld [vmem:[#allocation3 + $0x254] sm:$0xf0]  ;;  %s9665_s28 = smov 96  }
  0x18   : > { %9038 = vset.pattern.permute.xlu1 %v9663_v0  ;;  %v8437_v41 = vor.u32 %v8890_v40, %v8436_v39  ;;  %v8424_v42 = vld [vmem:[#allocation3 + $0x1e0] sm:$0xf]  ;;  %v8887_v43 = vld [vmem:[#allocation3 + $0x204] sm:$0xf0]  ;;  %v8412_v45 = vld [vmem:[#allocation3 + $0x190] sm:$0xf] }
  0x19   : > { %s9759_s9 = scalar_select %p230_p13, %s9752_s8, 15  ;;  %v8425_v44 = vor.u32 %v8887_v43, %v8424_v42  ;;  %v8884_v46 = vld [vmem:[#allocation3 + $0x1b4] sm:$0xf0]  ;;  %v8400_v48 = vld [vmem:[#allocation3 + $0x140] sm:$0xf] }
  0x1a   : > { %860 = vmatpush.bf16.msra.mxu0 %v8437_v41  ;;  %8964 = vmatpush.bf16.msra.mxu2 %v8437_v41  ;;  %v8413_v47 = vor.u32 %v8884_v46, %v8412_v45  ;;  %v8881_v49 = vld [vmem:[#allocation3 + $0x164] sm:$0xf0]  ;;  %v8388_v51 = vld [vmem:[#allocation3 + $0xf0] sm:$0xf]  ;;  %v8878_v52 = vld [vmem:[#allocation3 + $0x114] sm:$0xf0] }
  0x1b   : > { %s8866_s10 = sshll.u32 %s9759_s9, 4  ;;  %v8401_v50 = vor.u32 %v8881_v49, %v8400_v48  ;;  %v8389_v53 = vor.u32 %v8878_v52, %v8388_v51  ;;  %v8376_v54 = vld [vmem:[#allocation3 + $0xa0] sm:$0xf]  ;;  %v8875_v55 = vld [vmem:[#allocation3 + $0xc4] sm:$0xf0]  ;;  %s9666_s5 = smov 64  }
  0x1c   : > { %s9767_s13 = scalar_lea.vmem %s13654_s1, %s8866_s10  ;;  %v8377_v56 = vor.u32 %v8875_v55, %v8376_v54  ;;  %v8364_v58 = vld [vmem:[#allocation3 + $0x50] sm:$0xf]  ;;  %v8872_v59 = vld [vmem:[#allocation3 + $0x74] sm:$0xf0]  ;;  %v8352_v61 = vld [vmem:[#allocation3] sm:$0xf]  ;;  %s9937_s22 = scalar_lea.vmem %s13653_s0, %s8866_s10 }
  0x1d   : > { %v9770_v1 = vld [vmem:[%s9767_s13 + $0x10] sm:$0xff]  ;;  %v9773_v2 = vld [vmem:[%s9767_s13] sm:$0xff]  ;;  %v9787_v6 = vld [vmem:[%s9767_s13 + $0x18] sm:$0xff]  ;;  %v8365_v60 = vor.u32 %v8872_v59, %v8364_v58  ;;  %s9667_s6 = smov 32   ;;  %s9612_s19 = scalar_lea.hbm %s13657_s4, 16 }
  0x1e   : > { %vm13663_vm0 = vcmp.eq.s32.totalorder %v9770_v1, 1  ;;  %vm308_vm1 = vcmp.eq.s32.totalorder %v9773_v2, 1  ;;  %v9778_v3 = vld [vmem:[%s9767_s13 + $0x20] sm:$0xff]  ;;  %v9790_v7 = vld [vmem:[%s9767_s13 + $0x8] sm:$0xff]  ;;  %vm311_vm3 = vcmp.eq.s32.totalorder %v9787_v6, 1  ;;  %v9817_v13 = vld [vmem:[%s9767_s13 + $0x30] sm:$0xff]  ;;  %861 = vmatpush.bf16.msra.mxu0 %v8425_v44  ;;  %8965 = vmatpush.bf16.msra.mxu2 %v8425_v44 }
  0x1f   : > { %v326_v4 = vsel %vm13663_vm0, 1, %v9663_v0  ;;  %v324_v5 = vsel %vm308_vm1, 1, %v9663_v0  ;;  %vm312_vm2 = vcmp.eq.s32.totalorder %v9778_v3, 1  ;;  %v9799_v9 = vld [vmem:[%s9767_s13 + $0x28] sm:$0xff]  ;;  %vm309_vm4 = vcmp.eq.s32.totalorder %v9790_v7, 1  ;;  %v9862_v25 = vld [vmem:[%s9767_s13 + $0x38] sm:$0xff] }
  0x20   : > { %344 = vrot.lane.b32.xlu1 %v326_v4, %s9664_s14  ;;  %340 = vrot.lane.b32.xlu0 %v324_v5, %s9664_s14  ;;  %v328_v8 = vsel %vm312_vm2, 1, %v9663_v0  ;;  %vm13662_vm5 = vcmp.eq.s32.totalorder %v9799_v9, 1  ;;  %v327_v10 = vsel %vm311_vm3, 1, %v9663_v0  ;;  %v325_v11 = vsel %vm309_vm4, 1, %v9663_v0  ;;  %v9839_v18 = vld [vmem:[%s9767_s13 + $0x48] sm:$0xff]  ;;  %v9869_v27 = vld [vmem:[%s9767_s13 + $0x50] sm:$0xff] }
  0x21   : > { %348 = vrot.lane.b32.xlu2 %v328_v8, %s9664_s14  ;;  %v329_v12 = vsel %vm13662_vm5, 1, %v9663_v0  ;;  %vm13658_vm6 = vcmp.eq.s32.totalorder %v9817_v13, 1  ;;  %vm294_vm7 = vcmp.eq.s32.totalorder %v9770_v1, 0  ;;  %vm292_vm8 = vcmp.eq.s32.totalorder %v9773_v2, 0  ;;  %v9883_v31 = vld [vmem:[%s9767_s13 + $0x40] sm:$0xff]  ;;  %v9887_v32 = vld [vmem:[%s9767_s13 + $0x58] sm:$0xff] }
  0x22   : > { %v330_v14 = vsel %vm13658_vm6, 1, %v9663_v0  ;;  %vm13659_vm13 = vcmp.eq.s32.totalorder %v9839_v18, 1  ;;  %vm293_vm14 = vcmp.eq.s32.totalorder %v9790_v7, 0  ;;  %vm295_vm15 = vcmp.eq.s32.totalorder %v9787_v6, 0  ;;  %862 = vmatpush.bf16.msra.mxu0 %v8413_v47  ;;  %8966 = vmatpush.bf16.msra.mxu2 %v8413_v47  ;;  %v8869_v62 = vld [vmem:[#allocation3 + $0x24] sm:$0xf0] }
  0x23   : > { %v333_v22 = vsel %vm13659_vm13, 1, %v9663_v0  ;;  %vm296_vm6 = vcmp.eq.s32.totalorder %v9778_v3, 0  ;;  %vm298_vm0 = vcmp.eq.s32.totalorder %v9817_v13, 0  ;;  %v8353_v63 = vor.u32 %v8869_v62, %v8352_v61  ;;  %v247_v3 = vld [vmem:[%s9937_s22 + $0x18] sm:$0xff]  ;;  %v249_v51 = vld [vmem:[%s9937_s22 + $0x28] sm:$0xff]  ;;  %v248_v52 = vld [vmem:[%s9937_s22 + $0x20] sm:$0xff] }
  0x24   : > { %v10008_v54 = vpack.c.bf16 %v249_v51, %v249_v51  ;;  %v10029_v62 = vld [vmem:[%s9767_s13 + $0x68] sm:$0xff] }
  0x26   : > { %863 = vmatpush.bf16.msra.mxu0 %v8401_v50  ;;  %8967 = vmatpush.bf16.msra.mxu2 %v8401_v50 }
  0x28   : > { %346 = vrot.lane.b32.xlu1 %v327_v10, %s9664_s14  ;;  %342 = vrot.lane.b32.xlu0 %v325_v11, %s9664_s14  ;;  %v244_v11 = vld [vmem:[%s9937_s22] sm:$0xff] }
  0x29   : > { %350 = vrot.lane.b32.xlu2 %v329_v12, %s9664_s14  ;;  %v245_v12 = vld [vmem:[%s9937_s22 + $0x8] sm:$0xff] }
  0x2a   : > { %864 = vmatpush.bf16.msra.mxu0 %v8389_v53  ;;  %8968 = vmatpush.bf16.msra.mxu2 %v8389_v53  ;;  %v9944_v6 = vpack.c.bf16 %v245_v12, %v245_v12  ;;  %v8508_v12 = vld [vmem:[#allocation3 + $0x19c] sm:$0xf] }
  0x2e   : > { %865 = vmatpush.bf16.msra.mxu0 %v8377_v56  ;;  %8969 = vmatpush.bf16.msra.mxu2 %v8377_v56  ;;  %v10012_v56 = vld [vmem:[%s9767_s13 + $0x60] sm:$0xff] }
  0x31   : > { %352 = vrot.lane.b32.xlu2 %v330_v14, %s9664_s14  ;;  %v9942_v14 = vpack.c.bf16 %v244_v11, %v244_v11  ;;  %v8911_v11 = vld [vmem:[#allocation3 + $0x210] sm:$0xf0] }
  0x32   : > { %866 = vmatpush.bf16.msra.mxu0 %v8365_v60  ;;  %8970 = vmatpush.bf16.msra.mxu2 %v8365_v60 }
  0x36   : > { %867 = vmatpush.bf16.msra.mxu0 %v8353_v63  ;;  %8971 = vmatpush.bf16.msra.mxu2 %v8353_v63 }
  0x7b   : > { %v9854_v23 = vpop.permute.xlu2 %348 }
  0x7c   : > { %vm376_vm13 = vcmp.ne.s32.totalorder %v9854_v23, 0 }
  0x83   : > { %v9891_v33 = vpop.permute.xlu2 %350 }
  0x8b   : > { %v9906_v36 = vpop.permute.xlu2 %352 }
  0x8c   : > { %vm13665_vm5 = vcmp.ne.s32.totalorder %v9906_v36, 0 }
  0x92   : > { %v9827_v15 = vpop.permute.xlu1 %344  ;;  %v9829_v16 = vpop.permute.xlu0 %340 }
  0x93   : > { %vm374_vm9 = vcmp.ne.s32.totalorder %v9827_v15, 0  ;;  %vm372_vm10 = vcmp.ne.s32.totalorder %v9829_v16, 0 }
  0x94   : > { %vm390_vm11 = vmand %vm294_vm7, %vm374_vm9 }
  0x95   : > { %v422_v17 = vsel %vm390_vm11, 1, %v9663_v0  ;;  %vm388_vm12 = vmand %vm292_vm8, %vm372_vm10 }
  0x96   : > { %443 = vperm.xlu2 %9039, %v422_v17   ;;  %v420_v19 = vsel %vm388_vm12, 1, %v9663_v0 }
  0x97   : > { %437 = vperm.xlu0 %9037, %v420_v19  }
  0x9a   : > { %v9844_v20 = vpop.permute.xlu1 %346  ;;  %v9846_v21 = vpop.permute.xlu0 %342 }
  0x9b   : > { %vm375_vm7 = vcmp.ne.s32.totalorder %v9844_v20, 0  ;;  %vm373_vm8 = vcmp.ne.s32.totalorder %v9846_v21, 0 }
  0x9c   : > { %vm389_vm11 = vmand %vm293_vm14, %vm373_vm8  ;;  %vm13661_vm14 = vcmp.eq.s32.totalorder %v9862_v25, 1 }
  0x9d   : > { %v421_v24 = vsel %vm389_vm11, 1, %v9663_v0  ;;  %vm391_vm12 = vmand %vm295_vm15, %vm375_vm7  ;;  %vm13660_vm11 = vcmp.eq.s32.totalorder %v9869_v27, 1  ;;  %v331_v28 = vsel %vm13661_vm14, 1, %v9663_v0 }
  0x9e   : > { %358 = vrot.lane.b32.xlu2 %v333_v22, %s9664_s14  ;;  %440 = vperm.xlu1 %9038, %v421_v24   ;;  %v423_v26 = vsel %vm391_vm12, 1, %v9663_v0  ;;  %vm392_vm15 = vmand %vm296_vm6, %vm376_vm13  ;;  %v334_v29 = vsel %vm13660_vm11, 1, %v9663_v0  ;;  %vm316_vm6 = vcmp.eq.s32.totalorder %v9883_v31, 1  ;;  %vm13664_vm12 = vcmp.eq.s32.totalorder %v9887_v32, 1  ;;  %v9954_v24 = vld [vmem:[%s9767_s13 + $0x78] sm:$0xff] }
  0x9f   : > { %446 = vperm.xlu0 %9037, %v423_v26   ;;  %v424_v30 = vsel %vm392_vm15, 1, %v9663_v0  ;;  %v332_v34 = vsel %vm316_vm6, 1, %v9663_v0  ;;  %v335_v35 = vsel %vm13664_vm12, 1, %v9663_v0  ;;  %vm377_vm15 = vcmp.ne.s32.totalorder %v9891_v33, 0  ;;  %vm394_vm12 = vmand %vm298_vm0, %vm13665_vm5 }
  0xa0   : > { %vm297_vm11 = vcmp.eq.s32.totalorder %v9799_v9, 0  ;;  %v426_v38 = vsel %vm394_vm12, 1, %v9663_v0  ;;  %vm301_vm0 = vcmp.eq.s32.totalorder %v9839_v18, 0  ;;  %vm404_vm12 = vmand %vm308_vm1, %vm372_vm10 }
  0xa1   : > { %vm393_vm14 = vmand %vm297_vm11, %vm377_vm15  ;;  %v532_v8 = vsel %vm404_vm12, 1, %v9663_v0 }
  0xa2   : > { %v425_v37 = vsel %vm393_vm14, 1, %v9663_v0  ;;  %vm407_vm5 = vmand %vm311_vm3, %vm375_vm7 }
  0xa3   : > { %v535_v2 = vsel %vm407_vm5, 1, %v9663_v0  ;;  %vm408_vm3 = vmand %vm312_vm2, %vm376_vm13  ;;  %vm13666_vm5 = vcmp.eq.s32.totalorder %v9954_v24, 1  ;;  %vm299_vm2 = vcmp.eq.s32.totalorder %v9862_v25, 0 }
  0xa4   : > { %v536_v22 = vsel %vm408_vm3, 1, %v9663_v0  ;;  %vm302_vm3 = vcmp.eq.s32.totalorder %v9869_v27, 0 }
  0xa6   : > { %354 = vrot.lane.b32.xlu1 %v331_v28, %s9664_s14  ;;  %360 = vrot.lane.b32.xlu2 %v334_v29, %s9664_s14 }
  0xa7   : > { %449 = vperm.xlu0 %9037, %v424_v30  }
  0xae   : > { %356 = vrot.lane.b32.xlu1 %v332_v34, %s9664_s14 }
  0xaf   : > { %362 = vrot.lane.b32.xlu0 %v335_v35, %s9664_s14  ;;  %v339_v35 = vsel %vm13666_vm5, 1, %v9663_v0 }
  0xb6   : > { %452 = vperm.xlu1 %9038, %v425_v37   ;;  %v246_v37 = vld [vmem:[%s9937_s22 + $0x10] sm:$0xff] }
  0xb7   : > { %v9980_v40 = vpack.c.bf16 %v246_v37, %v246_v37  ;;  %v8438_v37 = vld [vmem:[#allocation3 + $0x258] sm:$0xf0] }
  0xbe   : > { %455 = vperm.xlu1 %9038, %v426_v38   ;;  %v9974_v38 = vpack.c.bf16 %v247_v3, %v247_v3  ;;  %v8472_v3 = vld [vmem:[#allocation3 + $0xac] sm:$0xf] }
  0xf0   : > { %v9914_v57 = vpop.permute.xlu2 %443 }
  0xf1   : > { %vm486_vm12 = vcmp.eq.s32.totalorder %v9914_v57, 1  ;;  %v10014_v57 = vpack.c.bf16 %v248_v52, %v248_v52  ;;  %v8883_v52 = vld [vmem:[#allocation3 + $0x194] sm:$0xf] }
  0xf8   : > { %v9917_v4 = vpop.permute.xlu2 %358 }
  0xf9   : > { %vm381_vm14 = vcmp.ne.s32.totalorder %v9917_v4, 0  ;;  %v8520_v4 = vld [vmem:[#allocation3 + $0x1ec] sm:$0xf] }
  0xfa   : > { %vm397_vm11 = vmand %vm301_vm0, %vm381_vm14 }
  0xfb   : > { %v429_v5 = vsel %vm397_vm11, 1, %v9663_v0 }
  0xfc   : > { %464 = vperm.xlu1 %9038, %v429_v5   ;;  %v10044_v5 = vld [vmem:[%s9767_s13 + $0x70] sm:$0xff] }
 0x100   : > { %v9964_v30 = vpop.permute.xlu2 %360 }
 0x104   : > { %549 = vperm.xlu1 %9038, %v532_v8   ;;  %v8532_v8 = vld [vmem:[#allocation3 + $0x23c] sm:$0xf] }
 0x109   : > { %v438_v10 = vpop.permute.xlu0 %437 }
 0x10a   : > { %vm484_vm1 = vcmp.eq.s32.totalorder %v438_v10, 1  ;;  %v8914_v10 = vld [vmem:[#allocation3 + $0x260] sm:$0xf0] }
 0x10b   : > { %vm500_vm10 = vmpackc.low %vm484_vm1, %vm484_vm1 }
 0x10c   : > { %558 = vperm.xlu1 %9038, %v535_v2   ;;  %v516_v17 = vsel %vm500_vm10, %v9942_v14, 0  ;;  %vm382_vm10 = vcmp.ne.s32.totalorder %v9964_v30, 0  ;;  %v8521_v2 = vor.u32 %v8911_v11, %v8520_v4  ;;  %v8874_v11 = vld [vmem:[#allocation3 + $0xa4] sm:$0xf] }
 0x10d   : > { %v700_v26 = vunpack.c.l.b16 %v516_v17  ;;  %vm398_vm5 = vmand %vm302_vm3, %vm382_vm10 }
 0x10e   : > { %v430_v44 = vsel %vm398_vm5, 1, %v9663_v0  ;;  %vm303_vm5 = vcmp.eq.s32.totalorder %v9887_v32, 0 }
 0x110   : > { %v441_v16 = vpop.permute.xlu1 %440 }
 0x111   : > { %vm485_vm7 = vcmp.eq.s32.totalorder %v441_v16, 1  ;;  %v447_v19 = vpop.permute.xlu0 %446  ;;  %v8908_v16 = vld [vmem:[#allocation3 + $0x1c0] sm:$0xf0] }
 0x112   : > { %vm501_vm0 = vmpackc.low %vm485_vm7, %vm485_vm7  ;;  %vm487_vm13 = vcmp.eq.s32.totalorder %v447_v19, 1  ;;  %v8509_v17 = vor.u32 %v8908_v16, %v8508_v12  ;;  %v8496_v19 = vld [vmem:[#allocation3 + $0x14c] sm:$0xf] }
 0x113   : > { %v517_v20 = vsel %vm501_vm0, %v9944_v6, 0  ;;  %vm503_vm7 = vmpackc.low %vm487_vm13, %vm487_vm13 }
 0x114   : > { %v701_v28 = vunpack.c.l.b16 %v517_v20  ;;  %561 = vperm.xlu1 %9038, %v536_v22   ;;  %vm502_vm0 = vmpackc.low %vm486_vm12, %vm486_vm12  ;;  %v519_v41 = vsel %vm503_vm7, %v9974_v38, 0  ;;  %v8905_v20 = vld [vmem:[#allocation3 + $0x170] sm:$0xf0] }
 0x115   : > { %v518_v43 = vsel %vm502_vm0, %v9980_v40, 0  ;;  %v703_v46 = vunpack.c.l.b16 %v519_v41  ;;  %vm405_vm7 = vmand %vm309_vm4, %vm373_vm8  ;;  %vm320_vm4 = vcmp.eq.s32.totalorder %v10012_v56, 1  ;;  %vm13776_vm8 = vcmp.eq.s32.totalorder %v9770_v1, 1 }
 0x116   : > { %v9956_v29 = vpack.c.b16 %v701_v28, %v700_v26  ;;  %v702_v48 = vunpack.c.l.b16 %v518_v43  ;;  %v533_v55 = vsel %vm405_vm7, 1, %v9663_v0  ;;  %v336_v58 = vsel %vm320_vm4, 1, %v9663_v0  ;;  %v8484_v26 = vld [vmem:[#allocation3 + $0xfc] sm:$0xf] }
 0x117   : > { %vm322_vm7 = vcmp.eq.s32.totalorder %v10044_v5, 1  ;;  %v8497_v22 = vor.u32 %v8905_v20, %v8496_v19  ;;  %v8871_v19 = vld [vmem:[#allocation3 + $0x54] sm:$0xf]  ;;  %v8366_v20 = vld [vmem:[#allocation3 + $0x78] sm:$0xf0] }
 0x118   : > { %v9961_v23 = vpop.permute.xlu1 %354  ;;  %868 = vmatmul.bf16.vlgmr.msra.gmra.mxu0 %v9956_v29  ;;  %v9996_v50 = vpack.c.b16 %v703_v46, %v702_v48  ;;  %v8426_v46 = vld [vmem:[#allocation3 + $0x208] sm:$0xf0] }
 0x119   : > { %vm379_vm11 = vcmp.ne.s32.totalorder %v9961_v23, 0  ;;  %v450_v34 = vpop.permute.xlu0 %449  ;;  %v8899_v23 = vld [vmem:[#allocation3 + $0xd0] sm:$0xf0] }
 0x11a   : > { %vm395_vm1 = vmand %vm299_vm2, %vm379_vm11  ;;  %vm300_vm2 = vcmp.eq.s32.totalorder %v9883_v31, 0  ;;  %v8473_v30 = vor.u32 %v8899_v23, %v8472_v3 }
 0x11b   : > { %v427_v39 = vsel %vm395_vm1, 1, %v9663_v0 }
 0x11c   : > { %370 = vrot.lane.b32.xlu1 %v339_v35, %s9664_s14  ;;  %458 = vperm.xlu2 %9039, %v427_v39   ;;  %v8889_v35 = vld [vmem:[#allocation3 + $0x234] sm:$0xf]  ;;  %v8460_v39 = vld [vmem:[#allocation3 + $0x5c] sm:$0xf] }
 0x11d   : > { %v8441_v41 = vor.u32 %v8889_v35, %v8438_v37 }
 0x11f   : > { %8972 = vmatpush.bf16.msra.mxu1 %v8441_v41  ;;  %909 = vmatpush.bf16.msrb.mxu0 %v8441_v41 }
 0x120   : > { %v357_v42 = vpop.permute.xlu1 %356 }
 0x121   : > { %vm380_vm1 = vcmp.ne.s32.totalorder %v357_v42, 0  ;;  %v9988_v45 = vpop.permute.xlu0 %362  ;;  %v8896_v42 = vld [vmem:[#allocation3 + $0x80] sm:$0xf0] }
 0x122   : > { %vm412_vm13 = vmand %vm316_vm6, %vm380_vm1  ;;  %vm383_vm3 = vcmp.ne.s32.totalorder %v9988_v45, 0  ;;  %v8461_v43 = vor.u32 %v8896_v42, %v8460_v39 }
 0x123   : > { %v540_v47 = vsel %vm412_vm13, 1, %v9663_v0  ;;  %vm396_vm12 = vmand %vm300_vm2, %vm380_vm1  ;;  %vm488_vm2 = vcmp.eq.s32.totalorder %v450_v34, 1 }
 0x124   : > { %467 = vperm.xlu2 %9039, %v430_v44   ;;  %573 = vperm.xlu1 %9038, %v540_v47   ;;  %v428_v49 = vsel %vm396_vm12, 1, %v9663_v0  ;;  %vm399_vm6 = vmand %vm303_vm5, %vm383_vm3  ;;  %vm321_vm5 = vcmp.eq.s32.totalorder %v10029_v62, 1  ;;  %v8886_v44 = vld [vmem:[#allocation3 + $0x1e4] sm:$0xf]  ;;  %v8448_v47 = vld [vmem:[#allocation3 + $0xc] sm:$0xf] }
 0x125   : > { %461 = vperm.xlu0 %9037, %v428_v49   ;;  %v431_v53 = vsel %vm399_vm6, 1, %v9663_v0  ;;  %vm504_vm13 = vmpackc.low %vm488_vm2, %vm488_vm2  ;;  %vm13777_vm6 = vcmp.eq.s32.totalorder %v9799_v9, 1  ;;  %v337_v1 = vsel %vm321_vm5, 1, %v9663_v0  ;;  %vm13779_vm2 = vcmp.eq.s32.totalorder %v9817_v13, 1  ;;  %v8893_v49 = vld [vmem:[#allocation3 + $0x30] sm:$0xf0] }
 0x126   : > { %v520_v21 = vsel %vm504_vm13, %v10014_v57, 0  ;;  %vm406_vm12 = vmand %vm13776_vm8, %vm374_vm9  ;;  %v338_v9 = vsel %vm322_vm7, 1, %v9663_v0  ;;  %vm13781_vm8 = vcmp.eq.s32.totalorder %v9862_v25, 1  ;;  %v8429_v48 = vor.u32 %v8886_v44, %v8426_v46  ;;  %v252_v44 = vld [vmem:[%s9937_s22 + $0x40] sm:$0xff] }
 0x127   : > { %v704_v60 = vunpack.c.l.b16 %v520_v21  ;;  %v534_v61 = vsel %vm406_vm12, 1, %v9663_v0  ;;  %vm409_vm9 = vmand %vm13777_vm6, %vm377_vm15  ;;  %vm13780_vm15 = vcmp.eq.s32.totalorder %v9839_v18, 1  ;;  %vm13782_vm6 = vcmp.eq.s32.totalorder %v9869_v27, 1  ;;  %v8902_v27 = vld [vmem:[#allocation3 + $0x120] sm:$0xf0]  ;;  %v251_v21 = vld [vmem:[%s9937_s22 + $0x38] sm:$0xff] }
 0x128   : > { %v453_v31 = vpop.permute.xlu1 %452  ;;  %873 = vmatmul.bf16.gmra.mxu0 %v9996_v50  ;;  %v537_v15 = vsel %vm409_vm9, 1, %v9663_v0  ;;  %vm413_vm13 = vmand %vm13780_vm15, %vm381_vm14  ;;  %v8533_v18 = vor.u32 %v8914_v10, %v8532_v8  ;;  %v8485_v28 = vor.u32 %v8902_v27, %v8484_v26  ;;  %8973 = vmatpush.bf16.msra.mxu1 %v8429_v48  ;;  %v8868_v26 = vld [vmem:[#allocation3 + $0x4] sm:$0xf]  ;;  %v8354_v27 = vld [vmem:[#allocation3 + $0x28] sm:$0xf0] }
 0x129   : > { %vm489_vm0 = vcmp.eq.s32.totalorder %v453_v31, 1  ;;  %vm411_vm12 = vmand %vm13781_vm8, %vm379_vm11  ;;  %v541_v13 = vsel %vm413_vm13, 1, %v9663_v0  ;;  %v8449_v31 = vor.u32 %v8893_v49, %v8448_v47  ;;  %910 = vmatpush.bf16.msrb.mxu0 %v8429_v48  ;;  %vm307_vm8 = vcmp.eq.s32.totalorder %v9954_v24, 0 }
 0x12a   : > { %vm505_vm1 = vmpackc.low %vm489_vm0, %vm489_vm0  ;;  %vm13778_vm0 = vcmp.ne.s32.totalorder %v9906_v36, 0  ;;  %v539_v36 = vsel %vm411_vm12, 1, %v9663_v0  ;;  %1255 = vmatpush.bf16.msra.mxu3 %v8533_v18  ;;  %vm304_vm12 = vcmp.eq.s32.totalorder %v10012_v56, 0  ;;  %v268_v48 = vpack.c.bf16 %v252_v44, %v252_v44  ;;  %v8913_v44 = vld [vmem:[#allocation3 + $0x240] sm:$0xf] }
 0x12b   : > { %v521_v7 = vsel %vm505_vm1, %v10008_v54, 0  ;;  %vm410_vm1 = vmand %vm13779_vm2, %vm13778_vm0 }
 0x12c   : > { %552 = vperm.xlu2 %9039, %v533_v55   ;;  %v705_v59 = vunpack.c.l.b16 %v521_v7  ;;  %v538_v33 = vsel %vm410_vm1, 1, %v9663_v0  ;;  %vm414_vm9 = vmand %vm13782_vm6, %vm382_vm10  ;;  %v250_v55 = vld [vmem:[%s9937_s22 + $0x30] sm:$0xff] }
 0x12d   : > { %470 = vperm.xlu0 %9037, %v431_v53   ;;  %v542_v25 = vsel %vm414_vm9, 1, %v9663_v0  ;;  %v8414_v53 = vld [vmem:[#allocation3 + $0x1b8] sm:$0xf0] }
 0x12e   : > { %v10031_v63 = vpack.c.b16 %v705_v59, %v704_v60  ;;  %1256 = vmatpush.bf16.msra.mxu3 %v8521_v2  ;;  %v8417_v7 = vor.u32 %v8883_v52, %v8414_v53  ;;  %v8880_v59 = vld [vmem:[#allocation3 + $0x144] sm:$0xf]  ;;  %v8402_v60 = vld [vmem:[#allocation3 + $0x168] sm:$0xf0]  ;;  %v254_v52 = vld [vmem:[%s9937_s22 + $0x50] sm:$0xff] }
 0x130   : > { %v456_v34 = vpop.permute.xlu1 %455  ;;  %8974 = vmatpush.bf16.msra.mxu1 %v8417_v7  ;;  %911 = vmatpush.bf16.msrb.mxu0 %v8417_v7 }
 0x131   : > { %vm490_vm14 = vcmp.eq.s32.totalorder %v456_v34, 1 }
 0x132   : > { %1257 = vmatpush.bf16.msra.mxu3 %v8509_v17  ;;  %vm506_vm11 = vmpackc.low %vm490_vm14, %vm490_vm14 }
 0x134   : > { %364 = vrot.lane.b32.xlu2 %v336_v58, %s9664_s14  ;;  %v10076_v58 = vpack.c.bf16 %v250_v55, %v250_v55  ;;  %v255_v55 = vld [vmem:[%s9937_s22 + $0x58] sm:$0xff] }
 0x135   : > { %555 = vperm.xlu0 %9037, %v534_v61   ;;  %v8405_v61 = vor.u32 %v8880_v59, %v8402_v60  ;;  %v8901_v59 = vld [vmem:[#allocation3 + $0x100] sm:$0xf] }
 0x136   : > { %1258 = vmatpush.bf16.msra.mxu3 %v8497_v22  ;;  %v8369_v22 = vor.u32 %v8871_v19, %v8366_v20 }
 0x137   : > { %8975 = vmatpush.bf16.msra.mxu1 %v8405_v61  ;;  %912 = vmatpush.bf16.msrb.mxu0 %v8405_v61  ;;  %v10123_v61 = vpack.c.bf16 %v255_v55, %v255_v55  ;;  %v8498_v55 = vld [vmem:[#allocation3 + $0x174] sm:$0xf0] }
 0x138   : > { %878 = vmatmul.bf16.gmra.mxu0 %v10031_v63 }
 0x13a   : > { %1259 = vmatpush.bf16.msra.mxu3 %v8485_v28  ;;  %v8357_v28 = vor.u32 %v8868_v26, %v8354_v27 }
 0x13c   : > { %564 = vperm.xlu2 %9039, %v537_v15  }
 0x13d   : > { %366 = vrot.lane.b32.xlu0 %v337_v1, %s9664_s14  ;;  %v10078_v1 = vpack.c.bf16 %v251_v21, %v251_v21  ;;  %v10112_v21 = vpack.c.bf16 %v254_v52, %v254_v52  ;;  %v8510_v52 = vld [vmem:[#allocation3 + $0x1c4] sm:$0xf0] }
 0x13e   : > { %1260 = vmatpush.bf16.msra.mxu3 %v8473_v30 }
 0x142   : > { %1261 = vmatpush.bf16.msra.mxu3 %v8461_v43 }
 0x144   : > { %567 = vperm.xlu2 %9039, %v538_v33   ;;  %v522_v33 = vsel %vm506_vm11, %v10076_v58, 0 }
 0x145   : > { %368 = vrot.lane.b32.xlu0 %v338_v9, %s9664_s14  ;;  %v706_v18 = vunpack.c.l.b16 %v522_v33 }
 0x146   : > { %1262 = vmatpush.bf16.msra.mxu3 %v8449_v31 }
 0x14c   : > { %576 = vperm.xlu2 %9039, %v541_v13   ;;  %v8877_v13 = vld [vmem:[#allocation3 + $0xf4] sm:$0xf] }
 0x14d   : > { %570 = vperm.xlu0 %9037, %v539_v36   ;;  %v8390_v36 = vld [vmem:[#allocation3 + $0x118] sm:$0xf0] }
 0x14e   : > { %v8393_v8 = vor.u32 %v8877_v13, %v8390_v36 }
 0x150   : > { %8976 = vmatpush.bf16.msra.mxu1 %v8393_v8  ;;  %913 = vmatpush.bf16.msrb.mxu0 %v8393_v8 }
 0x154   : > { %579 = vperm.xlu2 %9039, %v542_v25   ;;  %v8378_v25 = vld [vmem:[#allocation3 + $0xc8] sm:$0xf0] }
 0x155   : > { %v8381_v12 = vor.u32 %v8874_v11, %v8378_v25 }
 0x157   : > { %8977 = vmatpush.bf16.msra.mxu1 %v8381_v12  ;;  %914 = vmatpush.bf16.msrb.mxu0 %v8381_v12 }
 0x15b   : > { %8978 = vmatpush.bf16.msra.mxu1 %v8369_v22  ;;  %915 = vmatpush.bf16.msrb.mxu0 %v8369_v22 }
 0x15f   : > { %8979 = vmatpush.bf16.msra.mxu1 %v8357_v28  ;;  %916 = vmatpush.bf16.msrb.mxu0 %v8357_v28 }
 0x16e   : > { %v10072_v51 = vpop.permute.xlu1 %464 }
 0x176   : > { %v459_v15 = vpop.permute.xlu2 %458  ;;  %v550_v9 = vpop.permute.xlu1 %549 }
 0x177   : > { %vm491_vm10 = vcmp.eq.s32.totalorder %v459_v15, 1  ;;  %vm596_vm2 = vcmp.eq.s32.totalorder %v550_v9, 1 }
 0x178   : > { %vm507_vm0 = vmpackc.low %vm491_vm10, %vm491_vm10  ;;  %vm493_vm10 = vcmp.eq.s32.totalorder %v10072_v51, 1 }
 0x179   : > { %v523_v10 = vsel %vm507_vm0, %v10078_v1, 0  ;;  %vm612_vm1 = vmpackc.low %vm596_vm2, %vm596_vm2  ;;  %vm13783_vm2 = vcmp.eq.s32.totalorder %v9887_v32, 1 }
 0x17a   : > { %v707_v4 = vunpack.c.l.b16 %v523_v10  ;;  %v628_v30 = vsel %vm612_vm1, %v9942_v14, 0  ;;  %vm509_vm0 = vmpackc.low %vm493_vm10, %vm493_vm10 }
 0x17b   : > { %v1095_v35 = vunpack.c.l.b16 %v628_v30  ;;  %vm415_vm1 = vmand %vm13783_vm2, %vm383_vm3  ;;  %vm13788_vm2 = vcmp.eq.s32.totalorder %v9954_v24, 1 }
 0x17c   : > { %v10082_v2 = vpack.c.b16 %v707_v4, %v706_v18  ;;  %v543_v51 = vsel %vm415_vm1, 1, %v9663_v0 }
 0x17e   : > { %v468_v16 = vpop.permute.xlu2 %467  ;;  %v10084_v17 = vpop.permute.xlu1 %558  ;;  %883 = vmatmul.bf16.gmra.mxu0 %v10082_v2 }
 0x186   : > { %v553_v3 = vpop.permute.xlu2 %552  ;;  %v10087_v23 = vpop.permute.xlu1 %561 }
 0x187   : > { %vm597_vm15 = vcmp.eq.s32.totalorder %v553_v3, 1 }
 0x188   : > { %vm613_vm13 = vmpackc.low %vm597_vm15, %vm597_vm15 }
 0x189   : > { %v629_v34 = vsel %vm613_vm13, %v9944_v6, 0  ;;  %v253_v6 = vld [vmem:[%s9937_s22 + $0x48] sm:$0xff]  ;;  %vm494_vm13 = vcmp.eq.s32.totalorder %v468_v16, 1 }
 0x18a   : > { %v1096_v37 = vunpack.c.l.b16 %v629_v34  ;;  %v269_v46 = vpack.c.bf16 %v253_v6, %v253_v6 }
 0x18c   : > { %v10091_v39 = vpack.c.b16 %v1096_v37, %v1095_v35  ;;  %v525_v31 = vsel %vm509_vm0, %v269_v46, 0 }
 0x18d   : > { %v709_v7 = vunpack.c.l.b16 %v525_v31 }
 0x18e   : > { %v365_v41 = vpop.permute.xlu2 %364  ;;  %v371_v42 = vpop.permute.xlu1 %370  ;;  %1263 = vmatmul.bf16.vlgmr.msra.gmra.mxu3 %v10091_v39 }
 0x18f   : > { %vm384_vm6 = vcmp.ne.s32.totalorder %v365_v41, 0  ;;  %vm387_vm9 = vcmp.ne.s32.totalorder %v371_v42, 0 }
 0x190   : > { %vm403_vm14 = vmand %vm307_vm8, %vm387_vm9 }
 0x191   : > { %v435_v14 = vsel %vm403_vm14, 1, %v9663_v0  ;;  %vm400_vm11 = vmand %vm304_vm12, %vm384_vm6  ;;  %vm599_vm14 = vcmp.eq.s32.totalorder %v10084_v17, 1 }
 0x192   : > { %482 = vperm.xlu2 %9039, %v435_v14   ;;  %v432_v43 = vsel %vm400_vm11, 1, %v9663_v0  ;;  %vm10114_vm12 = vmpackc.low %vm494_vm13, %vm494_vm13 }
 0x193   : > { %473 = vperm.xlu0 %9037, %v432_v43   ;;  %vm416_vm3 = vmand %vm320_vm4, %vm384_vm6  ;;  %v526_v33 = vsel %vm10114_vm12, %v10112_v21, 0 }
 0x194   : > { %v544_v56 = vsel %vm416_vm3, 1, %v9663_v0  ;;  %v710_v36 = vunpack.c.l.b16 %v526_v33  ;;  %vm10134_vm10 = vmpackc.low %vm599_vm14, %vm599_vm14 }
 0x195   : > { %vm419_vm1 = vmand %vm13788_vm2, %vm387_vm9  ;;  %v631_v12 = vsel %vm10134_vm10, %v9974_v38, 0  ;;  %vm305_vm9 = vcmp.eq.s32.totalorder %v10029_v62, 0 }
 0x196   : > { %v10103_v47 = vpop.permute.xlu2 %564  ;;  %v574_v32 = vpop.permute.xlu1 %573  ;;  %v547_v16 = vsel %vm419_vm1, 1, %v9663_v0  ;;  %v1098_v22 = vunpack.c.l.b16 %v631_v12 }
 0x197   : > { %v462_v49 = vpop.permute.xlu0 %461  ;;  %vm604_vm4 = vcmp.eq.s32.totalorder %v574_v32, 1  ;;  %vm601_vm3 = vcmp.eq.s32.totalorder %v10103_v47, 1  ;;  %v8910_v47 = vld [vmem:[#allocation3 + $0x1f0] sm:$0xf] }
 0x198   : > { %vm492_vm15 = vcmp.eq.s32.totalorder %v462_v49, 1  ;;  %vm620_vm0 = vmpackc.low %vm604_vm4, %vm604_vm4  ;;  %vm600_vm4 = vcmp.eq.s32.totalorder %v10087_v23, 1  ;;  %v10182_v49 = vpop.f32.mrf.mxu0 }
 0x199   : > { %vm508_vm8 = vmpackc.low %vm492_vm15, %vm492_vm15  ;;  %v636_v11 = vsel %vm620_vm0, %v268_v48, 0  ;;  %vm306_vm0 = vcmp.eq.s32.totalorder %v10044_v5, 0 }
 0x19a   : > { %v524_v53 = vsel %vm508_vm8, %v268_v48, 0  ;;  %v1103_v19 = vunpack.c.l.b16 %v636_v11  ;;  %vm616_vm10 = vmpackc.low %vm600_vm4, %vm600_vm4  ;;  %v8522_v48 = vld [vmem:[#allocation3 + $0x214] sm:$0xf0] }
 0x19b   : > { %582 = vperm.xlu0 %9037, %v543_v51   ;;  %v708_v45 = vunpack.c.l.b16 %v524_v53  ;;  %v632_v34 = vsel %vm616_vm10, %v10014_v57, 0  ;;  %v8525_v31 = vor.u32 %v8910_v47, %v8522_v48  ;;  %v8904_v53 = vld [vmem:[#allocation3 + $0x150] sm:$0xf]  ;;  %v8909_v47 = vld [vmem:[#allocation3 + $0x1c8] sm:$0xf0] }
 0x19c   : > { %v1099_v23 = vunpack.c.l.b16 %v632_v34 }
 0x19d   : > { %v10125_v15 = vpack.c.b16 %v709_v7, %v708_v45  ;;  %v8501_v7 = vor.u32 %v8904_v53, %v8498_v55  ;;  %v8486_v45 = vld [vmem:[#allocation3 + $0x124] sm:$0xf0]  ;;  %v8906_v53 = vld [vmem:[#allocation3 + $0x178] sm:$0xf0] }
 0x19e   : > { %v10121_v60 = vpop.permute.xlu2 %567  ;;  %v8489_v32 = vor.u32 %v8901_v59, %v8486_v45  ;;  %v8396_v59 = vld [vmem:[#allocation3 + $0xf8] sm:$0xf]  ;;  %v8879_v45 = vld [vmem:[#allocation3 + $0x11c] sm:$0xf0] }
 0x19f   : > { %v471_v9 = vpop.permute.xlu0 %470  ;;  %888 = vmatmul.bf16.gmra.mxu0 %v10125_v15 }
 0x1a0   : > { %vm495_vm11 = vcmp.eq.s32.totalorder %v471_v9, 1  ;;  %v10184_v51 = vpop.f32.mrf.mxu0  ;;  %v8474_v9 = vld [vmem:[#allocation3 + $0xd4] sm:$0xf0] }
 0x1a1   : > { %vm511_vm6 = vmpackc.low %vm495_vm11, %vm495_vm11 }
 0x1a2   : > { %v527_v13 = vsel %vm511_vm6, %v10123_v61, 0  ;;  %vm617_vm6 = vmpackc.low %vm601_vm3, %vm601_vm3 }
 0x1a3   : > { %v711_v10 = vunpack.c.l.b16 %v527_v13  ;;  %585 = vperm.xlu0 %9037, %v544_v56   ;;  %v633_v3 = vsel %vm617_vm6, %v10008_v54, 0  ;;  %v8895_v13 = vld [vmem:[#allocation3 + $0x60] sm:$0xf] }
 0x1a4   : > { %v1100_v35 = vunpack.c.l.b16 %v633_v3 }
 0x1a5   : > { %v10138_v18 = vpack.c.b16 %v711_v10, %v710_v36  ;;  %v8462_v36 = vld [vmem:[#allocation3 + $0x84] sm:$0xf0]  ;;  %v8892_v10 = vld [vmem:[#allocation3 + $0x10] sm:$0xf] }
 0x1a6   : > { %v577_v4 = vpop.permute.xlu2 %576  ;;  %v10167_v42 = vpack.c.b16 %v1100_v35, %v1099_v23  ;;  %v8465_v8 = vor.u32 %v8895_v13, %v8462_v36  ;;  %v8384_v36 = vld [vmem:[#allocation3 + $0xa8] sm:$0xf] }
 0x1a7   : > { %vm605_vm15 = vcmp.eq.s32.totalorder %v577_v4, 1  ;;  %v556_v25 = vpop.permute.xlu0 %555  ;;  %942 = vmatmul.bf16.vlgmr.msra.gmra.mxu1 %v10138_v18  ;;  %v8450_v4 = vld [vmem:[#allocation3 + $0x34] sm:$0xf0] }
 0x1a8   : > { %vm621_vm13 = vmpackc.low %vm605_vm15, %vm605_vm15  ;;  %vm598_vm8 = vcmp.eq.s32.totalorder %v556_v25, 1  ;;  %v10188_v56 = vpop.f32.mrf.mxu0  ;;  %v8453_v11 = vor.u32 %v8892_v10, %v8450_v4  ;;  %v257_v10 = vld [vmem:[%s9937_s22 + $0x68] sm:$0xff] }
 0x1a9   : > { %v637_v17 = vsel %vm621_vm13, %v269_v46, 0  ;;  %vm614_vm12 = vmpackc.low %vm598_vm8, %vm598_vm8  ;;  %v8534_v46 = vld [vmem:[#allocation3 + $0x264] sm:$0xf0] }
 0x1aa   : > { %v1104_v20 = vunpack.c.l.b16 %v637_v17  ;;  %v630_v24 = vsel %vm614_vm12, %v9980_v40, 0 }
 0x1ab   : > { %v1097_v26 = vunpack.c.l.b16 %v630_v24  ;;  %594 = vperm.xlu0 %9037, %v547_v16  }
 0x1ac   : > { %v10149_v27 = vpack.c.b16 %v1104_v20, %v1103_v19 }
 0x1ad   : > { %v10151_v28 = vpack.c.b16 %v1098_v22, %v1097_v26  ;;  %v8444_v22 = vld [vmem:[#allocation3 + $0x238] sm:$0xf]  ;;  %v8891_v26 = vld [vmem:[#allocation3 + $0x25c] sm:$0xf0] }
 0x1ae   : > { %v580_v17 = vpop.permute.xlu2 %579  ;;  %v8445_v3 = vor.u32 %v8891_v26, %v8444_v22 }
 0x1af   : > { %v367_v38 = vpop.permute.xlu0 %366  ;;  %1268 = vmatmul.bf16.gmra.mxu3 %v10151_v28  ;;  %893 = vmatmul.bf16.gmra.mxu0 %v10138_v18 }
 0x1b0   : > { %vm385_vm14 = vcmp.ne.s32.totalorder %v367_v38, 0  ;;  %v10190_v25 = vpop.f32.mrf.mxu0  ;;  %v8540_v38 = vld [vmem:[#allocation3 + $0x244] sm:$0xf]  ;;  %958 = vmatpush.bf16.msrb.mxu2 %v8445_v3  ;;  %v8372_v3 = vld [vmem:[#allocation3 + $0x58] sm:$0xf] }
 0x1b1   : > { %vm401_vm11 = vmand %vm305_vm9, %vm385_vm14 }
 0x1b2   : > { %v433_v40 = vsel %vm401_vm11, 1, %v9663_v0  ;;  %vm417_vm13 = vmand %vm321_vm5, %vm385_vm14  ;;  %vm606_vm5 = vcmp.eq.s32.totalorder %v580_v17, 1  ;;  %v8900_v17 = vld [vmem:[#allocation3 + $0xd8] sm:$0xf0] }
 0x1b3   : > { %476 = vperm.xlu1 %9038, %v433_v40   ;;  %v545_v57 = vsel %vm417_vm13, 1, %v9663_v0  ;;  %vm622_vm3 = vmpackc.low %vm606_vm5, %vm606_vm5 }
 0x1b4   : > { %v638_v40 = vsel %vm622_vm3, %v10112_v21, 0 }
 0x1b7   : > { %v369_v30 = vpop.permute.xlu0 %368 }
 0x1b8   : > { %vm386_vm2 = vcmp.ne.s32.totalorder %v369_v30, 0  ;;  %v10193_v12 = vpop.f32.mrf.mxu0  ;;  %v8915_v30 = vld [vmem:[#allocation3 + $0x268] sm:$0xf0] }
 0x1b9   : > { %vm418_vm1 = vmand %vm322_vm7, %vm386_vm2  ;;  %vm602_vm7 = vcmp.eq.s32.totalorder %v10121_v60, 1  ;;  %v8898_v60 = vld [vmem:[#allocation3 + $0xb0] sm:$0xf]  ;;  %v8541_v34 = vor.u32 %v8915_v30, %v8540_v38  ;;  %v10222_v38 = vpack.c.bf16 %v257_v10, %v257_v10  ;;  %v8873_v30 = vld [vmem:[#allocation3 + $0x7c] sm:$0xf0] }
 0x1ba   : > { %v546_v37 = vsel %vm418_vm1, 1, %v9663_v0  ;;  %vm402_vm15 = vmand %vm306_vm0, %vm386_vm2  ;;  %v8477_v33 = vor.u32 %v8898_v60, %v8474_v9  ;;  %v8397_v60 = vor.u32 %v8879_v45, %v8396_v59  ;;  %v8903_v9 = vld [vmem:[#allocation3 + $0x128] sm:$0xf0] }
 0x1bb   : > { %591 = vperm.xlu2 %9039, %v546_v37   ;;  %v434_v41 = vsel %vm402_vm15, 1, %v9663_v0  ;;  %vm618_vm9 = vmpackc.low %vm602_vm7, %vm602_vm7  ;;  %v8537_v0 = vor.u32 %v8913_v44, %v8534_v46  ;;  %v1105_v37 = vunpack.c.l.b16 %v638_v40  ;;  %1353 = vmatpush.bf16.msrb.mxu1 %v8541_v34  ;;  %v8885_v44 = vld [vmem:[#allocation3 + $0x1bc] sm:$0xf0]  ;;  %v8516_v46 = vld [vmem:[#allocation3 + $0x1a4] sm:$0xf] }
 0x1bc   : > { %479 = vperm.xlu1 %9038, %v434_v41   ;;  %v634_v14 = vsel %vm618_vm9, %v10076_v58, 0  ;;  %v8432_v41 = vld [vmem:[#allocation3 + $0x1e8] sm:$0xf]  ;;  %v8517_v48 = vor.u32 %v8909_v47, %v8516_v46  ;;  %v8468_v34 = vld [vmem:[#allocation3 + $0x64] sm:$0xf] }
 0x1bd   : > { %v1101_v62 = vunpack.c.l.b16 %v634_v14  ;;  %1304 = vmatpush.bf16.msra.mxu0 %v8537_v0  ;;  %v8912_v14 = vld [vmem:[#allocation3 + $0x218] sm:$0xf0]  ;;  %v8456_v46 = vld [vmem:[#allocation3 + $0x14] sm:$0xf] }
 0x1bf   : > { %v571_v54 = vpop.permute.xlu0 %570  ;;  %1273 = vmatmul.bf16.gmra.mxu3 %v10167_v42  ;;  %917 = vmatmul.bf16.vlgmr.msrb.gmra.mxu0 %v9956_v29 }
 0x1c0   : > { %vm603_vm8 = vcmp.eq.s32.totalorder %v571_v54, 1  ;;  %v10196_v16 = vpop.f32.mrf.mxu0  ;;  %v8888_v54 = vld [vmem:[#allocation3 + $0x20c] sm:$0xf0] }
 0x1c1   : > { %vm619_vm12 = vmpackc.low %vm603_vm8, %vm603_vm8  ;;  %1305 = vmatpush.bf16.msra.mxu0 %v8525_v31  ;;  %v8408_v31 = vld [vmem:[#allocation3 + $0x148] sm:$0xf] }
 0x1c2   : > { %v635_v5 = vsel %vm619_vm12, %v10078_v1, 0  ;;  %v8907_v1 = vld [vmem:[#allocation3 + $0x1a0] sm:$0xf] }
 0x1c3   : > { %v1102_v6 = vunpack.c.l.b16 %v635_v5  ;;  %v8513_v58 = vor.u32 %v8907_v1, %v8510_v52  ;;  %v8433_v5 = vor.u32 %v8888_v54, %v8432_v41  ;;  %v8882_v1 = vld [vmem:[#allocation3 + $0x16c] sm:$0xf0] }
 0x1c4   : > { %588 = vperm.xlu1 %9038, %v545_v57   ;;  %v8528_v57 = vld [vmem:[#allocation3 + $0x1f4] sm:$0xf]  ;;  %v8409_v52 = vor.u32 %v8882_v1, %v8408_v31 }
 0x1c5   : > { %v10178_v43 = vpack.c.b16 %v1102_v6, %v1101_v62  ;;  %1306 = vmatpush.bf16.msra.mxu0 %v8513_v58  ;;  %v8529_v21 = vor.u32 %v8912_v14, %v8528_v57  ;;  %959 = vmatpush.bf16.msrb.mxu2 %v8433_v5  ;;  %v8504_v58 = vld [vmem:[#allocation3 + $0x154] sm:$0xf]  ;;  %v8360_v57 = vld [vmem:[#allocation3 + $0x8] sm:$0xf]  ;;  %v8870_v5 = vld [vmem:[#allocation3 + $0x2c] sm:$0xf0] }
 0x1c6   : > { %v8505_v55 = vor.u32 %v8906_v53, %v8504_v58  ;;  %v676_v14 = vld [vmem:[%s13656_s3] sm:$0x7] }
 0x1c7   : > { %1354 = vmatpush.bf16.msrb.mxu1 %v8529_v21  ;;  %v10233_v47 = vperm.slane %v676_v14, 1 }
 0x1c9   : > { %1307 = vmatpush.bf16.msra.mxu0 %v8501_v7 }
 0x1cb   : > { %1355 = vmatpush.bf16.msrb.mxu1 %v8517_v48 }
 0x1cd   : > { %1308 = vmatpush.bf16.msra.mxu0 %v8489_v32  ;;  %v8492_v32 = vld [vmem:[#allocation3 + $0x104] sm:$0xf] }
 0x1ce   : > { %v8493_v13 = vor.u32 %v8903_v9, %v8492_v32  ;;  %v258_v9 = vld [vmem:[%s9937_s22 + $0x70] sm:$0xff] }
 0x1cf   : > { %1278 = vmatmul.bf16.gmra.mxu3 %v10178_v43  ;;  %922 = vmatmul.bf16.gmra.mxu0 %v9996_v50 }
 0x1d0   : > { %1356 = vmatpush.bf16.msrb.mxu1 %v8505_v55 }
 0x1d1   : > { %1309 = vmatpush.bf16.msra.mxu0 %v8477_v33  ;;  %v256_v33 = vld [vmem:[%s9937_s22 + $0x60] sm:$0xff] }
 0x1d4   : > { %1357 = vmatpush.bf16.msrb.mxu1 %v8493_v13 }
 0x1d5   : > { %1310 = vmatpush.bf16.msra.mxu0 %v8465_v8  ;;  %v8876_v8 = vld [vmem:[#allocation3 + $0xcc] sm:$0xf0] }
 0x1d6   : > { %v8385_v4 = vor.u32 %v8876_v8, %v8384_v36  ;;  %v274_v36 = vpack.c.bf16 %v258_v9, %v258_v9 }
 0x1d9   : > { %1311 = vmatpush.bf16.msra.mxu0 %v8453_v11  ;;  %v8480_v11 = vld [vmem:[#allocation3 + $0xb4] sm:$0xf] }
 0x1da   : > { %v8481_v22 = vor.u32 %v8900_v17, %v8480_v11 }
 0x1dc   : > { %1358 = vmatpush.bf16.msrb.mxu1 %v8481_v22 }
 0x1df   : > { %1283 = vmatmul.bf16.gmra.mxu3 %v10149_v27  ;;  %927 = vmatmul.bf16.gmra.mxu0 %v10031_v63 }
 0x1ec   : > { %v483_v58 = vpop.permute.xlu2 %482 }
 0x1ed   : > { %vm499_vm1 = vcmp.eq.s32.totalorder %v483_v58, 1 }
 0x1ee   : > { %vm515_vm8 = vmpackc.low %vm499_vm1, %vm499_vm1  ;;  %vm4400_vm1 = vcmask 1044224  }
 0x1ef   : > { %932 = vmatmul.bf16.gmra.mxu0 %v10082_v2 }
 0x1fb   : > { %v10200_v20 = vpop.f32.mrf.mxu0 }
 0x1ff   : > { %937 = vmatmul.bf16.gmra.mxu0 %v10125_v15 }
 0x203   : > { %v10207_v62 = vpop.f32.mrf.mxu0 }
 0x205   : > { %v10198_v19 = vpop.permute.xlu0 %473 }
 0x206   : > { %vm496_vm4 = vcmp.eq.s32.totalorder %v10198_v19, 1 }
 0x207   : > { %vm10218_vm6 = vmpackc.low %vm496_vm4, %vm496_vm4  ;;  %vm1491_vm4 = vcmask 261120  }
 0x20d   : > { %v583_v24 = vpop.permute.xlu0 %582 }
 0x20e   : > { %vm607_vm14 = vcmp.eq.s32.totalorder %v583_v24, 1  ;;  %v10216_v24 = vpack.c.bf16 %v256_v33, %v256_v33 }
 0x20f   : > { %vm623_vm11 = vmpackc.low %vm607_vm14, %vm607_vm14  ;;  %1312 = vmatmul.bf16.vlgmr.msra.gmra.mxu0 %v10091_v39 }
 0x210   : > { %v639_v35 = vsel %vm623_vm11, %v10123_v61, 0  ;;  %v8420_v61 = vld [vmem:[#allocation3 + $0x198] sm:$0xf] }
 0x211   : > { %v1106_v23 = vunpack.c.l.b16 %v639_v35  ;;  %v8421_v0 = vor.u32 %v8885_v44, %v8420_v61  ;;  %v528_v35 = vsel %vm10218_vm6, %v10216_v24, 0  ;;  %v8361_v44 = vor.u32 %v8870_v5, %v8360_v57 }
 0x212   : > { %v712_v21 = vunpack.c.l.b16 %v528_v35  ;;  %vm1724_vm6 = vcmask 130048  }
 0x213   : > { %v10205_v6 = vpack.c.b16 %v1106_v23, %v1105_v37  ;;  %960 = vmatpush.bf16.msrb.mxu2 %v8421_v0  ;;  %v8373_v37 = vor.u32 %v8873_v30, %v8372_v3  ;;  %v8897_v23 = vld [vmem:[#allocation3 + $0x88] sm:$0xf0]  ;;  %v8894_v0 = vld [vmem:[#allocation3 + $0x38] sm:$0xf0] }
 0x214   : > { %v8469_v41 = vor.u32 %v8897_v23, %v8468_v34  ;;  %v8457_v48 = vor.u32 %v8894_v0, %v8456_v46 }
 0x215   : > { %1288 = vmatmul.bf16.gmra.mxu3 %v10205_v6  ;;  %v586_v55 = vpop.permute.xlu0 %585 }
 0x216   : > { %1359 = vmatpush.bf16.msrb.mxu1 %v8469_v41  ;;  %vm608_vm15 = vcmp.eq.s32.totalorder %v586_v55, 1  ;;  %v592_v41 = vpop.permute.xlu2 %591 }
 0x217   : > { %961 = vmatpush.bf16.msrb.mxu2 %v8409_v52  ;;  %v10237_v52 = vperm.slane %v676_v14, 0  ;;  %vm624_vm7 = vmpackc.low %vm608_vm15, %vm608_vm15  ;;  %vm610_vm3 = vcmp.eq.s32.totalorder %v592_v41, 1 }
 0x218   : > { %v640_v17 = vsel %vm624_vm7, %v10216_v24, 0  ;;  %vm626_vm11 = vmpackc.low %vm610_vm3, %vm610_vm3 }
 0x219   : > { %v1107_v3 = vunpack.c.l.b16 %v640_v17  ;;  %v870_v24 = vadd.f32 %v10182_v49, %v10237_v52  ;;  %v642_v14 = vsel %vm626_vm11, %v274_v36, 0  ;;  %v875_v46 = vadd.f32 %v10188_v56, %v10237_v52 }
 0x21a   : > { %1360 = vmatpush.bf16.msrb.mxu1 %v8457_v48 }
 0x21b   : > { %962 = vmatpush.bf16.msrb.mxu2 %v8397_v60  ;;  %v259_v60 = vld [vmem:[%s9937_s22 + $0x78] sm:$0xff] }
 0x21c   : > { %v10210_v7 = vpop.f32.mrf.mxu0  ;;  %v275_v13 = vpack.c.bf16 %v259_v60, %v259_v60 }
 0x21d   : > { %v595_v35 = vpop.permute.xlu0 %594 }
 0x21e   : > { %vm611_vm5 = vcmp.eq.s32.totalorder %v595_v35, 1 }
 0x21f   : > { %1317 = vmatmul.bf16.gmra.mxu0 %v10151_v28  ;;  %963 = vmatpush.bf16.msrb.mxu2 %v8385_v4  ;;  %v531_v4 = vsel %vm515_vm8, %v275_v13, 0  ;;  %vm627_vm14 = vmpackc.low %vm611_vm5, %vm611_vm5  ;;  %vm8058_vm8 = vcmask 1041409   ;;  %vm8062_vm5 = vcmask 1043459  }
 0x220   : > { %v715_v26 = vunpack.c.l.b16 %v531_v4  ;;  %v643_v57 = vsel %vm627_vm14, %v275_v13, 0  ;;  %vm8064_vm14 = vcmask 1044484  }
 0x223   : > { %964 = vmatpush.bf16.msrb.mxu2 %v8373_v37 }
 0x224   : > { %v10224_v19 = vpop.f32.mrf.mxu0  ;;  %v943_v31 = vpop.f32.mrf.mxu1 }
 0x225   : > { %v477_v40 = vpop.permute.xlu1 %476  ;;  %v944_v59 = vadd.f32 %v943_v31, %v10233_v47 }
 0x226   : > { %vm497_vm10 = vcmp.eq.s32.totalorder %v477_v40, 1 }
 0x227   : > { %vm513_vm0 = vmpackc.low %vm497_vm10, %vm497_vm10  ;;  %965 = vmatpush.bf16.msrb.mxu2 %v8361_v44  ;;  %vm2141_vm10 = vcmask 257024  }
 0x228   : > { %v529_v54 = vsel %vm513_vm0, %v10222_v38, 0  ;;  %vm2894_vm0 = vcmask 519424  }
 0x229   : > { %v713_v61 = vunpack.c.l.b16 %v529_v54 }
 0x22b   : > { %v10235_v1 = vpack.c.b16 %v713_v61, %v712_v21  ;;  %v1110_v21 = vunpack.c.l.b16 %v643_v57  ;;  %v1109_v61 = vunpack.c.l.b16 %v642_v14 }
 0x22c   : > { %v894_v53 = vpop.f32.mrf.mxu0 }
 0x22d   : > { %898 = vmatmul.bf16.vlgmr.msra.gmra.mxu2 %v10235_v1  ;;  %947 = vmatmul.bf16.gmra.mxu1 %v10235_v1  ;;  %v895_v45 = vadd.f32 %v894_v53, %v10237_v52  ;;  %v10267_v49 = vpack.c.b16 %v1110_v21, %v1109_v61  ;;  %v10346_v61 = vpop.f32.mrf.mxu1 }
 0x22e   : > { %v480_v32 = vpop.permute.xlu1 %479 }
 0x22f   : > { %vm498_vm2 = vcmp.eq.s32.totalorder %v480_v32, 1  ;;  %v10245_v33 = vpack.c.bf16 %v944_v59, %v895_v45  ;;  %1322 = vmatmul.bf16.gmra.mxu0 %v10167_v42  ;;  %v887_v45 = vadd.f32 %v10207_v62, %v10237_v52 }
 0x230   : > { %vm514_vm13 = vmpackc.low %vm498_vm2, %vm498_vm2  ;;  %vm3647_vm2 = vcmask 781824  }
 0x231   : > { %13791 = vst [vmem:[#allocation9_spill] sm:$0xff] %v10245_v33  ;;  %v530_v8 = vsel %vm514_vm13, %v274_v36, 0 }
 0x232   : > { %v714_v22 = vunpack.c.l.b16 %v530_v8 }
 0x234   : > { %v10248_v10 = vpop.f32.mrf.mxu0  ;;  %v10252_v34 = vpack.c.b16 %v715_v26, %v714_v22 }
 0x236   : > { %v589_v11 = vpop.permute.xlu1 %588 }
 0x237   : > { %vm609_vm12 = vcmp.eq.s32.totalorder %v589_v11, 1 }
 0x238   : > { %vm625_vm9 = vmpackc.low %vm609_vm12, %vm609_vm12  ;;  %vm8060_vm12 = vcmask 1042434  }
 0x239   : > { %v641_v40 = vsel %vm625_vm9, %v10222_v38, 0 }
 0x23a   : > { %v1108_v30 = vunpack.c.l.b16 %v641_v40 }
 0x23c   : > { %v10254_v37 = vpack.c.b16 %v1108_v30, %v1107_v3  ;;  %v918_v23 = vpop.f32.mrf.mxu0 }
 0x23d   : > { %903 = vmatmul.bf16.gmra.mxu2 %v10252_v34  ;;  %952 = vmatmul.bf16.gmra.mxu1 %v10252_v34  ;;  %v919_v54 = vadd.f32 %v918_v23, %v10233_v47 }
 0x23e   : > { %1293 = vmatmul.bf16.gmra.mxu3 %v10254_v37 }
 0x23f   : > { %v10262_v38 = vpack.c.bf16 %v919_v54, %v870_v24  ;;  %1327 = vmatmul.bf16.gmra.mxu0 %v10178_v43 }
 0x241   : > { %13792 = vst [vmem:[#allocation10_spill] sm:$0xff] %v10262_v38 }
 0x244   : > { %v10265_v5 = vpop.f32.mrf.mxu0 }
 0x24c   : > { %v923_v44 = vpop.f32.mrf.mxu0 }
 0x24d   : > { %966 = vmatmul.bf16.vlgmr.msrb.gmra.mxu2 %v9956_v29  ;;  %1361 = vmatmul.bf16.vlgmr.msrb.gmra.mxu1 %v10091_v39  ;;  %v924_v0 = vadd.f32 %v923_v44, %v10233_v47  ;;  %v880_v29 = vadd.f32 %v10193_v12, %v10237_v52  ;;  %v885_v12 = vadd.f32 %v10200_v20, %v10237_v52 }
 0x24e   : > { %1298 = vmatmul.bf16.gmra.mxu3 %v10267_v49  ;;  %v890_v20 = vadd.f32 %v10210_v7, %v10237_v52 }
 0x24f   : > { %v10275_v48 = vpack.c.bf16 %v924_v0, %v875_v46  ;;  %1332 = vmatmul.bf16.gmra.mxu0 %v10149_v27 }
 0x251   : > { %13793 = vst [vmem:[#allocation11_spill] sm:$0xff] %v10275_v48 }
 0x254   : > { %v10278_v31 = vpop.f32.mrf.mxu0 }
 0x25c   : > { %v928_v58 = vpop.f32.mrf.mxu0 }
 0x25d   : > { %971 = vmatmul.bf16.gmra.mxu2 %v9996_v50  ;;  %1366 = vmatmul.bf16.gmra.mxu1 %v10151_v28  ;;  %v929_v39 = vadd.f32 %v928_v58, %v10233_v47  ;;  %v1264_v28 = vpop.f32.mrf.mxu3 }
 0x25f   : > { %v10285_v56 = vpack.c.bf16 %v929_v39, %v880_v29  ;;  %1337 = vmatmul.bf16.gmra.mxu0 %v10205_v6  ;;  %v926_v39 = vadd.f32 %v10278_v31, %v10233_v47 }
 0x261   : > { %13794 = vst [vmem:[#allocation12_spill] sm:$0xff] %v10285_v56 }
 0x264   : > { %v10288_v53 = vpop.f32.mrf.mxu0 }
 0x265   : > { %v1266_v36 = vpop.f32.mrf.mxu3 }
 0x26c   : > { %v933_v55 = vpop.f32.mrf.mxu0 }
 0x26d   : > { %976 = vmatmul.bf16.gmra.mxu2 %v10031_v63  ;;  %1371 = vmatmul.bf16.gmra.mxu1 %v10167_v42  ;;  %v934_v50 = vadd.f32 %v933_v55, %v10233_v47  ;;  %v1269_v11 = vpop.f32.mrf.mxu3 }
 0x26f   : > { %1342 = vmatmul.bf16.gmra.mxu0 %v10254_v37  ;;  %v10298_v32 = vpack.c.bf16 %v934_v50, %v885_v12  ;;  %v877_v50 = vadd.f32 %v10190_v25, %v10237_v52 }
 0x271   : > { %13795 = vst [vmem:[#allocation13_spill] sm:$0xff] %v10298_v32  ;;  %v1570_v63 = vunpack.c.l.b16 %v10298_v32 }
 0x274   : > { %v935_v59 = vpop.f32.mrf.mxu0 }
 0x275   : > { %v936_v60 = vadd.f32 %v935_v59, %v10233_v47  ;;  %v1271_v22 = vpop.f32.mrf.mxu3 }
 0x277   : > { %v10301_v9 = vpack.c.bf16 %v936_v60, %v887_v45  ;;  %v10362_v45 = vpack.c.bf16 %v926_v39, %v877_v50 }
 0x279   : > { %13796 = vst [vmem:[#allocation14_spill] sm:$0xff] %v10301_v9  ;;  %v1571_v42 = vunpack.c.l.b16 %v10301_v9 }
 0x27a   : > { %13804 = vst [vmem:[#allocation22_spill] sm:$0xff] %v10362_v45 }
 0x27b   : > { %v10305_v13 = vpack.c.b16 %v1571_v42, %v1570_v63 }
 0x27c   : > { %v938_v8 = vpop.f32.mrf.mxu0 }
 0x27d   : > { %13797 = vst [vmem:[#allocation15_spill] sm:$0xff] %v10305_v13  ;;  %981 = vmatmul.bf16.gmra.mxu2 %v10082_v2  ;;  %1376 = vmatmul.bf16.gmra.mxu1 %v10178_v43  ;;  %v939_v62 = vadd.f32 %v938_v8, %v10233_v47  ;;  %v1071_v2 = vld [vmem:[%s13656_s3 + $0x3] sm:$0x7] }
 0x27e   : > { %2278 = vrot.lane.b32.xlu2 %v10305_v13, %s9665_s28  ;;  %v10324_v7 = vperm.slane %v1071_v2, 1  ;;  %v10326_v26 = vperm.slane %v1071_v2, 0 }
 0x27f   : > { %v10314_v4 = vpack.c.bf16 %v939_v62, %v890_v20  ;;  %1347 = vmatmul.bf16.gmra.mxu0 %v10267_v49  ;;  %v1514_v62 = vunpack.c.l.b16 %v10275_v48 }
 0x280   : > { %v1265_v3 = vadd.f32 %v1264_v28, %v10326_v26  ;;  %v1267_v35 = vadd.f32 %v1266_v36, %v10326_v26  ;;  %v1270_v0 = vadd.f32 %v1269_v11, %v10326_v26  ;;  %v1515_v36 = vunpack.c.l.b16 %v10362_v45 }
 0x281   : > { %13798 = vst [vmem:[#allocation16_spill] sm:$0xff] %v10314_v4 }
 0x282   : > { %v10374_v2 = vpack.c.b16 %v1515_v36, %v1514_v62  ;;  %v1485_v36 = vunpack.c.l.b16 %v10262_v38 }
 0x284   : > { %v10317_v17 = vpop.f32.mrf.mxu0 }
 0x28c   : > { %v1313_v43 = vpop.f32.mrf.mxu0 }
 0x28d   : > { %986 = vmatmul.bf16.gmra.mxu2 %v10125_v15  ;;  %1381 = vmatmul.bf16.gmra.mxu1 %v10149_v27  ;;  %v1314_v40 = vadd.f32 %v1313_v43, %v10324_v7  ;;  %v1274_v15 = vpop.f32.mrf.mxu3 }
 0x28e   : > { %v1275_v11 = vadd.f32 %v1274_v15, %v10326_v26 }
 0x28f   : > { %v10331_v23 = vpack.c.bf16 %v1314_v40, %v1265_v3 }
 0x291   : > { %13799 = vst [vmem:[#allocation17_spill] sm:$0xff] %v10331_v23  ;;  %v1488_v27 = vunpack.c.l.b16 %v10331_v23 }
 0x294   : > { %v1315_v30 = vpop.f32.mrf.mxu0 }
 0x295   : > { %v1316_v24 = vadd.f32 %v1315_v30, %v10324_v7  ;;  %v1276_v46 = vpop.f32.mrf.mxu3 }
 0x297   : > { %v10334_v41 = vpack.c.bf16 %v1316_v24, %v1267_v35 }
 0x299   : > { %13800 = vst [vmem:[#allocation18_spill] sm:$0xff] %v10334_v41  ;;  %v1489_v54 = vunpack.c.l.b16 %v10334_v41 }
 0x29b   : > { %v10338_v57 = vpack.c.b16 %v1489_v54, %v1488_v27 }
 0x29c   : > { %v1318_v14 = vpop.f32.mrf.mxu0 }
 0x29d   : > { %13801 = vst [vmem:[#allocation19_spill] sm:$0xff] %v10338_v57  ;;  %991 = vmatmul.bf16.gmra.mxu2 %v10138_v18  ;;  %1386 = vmatmul.bf16.gmra.mxu1 %v10205_v6  ;;  %v1496_v21 = vsel %vm1491_vm4, %v10338_v57, 0  ;;  %v1319_v44 = vadd.f32 %v1318_v14, %v10324_v7  ;;  %v1272_v18 = vadd.f32 %v1271_v22, %v10326_v26  ;;  %v1279_v63 = vpop.f32.mrf.mxu3 }
 0x29e   : > { %2208 = vrot.lane.b32.xlu2 %v10338_v57, %s9665_s28  ;;  %1505 = vmatpush.bf16.xpose.msra.mxu2 %v1496_v21 }
 0x29f   : > { %v10351_v29 = vpack.c.bf16 %v1319_v44, %v1270_v0  ;;  %v921_v44 = vadd.f32 %v10265_v5, %v10233_v47 }
 0x2a1   : > { %13802 = vst [vmem:[#allocation20_spill] sm:$0xff] %v10351_v29  ;;  %v1517_v12 = vunpack.c.l.b16 %v10351_v29 }
 0x2a4   : > { %v1320_v58 = vpop.f32.mrf.mxu0 }
 0x2a5   : > { %v1321_v6 = vadd.f32 %v1320_v58, %v10324_v7  ;;  %v1281_v3 = vpop.f32.mrf.mxu3 }
 0x2a7   : > { %v10356_v55 = vpack.c.bf16 %v1321_v6, %v1272_v18  ;;  %v872_v18 = vadd.f32 %v10184_v51, %v10237_v52 }
 0x2a9   : > { %13803 = vst [vmem:[#allocation21_spill] sm:$0xff] %v10356_v55  ;;  %v1518_v59 = vunpack.c.l.b16 %v10356_v55 }
 0x2aa   : > { %v948_v28 = vpop.f32.mrf.mxu1 }
 0x2ab   : > { %v10364_v60 = vpack.c.b16 %v1518_v59, %v1517_v12  ;;  %v949_v30 = vadd.f32 %v948_v28, %v10233_v47  ;;  %v10406_v28 = vpack.c.bf16 %v921_v44, %v872_v18 }
 0x2ac   : > { %v1323_v42 = vpop.f32.mrf.mxu0 }
 0x2ad   : > { %996 = vmatmul.bf16.gmra.mxu2 %v10235_v1  ;;  %1391 = vmatmul.bf16.gmra.mxu1 %v10254_v37  ;;  %v1524_v31 = vsel %vm1491_vm4, %v10364_v60, 0  ;;  %v1324_v8 = vadd.f32 %v1323_v42, %v10324_v7  ;;  %v1277_v37 = vadd.f32 %v1276_v46, %v10326_v26  ;;  %13809 = vst [vmem:[#allocation27_spill] sm:$0xff] %v10406_v28  ;;  %v1284_v42 = vpop.f32.mrf.mxu3 }
 0x2ae   : > { %1533 = vmatpush.bf16.xpose.msrb.mxu3 %v1524_v31 }
 0x2af   : > { %v10378_v22 = vpack.c.bf16 %v1324_v8, %v1275_v11  ;;  %v1282_v8 = vadd.f32 %v1281_v3, %v10326_v26 }
 0x2b0   : > { %v899_v25 = vpop.f32.mrf.mxu2 }
 0x2b1   : > { %v900_v1 = vadd.f32 %v899_v25, %v10237_v52  ;;  %13805 = vst [vmem:[#allocation23_spill] sm:$0xff] %v10378_v22  ;;  %v1545_v14 = vunpack.c.l.b16 %v10378_v22 }
 0x2b2   : > { %v950_v20 = vpop.f32.mrf.mxu1 }
 0x2b3   : > { %v10386_v15 = vpack.c.bf16 %v949_v30, %v900_v1  ;;  %v951_v27 = vadd.f32 %v950_v20, %v10233_v47 }
 0x2b4   : > { %v1325_v43 = vpop.f32.mrf.mxu0 }
 0x2b5   : > { %v1326_v40 = vadd.f32 %v1325_v43, %v10324_v7  ;;  %8543 = vmatmul.msk.bf16.vlgmr.msrb.gmra.mxu3 %vm1491_vm4, %v10374_v2  ;;  %13807 = vst [vmem:[#allocation25_spill] sm:$0xff] %v10386_v15  ;;  %v1654_v39 = vunpack.c.l.b16 %v10386_v15 }
 0x2b7   : > { %v10384_v35 = vpack.c.bf16 %v1326_v40, %v1277_v37 }
 0x2b8   : > { %v901_v24 = vpop.f32.mrf.mxu2 }
 0x2b9   : > { %13806 = vst [vmem:[#allocation24_spill] sm:$0xff] %v10384_v35  ;;  %v902_v54 = vadd.f32 %v901_v24, %v10237_v52  ;;  %v1546_v21 = vunpack.c.l.b16 %v10384_v35 }
 0x2ba   : > { %v953_v0 = vpop.f32.mrf.mxu1 }
 0x2bb   : > { %v10394_v46 = vpack.c.bf16 %v951_v27, %v902_v54  ;;  %v10396_v58 = vpack.c.b16 %v1546_v21, %v1545_v14  ;;  %v954_v1 = vadd.f32 %v953_v0, %v10233_v47  ;;  %v1286_v54 = vpop.f32.mrf.mxu3 }
 0x2bc   : > { %v1328_v6 = vpop.f32.mrf.mxu0 }
 0x2bd   : > { %13808 = vst [vmem:[#allocation26_spill] sm:$0xff] %v10394_v46  ;;  %1001 = vmatmul.bf16.gmra.mxu2 %v10252_v34  ;;  %1396 = vmatmul.bf16.gmra.mxu1 %v10267_v49  ;;  %v1655_v50 = vunpack.c.l.b16 %v10394_v46  ;;  %v1552_v5 = vsel %vm1491_vm4, %v10396_v58, 0  ;;  %v1329_v51 = vadd.f32 %v1328_v6, %v10324_v7  ;;  %v1486_v34 = vunpack.c.l.b16 %v10406_v28 }
 0x2be   : > { %1561 = vmatpush.bf16.xpose.msrb.mxu2 %v1552_v5  ;;  %v1280_v49 = vadd.f32 %v1279_v63, %v10326_v26 }
 0x2bf   : > { %v10408_v12 = vpack.c.b16 %v1655_v50, %v1654_v39  ;;  %v10422_v43 = vpack.c.b16 %v1486_v34, %v1485_v36  ;;  %v931_v39 = vadd.f32 %v10288_v53, %v10233_v47  ;;  %v1287_v53 = vadd.f32 %v1286_v54, %v10326_v26 }
 0x2c0   : > { %v904_v59 = vpop.f32.mrf.mxu2  ;;  %v10418_v20 = vpack.c.bf16 %v1329_v51, %v1280_v49 }
 0x2c1   : > { %2350 = vrot.lane.b32.xlu1 %v10408_v12, %s9665_s28  ;;  %v905_v31 = vadd.f32 %v904_v59, %v10237_v52  ;;  %13811 = vst [vmem:[#allocation29_spill] sm:$0xff] %v10422_v43  ;;  %v882_v59 = vadd.f32 %v10196_v16, %v10237_v52 }
 0x2c2   : > { %13810 = vst [vmem:[#allocation28_spill] sm:$0xff] %v10418_v20  ;;  %v955_v62 = vpop.f32.mrf.mxu1  ;;  %v1573_v3 = vunpack.c.l.b16 %v10418_v20 }
 0x2c3   : > { %v10426_v63 = vpack.c.bf16 %v954_v1, %v905_v31  ;;  %v956_v30 = vadd.f32 %v955_v62, %v10233_v47  ;;  %v10457_v34 = vpack.c.bf16 %v931_v39, %v882_v59  ;;  %v1289_v49 = vpop.f32.mrf.mxu3  ;;  %v1285_v31 = vadd.f32 %v1284_v42, %v10326_v26 }
 0x2c4   : > { %v1330_v25 = vpop.f32.mrf.mxu0  ;;  %v1542_v42 = vunpack.c.l.b16 %v10285_v56  ;;  %v1290_v59 = vadd.f32 %v1289_v49, %v10326_v26  ;;  %v946_v49 = vadd.f32 %v10346_v61, %v10233_v47 }
 0x2c5   : > { %v1331_v11 = vadd.f32 %v1330_v25, %v10324_v7  ;;  %13813 = vst [vmem:[#allocation31_spill] sm:$0xff] %v10426_v63  ;;  %v1682_v0 = vunpack.c.l.b16 %v10426_v63  ;;  %v1543_v16 = vunpack.c.l.b16 %v10457_v34 }
 0x2c6   : > { %13818 = vst [vmem:[#allocation36_spill] sm:$0xff] %v10457_v34 }
 0x2c7   : > { %v10424_v37 = vpack.c.bf16 %v1331_v11, %v1282_v8 }
 0x2c8   : > { %v906_v40 = vpop.f32.mrf.mxu2 }
 0x2c9   : > { %13812 = vst [vmem:[#allocation30_spill] sm:$0xff] %v10424_v37  ;;  %v907_v24 = vadd.f32 %v906_v40, %v10237_v52  ;;  %2206 = vrot.lane.b32.xlu1 %v10422_v43, %s9665_s28  ;;  %v1574_v27 = vunpack.c.l.b16 %v10424_v37 }
 0x2cb   : > { %v10434_v14 = vpack.c.bf16 %v956_v30, %v907_v24  ;;  %v10436_v21 = vpack.c.b16 %v1574_v27, %v1573_v3  ;;  %v10476_v30 = vpack.c.b16 %v1543_v16, %v1542_v42  ;;  %v1291_v3 = vpop.f32.mrf.mxu3 }
 0x2cc   : > { %v1333_v44 = vpop.f32.mrf.mxu0 }
 0x2cd   : > { %13814 = vst [vmem:[#allocation32_spill] sm:$0xff] %v10434_v14  ;;  %8542 = vmatmul.msk.bf16.vlgmr.msra.gmra.mxu2 %vm1491_vm4, %v10422_v43  ;;  %v1683_v18 = vunpack.c.l.b16 %v10434_v14  ;;  %2280 = vrot.lane.b32.xlu2 %v10436_v21, %s9665_s28  ;;  %v1580_v6 = vsel %vm1491_vm4, %v10436_v21, 0  ;;  %v1334_v51 = vadd.f32 %v1333_v44, %v10324_v7  ;;  %v941_v44 = vadd.f32 %v10317_v17, %v10233_v47 }
 0x2ce   : > { %13815 = vst [vmem:[#allocation33_spill] sm:$0xff] %v10436_v21  ;;  %1589 = vmatpush.bf16.xpose.msra.mxu3 %v1580_v6 }
 0x2cf   : > { %v10448_v50 = vpack.c.b16 %v1683_v18, %v1682_v0  ;;  %v10461_v36 = vpack.c.bf16 %v1334_v51, %v1285_v31  ;;  %v892_v18 = vadd.f32 %v10224_v19, %v10237_v52  ;;  %v897_v19 = vadd.f32 %v10248_v10, %v10237_v52 }
 0x2d0   : > { %v10450_v5 = vpop.f32.mrf.mxu2 }
 0x2d1   : > { %13816 = vst [vmem:[#allocation34_spill] sm:$0xff] %v10448_v50  ;;  %2374 = vrot.lane.b32.xlu0 %v10448_v50, %s9665_s28  ;;  %v1601_v1 = vunpack.c.l.b16 %v10461_v36  ;;  %v10493_v39 = vpack.c.bf16 %v941_v44, %v892_v18 }
 0x2d2   : > { %13817 = vst [vmem:[#allocation35_spill] sm:$0xff] %v10450_v5  ;;  %v1471_v5 = vrot.slane %v10378_v22, 4 }
 0x2d3   : > { %13823 = vst [vmem:[#allocation41_spill] sm:$0xff] %v10493_v39  ;;  %v1294_v51 = vpop.f32.mrf.mxu3 }
 0x2d4   : > { %v1335_v25 = vpop.f32.mrf.mxu0 }
 0x2d5   : > { %v1336_v8 = vadd.f32 %v1335_v25, %v10324_v7  ;;  %8545 = vmatmul.msk.bf16.vlgmr.msra.gmra.mxu3 %vm1491_vm4, %v10305_v13  ;;  %v1292_v25 = vadd.f32 %v1291_v3, %v10326_v26 }
 0x2d7   : > { %v10467_v62 = vpack.c.bf16 %v1336_v8, %v1287_v53  ;;  %v1599_v8 = vunpack.c.l.b16 %v10493_v39 }
 0x2d8   : > { %v10469_v11 = vpop.f32.mrf.mxu2 }
 0x2d9   : > { %13819 = vst [vmem:[#allocation37_spill] sm:$0xff] %v10467_v62  ;;  %2230 = vrot.lane.b32.xlu0 %v10374_v2, %s9665_s28  ;;  %v1602_v40 = vunpack.c.l.b16 %v10467_v62 }
 0x2da   : > { %13820 = vst [vmem:[#allocation38_spill] sm:$0xff] %v10469_v11 }
 0x2db   : > { %v10478_v24 = vpack.c.b16 %v1602_v40, %v1601_v1  ;;  %v1598_v1 = vunpack.c.l.b16 %v10314_v4  ;;  %v1296_v61 = vpop.f32.mrf.mxu3 }
 0x2dc   : > { %v1338_v27 = vpop.f32.mrf.mxu0 }
 0x2dd   : > { %13821 = vst [vmem:[#allocation39_spill] sm:$0xff] %v10478_v24  ;;  %8544 = vmatmul.msk.bf16.vlgmr.msrb.gmra.mxu2 %vm1491_vm4, %v10476_v30  ;;  %v1608_v54 = vsel %vm1491_vm4, %v10478_v24, 0  ;;  %v1339_v6 = vadd.f32 %v1338_v27, %v10324_v7  ;;  %v10514_v27 = vpack.c.b16 %v1599_v8, %v1598_v1  ;;  %v1297_v8 = vadd.f32 %v1296_v61, %v10326_v26 }
 0x2de   : > { %1617 = vmatpush.bf16.xpose.msra.mxu2 %v1608_v54  ;;  %v10516_v54 = vpack.c.bf16 %v946_v49, %v897_v19  ;;  %v1468_v49 = vrot.slane %v10334_v41, 4 }
 0x2df   : > { %v10497_v17 = vpack.c.bf16 %v1339_v6, %v1290_v59  ;;  %13827 = vst [vmem:[#allocation45_spill] sm:$0xff] %v10514_v27  ;;  %v1626_v59 = vunpack.c.l.b16 %v10245_v33 }
 0x2e0   : > { %v10486_v0 = vpop.f32.mrf.mxu2  ;;  %13828 = vst [vmem:[#allocation46_spill] sm:$0xff] %v10516_v54  ;;  %v1627_v18 = vunpack.c.l.b16 %v10516_v54 }
 0x2e1   : > { %13822 = vst [vmem:[#allocation40_spill] sm:$0xff] %v10486_v0  ;;  %2254 = vrot.lane.b32.xlu0 %v10476_v30, %s9665_s28  ;;  %v1629_v40 = vunpack.c.l.b16 %v10497_v17 }
 0x2e2   : > { %13824 = vst [vmem:[#allocation42_spill] sm:$0xff] %v10497_v17 }
 0x2e4   : > { %v1340_v31 = vpop.f32.mrf.mxu0 }
 0x2e5   : > { %v1341_v53 = vadd.f32 %v1340_v31, %v10324_v7  ;;  %v1295_v31 = vadd.f32 %v1294_v51, %v10326_v26  ;;  %v1467_v51 = vrot.slane %v10331_v23, 4 }
 0x2e7   : > { %v10503_v16 = vpack.c.bf16 %v1341_v53, %v1292_v25  ;;  %v10534_v25 = vpack.c.b16 %v1627_v18, %v1626_v59  ;;  %v1923_v18 = vunpack.c.l.b16 %v1468_v49  ;;  %v1922_v59 = vunpack.c.l.b16 %v1467_v51 }
 0x2e8   : > { %v10505_v42 = vpop.f32.mrf.mxu2 }
 0x2e9   : > { %13825 = vst [vmem:[#allocation43_spill] sm:$0xff] %v10503_v16  ;;  %2232 = vrot.lane.b32.xlu0 %v10364_v60, %s9665_s28  ;;  %v1630_v3 = vunpack.c.l.b16 %v10503_v16 }
 0x2ea   : > { %13826 = vst [vmem:[#allocation44_spill] sm:$0xff] %v10505_v42 }
 0x2eb   : > { %v10518_v52 = vpack.c.b16 %v1630_v3, %v1629_v40 }
 0x2ec   : > { %v1343_v10 = vpop.f32.mrf.mxu0 }
 0x2ed   : > { %8546 = vmatmul.msk.bf16.vlgmr.msra.gmra.mxu2 %vm1491_vm4, %v10514_v27  ;;  %2328 = vrot.lane.b32.xlu1 %v10518_v52, %s9665_s28  ;;  %v1636_v47 = vsel %vm1491_vm4, %v10518_v52, 0  ;;  %v1344_v6 = vadd.f32 %v1343_v10, %v10324_v7  ;;  %v1299_v10 = vpop.f32.mrf.mxu3 }
 0x2ee   : > { %1645 = vmatpush.bf16.xpose.msrb.mxu3 %v1636_v47  ;;  %v1300_v54 = vadd.f32 %v1299_v10, %v10326_v26 }
 0x2ef   : > { %v10537_v19 = vpack.c.bf16 %v1344_v6, %v1295_v31 }
 0x2f0   : > { %v10526_v44 = vpop.f32.mrf.mxu2 }
 0x2f1   : > { %13829 = vst [vmem:[#allocation47_spill] sm:$0xff] %v10526_v44  ;;  %2256 = vrot.lane.b32.xlu0 %v10396_v58, %s9665_s28  ;;  %v1657_v47 = vunpack.c.l.b16 %v10537_v19 }
 0x2f2   : > { %13830 = vst [vmem:[#allocation48_spill] sm:$0xff] %v10537_v19 }
 0x2f4   : > { %v1345_v53 = vpop.f32.mrf.mxu0 }
 0x2f5   : > { %v1346_v1 = vadd.f32 %v1345_v53, %v10324_v7  ;;  %8547 = vmatmul.msk.bf16.vlgmr.msrb.gmra.mxu3 %vm1491_vm4, %v10534_v25  ;;  %v1472_v53 = vrot.slane %v10384_v35, 4  ;;  %v1301_v51 = vpop.f32.mrf.mxu3 }
 0x2f6   : > { %v1302_v56 = vadd.f32 %v1301_v51, %v10326_v26 }
 0x2f7   : > { %v10543_v40 = vpack.c.bf16 %v1346_v1, %v1297_v8  ;;  %v1924_v1 = vpack.c.b16 %v1923_v18, %v1922_v59  ;;  %v1975_v49 = vunpack.c.l.b16 %v1472_v53  ;;  %v1470_v59 = vrot.slane %v10356_v55, 4 }
 0x2f8   : > { %v10545_v3 = vpop.f32.mrf.mxu2 }
 0x2f9   : > { %13831 = vst [vmem:[#allocation49_spill] sm:$0xff] %v10543_v40  ;;  %v1658_v61 = vunpack.c.l.b16 %v10543_v40 }
 0x2fa   : > { %13832 = vst [vmem:[#allocation50_spill] sm:$0xff] %v10545_v3 }
 0x2fb   : > { %v10550_v6 = vpack.c.b16 %v1658_v61, %v1657_v47  ;;  %v1974_v61 = vunpack.c.l.b16 %v1471_v5  ;;  %v1469_v5 = vrot.slane %v10351_v29, 4 }
 0x2fc   : > { %v1348_v31 = vpop.f32.mrf.mxu0 }
 0x2fd   : > { %2352 = vrot.lane.b32.xlu1 %v10550_v6, %s9665_s28  ;;  %v1664_v8 = vsel %vm1491_vm4, %v10550_v6, 0  ;;  %v1349_v47 = vadd.f32 %v1348_v31, %v10324_v7  ;;  %v1976_v3 = vpack.c.b16 %v1975_v49, %v1974_v61 }
 0x2fe   : > { %1673 = vmatpush.bf16.xpose.msrb.mxu2 %v1664_v8 }
 0x2ff   : > { %v10563_v63 = vpack.c.bf16 %v1349_v47, %v1300_v54  ;;  %v1949_v54 = vunpack.c.l.b16 %v1470_v59 }
 0x300   : > { %v10558_v11 = vpop.f32.mrf.mxu2 }
 0x301   : > { %13833 = vst [vmem:[#allocation51_spill] sm:$0xff] %v10558_v11  ;;  %v1685_v10 = vunpack.c.l.b16 %v10563_v63 }
 0x302   : > { %13834 = vst [vmem:[#allocation52_spill] sm:$0xff] %v10563_v63 }
 0x304   : > { %v1350_v44 = vpop.f32.mrf.mxu0 }
 0x305   : > { %v1351_v18 = vadd.f32 %v1350_v44, %v10324_v7  ;;  %8548 = vmatmul.msk.bf16.vlgmr.msrb.gmra.mxu2 %vm1491_vm4, %v10408_v12  ;;  %v1948_v7 = vunpack.c.l.b16 %v1469_v5  ;;  %v1474_v44 = vrot.slane %v10424_v37, 4 }
 0x306   : > { %1936 = vmatpush.bf16.msra.mxu2 %v1924_v1  ;;  %v1473_v1 = vrot.slane %v10418_v20, 4 }
 0x307   : > { %v10569_v53 = vpack.c.bf16 %v1351_v18, %v1302_v56  ;;  %v2001_v47 = vunpack.c.l.b16 %v1474_v44 }
 0x308   : > { %v10571_v31 = vpop.f32.mrf.mxu2  ;;  %v2000_v51 = vunpack.c.l.b16 %v1473_v1 }
 0x309   : > { %13835 = vst [vmem:[#allocation53_spill] sm:$0xff] %v10569_v53  ;;  %v1686_v26 = vunpack.c.l.b16 %v10569_v53 }
 0x30a   : > { %1988 = vmatpush.bf16.msrb.mxu2 %v1976_v3  ;;  %13836 = vst [vmem:[#allocation54_spill] sm:$0xff] %v10571_v31  ;;  %v1950_v3 = vpack.c.b16 %v1949_v54, %v1948_v7  ;;  %v2002_v61 = vpack.c.b16 %v2001_v47, %v2000_v51 }
 0x30b   : > { %v10576_v8 = vpack.c.b16 %v1686_v26, %v1685_v10 }
 0x30d   : > { %2376 = vrot.lane.b32.xlu2 %v10576_v8, %s9665_s28  ;;  %v1692_v56 = vsel %vm1491_vm4, %v10576_v8, 0 }
 0x30e   : > { %1701 = vmatpush.bf16.xpose.msra.mxu3 %v1692_v56 }
 0x310   : > { %v10584_v49 = vpop.f32.mrf.mxu2 }
 0x311   : > { %13837 = vst [vmem:[#allocation55_spill] sm:$0xff] %v10584_v49 }
 0x315   : > { %8549 = vmatmul.msk.bf16.vlgmr.msra.gmra.mxu3 %vm1491_vm4, %v10448_v50 }
 0x316   : > { %1962 = vmatpush.bf16.msrb.mxu3 %v1950_v3 }
 0x318   : > { %v10588_v18 = vpop.f32.mrf.mxu2 }
 0x319   : > { %13838 = vst [vmem:[#allocation56_spill] sm:$0xff] %v10588_v18 }
 0x31a   : > { %2014 = vmatpush.bf16.msra.mxu3 %v2002_v61 }
 0x320   : > { %v10590_v59 = vpop.f32.mrf.mxu2 }
 0x321   : > { %13839 = vst [vmem:[#allocation57_spill] sm:$0xff] %v10590_v59 }
 0x328   : > { %v10592_v5 = vpop.f32.mrf.mxu2 }
 0x329   : > { %13840 = vst [vmem:[#allocation58_spill] sm:$0xff] %v10592_v5 }
 0x330   : > { %v10594_v10 = vpop.f32.mrf.mxu2 }
 0x331   : > { %13841 = vst [vmem:[#allocation59_spill] sm:$0xff] %v10594_v10 }
 0x333   : > { %v10608_v51 = vpop.permute.xlu1 %2350 }
 0x338   : > { %v10596_v26 = vpop.f32.mrf.mxu2  ;;  %v1535_v54 = vpop.f32.mrf.mxu3 }
 0x339   : > { %13842 = vst [vmem:[#allocation60_spill] sm:$0xff] %v10596_v26  ;;  %v10598_v7 = vmul.f32 0.17677669, %v1535_v54 }
 0x33b   : > { %v1731_v44 = vsel %vm1724_vm6, %v10598_v7, -inf }
 0x33c   : > { %1732 = vmax.xlane.f32.xlu1 %v1731_v44  ;;  %v10616_v44 = vpop.permute.xlu1 %2206 }
 0x340   : > { %v10602_v56 = vpop.f32.mrf.mxu2  ;;  %v1537_v26 = vpop.f32.mrf.mxu3 }
 0x341   : > { %13843 = vst [vmem:[#allocation61_spill] sm:$0xff] %v10602_v56  ;;  %v10623_v14 = vmul.f32 0.17677669, %v1537_v26 }
 0x343   : > { %v10604_v3 = vpop.permute.xlu0 %2374 }
 0x348   : > { %v10606_v1 = vpop.f32.mrf.mxu2 }
 0x349   : > { %13844 = vst [vmem:[#allocation62_spill] sm:$0xff] %v10606_v1 }
 0x34b   : > { %v2231_v47 = vpop.permute.xlu0 %2230 }
 0x350   : > { %v1507_v61 = vpop.f32.mrf.mxu2 }
 0x351   : > { %v10610_v10 = vmul.f32 0.17677669, %v1507_v61 }
 0x353   : > { %v10612_v11 = vpop.permute.xlu0 %2254  ;;  %v1725_v54 = vsel %vm1724_vm6, %v10610_v10, -inf }
 0x354   : > { %1726 = vmax.xlane.f32.xlu0 %v1725_v54 }
 0x358   : > { %v1509_v56 = vpop.f32.mrf.mxu2  ;;  %v1591_v59 = vpop.f32.mrf.mxu3 }
 0x359   : > { %v10618_v31 = vmul.f32 0.17677669, %v1509_v56  ;;  %v1734_v56 = vsel %vm1724_vm6, %v10623_v14, -inf }
 0x35b   : > { %v2233_v1 = vpop.permute.xlu0 %2232  ;;  %v1728_v5 = vsel %vm1724_vm6, %v10618_v31, -inf }
 0x35c   : > { %v2238_v61 = vsel %vm1491_vm4, %v2233_v1, 0  ;;  %1729 = vmax.xlane.f32.xlu2 %v1728_v5 }
 0x35d   : > { %2247 = vmatpush.bf16.xpose.msra.mxu1 %v2238_v61  ;;  %v10641_v61 = vpop.f32.mrf.mxu1 }
 0x35e   : > { %13845 = vst [vmem:[#allocation63_spill] sm:$0xff] %v10641_v61 }
 0x35f   : > { %v2329_v39 = vpop.permute.xlu1 %2328 }
 0x360   : > { %v1563_v48 = vpop.f32.mrf.mxu2  ;;  %v2334_v54 = vsel %vm1491_vm4, %v2329_v39, 0  ;;  %v1593_v34 = vpop.f32.mrf.mxu3 }
 0x361   : > { %v10626_v33 = vmul.f32 0.17677669, %v1563_v48  ;;  %v10633_v5 = vmul.f32 0.17677669, %v1593_v34 }
 0x363   : > { %v1737_v4 = vsel %vm1724_vm6, %v10626_v33, -inf  ;;  %v1746_v48 = vsel %vm1724_vm6, %v10633_v5, -inf  ;;  %v10708_v28 = vpop.permute.xlu0 %2256 }
 0x364   : > { %8559 = vmatmul.msk.bf16.vlgmr.msra.gmra.mxu1 %vm1491_vm4, %v2231_v47  ;;  %1735 = vmax.xlane.f32.xlu2 %v1734_v56 }
 0x365   : > { %2343 = vmatpush.bf16.xpose.msrb.mxu1 %v2334_v54  ;;  %1738 = vmax.xlane.f32.xlu0 %v1737_v4  ;;  %v10643_v54 = vmul.f32 0.17677669, %v1591_v59  ;;  %v10649_v56 = vpop.f32.mrf.mxu1 }
 0x366   : > { %13846 = vst [vmem:[#allocation64_spill] sm:$0xff] %v10649_v56 }
 0x367   : > { %v1743_v4 = vsel %vm1724_vm6, %v10643_v54, -inf }
 0x368   : > { %v1565_v26 = vpop.f32.mrf.mxu2 }
 0x369   : > { %v10635_v1 = vmul.f32 0.17677669, %v1565_v26 }
 0x36b   : > { %v1740_v39 = vsel %vm1724_vm6, %v10635_v1, -inf }
 0x36c   : > { %1747 = vmax.xlane.f32.xlu2 %v1746_v48  ;;  %1741 = vmax.xlane.f32.xlu1 %v1740_v39 }
 0x36f   : > { %v10689_v56 = vpop.permute.xlu1 %2352 }
 0x370   : > { %v1619_v47 = vpop.f32.mrf.mxu2 }
 0x371   : > { %v10647_v34 = vmul.f32 0.17677669, %v1619_v47 }
 0x373   : > { %v1749_v48 = vsel %vm1724_vm6, %v10647_v34, -inf }
 0x374   : > { %1744 = vmax.xlane.f32.xlu1 %v1743_v4  ;;  %v10659_v4 = vpop.f32.mrf.mxu1 }
 0x375   : > { %13847 = vst [vmem:[#allocation65_spill] sm:$0xff] %v10659_v4 }
 0x378   : > { %v1621_v26 = vpop.f32.mrf.mxu2  ;;  %v1647_v49 = vpop.f32.mrf.mxu3 }
 0x379   : > { %v10651_v45 = vmul.f32 0.17677669, %v1621_v26  ;;  %v10657_v39 = vmul.f32 0.17677669, %v1647_v49 }
 0x37b   : > { %v1752_v59 = vsel %vm1724_vm6, %v10651_v45, -inf  ;;  %v1755_v26 = vsel %vm1724_vm6, %v10657_v39, -inf }
 0x37c   : > { %1750 = vmax.xlane.f32.xlu1 %v1749_v48  ;;  %1753 = vmax.xlane.f32.xlu2 %v1752_v59  ;;  %v10669_v48 = vpop.f32.mrf.mxu1 }
 0x37d   : > { %13848 = vst [vmem:[#allocation66_spill] sm:$0xff] %v10669_v48 }
 0x380   : > { %v1649_v18 = vpop.f32.mrf.mxu3 }
 0x381   : > { %v10661_v47 = vmul.f32 0.17677669, %v1649_v18 }
 0x383   : > { %v1758_v0 = vsel %vm1724_vm6, %v10661_v47, -inf }
 0x384   : > { %1756 = vmax.xlane.f32.xlu2 %v1755_v26  ;;  %1759 = vmax.xlane.f32.xlu0 %v1758_v0  ;;  %v10677_v46 = vpop.f32.mrf.mxu1 }
 0x385   : > { %13849 = vst [vmem:[#allocation67_spill] sm:$0xff] %v10677_v46  ;;  %v10693_v46 = vpop.permute.xlu2 %2278 }
 0x388   : > { %v1675_v42 = vpop.f32.mrf.mxu2 }
 0x389   : > { %v10667_v15 = vmul.f32 0.17677669, %v1675_v42 }
 0x38b   : > { %v1761_v49 = vsel %vm1724_vm6, %v10667_v15, -inf }
 0x38c   : > { %1762 = vmax.xlane.f32.xlu1 %v1761_v49  ;;  %v10683_v48 = vpop.f32.mrf.mxu1 }
 0x38d   : > { %13850 = vst [vmem:[#allocation68_spill] sm:$0xff] %v10683_v48  ;;  %v10698_v48 = vpop.permute.xlu2 %2208 }
 0x390   : > { %v1677_v59 = vpop.f32.mrf.mxu2 }
 0x391   : > { %v10673_v18 = vmul.f32 0.17677669, %v1677_v59 }
 0x393   : > { %v1764_v4 = vsel %vm1724_vm6, %v10673_v18, -inf }
 0x394   : > { %1765 = vmax.xlane.f32.xlu2 %v1764_v4  ;;  %v10691_v4 = vpop.f32.mrf.mxu1 }
 0x395   : > { %13851 = vst [vmem:[#allocation69_spill] sm:$0xff] %v10691_v4  ;;  %v10706_v4 = vpop.permute.xlu2 %2280 }
 0x398   : > { %v1703_v26 = vpop.f32.mrf.mxu3 }
 0x399   : > { %v10679_v0 = vmul.f32 0.17677669, %v1703_v26 }
 0x39b   : > { %v1767_v42 = vsel %vm1724_vm6, %v10679_v0, -inf }
 0x39c   : > { %1768 = vmax.xlane.f32.xlu0 %v1767_v42  ;;  %v10696_v42 = vpop.f32.mrf.mxu1 }
 0x39d   : > { %13852 = vst [vmem:[#allocation70_spill] sm:$0xff] %v10696_v42  ;;  %v10710_v43 = vpop.permute.xlu2 %2376 }
 0x3a0   : > { %v1705_v61 = vpop.f32.mrf.mxu3 }
 0x3a1   : > { %v10685_v49 = vmul.f32 0.17677669, %v1705_v61 }
 0x3a3   : > { %v1770_v59 = vsel %vm1724_vm6, %v10685_v49, -inf }
 0x3a4   : > { %1771 = vmax.xlane.f32.xlu1 %v1770_v59  ;;  %v10704_v38 = vpop.f32.mrf.mxu1 }
 0x3a5   : > { %13853 = vst [vmem:[#allocation71_spill] sm:$0xff] %v10704_v38 }
 0x3af   : > { %v1733_v26 = vpop.xlane.xlu1 %1732 }
 0x3b0   : > { %v1775_v32 = vsub.f32 %v10598_v7, %v1733_v26 }
 0x3b2   : > { %v1793_v9 = vmul.f32 1.442695, %v1775_v32 }
 0x3b4   : > { %9043 = vpow2.f32 %v1793_v9  ;;  %v10713_v9 = vpop.f32.mrf.mxu1 }
 0x3b5   : > { %13854 = vst [vmem:[#allocation72_spill] sm:$0xff] %v10713_v9 }
 0x3ba   : > { %v10700_v61 = vpop.eup %9043 }
 0x3bb   : > { %v1827_v59 = vsel %vm1724_vm6, %v10700_v61, 0.0 }
 0x3bc   : > { %1828 = vadd.xlane.f32.xlu2 %v1827_v59  ;;  %v10718_v38 = vpop.f32.mrf.mxu1 }
 0x3bd   : > { %13855 = vst [vmem:[#allocation73_spill] sm:$0xff] %v10718_v38 }
 0x3c7   : > { %v1727_v32 = vpop.xlane.xlu0 %1726 }
 0x3c8   : > { %v1773_v7 = vsub.f32 %v10610_v10, %v1727_v32 }
 0x3ca   : > { %v1789_v26 = vmul.f32 1.442695, %v1773_v7 }
 0x3cc   : > { %9045 = vpow2.f32 %v1789_v26 }
 0x3cf   : > { %v1730_v42 = vpop.xlane.xlu2 %1729 }
 0x3d0   : > { %v1774_v57 = vsub.f32 %v10618_v31, %v1730_v42  ;;  %v10728_v42 = vpop.f32.mrf.mxu1 }
 0x3d1   : > { %13856 = vst [vmem:[#allocation74_spill] sm:$0xff] %v10728_v42 }
 0x3d2   : > { %v10716_v41 = vpop.eup %9045  ;;  %v1791_v59 = vmul.f32 1.442695, %v1774_v57 }
 0x3d3   : > { %v1821_v23 = vsel %vm1724_vm6, %v10716_v41, 0.0 }
 0x3d4   : > { %9047 = vpow2.f32 %v1791_v59  ;;  %1822 = vadd.xlane.f32.xlu0 %v1821_v23 }
 0x3d7   : > { %v1736_v27 = vpop.xlane.xlu2 %1735 }
 0x3d8   : > { %v1776_v10 = vsub.f32 %v10623_v14, %v1736_v27  ;;  %v1739_v32 = vpop.xlane.xlu0 %1738 }
 0x3d9   : > { %v1777_v7 = vsub.f32 %v10626_v33, %v1739_v32 }
 0x3da   : > { %v10724_v26 = vpop.eup %9047  ;;  %v1795_v9 = vmul.f32 1.442695, %v1776_v10 }
 0x3db   : > { %v1797_v31 = vmul.f32 1.442695, %v1777_v7  ;;  %v1824_v57 = vsel %vm1724_vm6, %v10724_v26, 0.0 }
 0x3dc   : > { %9049 = vpow2.f32 %v1795_v9  ;;  %1825 = vadd.xlane.f32.xlu1 %v1824_v57 }
 0x3dd   : > { %9051 = vpow2.f32 %v1797_v31  ;;  %v10740_v31 = vpop.f32.mrf.mxu1 }
 0x3de   : > { %13857 = vst [vmem:[#allocation75_spill] sm:$0xff] %v10740_v31 }
 0x3df   : > { %v1748_v59 = vpop.xlane.xlu2 %1747  ;;  %v1742_v23 = vpop.xlane.xlu1 %1741 }
 0x3e0   : > { %v1780_v38 = vsub.f32 %v10633_v5, %v1748_v59  ;;  %v1778_v14 = vsub.f32 %v10635_v1, %v1742_v23 }
 0x3e2   : > { %v10732_v27 = vpop.eup %9049  ;;  %v1803_v33 = vmul.f32 1.442695, %v1780_v38  ;;  %v1799_v32 = vmul.f32 1.442695, %v1778_v14 }
 0x3e3   : > { %v10734_v10 = vpop.eup %9051  ;;  %v1830_v7 = vsel %vm1724_vm6, %v10732_v27, 0.0 }
 0x3e4   : > { %9053 = vpow2.f32 %v1803_v33  ;;  %1831 = vadd.xlane.f32.xlu0 %v1830_v7  ;;  %v1833_v9 = vsel %vm1724_vm6, %v10734_v10, 0.0 }
 0x3e5   : > { %9055 = vpow2.f32 %v1799_v32  ;;  %1834 = vadd.xlane.f32.xlu1 %v1833_v9  ;;  %v10753_v9 = vpop.f32.mrf.mxu1 }
 0x3e6   : > { %13858 = vst [vmem:[#allocation76_spill] sm:$0xff] %v10753_v9 }
 0x3e7   : > { %v1745_v5 = vpop.xlane.xlu1 %1744 }
 0x3e8   : > { %v1779_v1 = vsub.f32 %v10643_v54, %v1745_v5 }
 0x3ea   : > { %v10743_v57 = vpop.eup %9053  ;;  %v1801_v38 = vmul.f32 1.442695, %v1779_v1 }
 0x3eb   : > { %v10745_v59 = vpop.eup %9055  ;;  %v1842_v23 = vsel %vm1724_vm6, %v10743_v57, 0.0 }
 0x3ec   : > { %9057 = vpow2.f32 %v1801_v38  ;;  %1843 = vadd.xlane.f32.xlu0 %v1842_v23  ;;  %v1836_v14 = vsel %vm1724_vm6, %v10745_v59, 0.0 }
 0x3ed   : > { %1837 = vadd.xlane.f32.xlu2 %v1836_v14  ;;  %v10765_v9 = vpop.f32.mrf.mxu1 }
 0x3ee   : > { %13859 = vst [vmem:[#allocation77_spill] sm:$0xff] %v10765_v9 }
 0x3ef   : > { %v1751_v33 = vpop.xlane.xlu1 %1750  ;;  %v1754_v32 = vpop.xlane.xlu2 %1753 }
 0x3f0   : > { %v1781_v7 = vsub.f32 %v10647_v34, %v1751_v33  ;;  %v1782_v54 = vsub.f32 %v10651_v45, %v1754_v32 }
 0x3f2   : > { %v10755_v5 = vpop.eup %9057  ;;  %v1805_v1 = vmul.f32 1.442695, %v1781_v7  ;;  %v1807_v42 = vmul.f32 1.442695, %v1782_v54 }
 0x3f3   : > { %v1839_v38 = vsel %vm1724_vm6, %v10755_v5, 0.0 }
 0x3f4   : > { %9059 = vpow2.f32 %v1805_v1 }
 0x3f5   : > { %9061 = vpow2.f32 %v1807_v42  ;;  %1840 = vadd.xlane.f32.xlu2 %v1839_v38 }
 0x3f7   : > { %v1757_v23 = vpop.xlane.xlu2 %1756  ;;  %v1760_v14 = vpop.xlane.xlu0 %1759 }
 0x3f8   : > { %v1783_v31 = vsub.f32 %v10657_v39, %v1757_v23  ;;  %v1784_v34 = vsub.f32 %v10661_v47, %v1760_v14 }
 0x3fa   : > { %v10761_v33 = vpop.eup %9059  ;;  %v1809_v45 = vmul.f32 1.442695, %v1783_v31  ;;  %v1811_v7 = vmul.f32 1.442695, %v1784_v34  ;;  %v10780_v34 = vpop.f32.mrf.mxu1 }
 0x3fb   : > { %v10763_v32 = vpop.eup %9061  ;;  %v1845_v54 = vsel %vm1724_vm6, %v10761_v33, 0.0  ;;  %13860 = vst [vmem:[#allocation78_spill] sm:$0xff] %v10780_v34 }
 0x3fc   : > { %9063 = vpow2.f32 %v1809_v45  ;;  %v1848_v42 = vsel %vm1724_vm6, %v10763_v32, 0.0 }
 0x3fd   : > { %9065 = vpow2.f32 %v1811_v7  ;;  %1849 = vadd.xlane.f32.xlu0 %v1848_v42  ;;  %1846 = vadd.xlane.f32.xlu2 %v1845_v54 }
 0x3ff   : > { %v1763_v39 = vpop.xlane.xlu1 %1762 }
 0x400   : > { %v1785_v47 = vsub.f32 %v10667_v15, %v1763_v39 }
 0x402   : > { %v10772_v1 = vpop.eup %9063  ;;  %v1813_v38 = vmul.f32 1.442695, %v1785_v47  ;;  %v2249_v39 = vpop.f32.mrf.mxu1 }
 0x403   : > { %v10774_v31 = vpop.eup %9065  ;;  %v1851_v23 = vsel %vm1724_vm6, %v10772_v1, 0.0  ;;  %v10787_v47 = vmul.f32 0.17677669, %v2249_v39 }
 0x404   : > { %v1854_v14 = vsel %vm1724_vm6, %v10774_v31, 0.0  ;;  %9067 = vpow2.f32 %v1813_v38 }
 0x405   : > { %1852 = vadd.xlane.f32.xlu0 %v1851_v23  ;;  %1855 = vadd.xlane.f32.xlu1 %v1854_v14  ;;  %13861 = vst [vmem:[#allocation79_spill] sm:$0xff] %v10787_v47 }
 0x407   : > { %v1766_v45 = vpop.xlane.xlu2 %1765 }
 0x408   : > { %v1786_v7 = vsub.f32 %v10673_v18, %v1766_v45  ;;  %v2420_v18 = vsel %vm1724_vm6, %v10787_v47, -inf  ;;  %v1475_v47 = vrot.slane %v10461_v36, 4 }
 0x40a   : > { %v10783_v15 = vpop.eup %9067  ;;  %v1815_v54 = vmul.f32 1.442695, %v1786_v7  ;;  %v2026_v50 = vunpack.c.l.b16 %v1475_v47 }
 0x40b   : > { %v1857_v42 = vsel %vm1724_vm6, %v10783_v15, 0.0 }
 0x40c   : > { %9069 = vpow2.f32 %v1815_v54 }
 0x40d   : > { %1858 = vadd.xlane.f32.xlu0 %v1857_v42 }
 0x40f   : > { %v1769_v9 = vpop.xlane.xlu0 %1768 }
 0x410   : > { %v1787_v34 = vsub.f32 %v10679_v0, %v1769_v9 }
 0x412   : > { %v10790_v38 = vpop.eup %9069  ;;  %v1817_v23 = vmul.f32 1.442695, %v1787_v34 }
 0x413   : > { %v1860_v14 = vsel %vm1724_vm6, %v10790_v38, 0.0 }
 0x414   : > { %9071 = vpow2.f32 %v1817_v23  ;;  %1861 = vadd.xlane.f32.xlu1 %v1860_v14 }
 0x415   : > { %2421 = vmax.xlane.f32.xlu0 %v2420_v18 }
 0x417   : > { %v1772_v45 = vpop.xlane.xlu1 %1771 }
 0x418   : > { %v1788_v7 = vsub.f32 %v10685_v49, %v1772_v45 }
 0x41a   : > { %v10797_v54 = vpop.eup %9071  ;;  %v1819_v42 = vmul.f32 1.442695, %v1788_v7  ;;  %v1476_v7 = vrot.slane %v10467_v62, 4  ;;  %v2251_v62 = vpop.f32.mrf.mxu1 }
 0x41b   : > { %v1863_v0 = vsel %vm1724_vm6, %v10797_v54, 0.0  ;;  %v10828_v47 = vmul.f32 0.17677669, %v2251_v62 }
 0x41c   : > { %9073 = vpow2.f32 %v1819_v42  ;;  %1864 = vadd.xlane.f32.xlu1 %v1863_v0 }
 0x422   : > { %v10801_v9 = vpop.eup %9073 }
 0x423   : > { %v1866_v34 = vsel %vm1724_vm6, %v10801_v9, 0.0 }
 0x424   : > { %1867 = vadd.xlane.f32.xlu2 %v1866_v34 }
 0x42f   : > { %v1829_v39 = vpop.xlane.xlu2 %1828 }
 0x435   : > { %2168 = vrot.lane.b32.xlu1 %v10384_v35, %s9665_s28 }
 0x43c   : > { %2326 = vrot.lane.b32.xlu2 %v10534_v25, %s9665_s28 }
 0x43d   : > { %2182 = vrot.lane.b32.xlu1 %v10537_v19, %s9665_s28 }
 0x445   : > { %2178 = vrot.lane.b32.xlu1 %v10497_v17, %s9665_s28 }
 0x447   : > { %v1823_v49 = vpop.xlane.xlu0 %1822 }
 0x448   : > { %9075 = vrcp.f32 %v1823_v49 }
 0x44d   : > { %3033 = vrot.lane.b32.xlu1 %v10436_v21, %s9666_s5 }
 0x44e   : > { %v9076_v18 = vpop.eup %9075 }
 0x44f   : > { %v1826_v23 = vpop.xlane.xlu1 %1825  ;;  %v1885_v14 = vmul.f32 %v9076_v18, %v10716_v41 }
 0x450   : > { %9077 = vrcp.f32 %v1826_v23  ;;  %v2027_v23 = vunpack.c.l.b16 %v1476_v7 }
 0x451   : > { %9079 = vrcp.f32 %v1829_v39  ;;  %v1901_v42 = vpack.c.bf16 %v1885_v14, %v1885_v14  ;;  %v1478_v14 = vrot.slane %v10503_v16, 4 }
 0x453   : > { %v1919_v41 = vunpack.c.l.b16 %v1901_v42 }
 0x455   : > { %3031 = vrot.lane.b32.xlu1 %v10305_v13, %s9666_s5 }
 0x456   : > { %v9078_v45 = vpop.eup %9077 }
 0x457   : > { %v1886_v0 = vmul.f32 %v9078_v45, %v10724_v26  ;;  %v1832_v34 = vpop.xlane.xlu0 %1831  ;;  %v9080_v49 = vpop.eup %9079  ;;  %v2028_v26 = vpack.c.b16 %v2027_v23, %v2026_v50 }
 0x458   : > { %9081 = vrcp.f32 %v1832_v34  ;;  %v1835_v21 = vpop.xlane.xlu1 %1834  ;;  %v1887_v39 = vmul.f32 %v9080_v49, %v10700_v61 }
 0x459   : > { %v1902_v35 = vpack.c.bf16 %v1886_v0, %v1886_v0  ;;  %9083 = vrcp.f32 %v1835_v21  ;;  %v2053_v0 = vunpack.c.l.b16 %v1478_v14 }
 0x45a   : > { %v1903_v45 = vpack.c.bf16 %v1887_v39, %v1887_v39 }
 0x45b   : > { %v1920_v18 = vunpack.c.l.b16 %v1902_v35  ;;  %v1477_v35 = vrot.slane %v10497_v17, 4 }
 0x45c   : > { %v1945_v49 = vunpack.c.l.b16 %v1903_v45  ;;  %v1479_v45 = vrot.slane %v10537_v19, 4 }
 0x45d   : > { %v1921_v13 = vpack.c.b16 %v1920_v18, %v1919_v41  ;;  %3129 = vrot.lane.b32.xlu1 %v10576_v8, %s9666_s5  ;;  %v2052_v39 = vunpack.c.l.b16 %v1477_v35  ;;  %v1480_v41 = vrot.slane %v10543_v40, 4 }
 0x45e   : > { %v9082_v24 = vpop.eup %9081 }
 0x45f   : > { %v1888_v34 = vmul.f32 %v9082_v24, %v10732_v27  ;;  %8550 = vmatmul.msk.bf16.vlgmr.msra.gmra.mxu2 %vm1724_vm6, %v1921_v13  ;;  %v1844_v7 = vpop.xlane.xlu0 %1843  ;;  %v9084_v21 = vpop.eup %9083  ;;  %v2423_v13 = vsel %vm1724_vm6, %v10828_v47, -inf  ;;  %v2054_v27 = vpack.c.b16 %v2053_v0, %v2052_v39 }
 0x460   : > { %2040 = vmatpush.bf16.msra.mxu2 %v2028_v26  ;;  %v1838_v61 = vpop.xlane.xlu2 %1837  ;;  %v1889_v23 = vmul.f32 %v9084_v21, %v10734_v10 }
 0x461   : > { %v1904_v42 = vpack.c.bf16 %v1888_v34, %v1888_v34  ;;  %9085 = vrcp.f32 %v1838_v61 }
 0x462   : > { %9087 = vrcp.f32 %v1844_v7  ;;  %v1905_v18 = vpack.c.bf16 %v1889_v23, %v1889_v23  ;;  %v2079_v7 = vunpack.c.l.b16 %v1480_v41  ;;  %v1482_v23 = vrot.slane %v10569_v53, 4 }
 0x463   : > { %v1946_v50 = vunpack.c.l.b16 %v1904_v42  ;;  %v2078_v42 = vunpack.c.l.b16 %v1479_v45 }
 0x464   : > { %v1971_v61 = vunpack.c.l.b16 %v1905_v18 }
 0x465   : > { %v1947_v24 = vpack.c.b16 %v1946_v50, %v1945_v49  ;;  %2424 = vmax.xlane.f32.xlu2 %v2423_v13  ;;  %3079 = vrot.lane.b32.xlu1 %v10534_v25, %s9666_s5  ;;  %v2080_v50 = vpack.c.b16 %v2079_v7, %v2078_v42 }
 0x467   : > { %v9086_v62 = vpop.eup %9085  ;;  %8551 = vmatmul.msk.bf16.vlgmr.msrb.gmra.mxu3 %vm1724_vm6, %v1947_v24 }
 0x468   : > { %v1890_v26 = vmul.f32 %v9086_v62, %v10745_v59  ;;  %2066 = vmatpush.bf16.msrb.mxu3 %v2054_v27  ;;  %v1841_v10 = vpop.xlane.xlu2 %1840  ;;  %v9088_v14 = vpop.eup %9087  ;;  %v1481_v27 = vrot.slane %v10563_v63, 4 }
 0x469   : > { %9089 = vrcp.f32 %v1841_v10  ;;  %v1892_v35 = vmul.f32 %v9088_v14, %v10743_v57  ;;  %v2105_v57 = vunpack.c.l.b16 %v1482_v23 }
 0x46a   : > { %v1906_v34 = vpack.c.bf16 %v1890_v26, %v1890_v26  ;;  %v2104_v26 = vunpack.c.l.b16 %v1481_v27 }
 0x46b   : > { %v1908_v39 = vpack.c.bf16 %v1892_v35, %v1892_v35 }
 0x46c   : > { %v1972_v21 = vunpack.c.l.b16 %v1906_v34  ;;  %v2106_v45 = vpack.c.b16 %v2105_v57, %v2104_v26 }
 0x46d   : > { %v1998_v41 = vunpack.c.l.b16 %v1908_v39 }
 0x46e   : > { %v1973_v0 = vpack.c.b16 %v1972_v21, %v1971_v61 }
 0x46f   : > { %v9090_v49 = vpop.eup %9089 }
 0x470   : > { %v1891_v59 = vmul.f32 %v9090_v49, %v10755_v5  ;;  %v1850_v24 = vpop.xlane.xlu0 %1849  ;;  %8552 = vmatmul.msk.bf16.vlgmr.msrb.gmra.mxu2 %vm1724_vm6, %v1973_v0  ;;  %v1847_v13 = vpop.xlane.xlu2 %1846 }
 0x471   : > { %9091 = vrcp.f32 %v1850_v24  ;;  %2092 = vmatpush.bf16.msrb.mxu2 %v2080_v50 }
 0x472   : > { %v1907_v62 = vpack.c.bf16 %v1891_v59, %v1891_v59  ;;  %9093 = vrcp.f32 %v1847_v13 }
 0x474   : > { %v1997_v18 = vunpack.c.l.b16 %v1907_v62 }
 0x476   : > { %v1999_v10 = vpack.c.b16 %v1998_v41, %v1997_v18 }
 0x477   : > { %v9092_v14 = vpop.eup %9091 }
 0x478   : > { %v9094_v34 = vpop.eup %9093  ;;  %v1894_v5 = vmul.f32 %v9092_v14, %v10763_v32  ;;  %v1853_v7 = vpop.xlane.xlu0 %1852  ;;  %8553 = vmatmul.msk.bf16.vlgmr.msra.gmra.mxu3 %vm1724_vm6, %v1999_v10  ;;  %v2262_v32 = vsel %vm1491_vm4, %v10708_v28, 0 }
 0x479   : > { %v1856_v61 = vpop.xlane.xlu1 %1855  ;;  %v1893_v35 = vmul.f32 %v9094_v34, %v10761_v33  ;;  %9095 = vrcp.f32 %v1853_v7  ;;  %2118 = vmatpush.bf16.msra.mxu3 %v2106_v45 }
 0x47a   : > { %v1910_v21 = vpack.c.bf16 %v1894_v5, %v1894_v5  ;;  %9097 = vrcp.f32 %v1856_v61 }
 0x47b   : > { %v1909_v42 = vpack.c.bf16 %v1893_v35, %v1893_v35  ;;  %v2358_v35 = vsel %vm1491_vm4, %v10689_v56, 0  ;;  %v2286_v56 = vsel %vm1491_vm4, %v10706_v4, 0 }
 0x47c   : > { %v2024_v0 = vunpack.c.l.b16 %v1910_v21 }
 0x47d   : > { %v2023_v49 = vunpack.c.l.b16 %v1909_v42 }
 0x47f   : > { %v9096_v50 = vpop.eup %9095  ;;  %v2025_v23 = vpack.c.b16 %v2024_v0, %v2023_v49 }
 0x480   : > { %v9098_v39 = vpop.eup %9097  ;;  %v1895_v59 = vmul.f32 %v9096_v50, %v10772_v1  ;;  %v1859_v24 = vpop.xlane.xlu0 %1858  ;;  %v2214_v1 = vsel %vm1491_vm4, %v10698_v48, 0 }
 0x481   : > { %v1896_v13 = vmul.f32 %v9098_v39, %v10774_v31  ;;  %8554 = vmatmul.msk.bf16.vlgmr.msra.gmra.mxu2 %vm1724_vm6, %v2025_v23  ;;  %9099 = vrcp.f32 %v1859_v24 }
 0x482   : > { %v1911_v33 = vpack.c.bf16 %v1895_v59, %v1895_v59  ;;  %2271 = vmatpush.bf16.xpose.msra.mxu2 %v2262_v32 }
 0x483   : > { %v1912_v27 = vpack.c.bf16 %v1896_v13, %v1896_v13 }
 0x484   : > { %v2049_v62 = vunpack.c.l.b16 %v1911_v33 }
 0x485   : > { %v2050_v57 = vunpack.c.l.b16 %v1912_v27 }
 0x487   : > { %v2051_v41 = vpack.c.b16 %v2050_v57, %v2049_v62  ;;  %v1862_v18 = vpop.xlane.xlu1 %1861  ;;  %v9100_v26 = vpop.eup %9099 }
 0x488   : > { %9101 = vrcp.f32 %v1862_v18  ;;  %v1897_v28 = vmul.f32 %v9100_v26, %v10783_v15 }
 0x489   : > { %8555 = vmatmul.msk.bf16.vlgmr.msrb.gmra.mxu3 %vm1724_vm6, %v2051_v41 }
 0x48a   : > { %2223 = vmatpush.bf16.xpose.msrb.mxu3 %v2214_v1  ;;  %v1913_v10 = vpack.c.bf16 %v1897_v28, %v1897_v28 }
 0x48c   : > { %v2075_v5 = vunpack.c.l.b16 %v1913_v10 }
 0x48e   : > { %v9102_v31 = vpop.eup %9101 }
 0x48f   : > { %v1898_v14 = vmul.f32 %v9102_v31, %v10790_v38  ;;  %v1865_v45 = vpop.xlane.xlu1 %1864 }
 0x490   : > { %9103 = vrcp.f32 %v1865_v45 }
 0x491   : > { %v1914_v34 = vpack.c.bf16 %v1898_v14, %v1898_v14 }
 0x493   : > { %v2076_v7 = vunpack.c.l.b16 %v1914_v34 }
 0x495   : > { %v2077_v61 = vpack.c.b16 %v2076_v7, %v2075_v5 }
 0x496   : > { %v9104_v21 = vpop.eup %9103 }
 0x497   : > { %8556 = vmatmul.msk.bf16.vlgmr.msrb.gmra.mxu2 %vm1724_vm6, %v2077_v61  ;;  %v1868_v48 = vpop.xlane.xlu2 %1867  ;;  %v1899_v15 = vmul.f32 %v9104_v21, %v10797_v54  ;;  %v2382_v54 = vsel %vm1491_vm4, %v10710_v43, 0 }
 0x498   : > { %2367 = vmatpush.bf16.xpose.msrb.mxu2 %v2358_v35  ;;  %9105 = vrcp.f32 %v1868_v48 }
 0x499   : > { %v1915_v0 = vpack.c.bf16 %v1899_v15, %v1899_v15 }
 0x49b   : > { %v2101_v23 = vunpack.c.l.b16 %v1915_v0 }
 0x49e   : > { %v9106_v42 = vpop.eup %9105 }
 0x49f   : > { %v1900_v38 = vmul.f32 %v9106_v42, %v10801_v9  ;;  %v2327_v49 = vpop.permute.xlu2 %2326 }
 0x4a0   : > { %8563 = vmatmul.msk.bf16.vlgmr.msrb.gmra.mxu1 %vm1491_vm4, %v2327_v49 }
 0x4a1   : > { %v1916_v50 = vpack.c.bf16 %v1900_v38, %v1900_v38 }
 0x4a3   : > { %v2102_v39 = vunpack.c.l.b16 %v1916_v50 }
 0x4a5   : > { %v2103_v59 = vpack.c.b16 %v2102_v39, %v2101_v23  ;;  %v13862_v39 = vld [vmem:[#allocation39_spill] sm:$0xff] }
 0x4a7   : > { %8557 = vmatmul.msk.bf16.vlgmr.msra.gmra.mxu3 %vm1724_vm6, %v2103_v59  ;;  %8560 = vmatmul.msk.bf16.vlgmr.msra.gmra.mxu2 %vm1491_vm4, %v10612_v11  ;;  %v13863_v59 = vld [vmem:[#allocation34_spill] sm:$0xff] }
 0x4a8   : > { %2295 = vmatpush.bf16.xpose.msra.mxu3 %v2286_v56  ;;  %v13864_v56 = vld [vmem:[#allocation24_spill] sm:$0xff] }
 0x4b7   : > { %8558 = vmatmul.msk.bf16.vlgmr.msrb.gmra.mxu3 %vm1491_vm4, %v10616_v44  ;;  %8564 = vmatmul.msk.bf16.vlgmr.msrb.gmra.mxu2 %vm1491_vm4, %v10608_v51 }
 0x4b8   : > { %2391 = vmatpush.bf16.xpose.msrb.mxu3 %v2382_v54  ;;  %v13865_v54 = vld [vmem:[#allocation45_spill] sm:$0xff] }
 0x4c7   : > { %8561 = vmatmul.msk.bf16.vlgmr.msra.gmra.mxu3 %vm1491_vm4, %v10693_v46 }
 0x4d7   : > { %8565 = vmatmul.msk.bf16.vlgmr.msrb.gmra.mxu3 %vm1491_vm4, %v10604_v3 }
 0x4e2   : > { %v1938_v4 = vpop.f32.mrf.mxu2 }
 0x4e3   : > { %v2125_v11 = vpack.c.bf16 %v1938_v4, %v1938_v4  ;;  %v2425_v4 = vpop.xlane.xlu2 %2424 }
 0x4e5   : > { %2142 = vst.msk [vmem:[#allocation2] sm:$0xf] %vm2141_vm10, %v2125_v11  ;;  %v10946_v11 = vpop.xlane.xlu0 %2421 }
 0x4ea   : > { %v1940_v9 = vpop.f32.mrf.mxu2  ;;  %v1964_v43 = vpop.f32.mrf.mxu3 }
 0x4eb   : > { %v2126_v24 = vpack.c.bf16 %v1940_v9, %v1940_v9  ;;  %v2127_v32 = vpack.c.bf16 %v1964_v43, %v1964_v43 }
 0x4ed   : > { %2143 = vst.msk [vmem:[#allocation2 + $0x4] sm:$0xf] %vm2141_vm10, %v2126_v24  ;;  %v2169_v24 = vpop.permute.xlu1 %2168 }
 0x4ee   : > { %2144 = vst.msk [vmem:[#allocation2 + $0x8] sm:$0xf] %vm2141_vm10, %v2127_v32 }
 0x4f2   : > { %v1966_v51 = vpop.f32.mrf.mxu3 }
 0x4f3   : > { %v2128_v44 = vpack.c.bf16 %v1966_v51, %v1966_v51  ;;  %v1990_v13 = vpop.f32.mrf.mxu2  ;;  %v2195_v51 = vrot.slane %v2169_v24, 4 }
 0x4f4   : > { %v2129_v46 = vpack.c.bf16 %v1990_v13, %v1990_v13 }
 0x4f5   : > { %2145 = vst.msk [vmem:[#allocation2 + $0xc] sm:$0xf] %vm2141_vm10, %v2128_v44 }
 0x4f6   : > { %2146 = vst.msk [vmem:[#allocation2 + $0x10] sm:$0xf] %vm2141_vm10, %v2129_v46  ;;  %v2664_v46 = vunpack.c.l.b16 %v2195_v51 }
 0x4fb   : > { %v1992_v3 = vpop.f32.mrf.mxu2  ;;  %v2016_v33 = vpop.f32.mrf.mxu3 }
 0x4fc   : > { %v2130_v27 = vpack.c.bf16 %v1992_v3, %v1992_v3  ;;  %v2131_v62 = vpack.c.bf16 %v2016_v33, %v2016_v33 }
 0x4fe   : > { %2147 = vst.msk [vmem:[#allocation2 + $0x14] sm:$0xf] %vm2141_vm10, %v2130_v27  ;;  %v2465_v27 = vsub.f32 %v10828_v47, %v2425_v4 }
 0x4ff   : > { %2148 = vst.msk [vmem:[#allocation2 + $0x18] sm:$0xf] %vm2141_vm10, %v2131_v62 }
 0x503   : > { %v2018_v57 = vpop.f32.mrf.mxu3 }
 0x504   : > { %v2132_v41 = vpack.c.bf16 %v2018_v57, %v2018_v57  ;;  %v2042_v18 = vpop.f32.mrf.mxu2 }
 0x505   : > { %v2133_v26 = vpack.c.bf16 %v2042_v18, %v2042_v18 }
 0x506   : > { %2149 = vst.msk [vmem:[#allocation2 + $0x1c] sm:$0xf] %vm2141_vm10, %v2132_v41 }
 0x507   : > { %2150 = vst.msk [vmem:[#allocation2 + $0x20] sm:$0xf] %vm2141_vm10, %v2133_v26 }
 0x50c   : > { %v2044_v1 = vpop.f32.mrf.mxu2  ;;  %v2068_v28 = vpop.f32.mrf.mxu3 }
 0x50d   : > { %v2134_v31 = vpack.c.bf16 %v2044_v1, %v2044_v1  ;;  %v2135_v10 = vpack.c.bf16 %v2068_v28, %v2068_v28 }
 0x50f   : > { %2151 = vst.msk [vmem:[#allocation2 + $0x24] sm:$0xf] %vm2141_vm10, %v2134_v31 }
 0x510   : > { %2152 = vst.msk [vmem:[#allocation2 + $0x28] sm:$0xf] %vm2141_vm10, %v2135_v10 }
 0x514   : > { %v2070_v14 = vpop.f32.mrf.mxu3 }
 0x515   : > { %v2136_v45 = vpack.c.bf16 %v2070_v14, %v2070_v14 }
 0x517   : > { %2153 = vst.msk [vmem:[#allocation2 + $0x2c] sm:$0xf] %vm2141_vm10, %v2136_v45 }
 0x51a   : > { %v2094_v34 = vpop.f32.mrf.mxu2 }
 0x51b   : > { %v2137_v5 = vpack.c.bf16 %v2094_v34, %v2094_v34 }
 0x51d   : > { %2154 = vst.msk [vmem:[#allocation2 + $0x30] sm:$0xf] %vm2141_vm10, %v2137_v5  ;;  %v2345_v7 = vpop.f32.mrf.mxu1 }
 0x51e   : > { %v10891_v61 = vmul.f32 0.17677669, %v2345_v7 }
 0x520   : > { %v2444_v35 = vsel %vm1724_vm6, %v10891_v61, -inf }
 0x521   : > { %2445 = vmax.xlane.f32.xlu0 %v2444_v35 }
 0x522   : > { %v2096_v48 = vpop.f32.mrf.mxu2 }
 0x523   : > { %v2138_v21 = vpack.c.bf16 %v2096_v48, %v2096_v48 }
 0x525   : > { %2155 = vst.msk [vmem:[#allocation2 + $0x34] sm:$0xf] %vm2141_vm10, %v2138_v21  ;;  %v2347_v15 = vpop.f32.mrf.mxu1 }
 0x526   : > { %v10896_v42 = vmul.f32 0.17677669, %v2347_v15  ;;  %v2183_v15 = vpop.permute.xlu1 %2182 }
 0x528   : > { %v2447_v0 = vsel %vm1724_vm6, %v10896_v42, -inf }
 0x529   : > { %2448 = vmax.xlane.f32.xlu2 %v2447_v0 }
 0x52a   : > { %v2120_v38 = vpop.f32.mrf.mxu3 }
 0x52b   : > { %v2139_v49 = vpack.c.bf16 %v2120_v38, %v2120_v38 }
 0x52d   : > { %2156 = vst.msk [vmem:[#allocation2 + $0x38] sm:$0xf] %vm2141_vm10, %v2139_v49 }
 0x532   : > { %v2122_v50 = vpop.f32.mrf.mxu3 }
 0x533   : > { %v2140_v23 = vpack.c.bf16 %v2122_v50, %v2122_v50  ;;  %v2202_v50 = vrot.slane %v2183_v15, 4 }
 0x535   : > { %2157 = vst.msk [vmem:[#allocation2 + $0x3c] sm:$0xf] %vm2141_vm10, %v2140_v23  ;;  %2170 = vrot.lane.b32.xlu0 %v10418_v20, %s9665_s28 }
 0x53a   : > { %v2225_v32 = vpop.f32.mrf.mxu3 }
 0x53b   : > { %v10961_v49 = vmul.f32 0.17677669, %v2225_v32 }
 0x53d   : > { %2172 = vrot.lane.b32.xlu0 %v10424_v37, %s9665_s28  ;;  %v2414_v51 = vsel %vm1724_vm6, %v10961_v49, -inf }
 0x541   : > { %2166 = vrot.lane.b32.xlu2 %v10378_v22, %s9665_s28 }
 0x542   : > { %v10953_v57 = vpop.f32.mrf.mxu3 }
 0x545   : > { %2164 = vrot.lane.b32.xlu0 %v10356_v55, %s9665_s28 }
 0x549   : > { %2162 = vrot.lane.b32.xlu2 %v10351_v29, %s9665_s28 }
 0x54a   : > { %v2297_v34 = vpop.f32.mrf.mxu3 }
 0x54d   : > { %2184 = vrot.lane.b32.xlu0 %v10543_v40, %s9665_s28 }
 0x551   : > { %2186 = vrot.lane.b32.xlu2 %v10563_v63, %s9665_s28 }
 0x552   : > { %v10963_v4 = vpop.f32.mrf.mxu3 }
 0x555   : > { %2188 = vrot.lane.b32.xlu0 %v10569_v53, %s9665_s28 }
 0x559   : > { %3009 = vrot.lane.b32.xlu2 %v10396_v58, %s9666_s5 }
 0x55d   : > { %2180 = vrot.lane.b32.xlu0 %v10503_v16, %s9665_s28 }
 0x561   : > { %2985 = vrot.lane.b32.xlu2 %v10364_v60, %s9666_s5 }
 0x565   : > { %3007 = vrot.lane.b32.xlu0 %v10476_v30, %s9666_s5 }
 0x569   : > { %2983 = vrot.lane.b32.xlu2 %v10374_v2, %s9666_s5 }
 0x56d   : > { %3105 = vrot.lane.b32.xlu0 %v10550_v6, %s9666_s5 }
 0x571   : > { %3081 = vrot.lane.b32.xlu2 %v10518_v52, %s9666_s5 }
 0x575   : > { %3103 = vrot.lane.b32.xlu0 %v10408_v12, %s9666_s5 }
 0x579   : > { %2304 = vrot.lane.b32.xlu2 %v13862_v39, %s9665_s28 }
 0x57d   : > { %3127 = vrot.lane.b32.xlu0 %v13863_v59, %s9666_s5 }
 0x581   : > { %2921 = vrot.lane.b32.xlu2 %v13864_v56, %s9666_s5 }
 0x585   : > { %2302 = vrot.lane.b32.xlu0 %v13865_v54, %s9665_s28 }
 0x589   : > { %2937 = vrot.lane.b32.xlu2 %v10543_v40, %s9666_s5 }
 0x591   : > { %3762 = vrot.lane.b32.xlu2 %v10396_v58, %s9667_s6  ;;  %v2484_v58 = vmul.f32 1.442695, %v2465_v27 }
 0x593   : > { %9107 = vpow2.f32 %v2484_v58 }
 0x594   : > { %v10950_v43 = vpop.xlane.xlu0 %2445 }
 0x599   : > { %v10955_v45 = vpop.eup %9107 }
 0x59a   : > { %v2519_v35 = vsel %vm1724_vm6, %v10955_v45, 0.0 }
 0x59c   : > { %v10948_v9 = vpop.xlane.xlu2 %2448 }
 0x5a4   : > { %v2167_v44 = vpop.permute.xlu2 %2166 }
 0x5a5   : > { %v2194_v13 = vrot.slane %v2167_v44, 4  ;;  %v2767_v44 = vunpack.c.l.b16 %v2202_v50 }
 0x5a7   : > { %v2663_v3 = vunpack.c.l.b16 %v2194_v13  ;;  %v2171_v33 = vpop.permute.xlu0 %2170 }
 0x5a8   : > { %v2196_v18 = vrot.slane %v2171_v33, 4  ;;  %v10969_v33 = vmul.f32 0.17677669, %v2297_v34 }
 0x5a9   : > { %v2665_v62 = vpack.c.b16 %v2664_v46, %v2663_v3 }
 0x5aa   : > { %v2689_v28 = vunpack.c.l.b16 %v2196_v18  ;;  %v2432_v58 = vsel %vm1724_vm6, %v10969_v33, -inf }
 0x5ab   : > { %2677 = vmatpush.bf16.msra.mxu2 %v2665_v62 }
 0x5ac   : > { %v2163_v41 = vpop.permute.xlu2 %2162 }
 0x5ad   : > { %v2192_v5 = vrot.slane %v2163_v41, 4  ;;  %v2393_v41 = vpop.f32.mrf.mxu3 }
 0x5af   : > { %v2173_v26 = vpop.permute.xlu0 %2172  ;;  %v2637_v48 = vunpack.c.l.b16 %v2192_v5 }
 0x5b0   : > { %v2197_v1 = vrot.slane %v2173_v26, 4 }
 0x5b2   : > { %v2690_v31 = vunpack.c.l.b16 %v2197_v1  ;;  %v2179_v1 = vpop.permute.xlu1 %2178 }
 0x5b3   : > { %v2200_v5 = vrot.slane %v2179_v1, 4  ;;  %v2473_v1 = vsub.f32 %v10896_v42, %v10948_v9 }
 0x5b4   : > { %v2691_v10 = vpack.c.b16 %v2690_v31, %v2689_v28  ;;  %v2187_v14 = vpop.permute.xlu2 %2186 }
 0x5b5   : > { %v2204_v27 = vrot.slane %v2187_v14, 4 }
 0x5b6   : > { %2703 = vmatpush.bf16.msra.mxu3 %v2691_v10  ;;  %v10975_v10 = vmul.f32 0.17677669, %v2393_v41 }
 0x5b7   : > { %v2165_v47 = vpop.permute.xlu0 %2164  ;;  %v2793_v18 = vunpack.c.l.b16 %v2204_v27 }
 0x5b8   : > { %v2193_v7 = vrot.slane %v2165_v47, 4  ;;  %v2456_v47 = vsel %vm1724_vm6, %v10975_v10, -inf }
 0x5ba   : > { %v2638_v21 = vunpack.c.l.b16 %v2193_v7  ;;  %2520 = vadd.xlane.f32.xlu2 %v2519_v35  ;;  %v2741_v7 = vunpack.c.l.b16 %v2200_v5  ;;  %v2472_v5 = vsub.f32 %v10891_v61, %v10950_v43 }
 0x5bc   : > { %v2639_v0 = vpack.c.b16 %v2638_v21, %v2637_v48  ;;  %v10959_v38 = vpop.permute.xlu2 %3009 }
 0x5be   : > { %2651 = vmatpush.bf16.msra.mxu1 %v2639_v0 }
 0x5bf   : > { %v2185_v23 = vpop.permute.xlu0 %2184 }
 0x5c0   : > { %v2203_v24 = vrot.slane %v2185_v23, 4 }
 0x5c2   : > { %v2768_v13 = vunpack.c.l.b16 %v2203_v24  ;;  %2415 = vmax.xlane.f32.xlu2 %v2414_v51 }
 0x5c4   : > { %v2769_v46 = vpack.c.b16 %v2768_v13, %v2767_v44  ;;  %v10967_v3 = vpop.permute.xlu2 %2985 }
 0x5c6   : > { %2781 = vmatpush.bf16.msrb.mxu2 %v2769_v46 }
 0x5c7   : > { %v2189_v32 = vpop.permute.xlu0 %2188 }
 0x5c8   : > { %v2205_v62 = vrot.slane %v2189_v32, 4 }
 0x5ca   : > { %v2794_v26 = vunpack.c.l.b16 %v2205_v62  ;;  %2433 = vmax.xlane.f32.xlu2 %v2432_v58 }
 0x5cc   : > { %v2795_v28 = vpack.c.b16 %v2794_v26, %v2793_v18  ;;  %v10973_v31 = vpop.permute.xlu2 %2983  ;;  %v2273_v26 = vpop.f32.mrf.mxu2 }
 0x5ce   : > { %2807 = vmatpush.bf16.msrb.mxu3 %v2795_v28  ;;  %v2500_v28 = vmul.f32 1.442695, %v2473_v1  ;;  %v11065_v1 = vmul.f32 0.17677669, %v10963_v4 }
 0x5cf   : > { %v2181_v34 = vpop.permute.xlu0 %2180 }
 0x5d0   : > { %v2201_v14 = vrot.slane %v2181_v34, 4 }
 0x5d2   : > { %v2742_v35 = vunpack.c.l.b16 %v2201_v14  ;;  %2457 = vmax.xlane.f32.xlu2 %v2456_v47  ;;  %v2498_v47 = vmul.f32 1.442695, %v2472_v5  ;;  %v2435_v5 = vsel %vm1724_vm6, %v11065_v1, -inf }
 0x5d4   : > { %v2743_v48 = vpack.c.b16 %v2742_v35, %v2741_v7  ;;  %v10979_v21 = vpop.permute.xlu2 %3081  ;;  %v2275_v14 = vpop.f32.mrf.mxu2 }
 0x5d5   : > { %v11037_v61 = vmul.f32 0.17677669, %v2275_v14  ;;  %v2395_v14 = vpop.f32.mrf.mxu3 }
 0x5d6   : > { %2755 = vmatpush.bf16.msrb.mxu1 %v2743_v48 }
 0x5d7   : > { %v10981_v15 = vpop.permute.xlu0 %3007  ;;  %v2429_v48 = vsel %vm1724_vm6, %v11037_v61, -inf }
 0x5dc   : > { %v2305_v0 = vpop.permute.xlu2 %2304  ;;  %v2369_v35 = vpop.f32.mrf.mxu2 }
 0x5dd   : > { %v2310_v50 = vsel %vm1491_vm4, %v2305_v0, 0  ;;  %v11043_v0 = vmul.f32 0.17677669, %v2273_v26 }
 0x5de   : > { %2319 = vmatpush.bf16.xpose.msrb.mxu0 %v2310_v50 }
 0x5df   : > { %v10984_v23 = vpop.permute.xlu0 %3105 }
 0x5e4   : > { %v2371_v50 = vpop.f32.mrf.mxu2 }
 0x5e7   : > { %v10986_v24 = vpop.permute.xlu0 %3103 }
 0x5ea   : > { %3738 = vrot.lane.b32.xlu2 %v10364_v60, %s9667_s6  ;;  %v13867_v60 = vld [vmem:[#allocation79_spill] sm:$0xff] }
 0x5eb   : > { %v2464_v41 = vsub.f32 %v13867_v60, %v10946_v11 }
 0x5ed   : > { %v2482_v18 = vmul.f32 1.442695, %v2464_v41  ;;  %v11058_v41 = vmul.f32 0.17677669, %v10953_v57 }
 0x5ef   : > { %v10990_v51 = vpop.permute.xlu0 %3127  ;;  %9109 = vpow2.f32 %v2482_v18  ;;  %v2417_v26 = vsel %vm1724_vm6, %v11058_v41, -inf }
 0x5f0   : > { %13866 = vst [vmem:[#allocation39_spill] sm:$0xff] %v10990_v51  ;;  %9111 = vpow2.f32 %v2500_v28 }
 0x5f1   : > { %9113 = vpow2.f32 %v2498_v47  ;;  %v11071_v47 = vmul.f32 0.17677669, %v2395_v14 }
 0x5f3   : > { %v2459_v57 = vsel %vm1724_vm6, %v11071_v47, -inf }
 0x5f5   : > { %v11027_v34 = vpop.eup %9109 }
 0x5f6   : > { %v2516_v7 = vsel %vm1724_vm6, %v11027_v34, 0.0  ;;  %v11031_v11 = vpop.eup %9111 }
 0x5f7   : > { %v2303_v44 = vpop.permute.xlu0 %2302  ;;  %v2543_v42 = vsel %vm1724_vm6, %v11031_v11, 0.0  ;;  %v11035_v9 = vpop.eup %9113 }
 0x5f8   : > { %8562 = vmatmul.msk.bf16.vlgmr.msrb.gmra.mxu0 %vm1491_vm4, %v2303_v44  ;;  %v2540_v43 = vsel %vm1724_vm6, %v11035_v9, 0.0  ;;  %v11045_v44 = vmul.f32 0.17677669, %v2371_v50 }
 0x675   : > { %v2321_v13 = vpop.f32.mrf.mxu0 }
 0x676   : > { %v10993_v46 = vmul.f32 0.17677669, %v2321_v13  ;;  %v2426_v13 = vsel %vm1724_vm6, %v11043_v0, -inf }
 0x678   : > { %v2438_v27 = vsel %vm1724_vm6, %v10993_v46, -inf }
 0x679   : > { %2439 = vmax.xlane.f32.xlu1 %v2438_v27  ;;  %v2453_v27 = vsel %vm1724_vm6, %v11045_v44, -inf }
 0x67d   : > { %v2323_v32 = vpop.f32.mrf.mxu0 }
 0x67e   : > { %v10997_v62 = vmul.f32 0.17677669, %v2323_v32  ;;  %v11051_v32 = vpop.permute.xlu1 %3033 }
 0x680   : > { %v2441_v58 = vsel %vm1724_vm6, %v10997_v62, -inf }
 0x681   : > { %2442 = vmax.xlane.f32.xlu0 %v2441_v58  ;;  %v11053_v58 = vmul.f32 0.17677669, %v2369_v35 }
 0x683   : > { %v2450_v60 = vsel %vm1724_vm6, %v11053_v58, -inf }
 0x686   : > { %v11060_v18 = vpop.permute.xlu1 %3031 }
 0x68e   : > { %v11067_v28 = vpop.permute.xlu1 %3129 }
 0x692   : > { %2915 = vrot.lane.b32.xlu1 %v10351_v29, %s9666_s5 }
 0x695   : > { %2919 = vrot.lane.b32.xlu0 %v10378_v22, %s9666_s5 }
 0x69a   : > { %2923 = vrot.lane.b32.xlu1 %v10418_v20, %s9666_s5 }
 0x69d   : > { %2917 = vrot.lane.b32.xlu0 %v10356_v55, %s9666_s5 }
 0x6a2   : > { %2925 = vrot.lane.b32.xlu1 %v10424_v37, %s9666_s5 }
 0x6a5   : > { %2935 = vrot.lane.b32.xlu0 %v10537_v19, %s9666_s5 }
 0x6aa   : > { %2931 = vrot.lane.b32.xlu1 %v10497_v17, %s9666_s5 }
 0x6ad   : > { %2939 = vrot.lane.b32.xlu0 %v10563_v63, %s9666_s5 }
 0x6b2   : > { %2933 = vrot.lane.b32.xlu1 %v10503_v16, %s9666_s5 }
 0x6ba   : > { %2941 = vrot.lane.b32.xlu1 %v10569_v53, %s9666_s5 }
 0x6d7   : > { %2517 = vadd.xlane.f32.xlu0 %v2516_v7  ;;  %v11075_v7 = vpop.permute.xlu1 %3079 }
 0x6df   : > { %2544 = vadd.xlane.f32.xlu0 %v2543_v42 }
 0x6e4   : > { %2541 = vadd.xlane.f32.xlu1 %v2540_v43 }
 0x6e7   : > { %2430 = vmax.xlane.f32.xlu0 %v2429_v48  ;;  %v11085_v48 = vpop.permute.xlu2 %2921 }
 0x6ec   : > { %2427 = vmax.xlane.f32.xlu1 %v2426_v13  ;;  %v11077_v35 = vpop.xlane.xlu1 %2439 }
 0x6ef   : > { %2454 = vmax.xlane.f32.xlu0 %v2453_v27  ;;  %v11089_v27 = vpop.permute.xlu2 %2937 }
 0x6f4   : > { %2451 = vmax.xlane.f32.xlu1 %v2450_v60  ;;  %v11079_v42 = vpop.xlane.xlu0 %2442 }
 0x6fc   : > { %2418 = vmax.xlane.f32.xlu1 %v2417_v26 }
 0x704   : > { %2436 = vmax.xlane.f32.xlu1 %v2435_v5  ;;  %v11081_v4 = vpop.permute.xlu1 %2915  ;;  %v11095_v5 = vpop.permute.xlu2 %3762 }
 0x705   : > { %13868 = vst [vmem:[#allocation34_spill] sm:$0xff] %v11095_v5 }
 0x707   : > { %v11083_v43 = vpop.permute.xlu0 %2919 }
 0x70c   : > { %2460 = vmax.xlane.f32.xlu1 %v2459_v57  ;;  %v11087_v50 = vpop.permute.xlu1 %2923  ;;  %v2521_v57 = vpop.xlane.xlu2 %2520 }
 0x70d   : > { %9115 = vrcp.f32 %v2521_v57  ;;  %v2991_v57 = vsel %vm1491_vm4, %v10967_v3, 0 }
 0x70f   : > { %v2918_v13 = vpop.permute.xlu0 %2917 }
 0x713   : > { %v9116_v17 = vpop.eup %9115 }
 0x714   : > { %v11091_v60 = vpop.permute.xlu1 %2925  ;;  %v2577_v40 = vmul.f32 %v9116_v17, %v10955_v45 }
 0x716   : > { %v2593_v20 = vpack.c.bf16 %v2577_v40, %v2577_v40 }
 0x717   : > { %v11093_v26 = vpop.permute.xlu0 %2935 }
 0x718   : > { %v2635_v55 = vunpack.c.l.b16 %v2593_v20 }
 0x71c   : > { %v11097_v14 = vpop.permute.xlu1 %2931 }
 0x71f   : > { %v11099_v53 = vpop.permute.xlu0 %2939 }
 0x720   : > { %13869 = vst [vmem:[#allocation45_spill] sm:$0xff] %v11099_v53 }
 0x724   : > { %v2934_v19 = vpop.permute.xlu1 %2933 }
 0x72c   : > { %v11102_v37 = vpop.permute.xlu1 %2941 }
 0x74a   : > { %v2518_v63 = vpop.xlane.xlu0 %2517 }
 0x74b   : > { %9117 = vrcp.f32 %v2518_v63 }
 0x751   : > { %v9118_v16 = vpop.eup %9117 }
 0x752   : > { %v2576_v56 = vmul.f32 %v9118_v16, %v11027_v34  ;;  %v2545_v22 = vpop.xlane.xlu0 %2544 }
 0x753   : > { %9119 = vrcp.f32 %v2545_v22 }
 0x754   : > { %v2592_v5 = vpack.c.bf16 %v2576_v56, %v2576_v56 }
 0x756   : > { %v2634_v29 = vunpack.c.l.b16 %v2592_v5 }
 0x757   : > { %v2542_v51 = vpop.xlane.xlu1 %2541 }
 0x758   : > { %v2636_v53 = vpack.c.b16 %v2635_v55, %v2634_v29  ;;  %9121 = vrcp.f32 %v2542_v51  ;;  %v2416_v51 = vpop.xlane.xlu2 %2415 }
 0x759   : > { %v9120_v63 = vpop.eup %9119 }
 0x75a   : > { %8567 = vmatmul.msk.bf16.vlgmr.msra.gmra.mxu1 %vm1724_vm6, %v2636_v53  ;;  %v2585_v40 = vmul.f32 %v9120_v63, %v11031_v11  ;;  %v3087_v11 = vsel %vm1491_vm4, %v10979_v21, 0 }
 0x75b   : > { %3000 = vmatpush.bf16.xpose.msra.mxu1 %v2991_v57 }
 0x75c   : > { %v2601_v56 = vpack.c.bf16 %v2585_v40, %v2585_v40  ;;  %v2946_v40 = vrot.slane %v2918_v13, 4 }
 0x75e   : > { %v9122_v17 = vpop.eup %9121  ;;  %v2739_v55 = vunpack.c.l.b16 %v2601_v56  ;;  %v2954_v56 = vrot.slane %v2934_v19, 4 }
 0x75f   : > { %v2584_v16 = vmul.f32 %v9122_v17, %v11035_v9  ;;  %v2428_v45 = vpop.xlane.xlu1 %2427  ;;  %v2462_v9 = vsub.f32 %v10961_v49, %v2416_v51  ;;  %v3391_v49 = vunpack.c.l.b16 %v2946_v40 }
 0x760   : > { %v2466_v22 = vsub.f32 %v11043_v0, %v2428_v45 }
 0x761   : > { %v2600_v20 = vpack.c.bf16 %v2584_v16, %v2584_v16  ;;  %v2478_v17 = vmul.f32 1.442695, %v2462_v9  ;;  %v2431_v9 = vpop.xlane.xlu0 %2430 }
 0x762   : > { %v2486_v34 = vmul.f32 1.442695, %v2466_v22 }
 0x763   : > { %v2738_v29 = vunpack.c.l.b16 %v2600_v20 }
 0x764   : > { %9123 = vpow2.f32 %v2486_v34  ;;  %v3495_v34 = vunpack.c.l.b16 %v2954_v56 }
 0x765   : > { %v2740_v5 = vpack.c.b16 %v2739_v55, %v2738_v29 }
 0x767   : > { %v2452_v3 = vpop.xlane.xlu1 %2451 }
 0x768   : > { %v2474_v53 = vsub.f32 %v11053_v58, %v2452_v3  ;;  %v2945_v58 = vrot.slane %v11081_v4, 4  ;;  %v2953_v4 = vrot.slane %v11097_v14, 4 }
 0x76a   : > { %v11112_v57 = vpop.eup %9123  ;;  %v2502_v63 = vmul.f32 1.442695, %v2474_v53  ;;  %8571 = vmatmul.msk.bf16.vlgmr.msrb.gmra.mxu1 %vm1724_vm6, %v2740_v5  ;;  %v3390_v45 = vunpack.c.l.b16 %v2945_v58  ;;  %v3494_v29 = vunpack.c.l.b16 %v2953_v4 }
 0x76b   : > { %3096 = vmatpush.bf16.xpose.msrb.mxu1 %v3087_v11  ;;  %v2522_v0 = vsel %vm1724_vm6, %v11112_v57, 0.0 }
 0x76c   : > { %9125 = vpow2.f32 %v2502_v63  ;;  %2523 = vadd.xlane.f32.xlu1 %v2522_v0  ;;  %v3392_v20 = vpack.c.b16 %v3391_v49, %v3390_v45  ;;  %v3496_v55 = vpack.c.b16 %v3495_v34, %v3494_v29 }
 0x76d   : > { %9127 = vpow2.f32 %v2478_v17  ;;  %v2467_v17 = vsub.f32 %v11037_v61, %v2431_v9 }
 0x76f   : > { %v2488_v58 = vmul.f32 1.442695, %v2467_v17 }
 0x772   : > { %v11120_v16 = vpop.eup %9125 }
 0x773   : > { %v2546_v21 = vsel %vm1724_vm6, %v11120_v16, 0.0  ;;  %v11125_v22 = vpop.eup %9127 }
 0x774   : > { %2547 = vadd.xlane.f32.xlu1 %v2546_v21  ;;  %v2510_v13 = vsel %vm1724_vm6, %v11125_v22, 0.0  ;;  %v2455_v21 = vpop.xlane.xlu0 %2454 }
 0x77a   : > { %8575 = vmatmul.msk.bf16.vlgmr.msra.gmra.mxu1 %vm1491_vm4, %v10973_v31  ;;  %v2471_v31 = vsub.f32 %v10997_v62, %v11079_v42  ;;  %v2419_v42 = vpop.xlane.xlu1 %2418 }
 0x77b   : > { %3404 = vmatpush.bf16.msra.mxu1 %v3392_v20  ;;  %v2475_v20 = vsub.f32 %v11045_v44, %v2455_v21 }
 0x77c   : > { %2511 = vadd.xlane.f32.xlu1 %v2510_v13  ;;  %v2496_v51 = vmul.f32 1.442695, %v2471_v31 }
 0x77d   : > { %v2504_v61 = vmul.f32 1.442695, %v2475_v20 }
 0x77e   : > { %9129 = vpow2.f32 %v2496_v51  ;;  %v2463_v51 = vsub.f32 %v11058_v41, %v2419_v42 }
 0x77f   : > { %9131 = vpow2.f32 %v2488_v58 }
 0x780   : > { %9133 = vpow2.f32 %v2504_v61 }
 0x782   : > { %v2437_v63 = vpop.xlane.xlu1 %2436 }
 0x783   : > { %v2469_v58 = vsub.f32 %v11065_v1, %v2437_v63  ;;  %v13872_v63 = vld [vmem:[#allocation17_spill] sm:$0xff] }
 0x784   : > { %v11138_v3 = vpop.eup %9129 }
 0x785   : > { %v2537_v19 = vsel %vm1724_vm6, %v11138_v3, 0.0  ;;  %v11169_v29 = vpop.eup %9131 }
 0x786   : > { %v2525_v44 = vsel %vm1724_vm6, %v11169_v29, 0.0 }
 0x78a   : > { %8579 = vmatmul.msk.bf16.vlgmr.msrb.gmra.mxu1 %vm1491_vm4, %v11075_v7  ;;  %v2461_v49 = vpop.xlane.xlu1 %2460 }
 0x78b   : > { %3508 = vmatpush.bf16.msrb.mxu1 %v3496_v55  ;;  %v2477_v56 = vsub.f32 %v11071_v47, %v2461_v49 }
 0x78d   : > { %v2508_v34 = vmul.f32 1.442695, %v2477_v56 }
 0x78f   : > { %9135 = vpow2.f32 %v2508_v34 }
 0x795   : > { %3760 = vrot.lane.b32.xlu1 %v10476_v30, %s9667_s6 }
 0x7bf   : > { %2538 = vadd.xlane.f32.xlu1 %v2537_v19  ;;  %v2480_v19 = vmul.f32 1.442695, %v2463_v51  ;;  %v13874_v51 = vld [vmem:[#allocation33_spill] sm:$0xff] }
 0x7c1   : > { %9137 = vpow2.f32 %v2480_v19 }
 0x7d7   : > { %v11142_v14 = vpop.f32.mrf.mxu1 }
 0x7d8   : > { %3832 = vrot.lane.b32.xlu1 %v10534_v25, %s9667_s6 }
 0x7df   : > { %v11146_v7 = vpop.f32.mrf.mxu1 }
 0x7e0   : > { %3055 = vrot.lane.b32.xlu1 %v13865_v54, %s9666_s5 }
 0x7e7   : > { %v11150_v30 = vpop.f32.mrf.mxu1 }
 0x7e8   : > { %13870 = vst [vmem:[#allocation79_spill] sm:$0xff] %v11150_v30 }
 0x7ef   : > { %v11152_v62 = vpop.f32.mrf.mxu1 }
 0x7f0   : > { %13871 = vst [vmem:[#allocation80_spill] sm:$0xff] %v11152_v62 }
 0x7f7   : > { %v3002_v5 = vpop.f32.mrf.mxu1 }
 0x7f8   : > { %v11154_v53 = vmul.f32 0.17677669, %v3002_v5  ;;  %v11178_v5 = vpop.eup %9133 }
 0x7f9   : > { %v11180_v9 = vpop.eup %9135  ;;  %v2549_v41 = vsel %vm1724_vm6, %v11178_v5, 0.0 }
 0x7fa   : > { %v3173_v11 = vsel %vm1724_vm6, %v11154_v53, -inf  ;;  %v2555_v42 = vsel %vm1724_vm6, %v11180_v9, 0.0 }
 0x7fb   : > { %3174 = vmax.xlane.f32.xlu0 %v3173_v11  ;;  %v2434_v11 = vpop.xlane.xlu2 %2433 }
 0x7ff   : > { %v3004_v25 = vpop.f32.mrf.mxu1 }
 0x800   : > { %v11158_v0 = vmul.f32 0.17677669, %v3004_v25  ;;  %v2468_v25 = vsub.f32 %v10969_v33, %v2434_v11  ;;  %v2492_v33 = vmul.f32 1.442695, %v2469_v58 }
 0x802   : > { %v3176_v40 = vsel %vm1724_vm6, %v11158_v0, -inf  ;;  %v2490_v17 = vmul.f32 1.442695, %v2468_v25 }
 0x803   : > { %3177 = vmax.xlane.f32.xlu2 %v3176_v40  ;;  %v11187_v40 = vpop.eup %9137  ;;  %v2458_v49 = vpop.xlane.xlu2 %2457 }
 0x804   : > { %9139 = vpow2.f32 %v2490_v17  ;;  %v2513_v21 = vsel %vm1724_vm6, %v11187_v40, 0.0  ;;  %v2476_v20 = vsub.f32 %v10975_v10, %v2458_v49 }
 0x805   : > { %9141 = vpow2.f32 %v2492_v33 }
 0x807   : > { %v3098_v45 = vpop.f32.mrf.mxu1 }
 0x808   : > { %v11164_v13 = vmul.f32 0.17677669, %v3098_v45 }
 0x80a   : > { %v3197_v4 = vsel %vm1724_vm6, %v11164_v13, -inf  ;;  %v11192_v45 = vpop.eup %9139 }
 0x80b   : > { %3198 = vmax.xlane.f32.xlu0 %v3197_v4  ;;  %v2528_v56 = vsel %vm1724_vm6, %v11192_v45, 0.0  ;;  %v2506_v4 = vmul.f32 1.442695, %v2476_v20  ;;  %v11197_v61 = vpop.eup %9141  ;;  %v11223_v11 = vpop.permute.xlu2 %3738 }
 0x80c   : > { %v2531_v1 = vsel %vm1724_vm6, %v11197_v61, 0.0 }
 0x80d   : > { %9143 = vpow2.f32 %v2506_v4 }
 0x80f   : > { %v3100_v55 = vpop.f32.mrf.mxu1 }
 0x810   : > { %v11171_v31 = vmul.f32 0.17677669, %v3100_v55  ;;  %v13873_v55 = vld [vmem:[#allocation18_spill] sm:$0xff] }
 0x812   : > { %v3200_v47 = vsel %vm1724_vm6, %v11171_v31, -inf }
 0x813   : > { %2526 = vadd.xlane.f32.xlu0 %v2525_v44  ;;  %3201 = vmax.xlane.f32.xlu2 %v3200_v47  ;;  %v11203_v34 = vpop.eup %9143  ;;  %v13875_v44 = vld [vmem:[#allocation15_spill] sm:$0xff]  ;;  %v2470_v47 = vsub.f32 %v10993_v46, %v11077_v35 }
 0x814   : > { %v2552_v10 = vsel %vm1724_vm6, %v11203_v34, 0.0 }
 0x815   : > { %v2494_v19 = vmul.f32 1.442695, %v2470_v47 }
 0x817   : > { %9145 = vpow2.f32 %v2494_v19 }
 0x81b   : > { %2550 = vadd.xlane.f32.xlu0 %v2549_v41  ;;  %2556 = vadd.xlane.f32.xlu2 %v2555_v42  ;;  %v2524_v42 = vpop.xlane.xlu1 %2523 }
 0x823   : > { %2514 = vadd.xlane.f32.xlu0 %v2513_v21 }
 0x82b   : > { %2529 = vadd.xlane.f32.xlu0 %v2528_v56 }
 0x833   : > { %2158 = vrot.lane.b32.xlu2 %v13872_v63, %s9665_s28  ;;  %2532 = vadd.xlane.f32.xlu0 %v2531_v1 }
 0x83b   : > { %2160 = vrot.lane.b32.xlu2 %v13873_v55, %s9665_s28  ;;  %2553 = vadd.xlane.f32.xlu0 %v2552_v10 }
 0x843   : > { %3786 = vrot.lane.b32.xlu2 %v13874_v51, %s9667_s6 }
 0x84b   : > { %3858 = vrot.lane.b32.xlu2 %v10550_v6, %s9667_s6  ;;  %v13876_v6 = vld [vmem:[#allocation37_spill] sm:$0xff] }
 0x84f   : > { %3736 = vrot.lane.b32.xlu0 %v10374_v2, %s9667_s6  ;;  %v11227_v2 = vpop.eup %9145 }
 0x850   : > { %v2534_v25 = vsel %vm1724_vm6, %v11227_v2, 0.0 }
 0x857   : > { %3784 = vrot.lane.b32.xlu0 %v13875_v44, %s9667_s6 }
 0x85f   : > { %3834 = vrot.lane.b32.xlu0 %v10518_v52, %s9667_s6 }
 0x867   : > { %2174 = vrot.lane.b32.xlu0 %v10461_v36, %s9665_s28 }
 0x86e   : > { %v11231_v52 = vpop.xlane.xlu0 %3174 }
 0x86f   : > { %2176 = vrot.lane.b32.xlu0 %v13876_v6, %s9665_s28 }
 0x874   : > { %2535 = vadd.xlane.f32.xlu2 %v2534_v25 }
 0x876   : > { %v3178_v41 = vpop.xlane.xlu2 %3177 }
 0x877   : > { %v3218_v46 = vsub.f32 %v11158_v0, %v3178_v41  ;;  %3882 = vrot.lane.b32.xlu0 %v10576_v8, %s9667_s6  ;;  %v2548_v0 = vpop.xlane.xlu1 %2547 }
 0x879   : > { %v3237_v35 = vmul.f32 1.442695, %v3218_v46 }
 0x87b   : > { %9147 = vpow2.f32 %v3237_v35 }
 0x87c   : > { %9149 = vrcp.f32 %v2524_v42  ;;  %v13878_v42 = vld [vmem:[#allocation29_spill] sm:$0xff] }
 0x87e   : > { %v3199_v17 = vpop.xlane.xlu0 %3198 }
 0x87f   : > { %v3225_v58 = vsub.f32 %v11164_v13, %v3199_v17  ;;  %3880 = vrot.lane.b32.xlu0 %v13863_v59, %s9667_s6  ;;  %v13877_v13 = vld [vmem:[#allocation19_spill] sm:$0xff]  ;;  %v2512_v25 = vpop.xlane.xlu1 %2511 }
 0x881   : > { %v11239_v21 = vpop.eup %9147  ;;  %v3251_v33 = vmul.f32 1.442695, %v3225_v58 }
 0x882   : > { %v3272_v49 = vsel %vm1724_vm6, %v11239_v21, 0.0  ;;  %v9150_v56 = vpop.eup %9149 }
 0x883   : > { %9151 = vpow2.f32 %v3251_v33  ;;  %3273 = vadd.xlane.f32.xlu1 %v3272_v49  ;;  %v2578_v59 = vmul.f32 %v9150_v56, %v11112_v57 }
 0x885   : > { %v2594_v51 = vpack.c.bf16 %v2578_v59, %v2578_v59 }
 0x886   : > { %v2527_v8 = vpop.xlane.xlu0 %2526  ;;  %v11243_v20 = vpop.xlane.xlu2 %3201 }
 0x887   : > { %9153 = vrcp.f32 %v2527_v8  ;;  %2961 = vrot.lane.b32.xlu0 %v13877_v13, %s9666_s5  ;;  %v2660_v57 = vunpack.c.l.b16 %v2594_v51 }
 0x889   : > { %v11247_v4 = vpop.eup %9151 }
 0x88a   : > { %v3293_v1 = vsel %vm1724_vm6, %v11247_v4, 0.0 }
 0x88b   : > { %3294 = vadd.xlane.f32.xlu1 %v3293_v1 }
 0x88c   : > { %3856 = vrot.lane.b32.xlu2 %v10408_v12, %s9667_s6 }
 0x88d   : > { %v9154_v10 = vpop.eup %9153 }
 0x88e   : > { %v2579_v44 = vmul.f32 %v9154_v10, %v11169_v29  ;;  %v2551_v47 = vpop.xlane.xlu0 %2550  ;;  %v2557_v19 = vpop.xlane.xlu2 %2556  ;;  %v3015_v29 = vsel %vm1491_vm4, %v10959_v38, 0 }
 0x88f   : > { %9155 = vrcp.f32 %v2551_v47  ;;  %3057 = vrot.lane.b32.xlu0 %v13862_v39, %s9666_s5 }
 0x890   : > { %v2595_v41 = vpack.c.bf16 %v2579_v44, %v2579_v44  ;;  %9157 = vrcp.f32 %v2548_v0 }
 0x891   : > { %9159 = vrcp.f32 %v2512_v25 }
 0x892   : > { %v2661_v46 = vunpack.c.l.b16 %v2595_v41 }
 0x894   : > { %v2662_v35 = vpack.c.b16 %v2661_v46, %v2660_v57  ;;  %2959 = vrot.lane.b32.xlu2 %v13878_v42, %s9666_s5 }
 0x895   : > { %v9156_v12 = vpop.eup %9155 }
 0x896   : > { %8568 = vmatmul.msk.bf16.vlgmr.msra.gmra.mxu2 %vm1724_vm6, %v2662_v35  ;;  %v2515_v17 = vpop.xlane.xlu0 %2514  ;;  %v2159_v58 = vpop.permute.xlu2 %2158  ;;  %v2587_v49 = vmul.f32 %v9156_v12, %v11178_v5 }
 0x897   : > { %v9158_v33 = vpop.eup %9157  ;;  %3024 = vmatpush.bf16.xpose.msra.mxu2 %v3015_v29  ;;  %9161 = vrcp.f32 %v2515_v17  ;;  %v2190_v10 = vrot.slane %v2159_v58, 4  ;;  %v3111_v58 = vsel %vm1491_vm4, %v10984_v23, 0 }
 0x898   : > { %v9160_v0 = vpop.eup %9159  ;;  %v2586_v8 = vmul.f32 %v9158_v33, %v11120_v16  ;;  %v2603_v59 = vpack.c.bf16 %v2587_v49, %v2587_v49 }
 0x899   : > { %v2574_v56 = vmul.f32 %v9160_v0, %v11125_v22  ;;  %v2611_v35 = vunpack.c.l.b16 %v2190_v10 }
 0x89a   : > { %v2602_v51 = vpack.c.bf16 %v2586_v8, %v2586_v8  ;;  %v2765_v57 = vunpack.c.l.b16 %v2603_v59  ;;  %v3217_v8 = vsub.f32 %v11154_v53, %v11231_v52  ;;  %v2947_v59 = vrot.slane %v11083_v43, 4 }
 0x89b   : > { %v2590_v41 = vpack.c.bf16 %v2574_v56, %v2574_v56  ;;  %v3226_v53 = vsub.f32 %v11171_v31, %v11243_v20 }
 0x89c   : > { %v2764_v12 = vunpack.c.l.b16 %v2602_v51  ;;  %v2948_v51 = vrot.slane %v11085_v48, 4 }
 0x89d   : > { %v9162_v1 = vpop.eup %9161  ;;  %v2608_v17 = vunpack.c.l.b16 %v2590_v41 }
 0x89e   : > { %v2575_v38 = vmul.f32 %v9162_v1, %v11187_v40  ;;  %v2530_v44 = vpop.xlane.xlu0 %2529  ;;  %v2161_v47 = vpop.permute.xlu2 %2160  ;;  %v2766_v22 = vpack.c.b16 %v2765_v57, %v2764_v12 }
 0x89f   : > { %v2191_v25 = vrot.slane %v2161_v47, 4  ;;  %9163 = vrcp.f32 %v2530_v44  ;;  %v3416_v47 = vunpack.c.l.b16 %v2947_v59 }
 0x8a0   : > { %v2591_v46 = vpack.c.bf16 %v2575_v38, %v2575_v38  ;;  %v3235_v38 = vmul.f32 1.442695, %v3217_v8 }
 0x8a1   : > { %v2612_v5 = vunpack.c.l.b16 %v2191_v25 }
 0x8a2   : > { %v2609_v29 = vunpack.c.l.b16 %v2591_v46 }
 0x8a3   : > { %v2613_v16 = vpack.c.b16 %v2612_v5, %v2611_v35  ;;  %v2955_v5 = vrot.slane %v11093_v26, 4  ;;  %v3135_v26 = vsel %vm1491_vm4, %v11067_v28, 0  ;;  %v11312_v28 = vpop.permute.xlu1 %3760 }
 0x8a4   : > { %v2610_v33 = vpack.c.b16 %v2609_v29, %v2608_v17 }
 0x8a5   : > { %2625 = vmatpush.bf16.msra.mxu0 %v2613_v16  ;;  %v9164_v49 = vpop.eup %9163  ;;  %v3520_v17 = vunpack.c.l.b16 %v2955_v5 }
 0x8a6   : > { %8572 = vmatmul.msk.bf16.vlgmr.msrb.gmra.mxu2 %vm1724_vm6, %v2766_v22  ;;  %v2533_v40 = vpop.xlane.xlu0 %2532  ;;  %v2580_v0 = vmul.f32 %v9164_v49, %v11192_v45  ;;  %v3417_v45 = vunpack.c.l.b16 %v2948_v51  ;;  %v2950_v49 = vrot.slane %v11091_v60, 4  ;;  %v13879_v51 = vld [vmem:[#allocation45_spill] sm:$0xff] }
 0x8a7   : > { %3120 = vmatpush.bf16.xpose.msrb.mxu2 %v3111_v58  ;;  %9165 = vrcp.f32 %v2533_v40  ;;  %v2957_v60 = vrot.slane %v13879_v51, 4 }
 0x8a8   : > { %8566 = vmatmul.msk.bf16.vlgmr.msra.gmra.mxu0 %vm1724_vm6, %v2610_v33  ;;  %v2596_v1 = vpack.c.bf16 %v2580_v0, %v2580_v0  ;;  %v3418_v57 = vpack.c.b16 %v3417_v45, %v3416_v47  ;;  %v2949_v0 = vrot.slane %v11087_v50, 4  ;;  %v3443_v8 = vunpack.c.l.b16 %v2950_v49 }
 0x8a9   : > { %v3546_v45 = vunpack.c.l.b16 %v2957_v60 }
 0x8aa   : > { %v2686_v25 = vunpack.c.l.b16 %v2596_v1  ;;  %v3442_v59 = vunpack.c.l.b16 %v2949_v0 }
 0x8ac   : > { %v3444_v1 = vpack.c.b16 %v3443_v8, %v3442_v59 }
 0x8ad   : > { %v9166_v56 = vpop.eup %9165 }
 0x8ae   : > { %v2581_v23 = vmul.f32 %v9166_v56, %v11197_v61  ;;  %v2554_v10 = vpop.xlane.xlu0 %2553  ;;  %v3039_v61 = vsel %vm1491_vm4, %v11051_v32, 0 }
 0x8af   : > { %9167 = vrcp.f32 %v2554_v10  ;;  %v2958_v10 = vrot.slane %v11102_v37, 4 }
 0x8b0   : > { %v2597_v44 = vpack.c.bf16 %v2581_v23, %v2581_v23  ;;  %9169 = vrcp.f32 %v2557_v19  ;;  %v3253_v19 = vmul.f32 1.442695, %v3226_v53  ;;  %v11308_v23 = vpop.permute.xlu2 %3786 }
 0x8b1   : > { %9171 = vpow2.f32 %v3235_v38  ;;  %v2539_v38 = vpop.xlane.xlu1 %2538  ;;  %v3547_v47 = vunpack.c.l.b16 %v2958_v10 }
 0x8b2   : > { %v2687_v41 = vunpack.c.l.b16 %v2597_v44  ;;  %9173 = vpow2.f32 %v3253_v19 }
 0x8b3   : > { %9175 = vrcp.f32 %v2539_v38 }
 0x8b4   : > { %v2688_v52 = vpack.c.b16 %v2687_v41, %v2686_v25 }
 0x8b5   : > { %v9168_v43 = vpop.eup %9167 }
 0x8b6   : > { %8569 = vmatmul.msk.bf16.vlgmr.msra.gmra.mxu3 %vm1724_vm6, %v2688_v52  ;;  %8576 = vmatmul.msk.bf16.vlgmr.msra.gmra.mxu2 %vm1491_vm4, %v10981_v15  ;;  %v9170_v48 = vpop.eup %9169  ;;  %v2588_v46 = vmul.f32 %v9168_v43, %v11203_v34  ;;  %v2956_v15 = vrot.slane %v11089_v27, 4 }
 0x8b7   : > { %3048 = vmatpush.bf16.xpose.msra.mxu3 %v3039_v61  ;;  %3430 = vmatpush.bf16.msra.mxu2 %v3418_v57  ;;  %v11284_v35 = vpop.eup %9171  ;;  %v2589_v31 = vmul.f32 %v9170_v48, %v11180_v9  ;;  %v13880_v57 = vld [vmem:[#allocation39_spill] sm:$0xff] }
 0x8b8   : > { %v2604_v20 = vpack.c.bf16 %v2588_v46, %v2588_v46  ;;  %v3269_v32 = vsel %vm1724_vm6, %v11284_v35, 0.0  ;;  %v11291_v16 = vpop.eup %9173  ;;  %v3521_v58 = vunpack.c.l.b16 %v2956_v15  ;;  %v11316_v50 = vpop.permute.xlu2 %3858 }
 0x8b9   : > { %v2605_v12 = vpack.c.bf16 %v2589_v31, %v2589_v31  ;;  %v3296_v33 = vsel %vm1724_vm6, %v11291_v16, 0.0  ;;  %v9176_v61 = vpop.eup %9175 }
 0x8ba   : > { %v2790_v29 = vunpack.c.l.b16 %v2604_v20  ;;  %v3522_v40 = vpack.c.b16 %v3521_v58, %v3520_v17  ;;  %v2583_v19 = vmul.f32 %v9176_v61, %v11138_v3 }
 0x8bb   : > { %v2791_v22 = vunpack.c.l.b16 %v2605_v12 }
 0x8bc   : > { %v2599_v31 = vpack.c.bf16 %v2583_v19, %v2583_v19 }
 0x8bd   : > { %3270 = vadd.xlane.f32.xlu2 %v3269_v32  ;;  %v2792_v9 = vpack.c.b16 %v2791_v22, %v2790_v29 }
 0x8be   : > { %v2713_v12 = vunpack.c.l.b16 %v2599_v31 }
 0x8c1   : > { %v11293_v34 = vpop.permute.xlu0 %3736 }
 0x8c5   : > { %3297 = vadd.xlane.f32.xlu2 %v3296_v33 }
 0x8c6   : > { %8573 = vmatmul.msk.bf16.vlgmr.msrb.gmra.mxu3 %vm1724_vm6, %v2792_v9  ;;  %8580 = vmatmul.msk.bf16.vlgmr.msrb.gmra.mxu2 %vm1491_vm4, %v10986_v24 }
 0x8c7   : > { %3144 = vmatpush.bf16.xpose.msrb.mxu3 %v3135_v26  ;;  %3534 = vmatpush.bf16.msrb.mxu2 %v3522_v40 }
 0x8c9   : > { %v11302_v27 = vpop.permute.xlu0 %3784 }
 0x8d1   : > { %v11306_v56 = vpop.permute.xlu0 %3834 }
 0x8d6   : > { %8577 = vmatmul.msk.bf16.vlgmr.msra.gmra.mxu3 %vm1491_vm4, %v11060_v18  ;;  %v3548_v18 = vpack.c.b16 %v3547_v47, %v3546_v45 }
 0x8d7   : > { %3456 = vmatpush.bf16.msra.mxu3 %v3444_v1 }
 0x8d9   : > { %v2175_v24 = vpop.permute.xlu0 %2174 }
 0x8da   : > { %v2198_v44 = vrot.slane %v2175_v24, 4 }
 0x8dc   : > { %v2715_v53 = vunpack.c.l.b16 %v2198_v44 }
 0x8e1   : > { %v2177_v25 = vpop.permute.xlu0 %2176 }
 0x8e2   : > { %v2199_v41 = vrot.slane %v2177_v25, 4 }
 0x8e4   : > { %v2716_v52 = vunpack.c.l.b16 %v2199_v41 }
 0x8e6   : > { %v2717_v43 = vpack.c.b16 %v2716_v52, %v2715_v53  ;;  %8581 = vmatmul.msk.bf16.vlgmr.msrb.gmra.mxu3 %vm1491_vm4, %v13880_v57  ;;  %v3744_v57 = vsel %vm1491_vm4, %v11223_v11, 0 }
 0x8e7   : > { %3560 = vmatpush.bf16.msrb.mxu3 %v3548_v18  ;;  %v2536_v37 = vpop.xlane.xlu2 %2535 }
 0x8e8   : > { %9177 = vrcp.f32 %v2536_v37  ;;  %2729 = vmatpush.bf16.msrb.mxu0 %v2717_v43 }
 0x8e9   : > { %v11320_v48 = vpop.permute.xlu0 %3882 }
 0x8ee   : > { %v9178_v46 = vpop.eup %9177 }
 0x8ef   : > { %v2582_v20 = vmul.f32 %v9178_v46, %v11227_v2  ;;  %v11328_v58 = vpop.permute.xlu2 %3856  ;;  %v3833_v2 = vpop.permute.xlu1 %3832 }
 0x8f1   : > { %v2598_v32 = vpack.c.bf16 %v2582_v20, %v2582_v20  ;;  %v11324_v5 = vpop.permute.xlu0 %3880 }
 0x8f3   : > { %v2712_v15 = vunpack.c.l.b16 %v2598_v32 }
 0x8f5   : > { %v2714_v29 = vpack.c.b16 %v2713_v12, %v2712_v15 }
 0x8f7   : > { %8570 = vmatmul.msk.bf16.vlgmr.msrb.gmra.mxu0 %vm1724_vm6, %v2714_v29  ;;  %v2960_v33 = vpop.permute.xlu2 %2959  ;;  %v3056_v40 = vpop.permute.xlu1 %3055 }
 0x8f9   : > { %v2962_v17 = vpop.permute.xlu0 %2961 }
 0x8fa   : > { %v2967_v22 = vsel %vm1491_vm4, %v2962_v17, 0 }
 0x8fb   : > { %2976 = vmatpush.bf16.xpose.msra.mxu0 %v2967_v22  ;;  %v3840_v22 = vsel %vm1491_vm4, %v11306_v56, 0 }
 0x8ff   : > { %v3274_v0 = vpop.xlane.xlu1 %3273 }
 0x900   : > { %9179 = vrcp.f32 %v3274_v0 }
 0x901   : > { %v3058_v9 = vpop.permute.xlu0 %3057 }
 0x902   : > { %v3063_v3 = vsel %vm1491_vm4, %v3058_v9, 0 }
 0x903   : > { %3072 = vmatpush.bf16.xpose.msrb.mxu0 %v3063_v3 }
 0x906   : > { %v9180_v1 = vpop.eup %9179 }
 0x907   : > { %8574 = vmatmul.msk.bf16.vlgmr.msra.gmra.mxu0 %vm1491_vm4, %v2960_v33  ;;  %v3330_v10 = vmul.f32 %v9180_v1, %v11239_v21  ;;  %v3295_v38 = vpop.xlane.xlu1 %3294 }
 0x909   : > { %v3346_v60 = vpack.c.bf16 %v3330_v10, %v3330_v10 }
 0x90b   : > { %v3388_v53 = vunpack.c.l.b16 %v3346_v60 }
 0x917   : > { %8578 = vmatmul.msk.bf16.vlgmr.msrb.gmra.mxu0 %vm1491_vm4, %v3056_v40 }
 0x919   : > { %v11333_v26 = vpop.f32.mrf.mxu2 }
 0x921   : > { %v11335_v49 = vpop.f32.mrf.mxu2 }
 0x925   : > { %v11369_v3 = vpop.f32.mrf.mxu0 }
 0x929   : > { %v11337_v8 = vpop.f32.mrf.mxu2 }
 0x92a   : > { %13881 = vst [vmem:[#allocation17_spill] sm:$0xff] %v11337_v8 }
 0x92d   : > { %v11373_v40 = vpop.f32.mrf.mxu0 }
 0x930   : > { %v3271_v59 = vpop.xlane.xlu2 %3270 }
 0x931   : > { %9181 = vrcp.f32 %v3271_v59  ;;  %v11339_v24 = vpop.f32.mrf.mxu2 }
 0x932   : > { %13882 = vst [vmem:[#allocation18_spill] sm:$0xff] %v11339_v24 }
 0x937   : > { %v9182_v51 = vpop.eup %9181 }
 0x938   : > { %v3329_v44 = vmul.f32 %v9182_v51, %v11284_v35  ;;  %v3298_v47 = vpop.xlane.xlu2 %3297 }
 0x939   : > { %9183 = vrcp.f32 %v3298_v47  ;;  %v3026_v25 = vpop.f32.mrf.mxu2 }
 0x93a   : > { %v3345_v41 = vpack.c.bf16 %v3329_v44, %v3329_v44  ;;  %v11343_v45 = vmul.f32 0.17677669, %v3026_v25  ;;  %9185 = vrcp.f32 %v3295_v38 }
 0x93c   : > { %v3387_v52 = vunpack.c.l.b16 %v3345_v41  ;;  %v3179_v18 = vsel %vm1724_vm6, %v11343_v45, -inf }
 0x93d   : > { %3180 = vmax.xlane.f32.xlu1 %v3179_v18 }
 0x93e   : > { %v3389_v43 = vpack.c.b16 %v3388_v53, %v3387_v52 }
 0x93f   : > { %v9184_v21 = vpop.eup %9183 }
 0x940   : > { %8583 = vmatmul.msk.bf16.vlgmr.msra.gmra.mxu1 %vm1724_vm6, %v3389_v43  ;;  %v9186_v35 = vpop.eup %9185  ;;  %v3338_v61 = vmul.f32 %v9184_v21, %v11291_v16 }
 0x941   : > { %3753 = vmatpush.bf16.xpose.msra.mxu1 %v3744_v57  ;;  %v3028_v37 = vpop.f32.mrf.mxu2  ;;  %v3337_v46 = vmul.f32 %v9186_v35, %v11247_v4  ;;  %v11363_v4 = vpop.f32.mrf.mxu3 }
 0x942   : > { %v11351_v19 = vmul.f32 0.17677669, %v3028_v37  ;;  %v3354_v20 = vpack.c.bf16 %v3338_v61, %v3338_v61  ;;  %13883 = vst [vmem:[#allocation33_spill] sm:$0xff] %v11363_v4 }
 0x943   : > { %v3353_v32 = vpack.c.bf16 %v3337_v46, %v3337_v46 }
 0x944   : > { %v3182_v31 = vsel %vm1724_vm6, %v11351_v19, -inf  ;;  %v3492_v15 = vunpack.c.l.b16 %v3354_v20 }
 0x945   : > { %3183 = vmax.xlane.f32.xlu2 %v3182_v31  ;;  %v3491_v29 = vunpack.c.l.b16 %v3353_v32 }
 0x947   : > { %v3493_v16 = vpack.c.b16 %v3492_v15, %v3491_v29 }
 0x949   : > { %v3122_v12 = vpop.f32.mrf.mxu2  ;;  %v11365_v9 = vpop.f32.mrf.mxu3 }
 0x94a   : > { %v11356_v11 = vmul.f32 0.17677669, %v3122_v12  ;;  %13884 = vst [vmem:[#allocation15_spill] sm:$0xff] %v11365_v9 }
 0x94c   : > { %v3203_v17 = vsel %vm1724_vm6, %v11356_v11, -inf }
 0x94d   : > { %3204 = vmax.xlane.f32.xlu2 %v3203_v17 }
 0x950   : > { %8587 = vmatmul.msk.bf16.vlgmr.msrb.gmra.mxu1 %vm1724_vm6, %v3493_v16 }
 0x951   : > { %3849 = vmatpush.bf16.xpose.msrb.mxu1 %v3840_v22  ;;  %v11371_v33 = vpop.f32.mrf.mxu3  ;;  %v3124_v38 = vpop.f32.mrf.mxu2 }
 0x952   : > { %13885 = vst [vmem:[#allocation37_spill] sm:$0xff] %v11371_v33  ;;  %v11386_v44 = vmul.f32 0.17677669, %v3124_v38 }
 0x954   : > { %v3206_v41 = vsel %vm1724_vm6, %v11386_v44, -inf }
 0x959   : > { %v11375_v0 = vpop.f32.mrf.mxu3 }
 0x95a   : > { %13886 = vst [vmem:[#allocation19_spill] sm:$0xff] %v11375_v0 }
 0x960   : > { %8591 = vmatmul.msk.bf16.vlgmr.msra.gmra.mxu1 %vm1491_vm4, %v11293_v34 }
 0x961   : > { %v3050_v59 = vpop.f32.mrf.mxu3 }
 0x962   : > { %v11394_v52 = vmul.f32 0.17677669, %v3050_v59 }
 0x964   : > { %v3185_v57 = vsel %vm1724_vm6, %v11394_v52, -inf }
 0x969   : > { %v3052_v10 = vpop.f32.mrf.mxu3 }
 0x96a   : > { %v11396_v18 = vmul.f32 0.17677669, %v3052_v10 }
 0x96c   : > { %v3188_v35 = vsel %vm1724_vm6, %v11396_v18, -inf }
 0x970   : > { %8595 = vmatmul.msk.bf16.vlgmr.msrb.gmra.mxu1 %vm1491_vm4, %v3833_v2 }
 0x971   : > { %v3146_v2 = vpop.f32.mrf.mxu3 }
 0x972   : > { %v11411_v15 = vmul.f32 0.17677669, %v3146_v2 }
 0x974   : > { %v11378_v56 = vpop.f32.mrf.mxu0  ;;  %v3209_v29 = vsel %vm1724_vm6, %v11411_v15, -inf }
 0x975   : > { %13887 = vst [vmem:[#allocation29_spill] sm:$0xff] %v11378_v56 }
 0x979   : > { %v3148_v61 = vpop.f32.mrf.mxu3 }
 0x97a   : > { %v3166_v46 = vmul.f32 0.17677669, %v3148_v61 }
 0x97c   : > { %v11380_v1 = vpop.f32.mrf.mxu0  ;;  %v3212_v32 = vsel %vm1724_vm6, %v3166_v46, -inf }
 0x97d   : > { %13888 = vst [vmem:[#allocation45_spill] sm:$0xff] %v11380_v1 }
 0x984   : > { %v2978_v51 = vpop.f32.mrf.mxu0 }
 0x985   : > { %v11382_v60 = vmul.f32 0.17677669, %v2978_v51 }
 0x987   : > { %v3167_v34 = vsel %vm1724_vm6, %v11382_v60, -inf }
 0x988   : > { %3168 = vmax.xlane.f32.xlu1 %v3167_v34 }
 0x98c   : > { %v2980_v47 = vpop.f32.mrf.mxu0 }
 0x98d   : > { %v11388_v25 = vmul.f32 0.17677669, %v2980_v47 }
 0x98f   : > { %v3170_v53 = vsel %vm1724_vm6, %v11388_v25, -inf }
 0x990   : > { %3207 = vmax.xlane.f32.xlu1 %v3206_v41  ;;  %3171 = vmax.xlane.f32.xlu0 %v3170_v53 }
 0x994   : > { %v3074_v43 = vpop.f32.mrf.mxu0 }
 0x995   : > { %v11398_v21 = vmul.f32 0.17677669, %v3074_v43 }
 0x997   : > { %v3191_v37 = vsel %vm1724_vm6, %v11398_v21, -inf }
 0x998   : > { %3186 = vmax.xlane.f32.xlu1 %v3185_v57  ;;  %3189 = vmax.xlane.f32.xlu0 %v3188_v35 }
 0x999   : > { %3192 = vmax.xlane.f32.xlu2 %v3191_v37 }
 0x99c   : > { %v3076_v31 = vpop.f32.mrf.mxu0 }
 0x99d   : > { %v11406_v20 = vmul.f32 0.17677669, %v3076_v31 }
 0x99f   : > { %v3194_v12 = vsel %vm1724_vm6, %v11406_v20, -inf }
 0x9a0   : > { %3213 = vmax.xlane.f32.xlu0 %v3212_v32  ;;  %3195 = vmax.xlane.f32.xlu1 %v3194_v12 }
 0x9a8   : > { %3210 = vmax.xlane.f32.xlu1 %v3209_v29 }
 0x9b0   : > { %v3181_v35 = vpop.xlane.xlu1 %3180 }
 0x9b1   : > { %v3219_v31 = vsub.f32 %v11343_v45, %v3181_v35  ;;  %v13891_v45 = vld [vmem:[#allocation20_spill] sm:$0xff] }
 0x9b3   : > { %v3239_v12 = vmul.f32 1.442695, %v3219_v31  ;;  %v13893_v31 = vld [vmem:[#allocation23_spill] sm:$0xff] }
 0x9b8   : > { %v3184_v59 = vpop.xlane.xlu2 %3183 }
 0x9b9   : > { %v3220_v51 = vsub.f32 %v11351_v19, %v3184_v59 }
 0x9bb   : > { %v3241_v34 = vmul.f32 1.442695, %v3220_v51 }
 0x9bd   : > { %v11415_v17 = vpop.f32.mrf.mxu1  ;;  %9187 = vpow2.f32 %v3241_v34 }
 0x9be   : > { %9189 = vpow2.f32 %v3239_v12 }
 0x9c0   : > { %v3205_v35 = vpop.xlane.xlu2 %3204 }
 0x9c3   : > { %v11428_v41 = vpop.eup %9187 }
 0x9c4   : > { %v3278_v19 = vsel %vm1724_vm6, %v11428_v41, 0.0  ;;  %v11445_v34 = vpop.eup %9189 }
 0x9c5   : > { %v11417_v16 = vpop.f32.mrf.mxu1 }
 0x9cd   : > { %v11419_v22 = vpop.f32.mrf.mxu1 }
 0x9ce   : > { %13889 = vst [vmem:[#allocation39_spill] sm:$0xff] %v11419_v22 }
 0x9d5   : > { %v11421_v10 = vpop.f32.mrf.mxu1 }
 0x9d6   : > { %13890 = vst [vmem:[#allocation81_spill] sm:$0xff] %v11421_v10 }
 0x9dd   : > { %v3755_v38 = vpop.f32.mrf.mxu1 }
 0x9de   : > { %v11424_v47 = vmul.f32 0.17677669, %v3755_v38  ;;  %v3275_v38 = vsel %vm1724_vm6, %v11445_v34, 0.0 }
 0x9e0   : > { %v3926_v2 = vsel %vm1724_vm6, %v11424_v47, -inf }
 0x9e1   : > { %3927 = vmax.xlane.f32.xlu2 %v3926_v2 }
 0x9e5   : > { %v3757_v53 = vpop.f32.mrf.mxu1 }
 0x9e6   : > { %v11430_v43 = vmul.f32 0.17677669, %v3757_v53  ;;  %v13892_v53 = vld [vmem:[#allocation21_spill] sm:$0xff] }
 0x9e8   : > { %v3929_v57 = vsel %vm1724_vm6, %v11430_v43, -inf }
 0x9e9   : > { %3930 = vmax.xlane.f32.xlu0 %v3929_v57  ;;  %3279 = vadd.xlane.f32.xlu2 %v3278_v19 }
 0x9ed   : > { %v3851_v37 = vpop.f32.mrf.mxu1 }
 0x9ee   : > { %v11436_v61 = vmul.f32 0.17677669, %v3851_v37 }
 0x9f0   : > { %v3950_v32 = vsel %vm1724_vm6, %v11436_v61, -inf }
 0x9f1   : > { %3951 = vmax.xlane.f32.xlu1 %v3950_v32  ;;  %v3227_v32 = vsub.f32 %v11356_v11, %v3205_v35 }
 0x9f3   : > { %v3255_v12 = vmul.f32 1.442695, %v3227_v32 }
 0x9f5   : > { %v3853_v29 = vpop.f32.mrf.mxu1  ;;  %9191 = vpow2.f32 %v3255_v12 }
 0x9f6   : > { %v11441_v59 = vmul.f32 0.17677669, %v3853_v29 }
 0x9f8   : > { %v3953_v51 = vsel %vm1724_vm6, %v11441_v59, -inf }
 0x9f9   : > { %3954 = vmax.xlane.f32.xlu0 %v3953_v51  ;;  %v13894_v51 = vld [vmem:[#allocation24_spill] sm:$0xff] }
 0x9fb   : > { %v11453_v57 = vpop.xlane.xlu1 %3168  ;;  %v11461_v0 = vpop.eup %9191 }
 0xa01   : > { %3276 = vadd.xlane.f32.xlu0 %v3275_v38  ;;  %3668 = vrot.lane.b32.xlu2 %v13891_v45, %s9667_s6 }
 0xa03   : > { %v3172_v2 = vpop.xlane.xlu0 %3171  ;;  %v3208_v37 = vpop.xlane.xlu1 %3207 }
 0xa0a   : > { %3670 = vrot.lane.b32.xlu1 %v13892_v53, %s9667_s6 }
 0xa0b   : > { %v3190_v19 = vpop.xlane.xlu0 %3189  ;;  %v3187_v38 = vpop.xlane.xlu1 %3186 }
 0xa0c   : > { %v3221_v53 = vsub.f32 %v11394_v52, %v3187_v38  ;;  %v3222_v11 = vsub.f32 %v11396_v18, %v3190_v19 }
 0xa0e   : > { %v3243_v62 = vmul.f32 1.442695, %v3221_v53  ;;  %v3245_v32 = vmul.f32 1.442695, %v3222_v11 }
 0xa13   : > { %v3214_v29 = vpop.xlane.xlu0 %3213 }
 0xa14   : > { %v3230_v45 = vsub.f32 %v3166_v46, %v3214_v29  ;;  %v11470_v46 = vpop.xlane.xlu1 %3195 }
 0xa15   : > { %3672 = vrot.lane.b32.xlu0 %v13893_v31, %s9667_s6  ;;  %v3299_v31 = vsel %vm1724_vm6, %v11461_v0, 0.0 }
 0xa16   : > { %v3261_v8 = vmul.f32 1.442695, %v3230_v45 }
 0xa18   : > { %9193 = vpow2.f32 %v3261_v8 }
 0xa19   : > { %9195 = vpow2.f32 %v3243_v62  ;;  %v3228_v62 = vsub.f32 %v11386_v44, %v3208_v37  ;;  %v13895_v44 = vld [vmem:[#allocation28_spill] sm:$0xff] }
 0xa1a   : > { %9197 = vpow2.f32 %v3245_v32  ;;  %v13896_v32 = vld [vmem:[#allocation43_spill] sm:$0xff] }
 0xa1b   : > { %v3257_v19 = vmul.f32 1.442695, %v3228_v62 }
 0xa1c   : > { %v3211_v12 = vpop.xlane.xlu1 %3210 }
 0xa1d   : > { %3674 = vrot.lane.b32.xlu0 %v13894_v51, %s9667_s6  ;;  %9199 = vpow2.f32 %v3257_v19  ;;  %v3229_v38 = vsub.f32 %v11411_v15, %v3211_v12  ;;  %v13897_v15 = vld [vmem:[#allocation30_spill] sm:$0xff] }
 0xa1e   : > { %v11466_v35 = vpop.eup %9193  ;;  %v13899_v19 = vld [vmem:[#allocation42_spill] sm:$0xff] }
 0xa1f   : > { %v11468_v51 = vpop.eup %9195  ;;  %v3308_v52 = vsel %vm1724_vm6, %v11466_v35, 0.0  ;;  %v3259_v45 = vmul.f32 1.442695, %v3229_v38  ;;  %v3216_v38 = vsub.f32 %v11388_v25, %v3172_v2 }
 0xa20   : > { %v3281_v8 = vsel %vm1724_vm6, %v11468_v51, 0.0  ;;  %v11477_v18 = vpop.eup %9197 }
 0xa21   : > { %v3284_v29 = vsel %vm1724_vm6, %v11477_v18, 0.0  ;;  %9201 = vpow2.f32 %v3259_v45  ;;  %v13901_v45 = vld [vmem:[#allocation48_spill] sm:$0xff] }
 0xa23   : > { %v11482_v53 = vpop.eup %9199 }
 0xa27   : > { %v11488_v37 = vpop.eup %9201 }
 0xa28   : > { %v3305_v11 = vsel %vm1724_vm6, %v11488_v37, 0.0 }
 0xa2a   : > { %3300 = vadd.xlane.f32.xlu2 %v3299_v31  ;;  %v3302_v31 = vsel %vm1724_vm6, %v11482_v53, 0.0 }
 0xa32   : > { %3309 = vadd.xlane.f32.xlu2 %v3308_v52  ;;  %v3193_v52 = vpop.xlane.xlu2 %3192 }
 0xa34   : > { %3282 = vadd.xlane.f32.xlu1 %v3281_v8  ;;  %v13898_v8 = vld [vmem:[#allocation49_spill] sm:$0xff] }
 0xa3c   : > { %3285 = vadd.xlane.f32.xlu1 %v3284_v29  ;;  %v13900_v29 = vld [vmem:[#allocation52_spill] sm:$0xff] }
 0xa47   : > { %3303 = vadd.xlane.f32.xlu0 %v3302_v31 }
 0xa4a   : > { %3676 = vrot.lane.b32.xlu2 %v13895_v44, %s9667_s6 }
 0xa4f   : > { %3306 = vadd.xlane.f32.xlu0 %v3305_v11  ;;  %v3233_v11 = vmul.f32 1.442695, %v3216_v38 }
 0xa52   : > { %3686 = vrot.lane.b32.xlu2 %v13896_v32, %s9667_s6  ;;  %v13902_v32 = vld [vmem:[#allocation53_spill] sm:$0xff] }
 0xa54   : > { %v3928_v62 = vpop.xlane.xlu2 %3927 }
 0xa55   : > { %3678 = vrot.lane.b32.xlu1 %v13897_v15, %s9667_s6 }
 0xa5c   : > { %v11500_v12 = vpop.xlane.xlu0 %3930  ;;  %v3280_v31 = vpop.xlane.xlu2 %3279 }
 0xa5d   : > { %3690 = vrot.lane.b32.xlu1 %v13898_v8, %s9667_s6  ;;  %9203 = vrcp.f32 %v3280_v31 }
 0xa5e   : > { %9205 = vpow2.f32 %v3233_v11 }
 0xa63   : > { %3684 = vrot.lane.b32.xlu0 %v13899_v19, %s9667_s6  ;;  %v9204_v19 = vpop.eup %9203 }
 0xa64   : > { %v3952_v15 = vpop.xlane.xlu1 %3951  ;;  %v11513_v25 = vpop.eup %9205  ;;  %v3332_v2 = vmul.f32 %v9204_v19, %v11428_v41  ;;  %v13903_v41 = vld [vmem:[#allocation34_spill] sm:$0xff] }
 0xa65   : > { %3692 = vrot.lane.b32.xlu1 %v13900_v29, %s9667_s6  ;;  %v3669_v29 = vpop.permute.xlu2 %3668  ;;  %v3266_v38 = vsel %vm1724_vm6, %v11513_v25, 0.0  ;;  %v3768_v19 = vsel %vm1491_vm4, %v13903_v41, 0 }
 0xa66   : > { %v3698_v10 = vrot.slane %v3669_v29, 4  ;;  %v3348_v31 = vpack.c.bf16 %v3332_v2, %v3332_v2  ;;  %v3215_v2 = vsub.f32 %v11382_v60, %v11453_v57  ;;  %v3224_v29 = vsub.f32 %v11406_v20, %v11470_v46 }
 0xa68   : > { %v4143_v9 = vunpack.c.l.b16 %v3698_v10 }
 0xa6b   : > { %3688 = vrot.lane.b32.xlu0 %v13901_v45, %s9667_s6 }
 0xa6c   : > { %v11507_v44 = vpop.xlane.xlu0 %3954 }
 0xa6d   : > { %3694 = vrot.lane.b32.xlu1 %v13902_v32, %s9667_s6 }
 0xa73   : > { %2911 = vrot.lane.b32.xlu0 %v13872_v63, %s9666_s5 }
 0xa74   : > { %v3277_v8 = vpop.xlane.xlu0 %3276 }
 0xa75   : > { %9207 = vrcp.f32 %v3277_v8  ;;  %v3414_v8 = vunpack.c.l.b16 %v3348_v31 }
 0xa7b   : > { %v9208_v45 = vpop.eup %9207  ;;  %3267 = vadd.xlane.f32.xlu2 %v3266_v38 }
 0xa7c   : > { %v3331_v11 = vmul.f32 %v9208_v45, %v11445_v34  ;;  %v3671_v32 = vpop.permute.xlu1 %3670  ;;  %v3231_v34 = vmul.f32 1.442695, %v3215_v2 }
 0xa7d   : > { %v3699_v1 = vrot.slane %v3671_v32, 4 }
 0xa7e   : > { %v3347_v56 = vpack.c.bf16 %v3331_v11, %v3331_v11  ;;  %9209 = vpow2.f32 %v3231_v34 }
 0xa7f   : > { %v4144_v33 = vunpack.c.l.b16 %v3699_v1  ;;  %v3223_v1 = vsub.f32 %v11398_v21, %v3193_v52  ;;  %v3978_v21 = vsub.f32 %v11436_v61, %v3952_v15 }
 0xa80   : > { %v3413_v24 = vunpack.c.l.b16 %v3347_v56  ;;  %v3249_v56 = vmul.f32 1.442695, %v3224_v29 }
 0xa81   : > { %v4145_v22 = vpack.c.b16 %v4144_v33, %v4143_v9  ;;  %v3247_v9 = vmul.f32 1.442695, %v3223_v1  ;;  %v3970_v33 = vsub.f32 %v11424_v47, %v3928_v62  ;;  %v4004_v57 = vmul.f32 1.442695, %v3978_v21 }
 0xa82   : > { %v3415_v30 = vpack.c.b16 %v3414_v8, %v3413_v24  ;;  %9211 = vpow2.f32 %v3249_v56 }
 0xa83   : > { %4157 = vmatpush.bf16.msra.mxu1 %v4145_v22  ;;  %9213 = vpow2.f32 %v3247_v9  ;;  %v3988_v60 = vmul.f32 1.442695, %v3970_v33 }
 0xa84   : > { %8584 = vmatmul.msk.bf16.vlgmr.msra.gmra.mxu2 %vm1724_vm6, %v3415_v30  ;;  %v11527_v24 = vpop.eup %9209 }
 0xa85   : > { %3777 = vmatpush.bf16.xpose.msra.mxu2 %v3768_v19  ;;  %v3263_v30 = vsel %vm1724_vm6, %v11527_v24, 0.0  ;;  %9215 = vpow2.f32 %v3988_v60 }
 0xa86   : > { %9217 = vpow2.f32 %v4004_v57 }
 0xa87   : > { %v11551_v62 = vpop.permute.xlu0 %3672 }
 0xa88   : > { %v11534_v20 = vpop.eup %9211 }
 0xa89   : > { %v11536_v22 = vpop.eup %9213  ;;  %v3290_v10 = vsel %vm1724_vm6, %v11534_v20, 0.0 }
 0xa8a   : > { %v3287_v47 = vsel %vm1724_vm6, %v11536_v22, 0.0 }
 0xa8b   : > { %v11545_v46 = vpop.eup %9215 }
 0xa8c   : > { %v4022_v61 = vsel %vm1724_vm6, %v11545_v46, 0.0  ;;  %v11553_v15 = vpop.eup %9217 }
 0xa8d   : > { %v4046_v38 = vsel %vm1724_vm6, %v11553_v15, 0.0 }
 0xa8f   : > { %v3675_v11 = vpop.permute.xlu0 %3674 }
 0xa93   : > { %2913 = vrot.lane.b32.xlu2 %v13873_v55, %s9666_s5 }
 0xa97   : > { %3264 = vadd.xlane.f32.xlu1 %v3263_v30  ;;  %v3971_v30 = vsub.f32 %v11430_v43, %v11500_v12  ;;  %v3979_v43 = vsub.f32 %v11441_v59, %v11507_v44 }
 0xa99   : > { %v3990_v57 = vmul.f32 1.442695, %v3971_v30 }
 0xa9b   : > { %2929 = vrot.lane.b32.xlu2 %v13876_v6, %s9666_s5 }
 0xa9d   : > { %3291 = vadd.xlane.f32.xlu0 %v3290_v10 }
 0xa9f   : > { %3288 = vadd.xlane.f32.xlu1 %v3287_v47 }
 0xaa3   : > { %3714 = vrot.lane.b32.xlu2 %v13877_v13, %s9667_s6  ;;  %v3301_v13 = vpop.xlane.xlu2 %3300 }
 0xaa5   : > { %4023 = vadd.xlane.f32.xlu0 %v4022_v61 }
 0xaa7   : > { %v3283_v52 = vpop.xlane.xlu1 %3282 }
 0xaa8   : > { %9219 = vrcp.f32 %v3283_v52 }
 0xaab   : > { %3712 = vrot.lane.b32.xlu2 %v13878_v42, %s9667_s6  ;;  %v3310_v2 = vpop.xlane.xlu2 %3309 }
 0xaad   : > { %4047 = vadd.xlane.f32.xlu0 %v4046_v38 }
 0xaae   : > { %v9220_v31 = vpop.eup %9219 }
 0xaaf   : > { %v3286_v45 = vpop.xlane.xlu1 %3285  ;;  %v3333_v32 = vmul.f32 %v9220_v31, %v11468_v51  ;;  %v3792_v51 = vsel %vm1491_vm4, %v11308_v23, 0 }
 0xab0   : > { %9221 = vrcp.f32 %v3286_v45 }
 0xab1   : > { %9223 = vrcp.f32 %v3301_v13  ;;  %v3349_v41 = vpack.c.bf16 %v3333_v32, %v3333_v32  ;;  %v3864_v13 = vsel %vm1491_vm4, %v11316_v50, 0  ;;  %v3888_v50 = vsel %vm1491_vm4, %v11320_v48, 0 }
 0xab3   : > { %v3439_v1 = vunpack.c.l.b16 %v3349_v41  ;;  %v3677_v38 = vpop.permute.xlu2 %3676 }
 0xab6   : > { %v9222_v8 = vpop.eup %9221 }
 0xab7   : > { %v3334_v19 = vmul.f32 %v9222_v8, %v11477_v18  ;;  %v9224_v29 = vpop.eup %9223 }
 0xab8   : > { %2927 = vrot.lane.b32.xlu1 %v10461_v36, %s9666_s5  ;;  %v3339_v33 = vmul.f32 %v9224_v29, %v11461_v0 }
 0xab9   : > { %v3350_v42 = vpack.c.bf16 %v3334_v19, %v3334_v19 }
 0xaba   : > { %v3304_v34 = vpop.xlane.xlu0 %3303  ;;  %v3355_v60 = vpack.c.bf16 %v3339_v33, %v3339_v33 }
 0xabb   : > { %v3440_v56 = vunpack.c.l.b16 %v3350_v42  ;;  %9225 = vrcp.f32 %v3304_v34  ;;  %v3687_v34 = vpop.permute.xlu2 %3686 }
 0xabc   : > { %9227 = vrcp.f32 %v3310_v2  ;;  %v3517_v61 = vunpack.c.l.b16 %v3355_v60  ;;  %v3701_v2 = vrot.slane %v3675_v11, 4  ;;  %v3707_v29 = vrot.slane %v3687_v34, 4 }
 0xabd   : > { %v3441_v9 = vpack.c.b16 %v3440_v56, %v3439_v1 }
 0xabe   : > { %v4170_v1 = vunpack.c.l.b16 %v3701_v2 }
 0xabf   : > { %8585 = vmatmul.msk.bf16.vlgmr.msra.gmra.mxu3 %vm1724_vm6, %v3441_v9 }
 0xac0   : > { %3801 = vmatpush.bf16.xpose.msra.mxu3 %v3792_v51  ;;  %3810 = vrot.lane.b32.xlu1 %v13862_v39, %s9667_s6  ;;  %v4248_v51 = vunpack.c.l.b16 %v3707_v29 }
 0xac1   : > { %v9226_v18 = vpop.eup %9225 }
 0xac2   : > { %v3340_v21 = vmul.f32 %v9226_v18, %v11482_v53  ;;  %v3307_v10 = vpop.xlane.xlu0 %3306  ;;  %v9228_v47 = vpop.eup %9227 }
 0xac3   : > { %9229 = vrcp.f32 %v3307_v10  ;;  %v3342_v23 = vmul.f32 %v9228_v47, %v11466_v35  ;;  %v4006_v35 = vmul.f32 1.442695, %v3979_v43 }
 0xac4   : > { %v3356_v0 = vpack.c.bf16 %v3340_v21, %v3340_v21  ;;  %9231 = vpow2.f32 %v3990_v57 }
 0xac5   : > { %v3358_v53 = vpack.c.bf16 %v3342_v23, %v3342_v23  ;;  %9233 = vpow2.f32 %v4006_v35 }
 0xac6   : > { %v3518_v52 = vunpack.c.l.b16 %v3356_v0 }
 0xac7   : > { %v3679_v31 = vpop.permute.xlu1 %3678  ;;  %v3544_v8 = vunpack.c.l.b16 %v3358_v53 }
 0xac8   : > { %v3519_v45 = vpack.c.b16 %v3518_v52, %v3517_v61  ;;  %v3703_v30 = vrot.slane %v3679_v31, 4 }
 0xac9   : > { %v9230_v39 = vpop.eup %9229 }
 0xaca   : > { %v3341_v12 = vmul.f32 %v9230_v39, %v11488_v37  ;;  %8588 = vmatmul.msk.bf16.vlgmr.msrb.gmra.mxu2 %vm1724_vm6, %v3519_v45  ;;  %v11579_v19 = vpop.eup %9231  ;;  %v3700_v37 = vrot.slane %v11551_v62, 4  ;;  %v3702_v62 = vrot.slane %v3677_v38, 4  ;;  %v4196_v47 = vunpack.c.l.b16 %v3703_v30 }
 0xacb   : > { %3873 = vmatpush.bf16.xpose.msrb.mxu2 %v3864_v13  ;;  %v4025_v44 = vsel %vm1724_vm6, %v11579_v19, 0.0  ;;  %v11587_v33 = vpop.eup %9233 }
 0xacc   : > { %v3357_v32 = vpack.c.bf16 %v3341_v12, %v3341_v12  ;;  %v4169_v11 = vunpack.c.l.b16 %v3700_v37  ;;  %v4049_v21 = vsel %vm1724_vm6, %v11587_v33, 0.0  ;;  %v4195_v57 = vunpack.c.l.b16 %v3702_v62 }
 0xace   : > { %v3543_v41 = vunpack.c.l.b16 %v3357_v32  ;;  %v4171_v18 = vpack.c.b16 %v4170_v1, %v4169_v11  ;;  %v4197_v61 = vpack.c.b16 %v4196_v47, %v4195_v57 }
 0xacf   : > { %v3691_v59 = vpop.permute.xlu1 %3690 }
 0xad0   : > { %v3545_v42 = vpack.c.b16 %v3544_v8, %v3543_v41  ;;  %v3709_v52 = vrot.slane %v3691_v59, 4 }
 0xad2   : > { %8589 = vmatmul.msk.bf16.vlgmr.msrb.gmra.mxu3 %vm1724_vm6, %v3545_v42  ;;  %v4274_v38 = vunpack.c.l.b16 %v3709_v52 }
 0xad3   : > { %3897 = vmatpush.bf16.xpose.msrb.mxu3 %v3888_v50 }
 0xad4   : > { %4026 = vadd.xlane.f32.xlu2 %v4025_v44 }
 0xad5   : > { %v3685_v56 = vpop.permute.xlu0 %3684 }
 0xad6   : > { %v3706_v9 = vrot.slane %v3685_v56, 4 }
 0xad7   : > { %v3693_v10 = vpop.permute.xlu1 %3692 }
 0xad8   : > { %v4247_v48 = vunpack.c.l.b16 %v3706_v9  ;;  %v3710_v13 = vrot.slane %v3693_v10, 4 }
 0xada   : > { %v4249_v60 = vpack.c.b16 %v4248_v51, %v4247_v48  ;;  %8592 = vmatmul.msk.bf16.vlgmr.msra.gmra.mxu2 %vm1491_vm4, %v11312_v28  ;;  %v4299_v12 = vunpack.c.l.b16 %v3710_v13 }
 0xadb   : > { %4183 = vmatpush.bf16.msra.mxu2 %v4171_v18 }
 0xadc   : > { %4050 = vadd.xlane.f32.xlu2 %v4049_v21  ;;  %4261 = vmatpush.bf16.msrb.mxu1 %v4249_v60 }
 0xadd   : > { %v3689_v0 = vpop.permute.xlu0 %3688 }
 0xade   : > { %v3708_v23 = vrot.slane %v3689_v0, 4 }
 0xadf   : > { %v3695_v28 = vpop.permute.xlu1 %3694 }
 0xae0   : > { %v4273_v45 = vunpack.c.l.b16 %v3708_v23  ;;  %v3711_v39 = vrot.slane %v3695_v28, 4 }
 0xae2   : > { %8593 = vmatmul.msk.bf16.vlgmr.msra.gmra.mxu3 %vm1491_vm4, %v11302_v27  ;;  %v4275_v31 = vpack.c.b16 %v4274_v38, %v4273_v45  ;;  %v4300_v43 = vunpack.c.l.b16 %v3711_v39 }
 0xae3   : > { %4209 = vmatpush.bf16.msra.mxu3 %v4197_v61 }
 0xae4   : > { %v4301_v32 = vpack.c.b16 %v4300_v43, %v4299_v12 }
 0xae5   : > { %v2912_v35 = vpop.permute.xlu0 %2911 }
 0xae6   : > { %v2943_v27 = vrot.slane %v2912_v35, 4 }
 0xae8   : > { %v3364_v42 = vunpack.c.l.b16 %v2943_v27  ;;  %v13907_v27 = vld [vmem:[#allocation27_spill] sm:$0xff] }
 0xaea   : > { %8596 = vmatmul.msk.bf16.vlgmr.msrb.gmra.mxu2 %vm1491_vm4, %v11328_v58 }
 0xaeb   : > { %4287 = vmatpush.bf16.msrb.mxu2 %v4275_v31 }
 0xaee   : > { %v3268_v53 = vpop.xlane.xlu2 %3267 }
 0xaef   : > { %9235 = vrcp.f32 %v3268_v53 }
 0xaf2   : > { %8597 = vmatmul.msk.bf16.vlgmr.msrb.gmra.mxu3 %vm1491_vm4, %v11324_v5 }
 0xaf3   : > { %4313 = vmatpush.bf16.msrb.mxu3 %v4301_v32 }
 0xaf5   : > { %v9236_v50 = vpop.eup %9235 }
 0xaf6   : > { %v2914_v8 = vpop.permute.xlu2 %2913  ;;  %v3328_v59 = vmul.f32 %v9236_v50, %v11513_v25 }
 0xaf7   : > { %v2944_v41 = vrot.slane %v2914_v8, 4  ;;  %v4743_v8 = vrot.slane %v13907_v27, 4 }
 0xaf8   : > { %v3344_v44 = vpack.c.bf16 %v3328_v59, %v3328_v59 }
 0xaf9   : > { %v3365_v2 = vunpack.c.l.b16 %v2944_v41 }
 0xafa   : > { %v3362_v5 = vunpack.c.l.b16 %v3344_v44 }
 0xafb   : > { %v3366_v34 = vpack.c.b16 %v3365_v2, %v3364_v42  ;;  %v13910_v2 = vld [vmem:[#allocation10_spill] sm:$0xff] }
 0xafd   : > { %3378 = vmatpush.bf16.msra.mxu0 %v3366_v34  ;;  %v4742_v34 = vrot.slane %v13910_v2, 4 }
 0xafe   : > { %v2930_v18 = vpop.permute.xlu2 %2929 }
 0xaff   : > { %v2952_v62 = vrot.slane %v2930_v18, 4 }
 0xb01   : > { %v3469_v0 = vunpack.c.l.b16 %v2952_v62  ;;  %v13913_v62 = vld [vmem:[#allocation14_spill] sm:$0xff] }
 0xb06   : > { %v3715_v61 = vpop.permute.xlu2 %3714 }
 0xb07   : > { %v3720_v28 = vsel %vm1491_vm4, %v3715_v61, 0 }
 0xb0a   : > { %v3265_v58 = vpop.xlane.xlu1 %3264 }
 0xb0b   : > { %9237 = vrcp.f32 %v3265_v58 }
 0xb0e   : > { %v3713_v39 = vpop.permute.xlu2 %3712 }
 0xb10   : > { %v3292_v51 = vpop.xlane.xlu0 %3291 }
 0xb11   : > { %v9238_v37 = vpop.eup %9237 }
 0xb12   : > { %v3327_v29 = vmul.f32 %v9238_v37, %v11527_v24  ;;  %v3289_v11 = vpop.xlane.xlu1 %3288 }
 0xb13   : > { %9239 = vrcp.f32 %v3289_v11 }
 0xb14   : > { %v3343_v1 = vpack.c.bf16 %v3327_v29, %v3327_v29  ;;  %9241 = vrcp.f32 %v3292_v51  ;;  %v4764_v29 = vunpack.c.l.b16 %v4743_v8 }
 0xb16   : > { %v3361_v56 = vunpack.c.l.b16 %v3343_v1 }
 0xb18   : > { %v3363_v9 = vpack.c.b16 %v3362_v5, %v3361_v56  ;;  %v4024_v13 = vpop.xlane.xlu0 %4023  ;;  %v4763_v5 = vunpack.c.l.b16 %v4742_v34 }
 0xb19   : > { %v9240_v48 = vpop.eup %9239  ;;  %9243 = vrcp.f32 %v4024_v13 }
 0xb1a   : > { %8582 = vmatmul.msk.bf16.vlgmr.msra.gmra.mxu0 %vm1724_vm6, %v3363_v9  ;;  %v9242_v30 = vpop.eup %9241  ;;  %v3335_v60 = vmul.f32 %v9240_v48, %v11536_v22  ;;  %v4765_v9 = vpack.c.b16 %v4764_v29, %v4763_v5  ;;  %v13918_v29 = vld [vmem:[#allocation26_spill] sm:$0xff] }
 0xb1b   : > { %v3336_v25 = vmul.f32 %v9242_v30, %v11534_v20  ;;  %v11607_v20 = vpop.f32.mrf.mxu2 }
 0xb1c   : > { %v3351_v21 = vpack.c.bf16 %v3335_v60, %v3335_v60  ;;  %13904 = vst [vmem:[#allocation20_spill] sm:$0xff] %v11607_v20  ;;  %v4770_v30 = vsel %vm1491_vm4, %v4765_v9, 0  ;;  %v13919_v9 = vld [vmem:[#allocation25_spill] sm:$0xff] }
 0xb1d   : > { %v3352_v47 = vpack.c.bf16 %v3336_v25, %v3336_v25 }
 0xb1e   : > { %v3465_v23 = vunpack.c.l.b16 %v3351_v21  ;;  %v4749_v21 = vrot.slane %v13913_v62, 4 }
 0xb1f   : > { %v3466_v45 = vunpack.c.l.b16 %v3352_v47  ;;  %v9244_v32 = vpop.eup %9243 }
 0xb20   : > { %v4082_v35 = vmul.f32 %v9244_v32, %v11545_v46  ;;  %v4048_v59 = vpop.xlane.xlu0 %4047  ;;  %v9559_v32 = vld [vmem:[%s13656_s3 + $0x3] sm:$0x7] }
 0xb21   : > { %v3467_v38 = vpack.c.b16 %v3466_v45, %v3465_v23 }
 0xb22   : > { %v4098_v50 = vpack.c.bf16 %v4082_v35, %v4082_v35  ;;  %v11645_v35 = vperm.slane %v9559_v32, 2 }
 0xb23   : > { %v11612_v53 = vpop.f32.mrf.mxu2 }
 0xb24   : > { %13906 = vst [vmem:[#allocation23_spill] sm:$0xff] %v11612_v53  ;;  %v4140_v46 = vunpack.c.l.b16 %v4098_v50  ;;  %v13916_v50 = vld [vmem:[#allocation64_spill] sm:$0xff] }
 0xb2a   : > { %v2928_v24 = vpop.permute.xlu1 %2927 }
 0xb2b   : > { %v2951_v10 = vrot.slane %v2928_v24, 4 }
 0xb2d   : > { %v3468_v57 = vunpack.c.l.b16 %v2951_v10 }
 0xb2f   : > { %v3470_v52 = vpack.c.b16 %v3469_v0, %v3468_v57  ;;  %v13915_v0 = vld [vmem:[#allocation13_spill] sm:$0xff] }
 0xb30   : > { %v4748_v57 = vrot.slane %v13915_v0, 4 }
 0xb31   : > { %3482 = vmatpush.bf16.msrb.mxu0 %v3470_v52  ;;  %v4848_v52 = vunpack.c.l.b16 %v4749_v21 }
 0xb32   : > { %v3811_v31 = vpop.permute.xlu1 %3810 }
 0xb33   : > { %v3816_v22 = vsel %vm1491_vm4, %v3811_v31, 0 }
 0xb34   : > { %8586 = vmatmul.msk.bf16.vlgmr.msrb.gmra.mxu0 %vm1724_vm6, %v3467_v38 }
 0xb35   : > { %3729 = vmatpush.bf16.xpose.msra.mxu0 %v3720_v28 }
 0xb3d   : > { %3825 = vmatpush.bf16.xpose.msrb.mxu0 %v3816_v22 }
 0xb42   : > { %v11609_v43 = vpop.f32.mrf.mxu3 }
 0xb43   : > { %13905 = vst [vmem:[#allocation21_spill] sm:$0xff] %v11609_v43 }
 0xb44   : > { %8590 = vmatmul.msk.bf16.vlgmr.msra.gmra.mxu0 %vm1491_vm4, %v3713_v39 }
 0xb47   : > { %v4027_v12 = vpop.xlane.xlu2 %4026 }
 0xb48   : > { %9245 = vrcp.f32 %v4027_v12 }
 0xb4a   : > { %v11616_v41 = vpop.f32.mrf.mxu3 }
 0xb4b   : > { %13908 = vst [vmem:[#allocation24_spill] sm:$0xff] %v11616_v41 }
 0xb4d   : > { %v11618_v42 = vpop.f32.mrf.mxu2 }
 0xb4e   : > { %13909 = vst [vmem:[#allocation28_spill] sm:$0xff] %v11618_v42  ;;  %v9246_v58 = vpop.eup %9245 }
 0xb4f   : > { %v4083_v37 = vmul.f32 %v9246_v58, %v11579_v19  ;;  %v4051_v44 = vpop.xlane.xlu2 %4050 }
 0xb50   : > { %9247 = vrcp.f32 %v4051_v44 }
 0xb51   : > { %v4099_v1 = vpack.c.bf16 %v4083_v37, %v4083_v37  ;;  %9249 = vrcp.f32 %v4048_v59  ;;  %v1365_v59 = vadd.f32 %v13916_v50, %v11645_v35  ;;  %v13917_v37 = vld [vmem:[#allocation63_spill] sm:$0xff] }
 0xb52   : > { %v1363_v44 = vadd.f32 %v13917_v37, %v11645_v35 }
 0xb53   : > { %v4141_v56 = vunpack.c.l.b16 %v4099_v1  ;;  %v4755_v1 = vrot.slane %v13918_v29, 4  ;;  %v1405_v5 = vpack.c.bf16 %v1365_v59, %v1365_v59  ;;  %v13923_v59 = vld [vmem:[#allocation69_spill] sm:$0xff] }
 0xb54   : > { %v1378_v37 = vadd.f32 %v13923_v59, %v11645_v35 }
 0xb55   : > { %v4142_v11 = vpack.c.b16 %v4141_v56, %v4140_v46  ;;  %v11622_v51 = vpop.f32.mrf.mxu2  ;;  %v11624_v48 = vpop.f32.mrf.mxu3 }
 0xb56   : > { %13911 = vst [vmem:[#allocation43_spill] sm:$0xff] %v11622_v51  ;;  %v9248_v18 = vpop.eup %9247 }
 0xb57   : > { %13912 = vst [vmem:[#allocation30_spill] sm:$0xff] %v11624_v48  ;;  %8599 = vmatmul.msk.bf16.vlgmr.msra.gmra.mxu1 %vm1724_vm6, %v4142_v11  ;;  %v9250_v19 = vpop.eup %9249  ;;  %v4091_v60 = vmul.f32 %v9248_v18, %v11587_v33  ;;  %v4847_v33 = vunpack.c.l.b16 %v4748_v57  ;;  %v4754_v11 = vrot.slane %v13919_v9, 4 }
 0xb58   : > { %4779 = vmatpush.bf16.xpose.msra.mxu1 %v4770_v30  ;;  %v4090_v25 = vmul.f32 %v9250_v19, %v11553_v15  ;;  %v1403_v30 = vpack.c.bf16 %v1363_v44, %v1363_v44  ;;  %v4932_v19 = vunpack.c.l.b16 %v4755_v1  ;;  %v13924_v44 = vld [vmem:[#allocation40_spill] sm:$0xff] }
 0xb59   : > { %v4107_v24 = vpack.c.bf16 %v4091_v60, %v4091_v60  ;;  %v4849_v15 = vpack.c.b16 %v4848_v52, %v4847_v33  ;;  %v4931_v21 = vunpack.c.l.b16 %v4754_v11 }
 0xb5a   : > { %v4106_v23 = vpack.c.bf16 %v4090_v25, %v4090_v25  ;;  %v4761_v25 = vunpack.c.l.b16 %v1405_v5 }
 0xb5b   : > { %v4245_v28 = vunpack.c.l.b16 %v4107_v24  ;;  %v4854_v8 = vsel %vm1491_vm4, %v4849_v15, 0  ;;  %v4760_v24 = vunpack.c.l.b16 %v1403_v30  ;;  %v9560_v15 = vld [vmem:[%s13656_s3] sm:$0x7]  ;;  %v1415_v30 = vpack.c.bf16 %v1378_v37, %v1378_v37 }
 0xb5c   : > { %v4244_v38 = vunpack.c.l.b16 %v4106_v23 }
 0xb5d   : > { %v11631_v10 = vpop.f32.mrf.mxu3  ;;  %v3779_v47 = vpop.f32.mrf.mxu2  ;;  %v11665_v23 = vpack.c.b16 %v4761_v25, %v4760_v24  ;;  %v4844_v24 = vunpack.c.l.b16 %v1415_v30 }
 0xb5e   : > { %13914 = vst [vmem:[#allocation49_spill] sm:$0xff] %v11631_v10  ;;  %v11634_v61 = vmul.f32 0.17677669, %v3779_v47  ;;  %v4246_v31 = vpack.c.b16 %v4245_v28, %v4244_v38  ;;  %v4933_v47 = vpack.c.b16 %v4932_v19, %v4931_v21 }
 0xb5f   : > { %13920 = vst [vmem:[#allocation42_spill] sm:$0xff] %v11665_v23 }
 0xb60   : > { %v3932_v45 = vsel %vm1724_vm6, %v11634_v61, -inf  ;;  %v4938_v38 = vsel %vm1491_vm4, %v4933_v47, 0 }
 0xb61   : > { %3933 = vmax.xlane.f32.xlu1 %v3932_v45 }
 0xb65   : > { %v3781_v22 = vpop.f32.mrf.mxu2  ;;  %v3803_v39 = vpop.f32.mrf.mxu3 }
 0xb66   : > { %v11638_v13 = vmul.f32 0.17677669, %v3781_v22  ;;  %v11640_v12 = vmul.f32 0.17677669, %v3803_v39 }
 0xb67   : > { %8603 = vmatmul.msk.bf16.vlgmr.msrb.gmra.mxu1 %vm1724_vm6, %v4246_v31  ;;  %v11677_v31 = vperm.slane %v9560_v15, 2 }
 0xb68   : > { %4863 = vmatpush.bf16.xpose.msrb.mxu1 %v4854_v8  ;;  %v3935_v34 = vsel %vm1724_vm6, %v11638_v13, -inf  ;;  %v3938_v58 = vsel %vm1724_vm6, %v11640_v12, -inf  ;;  %v13921_v8 = vld [vmem:[#allocation70_spill] sm:$0xff] }
 0xb69   : > { %3936 = vmax.xlane.f32.xlu2 %v3935_v34  ;;  %3939 = vmax.xlane.f32.xlu0 %v3938_v58  ;;  %v1380_v34 = vadd.f32 %v13921_v8, %v11645_v35  ;;  %v13922_v58 = vld [vmem:[#allocation44_spill] sm:$0xff]  ;;  %v973_v1 = vadd.f32 %v13924_v44, %v11677_v31 }
 0xb6a   : > { %v975_v50 = vadd.f32 %v13922_v58, %v11677_v31 }
 0xb6b   : > { %v1417_v5 = vpack.c.bf16 %v1380_v34, %v1380_v34  ;;  %v1012_v19 = vpack.c.bf16 %v973_v1, %v973_v1  ;;  %v13930_v34 = vld [vmem:[#allocation55_spill] sm:$0xff] }
 0xb6c   : > { %v988_v58 = vadd.f32 %v13930_v34, %v11677_v31 }
 0xb6d   : > { %v3805_v46 = vpop.f32.mrf.mxu3  ;;  %v3875_v56 = vpop.f32.mrf.mxu2  ;;  %v4845_v25 = vunpack.c.l.b16 %v1417_v5  ;;  %v5225_v47 = vunpack.c.l.b16 %v1012_v19 }
 0xb6e   : > { %v11659_v18 = vmul.f32 0.17677669, %v3875_v56  ;;  %v11663_v57 = vmul.f32 0.17677669, %v3805_v46  ;;  %v1014_v56 = vpack.c.bf16 %v975_v50, %v975_v50  ;;  %v1024_v44 = vpack.c.bf16 %v988_v58, %v988_v58 }
 0xb70   : > { %v3956_v60 = vsel %vm1724_vm6, %v11659_v18, -inf  ;;  %v3941_v39 = vsel %vm1724_vm6, %v11663_v57, -inf  ;;  %v5226_v21 = vunpack.c.l.b16 %v1014_v56  ;;  %v5309_v56 = vunpack.c.l.b16 %v1024_v44 }
 0xb71   : > { %3957 = vmax.xlane.f32.xlu2 %v3956_v60 }
 0xb75   : > { %v3877_v52 = vpop.f32.mrf.mxu2  ;;  %v3899_v45 = vpop.f32.mrf.mxu3 }
 0xb76   : > { %v11667_v28 = vmul.f32 0.17677669, %v3877_v52  ;;  %v11669_v33 = vmul.f32 0.17677669, %v3899_v45  ;;  %v11697_v52 = vpack.c.b16 %v4845_v25, %v4844_v24  ;;  %v11699_v45 = vpack.c.b16 %v5226_v21, %v5225_v47 }
 0xb77   : > { %8670 = vmatmul.msk.bf16.vlgmr.msra.gmra.mxu1 %vm1491_vm4, %v11665_v23 }
 0xb78   : > { %4947 = vmatpush.bf16.xpose.msra.mxu1 %v4938_v38  ;;  %v3959_v22 = vsel %vm1724_vm6, %v11667_v28, -inf  ;;  %v3962_v32 = vsel %vm1724_vm6, %v11669_v33, -inf  ;;  %13925 = vst [vmem:[#allocation52_spill] sm:$0xff] %v11697_v52  ;;  %v13927_v38 = vld [vmem:[#allocation76_spill] sm:$0xff] }
 0xb79   : > { %3960 = vmax.xlane.f32.xlu1 %v3959_v22  ;;  %3942 = vmax.xlane.f32.xlu2 %v3941_v39  ;;  %13926 = vst [vmem:[#allocation48_spill] sm:$0xff] %v11699_v45  ;;  %v1395_v15 = vadd.f32 %v13927_v38, %v11645_v35  ;;  %v13928_v22 = vld [vmem:[#allocation56_spill] sm:$0xff] }
 0xb7a   : > { %3963 = vmax.xlane.f32.xlu0 %v3962_v32  ;;  %v990_v39 = vadd.f32 %v13928_v22, %v11677_v31  ;;  %v13929_v32 = vld [vmem:[#allocation75_spill] sm:$0xff] }
 0xb7b   : > { %v1393_v8 = vadd.f32 %v13929_v32, %v11645_v35  ;;  %v1429_v50 = vpack.c.bf16 %v1395_v15, %v1395_v15 }
 0xb7c   : > { %v1026_v59 = vpack.c.bf16 %v990_v39, %v990_v39 }
 0xb7d   : > { %v3901_v46 = vpop.f32.mrf.mxu3  ;;  %v1427_v37 = vpack.c.bf16 %v1393_v8, %v1393_v8  ;;  %v4929_v1 = vunpack.c.l.b16 %v1429_v50 }
 0xb7e   : > { %v11693_v11 = vmul.f32 0.17677669, %v3901_v46  ;;  %v5310_v5 = vunpack.c.l.b16 %v1026_v59 }
 0xb7f   : > { %v4928_v46 = vunpack.c.l.b16 %v1427_v37 }
 0xb80   : > { %v3965_v60 = vsel %vm1724_vm6, %v11693_v11, -inf  ;;  %v11714_v19 = vpack.c.b16 %v5310_v5, %v5309_v56 }
 0xb81   : > { %3966 = vmax.xlane.f32.xlu2 %v3965_v60  ;;  %v11712_v30 = vpack.c.b16 %v4929_v1, %v4928_v46 }
 0xb82   : > { %13932 = vst [vmem:[#allocation34_spill] sm:$0xff] %v11714_v19 }
 0xb83   : > { %13931 = vst [vmem:[#allocation53_spill] sm:$0xff] %v11712_v30 }
 0xb87   : > { %8673 = vmatmul.msk.bf16.vlgmr.msrb.gmra.mxu1 %vm1491_vm4, %v11697_v52 }
 0xb88   : > { %5239 = vmatpush.bf16.msrb.mxu1 %v11699_v45 }
 0xb97   : > { %8676 = vmatmul.msk.bf16.vlgmr.msra.gmra.mxu1 %vm1491_vm4, %v11712_v30  ;;  %v11727_v39 = vpop.f32.mrf.mxu0 }
 0xb98   : > { %5323 = vmatpush.bf16.msra.mxu1 %v11714_v19 }
 0xb99   : > { %3808 = vrot.lane.b32.xlu2 %v13865_v54, %s9667_s6 }
 0xb9f   : > { %v11739_v50 = vpop.f32.mrf.mxu0 }
 0xbd4   : > { %v11721_v60 = vpop.f32.mrf.mxu1  ;;  %v3934_v32 = vpop.xlane.xlu1 %3933 }
 0xbd5   : > { %v3972_v5 = vsub.f32 %v11634_v61, %v3934_v32 }
 0xbd7   : > { %v3992_v56 = vmul.f32 1.442695, %v3972_v5 }
 0xbdc   : > { %v3940_v25 = vpop.xlane.xlu0 %3939  ;;  %v11723_v21 = vpop.f32.mrf.mxu1 }
 0xbdd   : > { %v3974_v24 = vsub.f32 %v11640_v12, %v3940_v25  ;;  %v3937_v47 = vpop.xlane.xlu2 %3936 }
 0xbde   : > { %v3973_v38 = vsub.f32 %v11638_v13, %v3937_v47 }
 0xbdf   : > { %v3996_v15 = vmul.f32 1.442695, %v3974_v24  ;;  %v11745_v24 = vpop.f32.mrf.mxu0 }
 0xbe0   : > { %v3994_v22 = vmul.f32 1.442695, %v3973_v38  ;;  %13935 = vst [vmem:[#allocation70_spill] sm:$0xff] %v11745_v24 }
 0xbe1   : > { %9251 = vpow2.f32 %v3996_v15 }
 0xbe2   : > { %9253 = vpow2.f32 %v3994_v22 }
 0xbe4   : > { %v11729_v8 = vpop.f32.mrf.mxu1 }
 0xbe5   : > { %13933 = vst [vmem:[#allocation64_spill] sm:$0xff] %v11729_v8  ;;  %v3958_v54 = vpop.xlane.xlu2 %3957 }
 0xbe7   : > { %v11731_v34 = vpop.eup %9251 }
 0xbe8   : > { %v11733_v58 = vpop.eup %9253  ;;  %v4034_v12 = vsel %vm1724_vm6, %v11731_v34, 0.0 }
 0xbe9   : > { %4035 = vadd.xlane.f32.xlu2 %v4034_v12  ;;  %v4031_v13 = vsel %vm1724_vm6, %v11733_v58, 0.0 }
 0xbea   : > { %4032 = vadd.xlane.f32.xlu0 %v4031_v13 }
 0xbec   : > { %v3961_v59 = vpop.xlane.xlu1 %3960  ;;  %v11741_v37 = vpop.f32.mrf.mxu1 }
 0xbed   : > { %13934 = vst [vmem:[#allocation63_spill] sm:$0xff] %v11741_v37  ;;  %v3981_v44 = vsub.f32 %v11667_v28, %v3961_v59  ;;  %v3943_v1 = vpop.xlane.xlu2 %3942  ;;  %v3964_v25 = vpop.xlane.xlu0 %3963  ;;  %v3980_v28 = vsub.f32 %v11659_v18, %v3958_v54 }
 0xbee   : > { %v3982_v22 = vsub.f32 %v11669_v33, %v3964_v25 }
 0xbef   : > { %v4010_v46 = vmul.f32 1.442695, %v3981_v44  ;;  %v4008_v59 = vmul.f32 1.442695, %v3980_v28 }
 0xbf0   : > { %v4012_v13 = vmul.f32 1.442695, %v3982_v22 }
 0xbf1   : > { %9255 = vpow2.f32 %v4010_v46 }
 0xbf2   : > { %9257 = vpow2.f32 %v3992_v56  ;;  %v11763_v56 = vpop.f32.mrf.mxu0 }
 0xbf3   : > { %13937 = vst [vmem:[#allocation69_spill] sm:$0xff] %v11763_v56  ;;  %9259 = vpow2.f32 %v4012_v13 }
 0xbf4   : > { %v4781_v47 = vpop.f32.mrf.mxu1  ;;  %9261 = vpow2.f32 %v4008_v59 }
 0xbf5   : > { %v11747_v38 = vmul.f32 0.17677669, %v4781_v47  ;;  %v11749_v15 = vpop.xlane.xlu2 %3966 }
 0xbf7   : > { %13936 = vst [vmem:[#allocation44_spill] sm:$0xff] %v11747_v38  ;;  %v11752_v12 = vpop.eup %9255  ;;  %v4998_v61 = vsel %vm1724_vm6, %v11747_v38, -inf }
 0xbf8   : > { %4999 = vmax.xlane.f32.xlu1 %v4998_v61  ;;  %v4055_v32 = vsel %vm1724_vm6, %v11752_v12, 0.0  ;;  %v11759_v44 = vpop.eup %9257 }
 0xbf9   : > { %4056 = vadd.xlane.f32.xlu0 %v4055_v32  ;;  %v4028_v18 = vsel %vm1724_vm6, %v11759_v44, 0.0  ;;  %v11770_v25 = vpop.eup %9259 }
 0xbfa   : > { %13938 = vst [vmem:[#allocation40_spill] sm:$0xff] %v11770_v25  ;;  %v11772_v22 = vpop.eup %9261  ;;  %v4058_v61 = vsel %vm1724_vm6, %v11770_v25, 0.0  ;;  %v3731_v13 = vpop.f32.mrf.mxu0 }
 0xbfb   : > { %v4052_v59 = vsel %vm1724_vm6, %v11772_v22, 0.0 }
 0xbfc   : > { %v4783_v5 = vpop.f32.mrf.mxu1 }
 0xbfd   : > { %v11761_v46 = vmul.f32 0.17677669, %v4783_v5  ;;  %v3809_v33 = vpop.permute.xlu2 %3808  ;;  %v11782_v5 = vmul.f32 0.17677669, %v3731_v13 }
 0xbfe   : > { %8594 = vmatmul.msk.bf16.vlgmr.msrb.gmra.mxu0 %vm1491_vm4, %v3809_v33 }
 0xbff   : > { %v5001_v54 = vsel %vm1724_vm6, %v11761_v46, -inf }
 0xc00   : > { %4029 = vadd.xlane.f32.xlu1 %v4028_v18  ;;  %5002 = vmax.xlane.f32.xlu2 %v5001_v54  ;;  %v3920_v54 = vsel %vm1724_vm6, %v11782_v5, -inf }
 0xc04   : > { %v4865_v47 = vpop.f32.mrf.mxu1 }
 0xc05   : > { %v11774_v28 = vmul.f32 0.17677669, %v4865_v47 }
 0xc07   : > { %13939 = vst [vmem:[#allocation76_spill] sm:$0xff] %v11774_v28  ;;  %v5016_v32 = vsel %vm1724_vm6, %v11774_v28, -inf }
 0xc08   : > { %4059 = vadd.xlane.f32.xlu2 %v4058_v61  ;;  %5017 = vmax.xlane.f32.xlu0 %v5016_v32  ;;  %v3975_v32 = vsub.f32 %v11663_v57, %v3943_v1 }
 0xc09   : > { %4053 = vadd.xlane.f32.xlu1 %v4052_v59  ;;  %v3733_v59 = vpop.f32.mrf.mxu0 }
 0xc0a   : > { %v11795_v37 = vmul.f32 0.17677669, %v3733_v59 }
 0xc0c   : > { %v4867_v33 = vpop.f32.mrf.mxu1 }
 0xc0d   : > { %v11784_v18 = vmul.f32 0.17677669, %v4867_v33  ;;  %v3998_v33 = vmul.f32 1.442695, %v3975_v32 }
 0xc0f   : > { %v5019_v47 = vsel %vm1724_vm6, %v11784_v18, -inf  ;;  %9263 = vpow2.f32 %v3998_v33 }
 0xc10   : > { %3921 = vmax.xlane.f32.xlu2 %v3920_v54  ;;  %v3923_v54 = vsel %vm1724_vm6, %v11795_v37, -inf }
 0xc11   : > { %5020 = vmax.xlane.f32.xlu1 %v5019_v47  ;;  %v13942_v47 = vld [vmem:[#allocation66_spill] sm:$0xff] }
 0xc12   : > { %v1370_v32 = vadd.f32 %v13942_v47, %v11645_v35  ;;  %v13947_v47 = vld [vmem:[#allocation9_spill] sm:$0xff] }
 0xc14   : > { %v4949_v48 = vpop.f32.mrf.mxu1  ;;  %v1409_v33 = vpack.c.bf16 %v1370_v32, %v1370_v32  ;;  %v13948_v32 = vld [vmem:[#allocation74_spill] sm:$0xff] }
 0xc15   : > { %v11790_v61 = vmul.f32 0.17677669, %v4949_v48  ;;  %v11803_v57 = vpop.eup %9263 }
 0xc16   : > { %v4037_v1 = vsel %vm1724_vm6, %v11803_v57, 0.0  ;;  %v4789_v24 = vunpack.c.l.b16 %v1409_v33 }
 0xc17   : > { %13940 = vst [vmem:[#allocation56_spill] sm:$0xff] %v11790_v61  ;;  %v5034_v13 = vsel %vm1724_vm6, %v11790_v61, -inf }
 0xc18   : > { %5035 = vmax.xlane.f32.xlu0 %v5034_v13  ;;  %v13943_v13 = vld [vmem:[#allocation65_spill] sm:$0xff] }
 0xc19   : > { %v1368_v59 = vadd.f32 %v13943_v13, %v11645_v35  ;;  %v1390_v13 = vadd.f32 %v13948_v32, %v11645_v35 }
 0xc1b   : > { %v1425_v33 = vpack.c.bf16 %v1390_v13, %v1390_v13  ;;  %v13952_v13 = vld [vmem:[#allocation11_spill] sm:$0xff] }
 0xc1c   : > { %v4951_v42 = vpop.f32.mrf.mxu1 }
 0xc1d   : > { %v11797_v56 = vmul.f32 0.17677669, %v4951_v42  ;;  %v13941_v42 = vld [vmem:[#allocation22_spill] sm:$0xff]  ;;  %v4901_v20 = vunpack.c.l.b16 %v1425_v33 }
 0xc1e   : > { %v4745_v53 = vrot.slane %v13941_v42, 4 }
 0xc1f   : > { %v5037_v48 = vsel %vm1724_vm6, %v11797_v56, -inf }
 0xc20   : > { %3924 = vmax.xlane.f32.xlu0 %v3923_v54  ;;  %5038 = vmax.xlane.f32.xlu1 %v5037_v48  ;;  %v1407_v54 = vpack.c.bf16 %v1368_v59, %v1368_v59  ;;  %v13944_v48 = vld [vmem:[#allocation36_spill] sm:$0xff] }
 0xc22   : > { %v4788_v43 = vunpack.c.l.b16 %v1407_v54 }
 0xc28   : > { %4038 = vadd.xlane.f32.xlu1 %v4037_v1  ;;  %v11817_v1 = vpack.c.b16 %v4789_v24, %v4788_v43  ;;  %v13950_v43 = vld [vmem:[#allocation73_spill] sm:$0xff] }
 0xc29   : > { %v1388_v24 = vadd.f32 %v13950_v43, %v11645_v35 }
 0xc2a   : > { %13945 = vst [vmem:[#allocation75_spill] sm:$0xff] %v11817_v1 }
 0xc2b   : > { %v1423_v54 = vpack.c.bf16 %v1388_v24, %v1388_v24 }
 0xc2d   : > { %v4900_v41 = vunpack.c.l.b16 %v1423_v54 }
 0xc2f   : > { %v11837_v32 = vpack.c.b16 %v4901_v20, %v4900_v41 }
 0xc31   : > { %13951 = vst [vmem:[#allocation66_spill] sm:$0xff] %v11837_v32 }
 0xc41   : > { %3666 = vrot.lane.b32.xlu1 %v13873_v55, %s9667_s6  ;;  %v13946_v55 = vld [vmem:[#allocation16_spill] sm:$0xff] }
 0xc49   : > { %5452 = vrot.lane.b32.xlu1 %v13941_v42, %s9665_s28 }
 0xc51   : > { %5456 = vrot.lane.b32.xlu1 %v13944_v48, %s9665_s28 }
 0xc59   : > { %5519 = vrot.lane.b32.xlu1 %v11817_v1, %s9665_s28 }
 0xc5c   : > { %v11825_v10 = vpop.xlane.xlu2 %4035 }
 0xc5d   : > { %v4033_v59 = vpop.xlane.xlu0 %4032 }
 0xc5e   : > { %9265 = vrcp.f32 %v4033_v59  ;;  %v4744_v59 = vrot.slane %v13952_v13, 4 }
 0xc60   : > { %v4791_v41 = vunpack.c.l.b16 %v4744_v59 }
 0xc61   : > { %5462 = vrot.lane.b32.xlu1 %v13946_v55, %s9665_s28 }
 0xc64   : > { %v9266_v8 = vpop.eup %9265 }
 0xc65   : > { %v4085_v4 = vmul.f32 %v9266_v8, %v11733_v58 }
 0xc67   : > { %v4101_v24 = vpack.c.bf16 %v4085_v4, %v4085_v4 }
 0xc69   : > { %5466 = vrot.lane.b32.xlu1 %v13947_v47, %s9665_s28  ;;  %v4792_v47 = vunpack.c.l.b16 %v4745_v53  ;;  %v4167_v8 = vunpack.c.l.b16 %v4101_v24  ;;  %v13955_v24 = vld [vmem:[#allocation41_spill] sm:$0xff] }
 0xc6b   : > { %v11829_v19 = vpop.xlane.xlu1 %4999  ;;  %v4793_v54 = vpack.c.b16 %v4792_v47, %v4791_v41  ;;  %v4751_v47 = vrot.slane %v13955_v24, 4 }
 0xc6c   : > { %13949 = vst [vmem:[#allocation55_spill] sm:$0xff] %v11829_v19  ;;  %v4057_v33 = vpop.xlane.xlu0 %4056 }
 0xc6d   : > { %v4798_v4 = vsel %vm1491_vm4, %v4793_v54, 0 }
 0xc71   : > { %5470 = vrot.lane.b32.xlu1 %v13919_v9, %s9665_s28 }
 0xc73   : > { %v4030_v51 = vpop.xlane.xlu1 %4029  ;;  %v11835_v45 = vpop.xlane.xlu2 %5002 }
 0xc74   : > { %9267 = vrcp.f32 %v4030_v51 }
 0xc79   : > { %5619 = vrot.lane.b32.xlu1 %v11837_v32, %s9665_s28 }
 0xc7a   : > { %v9268_v43 = vpop.eup %9267 }
 0xc7b   : > { %v4084_v9 = vmul.f32 %v9268_v43, %v11759_v44  ;;  %v11845_v51 = vpop.xlane.xlu2 %4059  ;;  %v11847_v61 = vpop.xlane.xlu0 %5017 }
 0xc7c   : > { %v4054_v25 = vpop.xlane.xlu1 %4053  ;;  %13953 = vst [vmem:[#allocation65_spill] sm:$0xff] %v11845_v51  ;;  %v13961_v51 = vld [vmem:[#allocation50_spill] sm:$0xff] }
 0xc7d   : > { %v4100_v20 = vpack.c.bf16 %v4084_v9, %v4084_v9  ;;  %9269 = vrcp.f32 %v4054_v25  ;;  %13954 = vst [vmem:[#allocation74_spill] sm:$0xff] %v11847_v61 }
 0xc7e   : > { %9271 = vrcp.f32 %v4057_v33 }
 0xc7f   : > { %v4166_v58 = vunpack.c.l.b16 %v4100_v20  ;;  %v4750_v20 = vrot.slane %v13946_v55, 4 }
 0xc81   : > { %v4168_v42 = vpack.c.b16 %v4167_v8, %v4166_v58  ;;  %v4876_v58 = vunpack.c.l.b16 %v4751_v47 }
 0xc83   : > { %v9270_v32 = vpop.eup %9269  ;;  %8600 = vmatmul.msk.bf16.vlgmr.msra.gmra.mxu2 %vm1724_vm6, %v4168_v42  ;;  %v3922_v53 = vpop.xlane.xlu2 %3921 }
 0xc84   : > { %v9272_v44 = vpop.eup %9271  ;;  %4807 = vmatpush.bf16.xpose.msra.mxu2 %v4798_v4  ;;  %v4092_v43 = vmul.f32 %v9270_v32, %v11772_v22  ;;  %v3968_v9 = vsub.f32 %v11782_v5, %v3922_v53  ;;  %v11856_v42 = vpop.xlane.xlu1 %5020  ;;  %v4875_v4 = vunpack.c.l.b16 %v4750_v20  ;;  %v13957_v20 = vld [vmem:[#allocation32_spill] sm:$0xff] }
 0xc85   : > { %v4093_v25 = vmul.f32 %v9272_v44, %v11752_v12  ;;  %v3827_v12 = vpop.f32.mrf.mxu0 }
 0xc86   : > { %v3984_v59 = vmul.f32 1.442695, %v3968_v9  ;;  %v4108_v33 = vpack.c.bf16 %v4092_v43, %v4092_v43  ;;  %v4877_v32 = vpack.c.b16 %v4876_v58, %v4875_v4  ;;  %v11869_v47 = vmul.f32 0.17677669, %v3827_v12 }
 0xc87   : > { %v4109_v41 = vpack.c.bf16 %v4093_v25, %v4093_v25 }
 0xc88   : > { %9273 = vpow2.f32 %v3984_v59  ;;  %v4270_v54 = vunpack.c.l.b16 %v4108_v33  ;;  %v4882_v9 = vsel %vm1491_vm4, %v4877_v32, 0  ;;  %v3944_v58 = vsel %vm1724_vm6, %v11869_v47, -inf }
 0xc89   : > { %v4271_v22 = vunpack.c.l.b16 %v4109_v41  ;;  %9275 = vrcp.f32 %v11825_v10  ;;  %v4757_v41 = vrot.slane %v13957_v20, 4 }
 0xc8b   : > { %v11858_v8 = vpop.xlane.xlu0 %5035  ;;  %v4272_v44 = vpack.c.b16 %v4271_v22, %v4270_v54  ;;  %v13958_v54 = vld [vmem:[#allocation31_spill] sm:$0xff] }
 0xc8c   : > { %13956 = vst [vmem:[#allocation73_spill] sm:$0xff] %v11858_v8  ;;  %v4756_v4 = vrot.slane %v13958_v54, 4  ;;  %v980_v8 = vadd.f32 %v13961_v51, %v11677_v31 }
 0xc8d   : > { %v3829_v22 = vpop.f32.mrf.mxu0 }
 0xc8e   : > { %v11860_v5 = vpop.eup %9273  ;;  %v4959_v12 = vunpack.c.l.b16 %v4756_v4 }
 0xc8f   : > { %v4016_v53 = vsel %vm1724_vm6, %v11860_v5, 0.0 }
 0xc90   : > { %4017 = vadd.xlane.f32.xlu2 %v4016_v53  ;;  %v9276_v53 = vpop.eup %9275 }
 0xc91   : > { %v4086_v10 = vmul.f32 %v9276_v53, %v11731_v34 }
 0xc93   : > { %v3925_v43 = vpop.xlane.xlu0 %3924  ;;  %8604 = vmatmul.msk.bf16.vlgmr.msrb.gmra.mxu2 %vm1724_vm6, %v4272_v44  ;;  %v11866_v25 = vpop.xlane.xlu1 %5038  ;;  %v4960_v44 = vunpack.c.l.b16 %v4757_v41  ;;  %v13959_v41 = vld [vmem:[#allocation12_spill] sm:$0xff] }
 0xc94   : > { %v3969_v59 = vsub.f32 %v11795_v37, %v3925_v43  ;;  %4891 = vmatpush.bf16.xpose.msrb.mxu2 %v4882_v9  ;;  %v11876_v37 = vmul.f32 0.17677669, %v3829_v22  ;;  %v4746_v55 = vrot.slane %v13959_v41, 4  ;;  %v4102_v22 = vpack.c.bf16 %v4086_v10, %v4086_v10 }
 0xc96   : > { %v3986_v33 = vmul.f32 1.442695, %v3969_v59  ;;  %v4961_v59 = vpack.c.b16 %v4960_v44, %v4959_v12  ;;  %v13960_v44 = vld [vmem:[#allocation72_spill] sm:$0xff]  ;;  %v4192_v28 = vunpack.c.l.b16 %v4102_v22 }
 0xc97   : > { %v1385_v12 = vadd.f32 %v13960_v44, %v11645_v35 }
 0xc98   : > { %9277 = vpow2.f32 %v3986_v33  ;;  %3945 = vmax.xlane.f32.xlu2 %v3944_v58  ;;  %v4747_v33 = vrot.slane %v13944_v48, 4  ;;  %v3947_v58 = vsel %vm1724_vm6, %v11876_v37, -inf  ;;  %v4966_v34 = vsel %vm1491_vm4, %v4961_v59, 0 }
 0xc99   : > { %v4819_v48 = vunpack.c.l.b16 %v4746_v55  ;;  %v1421_v59 = vpack.c.bf16 %v1385_v12, %v1385_v12 }
 0xc9a   : > { %v4820_v53 = vunpack.c.l.b16 %v4747_v33 }
 0xc9b   : > { %v4039_v32 = vpop.xlane.xlu1 %4038  ;;  %v4873_v51 = vunpack.c.l.b16 %v1421_v59 }
 0xc9c   : > { %9279 = vrcp.f32 %v4039_v32 }
 0xc9e   : > { %v11878_v43 = vpop.eup %9277 }
 0xc9f   : > { %v4019_v9 = vsel %vm1724_vm6, %v11878_v43, 0.0 }
 0xca0   : > { %4020 = vadd.xlane.f32.xlu0 %v4019_v9  ;;  %3948 = vmax.xlane.f32.xlu2 %v3947_v58  ;;  %v13962_v58 = vld [vmem:[#allocation71_spill] sm:$0xff] }
 0xca1   : > { %v1383_v10 = vadd.f32 %v13962_v58, %v11645_v35 }
 0xca2   : > { %v9280_v32 = vpop.eup %9279 }
 0xca3   : > { %v4087_v4 = vmul.f32 %v9280_v32, %v11803_v57  ;;  %8671 = vmatmul.msk.bf16.vlgmr.msra.gmra.mxu2 %vm1491_vm4, %v11817_v1  ;;  %v4821_v32 = vpack.c.b16 %v4820_v53, %v4819_v48  ;;  %v13963_v1 = vld [vmem:[#allocation47_spill] sm:$0xff]  ;;  %v1419_v38 = vpack.c.bf16 %v1383_v10, %v1383_v10  ;;  %v13968_v53 = vld [vmem:[#allocation57_spill] sm:$0xff] }
 0xca4   : > { %4975 = vmatpush.bf16.xpose.msra.mxu2 %v4966_v34  ;;  %v978_v61 = vadd.f32 %v13963_v1, %v11677_v31  ;;  %v1018_v34 = vpack.c.bf16 %v980_v8, %v980_v8  ;;  %v13966_v1 = vld [vmem:[#allocation58_spill] sm:$0xff]  ;;  %v993_v12 = vadd.f32 %v13968_v53, %v11677_v31 }
 0xca5   : > { %v4103_v9 = vpack.c.bf16 %v4087_v4, %v4087_v4  ;;  %v4826_v55 = vsel %vm1491_vm4, %v4821_v32, 0  ;;  %v4872_v19 = vunpack.c.l.b16 %v1419_v38  ;;  %v995_v8 = vadd.f32 %v13966_v1, %v11677_v31  ;;  %v13967_v38 = vld [vmem:[#allocation77_spill] sm:$0xff] }
 0xca6   : > { %v1016_v4 = vpack.c.bf16 %v978_v61, %v978_v61  ;;  %v5254_v44 = vunpack.c.l.b16 %v1018_v34  ;;  %v1028_v32 = vpack.c.bf16 %v993_v12, %v993_v12 }
 0xca7   : > { %v4193_v57 = vunpack.c.l.b16 %v4103_v9  ;;  %v11901_v22 = vpack.c.b16 %v4873_v51, %v4872_v19  ;;  %v1398_v19 = vadd.f32 %v13967_v38, %v11645_v35  ;;  %v1030_v10 = vpack.c.bf16 %v995_v8, %v995_v8  ;;  %v13971_v51 = vld [vmem:[#allocation46_spill] sm:$0xff] }
 0xca8   : > { %v5253_v58 = vunpack.c.l.b16 %v1016_v4  ;;  %v5337_v34 = vunpack.c.l.b16 %v1028_v32 }
 0xca9   : > { %v4194_v33 = vpack.c.b16 %v4193_v57, %v4192_v28  ;;  %13964 = vst [vmem:[#allocation72_spill] sm:$0xff] %v11901_v22  ;;  %v13965_v28 = vld [vmem:[#allocation78_spill] sm:$0xff]  ;;  %v1431_v57 = vpack.c.bf16 %v1398_v19, %v1398_v19  ;;  %v5338_v59 = vunpack.c.l.b16 %v1030_v10 }
 0xcaa   : > { %v11903_v48 = vpack.c.b16 %v5254_v44, %v5253_v58  ;;  %v1400_v61 = vadd.f32 %v13965_v28, %v11645_v35  ;;  %v13972_v44 = vld [vmem:[#allocation68_spill] sm:$0xff]  ;;  %v13973_v28 = vld [vmem:[#allocation67_spill] sm:$0xff] }
 0xcab   : > { %8601 = vmatmul.msk.bf16.vlgmr.msra.gmra.mxu3 %vm1724_vm6, %v4194_v33  ;;  %v4956_v33 = vunpack.c.l.b16 %v1431_v57  ;;  %v11924_v4 = vpack.c.b16 %v5338_v59, %v5337_v34  ;;  %v1375_v58 = vadd.f32 %v13972_v44, %v11645_v35 }
 0xcac   : > { %4835 = vmatpush.bf16.xpose.msra.mxu3 %v4826_v55  ;;  %v1433_v9 = vpack.c.bf16 %v1400_v61, %v1400_v61  ;;  %v1373_v61 = vadd.f32 %v13973_v28, %v11645_v35 }
 0xcad   : > { %13970 = vst [vmem:[#allocation71_spill] sm:$0xff] %v11924_v4  ;;  %v1413_v1 = vpack.c.bf16 %v1375_v58, %v1375_v58 }
 0xcae   : > { %v1411_v8 = vpack.c.bf16 %v1373_v61, %v1373_v61 }
 0xcaf   : > { %v4817_v38 = vunpack.c.l.b16 %v1413_v1 }
 0xcb0   : > { %v4816_v19 = vunpack.c.l.b16 %v1411_v8 }
 0xcb2   : > { %v11949_v53 = vpack.c.b16 %v4817_v38, %v4816_v19 }
 0xcb3   : > { %8674 = vmatmul.msk.bf16.vlgmr.msrb.gmra.mxu2 %vm1491_vm4, %v11901_v22  ;;  %v3667_v28 = vpop.permute.xlu1 %3666 }
 0xcb4   : > { %5267 = vmatpush.bf16.msrb.mxu2 %v11903_v48  ;;  %3664 = vrot.lane.b32.xlu0 %v13872_v63, %s9667_s6  ;;  %v4957_v63 = vunpack.c.l.b16 %v1433_v9  ;;  %13974 = vst [vmem:[#allocation47_spill] sm:$0xff] %v11949_v53  ;;  %v2815_v9 = vpack.c.bf16 %v11373_v40, %v11373_v40  ;;  %v3697_v8 = vrot.slane %v3667_v28, 4  ;;  %v4322_v28 = vpack.c.bf16 %v11721_v60, %v11721_v60 }
 0xcb6   : > { %v11922_v55 = vpack.c.b16 %v4957_v63, %v4956_v33  ;;  %v3568_v63 = vpack.c.bf16 %v11739_v50, %v11739_v50  ;;  %v2816_v50 = vpack.c.bf16 %v11142_v14, %v11142_v14  ;;  %v3570_v14 = vpack.c.bf16 %v11417_v16, %v11417_v16 }
 0xcb8   : > { %5448 = vrot.lane.b32.xlu2 %v13907_v27, %s9665_s28  ;;  %13969 = vst [vmem:[#allocation50_spill] sm:$0xff] %v11922_v55 }
 0xcbc   : > { %5446 = vrot.lane.b32.xlu0 %v13910_v2, %s9665_s28 }
 0xcc0   : > { %5458 = vrot.lane.b32.xlu2 %v13915_v0, %s9665_s28  ;;  %v13978_v0 = vld [vmem:[#allocation55_spill] sm:$0xff] }
 0xcc3   : > { %8677 = vmatmul.msk.bf16.vlgmr.msra.gmra.mxu2 %vm1491_vm4, %v11922_v55 }
 0xcc4   : > { %5351 = vmatpush.bf16.msra.mxu2 %v11924_v4  ;;  %5450 = vrot.lane.b32.xlu0 %v13952_v13, %s9665_s28 }
 0xcc8   : > { %5464 = vrot.lane.b32.xlu2 %v13955_v24, %s9665_s28 }
 0xccc   : > { %5454 = vrot.lane.b32.xlu0 %v13959_v41, %s9665_s28 }
 0xcd0   : > { %5468 = vrot.lane.b32.xlu2 %v13971_v51, %s9665_s28 }
 0xcd4   : > { %5494 = vrot.lane.b32.xlu0 %v11665_v23, %s9665_s28 }
 0xcd8   : > { %5472 = vrot.lane.b32.xlu2 %v13918_v29, %s9665_s28  ;;  %v13981_v29 = vld [vmem:[#allocation76_spill] sm:$0xff] }
 0xcdc   : > { %5460 = vrot.lane.b32.xlu0 %v13913_v62, %s9665_s28 }
 0xce0   : > { %5644 = vrot.lane.b32.xlu2 %v11712_v30, %s9665_s28 }
 0xce4   : > { %5544 = vrot.lane.b32.xlu0 %v11949_v53, %s9665_s28 }
 0xce8   : > { %3680 = vrot.lane.b32.xlu2 %v10461_v36, %s9667_s6 }
 0xcec   : > { %5569 = vrot.lane.b32.xlu0 %v11697_v52, %s9665_s28 }
 0xcf0   : > { %3682 = vrot.lane.b32.xlu2 %v13876_v6, %s9667_s6 }
 0xcf4   : > { %5594 = vrot.lane.b32.xlu0 %v11901_v22, %s9665_s28 }
 0xcf8   : > { %5474 = vrot.lane.b32.xlu2 %v13958_v54, %s9665_s28 }
 0xd00   : > { %5476 = vrot.lane.b32.xlu2 %v13957_v20, %s9665_s28  ;;  %v13979_v20 = vld [vmem:[#allocation44_spill] sm:$0xff] }
 0xd01   : > { %v5046_v54 = vsub.f32 %v13979_v20, %v13978_v0  ;;  %v13983_v20 = vld [vmem:[#allocation56_spill] sm:$0xff] }
 0xd03   : > { %v4018_v35 = vpop.xlane.xlu2 %4017  ;;  %v5062_v30 = vmul.f32 1.442695, %v5046_v54 }
 0xd08   : > { %5669 = vrot.lane.b32.xlu2 %v11922_v55, %s9665_s28 }
 0xd0b   : > { %v3946_v36 = vpop.xlane.xlu2 %3945 }
 0xd0c   : > { %v3976_v12 = vsub.f32 %v11869_v47, %v3946_v36 }
 0xd0e   : > { %v4000_v6 = vmul.f32 1.442695, %v3976_v12 }
 0xd10   : > { %2848 = vrot.lane.b32.xlu2 %v2815_v9, %s9667_s6  ;;  %9281 = vpow2.f32 %v4000_v6  ;;  %v4118_v9 = vunpack.c.l.b16 %v3697_v8 }
 0xd13   : > { %v3949_v10 = vpop.xlane.xlu2 %3948  ;;  %v4021_v57 = vpop.xlane.xlu0 %4020 }
 0xd14   : > { %v3977_v32 = vsub.f32 %v11876_v37, %v3949_v10  ;;  %9283 = vrcp.f32 %v4021_v57 }
 0xd16   : > { %v4002_v59 = vmul.f32 1.442695, %v3977_v32  ;;  %v11976_v33 = vpop.eup %9281 }
 0xd17   : > { %v4040_v47 = vsel %vm1724_vm6, %v11976_v33, 0.0 }
 0xd18   : > { %9285 = vpow2.f32 %v4002_v59  ;;  %3601 = vrot.lane.b32.xlu2 %v3568_v63, %s9666_s5  ;;  %v2814_v63 = vpack.c.bf16 %v11369_v3, %v11369_v3  ;;  %v3569_v59 = vpack.c.bf16 %v11415_v17, %v11415_v17  ;;  %v4323_v3 = vpack.c.bf16 %v11723_v21, %v11723_v21 }
 0xd19   : > { %9287 = vrcp.f32 %v4018_v35 }
 0xd1a   : > { %v9284_v34 = vpop.eup %9283 }
 0xd1b   : > { %v11979_v40 = vpop.permute.xlu2 %5448  ;;  %v4081_v61 = vmul.f32 %v9284_v34, %v11878_v43  ;;  %v12011_v34 = vpop.f32.mrf.mxu2 }
 0xd1d   : > { %v4097_v19 = vpack.c.bf16 %v4081_v61, %v4081_v61 }
 0xd1e   : > { %4041 = vadd.xlane.f32.xlu0 %v4040_v47  ;;  %v11983_v44 = vpop.eup %9285  ;;  %v3567_v47 = vpack.c.bf16 %v11727_v39, %v11727_v39 }
 0xd1f   : > { %v9288_v37 = vpop.eup %9287  ;;  %v4043_v58 = vsel %vm1724_vm6, %v11983_v44, 0.0  ;;  %v4115_v10 = vunpack.c.l.b16 %v4097_v19 }
 0xd20   : > { %2850 = vrot.lane.b32.xlu2 %v2816_v50, %s9667_s6  ;;  %4044 = vadd.xlane.f32.xlu1 %v4043_v58  ;;  %v4080_v1 = vmul.f32 %v9288_v37, %v11860_v5  ;;  %v2817_v37 = vpack.c.bf16 %v11146_v7, %v11146_v7  ;;  %v2818_v7 = vpack.c.bf16 %v11333_v26, %v11333_v26 }
 0xd22   : > { %v4096_v12 = vpack.c.bf16 %v4080_v1, %v4080_v1  ;;  %v12032_v1 = vpop.permute.xlu1 %5452 }
 0xd23   : > { %v11992_v38 = vpop.permute.xlu2 %5458  ;;  %v12025_v58 = vpop.f32.mrf.mxu2 }
 0xd24   : > { %v4114_v57 = vunpack.c.l.b16 %v4096_v12 }
 0xd26   : > { %v3665_v35 = vpop.permute.xlu0 %3664  ;;  %v4116_v5 = vpack.c.b16 %v4115_v10, %v4114_v57 }
 0xd27   : > { %v3696_v36 = vrot.slane %v3665_v35, 4 }
 0xd28   : > { %3605 = vrot.lane.b32.xlu2 %v3570_v14, %s9666_s5 }
 0xd29   : > { %v4117_v6 = vunpack.c.l.b16 %v3696_v36 }
 0xd2b   : > { %v4119_v43 = vpack.c.b16 %v4118_v9, %v4117_v6  ;;  %v11997_v32 = vpop.permute.xlu2 %5464  ;;  %v12036_v8 = vpop.f32.mrf.mxu2  ;;  %v3983_v9 = vsub.f32 %v11693_v11, %v11749_v15  ;;  %v5047_v11 = vsub.f32 %v11761_v46, %v11835_v45 }
 0xd2c   : > { %13976 = vst [vmem:[#allocation58_spill] sm:$0xff] %v12036_v8  ;;  %v12043_v6 = vpop.permute.xlu1 %5456 }
 0xd2d   : > { %4131 = vmatpush.bf16.msra.mxu0 %v4119_v43  ;;  %v4014_v57 = vmul.f32 1.442695, %v3983_v9 }
 0xd2e   : > { %v12020_v17 = vpop.permute.xlu0 %5446 }
 0xd2f   : > { %9289 = vpow2.f32 %v4014_v57  ;;  %v2819_v57 = vpack.c.bf16 %v11335_v49, %v11335_v49 }
 0xd30   : > { %8598 = vmatmul.msk.bf16.vlgmr.msra.gmra.mxu0 %vm1724_vm6, %v4116_v5 }
 0xd32   : > { %2846 = vrot.lane.b32.xlu0 %v2814_v63, %s9667_s6 }
 0xd33   : > { %v12003_v16 = vpop.permute.xlu2 %5468  ;;  %v12045_v43 = vpop.f32.mrf.mxu2 }
 0xd34   : > { %v12051_v63 = vpop.permute.xlu1 %5519 }
 0xd36   : > { %v12030_v61 = vpop.permute.xlu0 %5450 }
 0xd39   : > { %3599 = vrot.lane.b32.xlu1 %v3567_v47, %s9666_s5 }
 0xd3a   : > { %3603 = vrot.lane.b32.xlu0 %v3569_v59, %s9666_s5 }
 0xd3b   : > { %v12013_v50 = vpop.permute.xlu2 %5472  ;;  %v12053_v59 = vpop.f32.mrf.mxu2 }
 0xd3e   : > { %v12039_v14 = vpop.permute.xlu0 %5454 }
 0xd41   : > { %2852 = vrot.lane.b32.xlu1 %v2817_v37, %s9667_s6 }
 0xd42   : > { %4358 = vrot.lane.b32.xlu0 %v4323_v3, %s9665_s28  ;;  %v12057_v3 = vpop.eup %9289 }
 0xd43   : > { %v12023_v39 = vpop.permute.xlu2 %5644  ;;  %v4061_v37 = vsel %vm1724_vm6, %v12057_v3, 0.0 }
 0xd44   : > { %13975 = vst [vmem:[#allocation78_spill] sm:$0xff] %v12023_v39 }
 0xd46   : > { %v12049_v5 = vpop.permute.xlu0 %5494 }
 0xd49   : > { %4356 = vrot.lane.b32.xlu1 %v4322_v28, %s9665_s28 }
 0xd4b   : > { %v3681_v21 = vpop.permute.xlu2 %3680 }
 0xd4c   : > { %v3704_v19 = vrot.slane %v3681_v21, 4  ;;  %v5064_v21 = vmul.f32 1.442695, %v5047_v11 }
 0xd4e   : > { %v4221_v60 = vunpack.c.l.b16 %v3704_v19  ;;  %v12061_v15 = vpop.permute.xlu0 %5460  ;;  %v12069_v19 = vpop.f32.mrf.mxu2  ;;  %9291 = vpow2.f32 %v5064_v21 }
 0xd51   : > { %2854 = vrot.lane.b32.xlu1 %v2818_v7, %s9667_s6  ;;  %v12067_v7 = vpop.permute.xlu1 %5462 }
 0xd53   : > { %v3683_v35 = vpop.permute.xlu2 %3682 }
 0xd54   : > { %v3705_v36 = vrot.slane %v3683_v35, 4  ;;  %v5053_v35 = vsub.f32 %v11784_v18, %v11856_v42 }
 0xd56   : > { %v4222_v12 = vunpack.c.l.b16 %v3705_v36  ;;  %v12073_v36 = vpop.permute.xlu0 %5544  ;;  %v5076_v46 = vmul.f32 1.442695, %v5053_v35  ;;  %v12080_v9 = vpop.f32.mrf.mxu2 }
 0xd58   : > { %v4223_v10 = vpack.c.b16 %v4222_v12, %v4221_v60  ;;  %v12076_v60 = vpop.eup %9291  ;;  %9293 = vpow2.f32 %v5076_v46 }
 0xd59   : > { %v12078_v12 = vpop.permute.xlu1 %5466  ;;  %v5097_v18 = vsel %vm1724_vm6, %v12076_v60, 0.0 }
 0xd5a   : > { %4235 = vmatpush.bf16.msrb.mxu0 %v4223_v10  ;;  %v5059_v10 = vsub.f32 %v11797_v56, %v11866_v25 }
 0xd5b   : > { %v12047_v26 = vpop.permute.xlu2 %5474 }
 0xd5c   : > { %v5088_v11 = vmul.f32 1.442695, %v5059_v10 }
 0xd5e   : > { %v12092_v21 = vpop.eup %9293  ;;  %9295 = vpow2.f32 %v5088_v11  ;;  %v12096_v25 = vpop.f32.mrf.mxu2 }
 0xd5f   : > { %v5115_v35 = vsel %vm1724_vm6, %v12092_v21, 0.0 }
 0xd61   : > { %v12094_v56 = vpop.permute.xlu1 %5470 }
 0xd63   : > { %v12055_v47 = vpop.permute.xlu2 %5476 }
 0xd64   : > { %v12101_v49 = vpop.eup %9295 }
 0xd65   : > { %v5133_v10 = vsel %vm1724_vm6, %v12101_v49, 0.0 }
 0xd6b   : > { %v12065_v28 = vpop.permute.xlu2 %5669 }
 0xd6c   : > { %4062 = vadd.xlane.f32.xlu0 %v4061_v37  ;;  %v12089_v37 = vpop.permute.xlu0 %5569 }
 0xd6d   : > { %13977 = vst [vmem:[#allocation77_spill] sm:$0xff] %v12089_v37 }
 0xd73   : > { %v2849_v45 = vpop.permute.xlu2 %2848 }
 0xd74   : > { %2896 = vst.msk [vmem:[#allocation2 + $0x4] sm:$0xf] %vm2894_vm0, %v2849_v45  ;;  %v12103_v46 = vpop.permute.xlu0 %5594 }
 0xd7b   : > { %5098 = vadd.xlane.f32.xlu1 %v5097_v18  ;;  %v3602_v42 = vpop.permute.xlu2 %3601  ;;  %v12107_v18 = vpop.permute.xlu1 %5619 }
 0xd7c   : > { %3649 = vst.msk [vmem:[#allocation2 + $0x4] sm:$0xf] %vm3647_vm2, %v3602_v42  ;;  %v4977_v42 = vpop.f32.mrf.mxu2 }
 0xd80   : > { %2856 = vrot.lane.b32.xlu0 %v2819_v57, %s9667_s6  ;;  %v12109_v57 = vmul.f32 0.17677669, %v4977_v42 }
 0xd83   : > { %5116 = vadd.xlane.f32.xlu1 %v5115_v35  ;;  %v2851_v45 = vpop.permute.xlu2 %2850  ;;  %v5040_v35 = vsel %vm1724_vm6, %v12109_v57, -inf }
 0xd84   : > { %2897 = vst.msk [vmem:[#allocation2 + $0x8] sm:$0xf] %vm2894_vm0, %v2851_v45 }
 0xd8b   : > { %5134 = vadd.xlane.f32.xlu1 %v5133_v10 }
 0xd91   : > { %v4042_v11 = vpop.xlane.xlu0 %4041 }
 0xd92   : > { %9297 = vrcp.f32 %v4042_v11  ;;  %v13980_v11 = vld [vmem:[#allocation74_spill] sm:$0xff] }
 0xd93   : > { %5041 = vmax.xlane.f32.xlu1 %v5040_v35  ;;  %v4045_v45 = vpop.xlane.xlu1 %4044  ;;  %v5052_v24 = vsub.f32 %v13981_v29, %v13980_v11 }
 0xd94   : > { %9299 = vrcp.f32 %v4045_v45 }
 0xd95   : > { %9301 = vpow2.f32 %v5062_v30  ;;  %v5074_v45 = vmul.f32 1.442695, %v5052_v24 }
 0xd97   : > { %9303 = vpow2.f32 %v5074_v45 }
 0xd98   : > { %v9298_v55 = vpop.eup %9297 }
 0xd99   : > { %v4088_v52 = vmul.f32 %v9298_v55, %v11976_v33 }
 0xd9a   : > { %v9300_v62 = vpop.eup %9299 }
 0xd9b   : > { %v4104_v22 = vpack.c.bf16 %v4088_v52, %v4088_v52  ;;  %v4089_v10 = vmul.f32 %v9300_v62, %v11983_v44  ;;  %v12121_v0 = vpop.eup %9301  ;;  %v13982_v52 = vld [vmem:[#allocation73_spill] sm:$0xff] }
 0xd9c   : > { %v5058_v62 = vsub.f32 %v13983_v20, %v13982_v52  ;;  %v5094_v30 = vsel %vm1724_vm6, %v12121_v0, 0.0  ;;  %v12145_v20 = vmul.f32 0.17677669, %v12080_v9  ;;  %v4753_v9 = vrot.slane %v13971_v51, 4 }
 0xd9d   : > { %v4105_v42 = vpack.c.bf16 %v4089_v10, %v4089_v10  ;;  %v4218_v23 = vunpack.c.l.b16 %v4104_v22  ;;  %v12128_v24 = vpop.eup %9303  ;;  %v3606_v10 = vpop.permute.xlu2 %3605 }
 0xd9e   : > { %v5086_v29 = vmul.f32 1.442695, %v5058_v62  ;;  %v5112_v55 = vsel %vm1724_vm6, %v12128_v24, 0.0  ;;  %v5022_v62 = vsel %vm1724_vm6, %v12145_v20, -inf }
 0xd9f   : > { %v4219_v35 = vunpack.c.l.b16 %v4105_v42 }
 0xda0   : > { %9305 = vpow2.f32 %v5086_v29  ;;  %v13984_v29 = vld [vmem:[#allocation65_spill] sm:$0xff] }
 0xda1   : > { %v4220_v41 = vpack.c.b16 %v4219_v35, %v4218_v23  ;;  %9307 = vrcp.f32 %v13984_v29 }
 0xda3   : > { %8602 = vmatmul.msk.bf16.vlgmr.msrb.gmra.mxu0 %vm1724_vm6, %v4220_v41 }
 0xda4   : > { %v2847_v4 = vpop.permute.xlu0 %2846 }
 0xda5   : > { %2895 = vst.msk [vmem:[#allocation2] sm:$0xf] %vm2894_vm0, %v2847_v4 }
 0xda6   : > { %v12134_v44 = vpop.eup %9305 }
 0xda7   : > { %v5130_v42 = vsel %vm1724_vm6, %v12134_v44, 0.0 }
 0xdaa   : > { %5095 = vadd.xlane.f32.xlu0 %v5094_v30  ;;  %v4979_v30 = vpop.f32.mrf.mxu2 }
 0xdab   : > { %v3600_v22 = vpop.permute.xlu1 %3599 }
 0xdac   : > { %v3604_v54 = vpop.permute.xlu0 %3603  ;;  %3648 = vst.msk [vmem:[#allocation2] sm:$0xf] %vm3647_vm2, %v3600_v22 }
 0xdad   : > { %3650 = vst.msk [vmem:[#allocation2 + $0x8] sm:$0xf] %vm3647_vm2, %v3604_v54  ;;  %v4133_v23 = vpop.f32.mrf.mxu0  ;;  %v12150_v54 = vmul.f32 0.17677669, %v4979_v30 }
 0xdae   : > { %v4320_v41 = vpack.c.bf16 %v4133_v23, %v4133_v23  ;;  %v9308_v23 = vpop.eup %9307 }
 0xdb0   : > { %4352 = vrot.lane.b32.xlu2 %v4320_v41, %s9665_s28  ;;  %v5043_v41 = vsel %vm1724_vm6, %v12150_v54, -inf }
 0xdb2   : > { %5113 = vadd.xlane.f32.xlu0 %v5112_v55  ;;  %v13985_v55 = vld [vmem:[#allocation40_spill] sm:$0xff] }
 0xdb3   : > { %v2853_v4 = vpop.permute.xlu1 %2852 }
 0xdb4   : > { %v4359_v33 = vpop.permute.xlu0 %4358  ;;  %2898 = vst.msk [vmem:[#allocation2 + $0xc] sm:$0xf] %vm2894_vm0, %v2853_v4  ;;  %v4094_v4 = vmul.f32 %v9308_v23, %v13985_v55  ;;  %v13987_v23 = vld [vmem:[#allocation38_spill] sm:$0xff] }
 0xdb5   : > { %3651 = vst.msk [vmem:[#allocation2 + $0xc] sm:$0xf] %vm3647_vm2, %v3606_v10  ;;  %v4135_v45 = vpop.f32.mrf.mxu0  ;;  %v970_v55 = vadd.f32 %v13987_v23, %v11677_v31 }
 0xdb6   : > { %4404 = vst.msk [vmem:[#allocation2 + $0xc] sm:$0xf] %vm4400_vm1, %v4359_v33  ;;  %v4321_v52 = vpack.c.bf16 %v4135_v45, %v4135_v45  ;;  %v13986_v33 = vld [vmem:[#allocation9_spill] sm:$0xff]  ;;  %v4904_v45 = vunpack.c.l.b16 %v4753_v9 }
 0xdb7   : > { %v4752_v10 = vrot.slane %v13986_v33, 4 }
 0xdba   : > { %5131 = vadd.xlane.f32.xlu0 %v5130_v42 }
 0xdbb   : > { %v4357_v11 = vpop.permute.xlu1 %4356 }
 0xdbc   : > { %4403 = vst.msk [vmem:[#allocation2 + $0x8] sm:$0xf] %vm4400_vm1, %v4357_v11  ;;  %v4110_v11 = vpack.c.bf16 %v4094_v4, %v4094_v4  ;;  %v12163_v4 = vmul.f32 0.17677669, %v12053_v59  ;;  %v13989_v59 = vld [vmem:[#allocation54_spill] sm:$0xff] }
 0xdbe   : > { %v4296_v30 = vunpack.c.l.b16 %v4110_v11 }
 0xdc3   : > { %v2855_v35 = vpop.permute.xlu1 %2854 }
 0xdc4   : > { %2899 = vst.msk [vmem:[#allocation2 + $0x10] sm:$0xf] %vm2894_vm0, %v2855_v35 }
 0xdce   : > { %4354 = vrot.lane.b32.xlu0 %v4321_v52, %s9665_s28 }
 0xdd9   : > { %5023 = vmax.xlane.f32.xlu2 %v5022_v62  ;;  %v4903_v62 = vunpack.c.l.b16 %v4752_v10  ;;  %v1010_v10 = vpack.c.bf16 %v970_v55, %v970_v55 }
 0xddb   : > { %v5198_v11 = vunpack.c.l.b16 %v1010_v10  ;;  %v8923_v10 = vld [vmem:[#allocation3 + $0x26c] sm:$0xf0] }
 0xddf   : > { %v4063_v22 = vpop.xlane.xlu0 %4062 }
 0xde0   : > { %9309 = vrcp.f32 %v4063_v22  ;;  %v4905_v22 = vpack.c.b16 %v4904_v45, %v4903_v62  ;;  %v985_v62 = vadd.f32 %v13989_v59, %v11677_v31 }
 0xde1   : > { %5044 = vmax.xlane.f32.xlu2 %v5043_v41 }
 0xde2   : > { %v4910_v41 = vsel %vm1491_vm4, %v4905_v22, 0  ;;  %v1022_v22 = vpack.c.bf16 %v985_v62, %v985_v62  ;;  %v8660_v62 = vld [vmem:[#allocation3 + $0x1a8] sm:$0xf] }
 0xde4   : > { %v5282_v55 = vunpack.c.l.b16 %v1022_v22 }
 0xde6   : > { %v9310_v42 = vpop.eup %9309 }
 0xde7   : > { %v4095_v35 = vmul.f32 %v9310_v42, %v12057_v3  ;;  %v13988_v3 = vld [vmem:[#allocation35_spill] sm:$0xff]  ;;  %v5004_v42 = vsel %vm1724_vm6, %v12163_v4, -inf }
 0xde8   : > { %v968_v9 = vadd.f32 %v13988_v3, %v11677_v31 }
 0xde9   : > { %v4111_v52 = vpack.c.bf16 %v4095_v35, %v4095_v35  ;;  %v12171_v35 = vmul.f32 0.17677669, %v12069_v19  ;;  %v13990_v19 = vld [vmem:[#allocation51_spill] sm:$0xff] }
 0xdeb   : > { %v4297_v29 = vunpack.c.l.b16 %v4111_v52 }
 0xded   : > { %v4298_v8 = vpack.c.b16 %v4297_v29, %v4296_v30  ;;  %v12183_v30 = vmul.f32 0.17677669, %v12096_v25  ;;  %v983_v29 = vadd.f32 %v13990_v19, %v11677_v31  ;;  %v8921_v19 = vld [vmem:[#allocation3 + $0x1cc] sm:$0xf0] }
 0xdee   : > { %v5099_v22 = vpop.xlane.xlu1 %5098 }
 0xdef   : > { %8605 = vmatmul.msk.bf16.vlgmr.msrb.gmra.mxu3 %vm1724_vm6, %v4298_v8  ;;  %v1008_v8 = vpack.c.bf16 %v968_v9, %v968_v9  ;;  %v1020_v23 = vpack.c.bf16 %v983_v29, %v983_v29  ;;  %v8668_v9 = vld [vmem:[#allocation3 + $0x248] sm:$0xf]  ;;  %v8661_v29 = vor.u32 %v8921_v19, %v8660_v62  ;;  %9311 = vrcp.f32 %v5099_v22  ;;  %v13994_v22 = vld [vmem:[#allocation59_spill] sm:$0xff] }
 0xdf0   : > { %4919 = vmatpush.bf16.xpose.msrb.mxu3 %v4910_v41  ;;  %v5025_v41 = vsel %vm1724_vm6, %v12183_v30, -inf }
 0xdf1   : > { %v5197_v45 = vunpack.c.l.b16 %v1008_v8  ;;  %v5281_v8 = vunpack.c.l.b16 %v1020_v23 }
 0xdf2   : > { %v2857_v51 = vpop.permute.xlu0 %2856 }
 0xdf3   : > { %2900 = vst.msk [vmem:[#allocation2 + $0x14] sm:$0xf] %vm2894_vm0, %v2857_v51  ;;  %v12173_v52 = vpack.c.b16 %v5198_v11, %v5197_v45  ;;  %v5007_v51 = vsel %vm1724_vm6, %v12171_v35, -inf  ;;  %v12190_v25 = vpack.c.b16 %v5282_v55, %v5281_v8  ;;  %v8664_v11 = vld [vmem:[#allocation3 + $0x1f8] sm:$0xf] }
 0xdf4   : > { %v8922_v45 = vld [vmem:[#allocation3 + $0x21c] sm:$0xf0]  ;;  %v8652_v55 = vld [vmem:[#allocation3 + $0x108] sm:$0xf] }
 0xdf5   : > { %13991 = vst [vmem:[#allocation57_spill] sm:$0xff] %v12190_v25  ;;  %v8665_v59 = vor.u32 %v8922_v45, %v8664_v11  ;;  %v9312_v8 = vpop.eup %9311  ;;  %v8648_v11 = vld [vmem:[#allocation3 + $0xb8] sm:$0xf]  ;;  %v8918_v45 = vld [vmem:[#allocation3 + $0xdc] sm:$0xf0] }
 0xdf6   : > { %v5159_v19 = vmul.f32 %v9312_v8, %v12076_v60 }
 0xdf8   : > { %5005 = vmax.xlane.f32.xlu0 %v5004_v42  ;;  %v8669_v42 = vor.u32 %v8923_v10, %v8668_v9  ;;  %v8919_v9 = vld [vmem:[#allocation3 + $0x12c] sm:$0xf0] }
 0xdf9   : > { %v8653_v10 = vor.u32 %v8919_v9, %v8652_v55  ;;  %v8640_v55 = vld [vmem:[#allocation3 + $0x18] sm:$0xf]  ;;  %v8916_v9 = vld [vmem:[#allocation3 + $0x3c] sm:$0xf0] }
 0xdfa   : > { %4532 = vmatpush.bf16.msra.mxu0 %v8669_v42 }
 0xdfe   : > { %4533 = vmatpush.bf16.msra.mxu0 %v8665_v59  ;;  %v8649_v59 = vor.u32 %v8918_v45, %v8648_v11 }
 0xdff   : > { %8672 = vmatmul.msk.bf16.vlgmr.msra.gmra.mxu3 %vm1491_vm4, %v11949_v53  ;;  %v13993_v53 = vld [vmem:[#allocation60_spill] sm:$0xff] }
 0xe00   : > { %5211 = vmatpush.bf16.msra.mxu3 %v12173_v52  ;;  %5008 = vmax.xlane.f32.xlu0 %v5007_v51  ;;  %v13992_v51 = vld [vmem:[#allocation66_spill] sm:$0xff]  ;;  %v1000_v62 = vadd.f32 %v13993_v53, %v11677_v31  ;;  %v8641_v53 = vor.u32 %v8916_v9, %v8640_v55 }
 0xe02   : > { %4534 = vmatpush.bf16.msra.mxu0 %v8661_v29  ;;  %v8644_v29 = vld [vmem:[#allocation3 + $0x68] sm:$0xf] }
 0xe08   : > { %5026 = vmax.xlane.f32.xlu0 %v5025_v41  ;;  %v8656_v41 = vld [vmem:[#allocation3 + $0x158] sm:$0xf] }
 0xe0a   : > { %v4353_v3 = vpop.permute.xlu2 %4352 }
 0xe0b   : > { %4401 = vst.msk [vmem:[#allocation2] sm:$0xf] %vm4400_vm1, %v4353_v3  ;;  %v8920_v3 = vld [vmem:[#allocation3 + $0x17c] sm:$0xf0] }
 0xe0c   : > { %v8657_v23 = vor.u32 %v8920_v3, %v8656_v41  ;;  %v8917_v41 = vld [vmem:[#allocation3 + $0x8c] sm:$0xf0]  ;;  %v998_v3 = vadd.f32 %v13994_v22, %v11677_v31 }
 0xe0e   : > { %4535 = vmatpush.bf16.msra.mxu0 %v8657_v23  ;;  %v8645_v23 = vor.u32 %v8917_v41, %v8644_v29  ;;  %v1032_v33 = vpack.c.bf16 %v998_v3, %v998_v3 }
 0xe0f   : > { %8675 = vmatmul.msk.bf16.vlgmr.msrb.gmra.mxu3 %vm1491_vm4, %v13992_v51  ;;  %v5117_v51 = vpop.xlane.xlu1 %5116 }
 0xe10   : > { %5295 = vmatpush.bf16.msrb.mxu3 %v12190_v25  ;;  %v1034_v25 = vpack.c.bf16 %v1000_v62, %v1000_v62  ;;  %v5365_v29 = vunpack.c.l.b16 %v1032_v33 }
 0xe12   : > { %4536 = vmatpush.bf16.msra.mxu0 %v8653_v10  ;;  %v5366_v8 = vunpack.c.l.b16 %v1034_v25 }
 0xe14   : > { %v12201_v37 = vpack.c.b16 %v5366_v8, %v5365_v29 }
 0xe16   : > { %4537 = vmatpush.bf16.msra.mxu0 %v8649_v59 }
 0xe17   : > { %v5135_v55 = vpop.xlane.xlu1 %5134 }
 0xe1a   : > { %4538 = vmatpush.bf16.msra.mxu0 %v8645_v23 }
 0xe1d   : > { %v5096_v42 = vpop.xlane.xlu0 %5095 }
 0xe1e   : > { %9313 = vrcp.f32 %v5096_v42  ;;  %v5175_v42 = vpack.c.bf16 %v5159_v19, %v5159_v19  ;;  %4539 = vmatpush.bf16.msra.mxu0 %v8641_v53  ;;  %v5480_v19 = vrot.slane %v12030_v61, 4 }
 0xe20   : > { %v5193_v59 = vunpack.c.l.b16 %v5175_v42  ;;  %v5521_v33 = vunpack.c.l.b16 %v5480_v19 }
 0xe24   : > { %v9314_v10 = vpop.eup %9313 }
 0xe25   : > { %v5158_v11 = vmul.f32 %v9314_v10, %v12121_v0  ;;  %v5114_v45 = vpop.xlane.xlu0 %5113 }
 0xe26   : > { %9315 = vrcp.f32 %v5114_v45 }
 0xe27   : > { %v5174_v60 = vpack.c.bf16 %v5158_v11, %v5158_v11  ;;  %9317 = vrcp.f32 %v5117_v51  ;;  %v5481_v51 = vrot.slane %v12032_v1, 4 }
 0xe29   : > { %v5192_v39 = vunpack.c.l.b16 %v5174_v60  ;;  %v5522_v9 = vunpack.c.l.b16 %v5481_v51  ;;  %v5487_v60 = vrot.slane %v11997_v32, 4 }
 0xe2b   : > { %v5194_v41 = vpack.c.b16 %v5193_v59, %v5192_v39  ;;  %v5523_v42 = vpack.c.b16 %v5522_v9, %v5521_v33  ;;  %v5486_v59 = vrot.slane %v12067_v7, 4  ;;  %v8925_v33 = vld [vmem:[#allocation2 + $0x8] sm:$0xff]  ;;  %v4211_v9 = vpop.f32.mrf.mxu3 }
 0xe2c   : > { %v9316_v22 = vpop.eup %9315 }
 0xe2d   : > { %8678 = vmatmul.msk.bf16.vlgmr.msra.gmra.mxu3 %vm1724_vm6, %v5194_v41  ;;  %v9318_v62 = vpop.eup %9317  ;;  %v5164_v0 = vmul.f32 %v9316_v22, %v12128_v24  ;;  %v5132_v23 = vpop.xlane.xlu0 %5131  ;;  %v5528_v61 = vsel %vm1491_vm4, %v5523_v42, 0  ;;  %v5597_v41 = vunpack.c.l.b16 %v5487_v60 }
 0xe2e   : > { %5379 = vmatpush.bf16.msra.mxu3 %v12201_v37  ;;  %v5165_v25 = vmul.f32 %v9318_v62, %v12092_v21  ;;  %9319 = vrcp.f32 %v5132_v23  ;;  %v5596_v62 = vunpack.c.l.b16 %v5486_v59 }
 0xe2f   : > { %v5180_v3 = vpack.c.bf16 %v5164_v0, %v5164_v0  ;;  %9321 = vrcp.f32 %v5135_v55 }
 0xe30   : > { %v5181_v39 = vpack.c.bf16 %v5165_v25, %v5165_v25  ;;  %v5598_v25 = vpack.c.b16 %v5597_v41, %v5596_v62 }
 0xe31   : > { %v5276_v10 = vunpack.c.l.b16 %v5180_v3 }
 0xe32   : > { %v5277_v11 = vunpack.c.l.b16 %v5181_v39  ;;  %v5603_v32 = vsel %vm1491_vm4, %v5598_v25, 0 }
 0xe34   : > { %v5278_v45 = vpack.c.b16 %v5277_v11, %v5276_v10  ;;  %v9320_v53 = vpop.eup %9319  ;;  %v12223_v10 = vpop.f32.mrf.mxu3 }
 0xe35   : > { %v9322_v21 = vpop.eup %9321  ;;  %v5170_v1 = vmul.f32 %v9320_v53, %v12134_v44  ;;  %v5492_v44 = vrot.slane %v12047_v26, 4 }
 0xe36   : > { %v5171_v8 = vmul.f32 %v9322_v21, %v12101_v49  ;;  %v5493_v49 = vrot.slane %v12055_v47, 4 }
 0xe37   : > { %v5186_v29 = vpack.c.bf16 %v5170_v1, %v5170_v1  ;;  %v5671_v23 = vunpack.c.l.b16 %v5492_v44  ;;  %v12265_v44 = vpop.f32.mrf.mxu0 }
 0xe38   : > { %v5187_v22 = vpack.c.bf16 %v5171_v8, %v5171_v8  ;;  %v5672_v7 = vunpack.c.l.b16 %v5493_v49 }
 0xe39   : > { %v5360_v0 = vunpack.c.l.b16 %v5186_v29 }
 0xe3a   : > { %v5361_v51 = vunpack.c.l.b16 %v5187_v22  ;;  %v5673_v39 = vpack.c.b16 %v5672_v7, %v5671_v23  ;;  %v13996_v7 = vld [vmem:[#allocation33_spill] sm:$0xff] }
 0xe3b   : > { %v2820_v23 = vpack.c.bf16 %v13996_v7, %v13996_v7 }
 0xe3c   : > { %v5362_v3 = vpack.c.b16 %v5361_v51, %v5360_v0  ;;  %v5678_v55 = vsel %vm1491_vm4, %v5673_v39, 0  ;;  %v13995_v51 = vld [vmem:[#allocation23_spill] sm:$0xff] }
 0xe3d   : > { %8681 = vmatmul.msk.bf16.vlgmr.msrb.gmra.mxu3 %vm1724_vm6, %v5278_v45 }
 0xe3e   : > { %5537 = vmatpush.bf16.xpose.msrb.mxu3 %v5528_v61 }
 0xe40   : > { %v4355_v24 = vpop.permute.xlu0 %4354 }
 0xe41   : > { %4402 = vst.msk [vmem:[#allocation2 + $0x4] sm:$0xf] %vm4400_vm1, %v4355_v24 }
 0xe48   : > { %v8924_v19 = vld [vmem:[#allocation2] sm:$0xff] }
 0xe49   : > { %4540 = vmatmul.bf16.vlgmr.msra.gmra.mxu0 %v8924_v19 }
 0xe4d   : > { %8684 = vmatmul.msk.bf16.vlgmr.msra.gmra.mxu3 %vm1724_vm6, %v5362_v3  ;;  %v3572_v3 = vpack.c.bf16 %v13995_v51, %v13995_v51 }
 0xe4e   : > { %5612 = vmatpush.bf16.xpose.msra.mxu3 %v5603_v32 }
 0xe59   : > { %4545 = vmatmul.bf16.gmra.mxu0 %v8925_v33 }
 0xe5d   : > { %8687 = vmatmul.msk.bf16.vlgmr.msrb.gmra.mxu3 %vm1491_vm4, %v12051_v63 }
 0xe5e   : > { %5687 = vmatpush.bf16.xpose.msrb.mxu3 %v5678_v55  ;;  %v12271_v55 = vpop.f32.mrf.mxu0 }
 0xe6b   : > { %v12229_v26 = vpop.xlane.xlu0 %5005 }
 0xe6d   : > { %8690 = vmatmul.msk.bf16.vlgmr.msra.gmra.mxu3 %vm1491_vm4, %v12103_v46 }
 0xe72   : > { %v12227_v47 = vpop.f32.mrf.mxu3 }
 0xe73   : > { %v5009_v11 = vpop.xlane.xlu0 %5008 }
 0xe74   : > { %v5049_v53 = vsub.f32 %v12171_v35, %v5009_v11  ;;  %v13997_v11 = vld [vmem:[#allocation24_spill] sm:$0xff] }
 0xe76   : > { %v5068_v46 = vmul.f32 1.442695, %v5049_v53 }
 0xe78   : > { %9323 = vpow2.f32 %v5068_v46  ;;  %v4326_v46 = vpack.c.bf16 %v4211_v9, %v4211_v9 }
 0xe7a   : > { %v12231_v42 = vpop.f32.mrf.mxu3 }
 0xe7b   : > { %v5027_v21 = vpop.xlane.xlu0 %5026 }
 0xe7c   : > { %v5055_v60 = vsub.f32 %v12183_v30, %v5027_v21 }
 0xe7d   : > { %8693 = vmatmul.msk.bf16.vlgmr.msrb.gmra.mxu3 %vm1491_vm4, %v12065_v28 }
 0xe7e   : > { %v5080_v8 = vmul.f32 1.442695, %v5055_v60  ;;  %v12245_v59 = vpop.eup %9323 }
 0xe7f   : > { %v5103_v41 = vsel %vm1724_vm6, %v12245_v59, 0.0 }
 0xe80   : > { %9325 = vpow2.f32 %v5080_v8 }
 0xe82   : > { %v4837_v63 = vpop.f32.mrf.mxu3 }
 0xe83   : > { %v12235_v45 = vmul.f32 0.17677669, %v4837_v63  ;;  %v3574_v63 = vpack.c.bf16 %v13997_v11, %v13997_v11 }
 0xe85   : > { %v5010_v61 = vsel %vm1724_vm6, %v12235_v45, -inf }
 0xe86   : > { %5011 = vmax.xlane.f32.xlu0 %v5010_v61  ;;  %v12253_v30 = vpop.eup %9325 }
 0xe87   : > { %v5121_v25 = vsel %vm1724_vm6, %v12253_v30, 0.0 }
 0xe8a   : > { %v4839_v1 = vpop.f32.mrf.mxu3 }
 0xe8b   : > { %v12240_v24 = vmul.f32 0.17677669, %v4839_v1  ;;  %v12284_v1 = vld [vmem:[%s13656_s3 + $0x6] ss:$0 sm:$0xff] }
 0xe8d   : > { %v5013_v28 = vsel %vm1724_vm6, %v12240_v24, -inf }
 0xe8e   : > { %5014 = vmax.xlane.f32.xlu0 %v5013_v28  ;;  %v13998_v28 = vld [vmem:[#allocation79_spill] sm:$0xff] }
 0xe8f   : > { %v2824_v8 = vpack.c.bf16 %v13998_v28, %v13998_v28  ;;  %v14001_v28 = vld [vmem:[#allocation64_spill] sm:$0xff] }
 0xe92   : > { %v4921_v35 = vpop.f32.mrf.mxu3 }
 0xe93   : > { %v12247_v29 = vmul.f32 0.17677669, %v4921_v35 }
 0xe95   : > { %v5028_v22 = vsel %vm1724_vm6, %v12247_v29, -inf }
 0xe96   : > { %5104 = vadd.xlane.f32.xlu0 %v5103_v41  ;;  %5029 = vmax.xlane.f32.xlu1 %v5028_v22 }
 0xe9a   : > { %v4923_v62 = vpop.f32.mrf.mxu3 }
 0xe9b   : > { %v12255_v0 = vmul.f32 0.17677669, %v4923_v62 }
 0xe9d   : > { %v5031_v19 = vsel %vm1724_vm6, %v12255_v0, -inf }
 0xe9e   : > { %5032 = vmax.xlane.f32.xlu2 %v5031_v19  ;;  %5122 = vadd.xlane.f32.xlu0 %v5121_v25 }
 0xeb0   : > { %v5213_v32 = vpop.f32.mrf.mxu3 }
 0xeb1   : > { %v5414_v49 = vpack.c.bf16 %v5213_v32, %v5213_v32  ;;  %v14000_v32 = vld [vmem:[#allocation39_spill] sm:$0xff] }
 0xeb2   : > { %3609 = vrot.lane.b32.xlu0 %v3572_v3, %s9666_s5 }
 0xeb3   : > { %5430 = vst.msk [vmem:[#allocation2] sm:$0xf] %vm2141_vm10, %v5414_v49  ;;  %v3577_v49 = vpack.c.bf16 %v14000_v32, %v14000_v32 }
 0xeb8   : > { %v5215_v33 = vpop.f32.mrf.mxu3 }
 0xeb9   : > { %v5415_v39 = vpack.c.bf16 %v5215_v33, %v5215_v33  ;;  %v5048_v33 = vsub.f32 %v12163_v4, %v12229_v26 }
 0xeba   : > { %2858 = vrot.lane.b32.xlu0 %v2820_v23, %s9667_s6 }
 0xebb   : > { %5431 = vst.msk [vmem:[#allocation2 + $0x4] sm:$0xf] %vm2141_vm10, %v5415_v39 }
 0xec0   : > { %v12275_v53 = vpop.f32.mrf.mxu3 }
 0xec2   : > { %3613 = vrot.lane.b32.xlu0 %v3574_v63, %s9666_s5  ;;  %v5024_v63 = vpop.xlane.xlu2 %5023 }
 0xec3   : > { %v5054_v32 = vsub.f32 %v12145_v20, %v5024_v63 }
 0xec6   : > { %v4541_v61 = vpop.f32.mrf.mxu0 }
 0xec7   : > { %v4542_v35 = vadd.f32 %v12284_v1, %v4541_v61  ;;  %v5066_v61 = vmul.f32 1.442695, %v5048_v33 }
 0xec8   : > { %v12278_v21 = vpop.f32.mrf.mxu3 }
 0xec9   : > { %9327 = vpow2.f32 %v5066_v61 }
 0xeca   : > { %4364 = vrot.lane.b32.xlu0 %v4326_v46, %s9665_s28 }
 0xece   : > { %v4543_v60 = vpop.f32.mrf.mxu0 }
 0xecf   : > { %v4544_v41 = vadd.f32 %v12284_v1, %v4543_v60  ;;  %v12310_v20 = vpop.eup %9327 }
 0xed0   : > { %v12290_v22 = vpop.f32.mrf.mxu3 }
 0xed1   : > { %13999 = vst [vmem:[#allocation68_spill] sm:$0xff] %v12290_v22  ;;  %v4581_v9 = vmax.f32 %v4542_v35, %v4544_v41  ;;  %v4637_v62 = vmin.f32 %v4542_v35, %v4544_v41 }
 0xed2   : > { %2866 = vrot.lane.b32.xlu0 %v2824_v8, %s9667_s6  ;;  %v4330_v8 = vpack.c.bf16 %v14001_v28, %v14001_v28 }
 0xed3   : > { %v4638_v19 = vrot.slane %v4637_v62, 4  ;;  %v4582_v25 = vrot.slane %v4581_v9, 4 }
 0xed5   : > { %v4639_v51 = vmin.f32 %v4637_v62, %v4638_v19  ;;  %v4583_v39 = vmax.f32 %v4581_v9, %v4582_v25 }
 0xed6   : > { %v4546_v3 = vpop.f32.mrf.mxu0 }
 0xed7   : > { %v4640_v7 = vrot.slane %v4639_v51, 2  ;;  %v4584_v46 = vrot.slane %v4583_v39, 2  ;;  %v4547_v41 = vadd.f32 %v12284_v1, %v4546_v3  ;;  %v5078_v3 = vmul.f32 1.442695, %v5054_v32 }
 0xed8   : > { %v12295_v23 = vpop.f32.mrf.mxu3 }
 0xed9   : > { %v4641_v11 = vmin.f32 %v4639_v51, %v4640_v7  ;;  %v4585_v26 = vmax.f32 %v4583_v39, %v4584_v46  ;;  %9329 = vpow2.f32 %v5078_v3 }
 0xeda   : > { %3619 = vrot.lane.b32.xlu0 %v3577_v49, %s9666_s5 }
 0xedb   : > { %v4642_v35 = vrot.slane %v4641_v11, 1 }
 0xedd   : > { %v4643_v49 = vmin.f32 %v4641_v11, %v4642_v35  ;;  %v14002_v11 = vld [vmem:[#allocation48_spill] sm:$0xff]  ;;  %v5100_v35 = vsel %vm1724_vm6, %v12310_v20, 0.0 }
 0xede   : > { %v4548_v60 = vpop.f32.mrf.mxu0 }
 0xedf   : > { %v4549_v62 = vadd.f32 %v12284_v1, %v4548_v60  ;;  %v4586_v60 = vrot.slane %v4585_v26, 1  ;;  %v4693_v63 = vsub.f32 0.0, %v4643_v49 }
 0xee0   : > { %v5539_v19 = vpop.f32.mrf.mxu3 }
 0xee1   : > { %v12305_v4 = vmul.f32 0.17677669, %v5539_v19  ;;  %v4588_v9 = vmax.f32 %v4547_v41, %v4549_v62  ;;  %v4644_v25 = vmin.f32 %v4547_v41, %v4549_v62 }
 0xee2   : > { %4372 = vrot.lane.b32.xlu0 %v4330_v8, %s9665_s28  ;;  %v4587_v8 = vmax.f32 %v4585_v26, %v4586_v60 }
 0xee3   : > { %v5716_v51 = vsel %vm1724_vm6, %v12305_v4, -inf  ;;  %v4589_v7 = vrot.slane %v4588_v9, 4  ;;  %v4645_v33 = vrot.slane %v4644_v25, 4 }
 0xee4   : > { %5717 = vmax.xlane.f32.xlu2 %v5716_v51  ;;  %vm4701_vm15 = vcmp.ge.f32.partialorder %v4587_v8, %v4693_v63 }
 0xee5   : > { %v4590_v28 = vmax.f32 %v4588_v9, %v4589_v7  ;;  %v4646_v22 = vmin.f32 %v4644_v25, %v4645_v33  ;;  %v4709_v7 = vsel %vm4701_vm15, %v4587_v8, %v4643_v49  ;;  %v12320_v33 = vpop.eup %9329  ;;  %v5042_v8 = vpop.xlane.xlu1 %5041 }
 0xee6   : > { %v4717_v60 = vpack.c.bf16 %v4709_v7, %v4709_v7 }
 0xee7   : > { %v4591_v61 = vrot.slane %v4590_v28, 2  ;;  %v4647_v39 = vrot.slane %v4646_v22, 2 }
 0xee8   : > { %v5541_v46 = vpop.f32.mrf.mxu3  ;;  %v8143_v63 = vunpack.c.l.b16 %v4717_v60 }
 0xee9   : > { %v12312_v41 = vmul.f32 0.17677669, %v5541_v46  ;;  %v4592_v62 = vmax.f32 %v4590_v28, %v4591_v61  ;;  %v4648_v19 = vmin.f32 %v4646_v22, %v4647_v39  ;;  %v5118_v61 = vsel %vm1724_vm6, %v12320_v33, 0.0 }
 0xeea   : > { %5932 = vrot.lane.b32.xlu0 %v14002_v11, %s9665_s28  ;;  %v14011_v11 = vld [vmem:[#allocation49_spill] sm:$0xff] }
 0xeeb   : > { %v5719_v32 = vsel %vm1724_vm6, %v12312_v41, -inf  ;;  %v4593_v9 = vrot.slane %v4592_v62, 1  ;;  %v4649_v25 = vrot.slane %v4648_v19, 1 }
 0xeec   : > { %5101 = vadd.xlane.f32.xlu2 %v5100_v35  ;;  %5720 = vmax.xlane.f32.xlu1 %v5719_v32  ;;  %v5060_v32 = vsub.f32 %v12109_v57, %v5042_v8 }
 0xeed   : > { %v4650_v51 = vmin.f32 %v4648_v19, %v4649_v25  ;;  %v4594_v26 = vmax.f32 %v4592_v62, %v4593_v9 }
 0xeee   : > { %v5090_v25 = vmul.f32 1.442695, %v5060_v32 }
 0xeef   : > { %v4694_v22 = vsub.f32 0.0, %v4650_v51 }
 0xef0   : > { %v12322_v3 = vpop.f32.mrf.mxu3 }
 0xef1   : > { %vm4702_vm13 = vcmp.ge.f32.partialorder %v4594_v26, %v4694_v22 }
 0xef2   : > { %v4710_v28 = vsel %vm4702_vm13, %v4594_v26, %v4650_v51  ;;  %v5045_v51 = vpop.xlane.xlu2 %5044  ;;  %vm8068_vm13 = vcmask 1046534  }
 0xef3   : > { %v4718_v39 = vpack.c.bf16 %v4710_v28, %v4710_v28  ;;  %v5061_v28 = vsub.f32 %v12150_v54, %v5045_v51 }
 0xef4   : > { %5119 = vadd.xlane.f32.xlu2 %v5118_v61 }
 0xef5   : > { %v8144_v46 = vunpack.c.l.b16 %v4718_v39  ;;  %v5092_v57 = vmul.f32 1.442695, %v5061_v28 }
 0xef7   : > { %v12327_v19 = vsel %vm8058_vm8, %v8144_v46, %v8143_v63 }
 0xef8   : > { %v12329_v49 = vpop.f32.mrf.mxu3 }
 0xef9   : > { %v5012_v62 = vpop.xlane.xlu0 %5011 }
 0xefa   : > { %v5050_v35 = vsub.f32 %v12235_v45, %v5012_v62 }
 0xefc   : > { %v5070_v9 = vmul.f32 1.442695, %v5050_v35 }
 0xefe   : > { %9331 = vpow2.f32 %v5070_v9 }
 0xeff   : > { %9333 = vpow2.f32 %v5090_v25 }
 0xf00   : > { %v12333_v26 = vpop.f32.mrf.mxu3 }
 0xf01   : > { %v5015_v7 = vpop.xlane.xlu0 %5014 }
 0xf02   : > { %v5051_v22 = vsub.f32 %v12240_v24, %v5015_v7 }
 0xf04   : > { %v12336_v60 = vpop.eup %9331  ;;  %v5072_v61 = vmul.f32 1.442695, %v5051_v22 }
 0xf05   : > { %v5106_v45 = vsel %vm1724_vm6, %v12336_v60, 0.0  ;;  %v12341_v63 = vpop.eup %9333 }
 0xf06   : > { %9335 = vpow2.f32 %v5072_v61  ;;  %5107 = vadd.xlane.f32.xlu1 %v5106_v45  ;;  %v5136_v54 = vsel %vm1724_vm6, %v12341_v63, 0.0 }
 0xf07   : > { %9337 = vpow2.f32 %v5092_v57 }
 0xf08   : > { %v5691_v24 = vpop.f32.mrf.mxu3 }
 0xf09   : > { %v5030_v39 = vpop.xlane.xlu1 %5029  ;;  %v12350_v32 = vmul.f32 0.17677669, %v5691_v24  ;;  %v14003_v24 = vld [vmem:[#allocation18_spill] sm:$0xff] }
 0xf0a   : > { %v5056_v46 = vsub.f32 %v12247_v29, %v5030_v39  ;;  %v5105_v29 = vpop.xlane.xlu0 %5104 }
 0xf0b   : > { %v5755_v7 = vsel %vm1724_vm6, %v12350_v32, -inf }
 0xf0c   : > { %v12344_v8 = vpop.eup %9335  ;;  %v5082_v62 = vmul.f32 1.442695, %v5056_v46 }
 0xf0d   : > { %v5109_v35 = vsel %vm1724_vm6, %v12344_v8, 0.0  ;;  %v12352_v25 = vpop.eup %9337 }
 0xf0e   : > { %9339 = vpow2.f32 %v5082_v62  ;;  %5137 = vadd.xlane.f32.xlu1 %v5136_v54  ;;  %5110 = vadd.xlane.f32.xlu2 %v5109_v35  ;;  %v5139_v45 = vsel %vm1724_vm6, %v12352_v25, 0.0  ;;  %v2827_v62 = vpack.c.bf16 %v14003_v24, %v14003_v24  ;;  %v4324_v35 = vpack.c.bf16 %v12011_v34, %v12011_v34 }
 0xf0f   : > { %v4325_v34 = vpack.c.bf16 %v12025_v58, %v12025_v58  ;;  %v12400_v58 = vmul.f32 0.17677669, %v12322_v3  ;;  %v14008_v3 = vld [vmem:[#allocation62_spill] sm:$0xff] }
 0xf11   : > { %v5033_v9 = vpop.xlane.xlu2 %5032 }
 0xf12   : > { %v5057_v51 = vsub.f32 %v12255_v0, %v5033_v9  ;;  %v5123_v39 = vpop.xlane.xlu0 %5122  ;;  %v14004_v9 = vld [vmem:[#allocation43_spill] sm:$0xff] }
 0xf14   : > { %v12357_v22 = vpop.eup %9339  ;;  %v5084_v28 = vmul.f32 1.442695, %v5057_v51  ;;  %5756 = vmax.xlane.f32.xlu0 %v5755_v7  ;;  %v3580_v51 = vpack.c.bf16 %v14004_v9, %v14004_v9  ;;  %v14005_v7 = vld [vmem:[#allocation20_spill] sm:$0xff]  ;;  %v5734_v9 = vsel %vm1724_vm6, %v12400_v58, -inf }
 0xf15   : > { %v5124_v61 = vsel %vm1724_vm6, %v12357_v22, 0.0 }
 0xf16   : > { %9341 = vpow2.f32 %v5084_v28  ;;  %5125 = vadd.xlane.f32.xlu1 %v5124_v61  ;;  %5140 = vadd.xlane.f32.xlu2 %v5139_v45  ;;  %v3571_v28 = vpack.c.bf16 %v14005_v7, %v14005_v7  ;;  %v4333_v45 = vpack.c.bf16 %v12045_v43, %v12045_v43 }
 0xf17   : > { %9343 = vrcp.f32 %v5105_v29  ;;  %v14010_v29 = vld [vmem:[#allocation37_spill] sm:$0xff] }
 0xf1c   : > { %v12363_v57 = vpop.eup %9341 }
 0xf1d   : > { %v5127_v0 = vsel %vm1724_vm6, %v12363_v57, 0.0  ;;  %v9344_v7 = vpop.eup %9343 }
 0xf1e   : > { %5128 = vadd.xlane.f32.xlu2 %v5127_v0 }
 0xf24   : > { %v3610_v46 = vpop.permute.xlu0 %3609 }
 0xf25   : > { %3653 = vst.msk [vmem:[#allocation2 + $0x14] sm:$0xf] %vm3647_vm2, %v3610_v46  ;;  %v14006_v46 = vld [vmem:[#allocation34_spill] sm:$0xff] }
 0xf28   : > { %2872 = vrot.lane.b32.xlu0 %v2827_v62, %s9667_s6  ;;  %v14007_v62 = vld [vmem:[#allocation22_spill] sm:$0xff] }
 0xf2c   : > { %v2859_v54 = vpop.permute.xlu0 %2858 }
 0xf2d   : > { %2901 = vst.msk [vmem:[#allocation2 + $0x18] sm:$0xf] %vm2894_vm0, %v2859_v54 }
 0xf2f   : > { %4360 = vrot.lane.b32.xlu1 %v4324_v35, %s9665_s28 }
 0xf30   : > { %3625 = vrot.lane.b32.xlu0 %v3580_v51, %s9666_s5 }
 0xf34   : > { %v12380_v61 = vpop.permute.xlu0 %3613 }
 0xf36   : > { %3607 = vrot.lane.b32.xlu2 %v3571_v28, %s9666_s5  ;;  %v1005_v28 = vadd.f32 %v14008_v3, %v11677_v31 }
 0xf38   : > { %4378 = vrot.lane.b32.xlu0 %v4333_v45, %s9665_s28  ;;  %v12414_v45 = vmul.f32 0.17677669, %v12329_v49 }
 0xf3c   : > { %v12388_v0 = vpop.permute.xlu0 %4364 }
 0xf3e   : > { %4362 = vrot.lane.b32.xlu2 %v4325_v34, %s9665_s28  ;;  %v5161_v34 = vmul.f32 %v9344_v7, %v12245_v59 }
 0xf40   : > { %6007 = vrot.lane.b32.xlu0 %v14006_v46, %s9665_s28 }
 0xf44   : > { %v2867_v24 = vpop.permute.xlu0 %2866 }
 0xf45   : > { %2905 = vst.msk [vmem:[#allocation2 + $0x28] sm:$0xf] %vm2894_vm0, %v2867_v24  ;;  %v14009_v24 = vld [vmem:[#allocation61_spill] sm:$0xff] }
 0xf48   : > { %6202 = vrot.lane.b32.xlu0 %v13952_v13, %s9666_s5  ;;  %v5177_v13 = vpack.c.bf16 %v5161_v34, %v5161_v34  ;;  %v3582_v34 = vpack.c.bf16 %v14011_v11, %v14011_v11 }
 0xf4c   : > { %v3620_v43 = vpop.permute.xlu0 %3619 }
 0xf4d   : > { %3658 = vst.msk [vmem:[#allocation2 + $0x28] sm:$0xf] %vm3647_vm2, %v3620_v43  ;;  %v1003_v43 = vadd.f32 %v14009_v24, %v11677_v31  ;;  %v5221_v31 = vunpack.c.l.b16 %v5177_v13 }
 0xf4f   : > { %v1036_v49 = vpack.c.bf16 %v1003_v43, %v1003_v43  ;;  %v14012_v43 = vld [vmem:[#allocation15_spill] sm:$0xff] }
 0xf50   : > { %6204 = vrot.lane.b32.xlu0 %v14007_v62, %s9666_s5  ;;  %v2828_v62 = vpack.c.bf16 %v14010_v29, %v14010_v29 }
 0xf51   : > { %v5393_v24 = vunpack.c.l.b16 %v1036_v49  ;;  %v4327_v49 = vpack.c.bf16 %v12223_v10, %v12223_v10 }
 0xf54   : > { %v4373_v54 = vpop.permute.xlu0 %4372 }
 0xf55   : > { %4411 = vst.msk [vmem:[#allocation2 + $0x28] sm:$0xf] %vm4400_vm1, %v4373_v54 }
 0xf57   : > { %v12403_v35 = vpop.xlane.xlu2 %5717 }
 0xf58   : > { %6198 = vrot.lane.b32.xlu0 %v13910_v2, %s9666_s5 }
 0xf59   : > { %5735 = vmax.xlane.f32.xlu1 %v5734_v9  ;;  %v1038_v9 = vpack.c.bf16 %v1005_v28, %v1005_v28 }
 0xf5b   : > { %v5394_v7 = vunpack.c.l.b16 %v1038_v9  ;;  %v4334_v9 = vpack.c.bf16 %v12227_v47, %v12227_v47  ;;  %v4335_v47 = vpack.c.bf16 %v12231_v42, %v12231_v42  ;;  %v5478_v42 = vrot.slane %v12020_v17, 4 }
 0xf5d   : > { %v12425_v46 = vpack.c.b16 %v5394_v7, %v5393_v24  ;;  %v14014_v24 = vld [vmem:[#allocation29_spill] sm:$0xff] }
 0xf5f   : > { %v5102_v51 = vpop.xlane.xlu2 %5101 }
 0xf60   : > { %9345 = vrcp.f32 %v5102_v51  ;;  %6200 = vrot.lane.b32.xlu0 %v13907_v27, %s9666_s5  ;;  %v5737_v51 = vsel %vm1724_vm6, %v12414_v45, -inf }
 0xf66   : > { %v9346_v54 = vpop.eup %9345 }
 0xf67   : > { %v5160_v27 = vmul.f32 %v9346_v54, %v12310_v20  ;;  %5738 = vmax.xlane.f32.xlu2 %v5737_v51  ;;  %v5120_v3 = vpop.xlane.xlu2 %5119  ;;  %v2821_v54 = vpack.c.bf16 %v14012_v43, %v14012_v43 }
 0xf68   : > { %9347 = vrcp.f32 %v5120_v3  ;;  %2874 = vrot.lane.b32.xlu0 %v2828_v62, %s9667_s6 }
 0xf69   : > { %v5176_v59 = vpack.c.bf16 %v5160_v27, %v5160_v27  ;;  %9349 = vrcp.f32 %v5123_v39  ;;  %v12434_v27 = vpop.xlane.xlu1 %5720  ;;  %v5482_v39 = vrot.slane %v12039_v14, 4 }
 0xf6b   : > { %v5220_v28 = vunpack.c.l.b16 %v5176_v59  ;;  %v5546_v51 = vunpack.c.l.b16 %v5482_v39  ;;  %v5479_v39 = vrot.slane %v11979_v40, 4 }
 0xf6d   : > { %v5222_v2 = vpack.c.b16 %v5221_v31, %v5220_v28  ;;  %v14013_v31 = vld [vmem:[#allocation21_spill] sm:$0xff] }
 0xf6e   : > { %v9348_v29 = vpop.eup %9347 }
 0xf6f   : > { %8679 = vmatmul.msk.bf16.vlgmr.msrb.gmra.mxu1 %vm1724_vm6, %v5222_v2  ;;  %v9350_v20 = vpop.eup %9349  ;;  %v5166_v13 = vmul.f32 %v9348_v29, %v12320_v33  ;;  %v5483_v2 = vrot.slane %v12043_v6, 4  ;;  %v3573_v6 = vpack.c.bf16 %v14013_v31, %v14013_v31  ;;  %v2822_v29 = vpack.c.bf16 %v14014_v24, %v14014_v24 }
 0xf70   : > { %5407 = vmatpush.bf16.msrb.mxu1 %v12425_v46  ;;  %3629 = vrot.lane.b32.xlu0 %v3582_v34, %s9666_s5  ;;  %v5167_v11 = vmul.f32 %v9350_v20, %v12253_v30  ;;  %v5489_v31 = vrot.slane %v12003_v16, 4  ;;  %v5488_v24 = vrot.slane %v12078_v12, 4 }
 0xf71   : > { %v5182_v62 = vpack.c.bf16 %v5166_v13, %v5166_v13  ;;  %v5547_v33 = vunpack.c.l.b16 %v5483_v2 }
 0xf72   : > { %2860 = vrot.lane.b32.xlu1 %v2821_v54, %s9667_s6  ;;  %v5183_v3 = vpack.c.bf16 %v5167_v11, %v5167_v11  ;;  %v4329_v54 = vpack.c.bf16 %v12271_v55, %v12271_v55  ;;  %v14015_v11 = vld [vmem:[#allocation45_spill] sm:$0xff] }
 0xf73   : > { %v5304_v59 = vunpack.c.l.b16 %v5182_v62  ;;  %v5548_v14 = vpack.c.b16 %v5547_v33, %v5546_v51  ;;  %v2823_v2 = vpack.c.bf16 %v14015_v11, %v14015_v11  ;;  %v14016_v62 = vld [vmem:[#allocation16_spill] sm:$0xff]  ;;  %v5496_v51 = vunpack.c.l.b16 %v5478_v42 }
 0xf74   : > { %v5305_v30 = vunpack.c.l.b16 %v5183_v3 }
 0xf75   : > { %v5553_v10 = vsel %vm1491_vm4, %v5548_v14, 0 }
 0xf76   : > { %v5306_v28 = vpack.c.b16 %v5305_v30, %v5304_v59 }
 0xf78   : > { %4380 = vrot.lane.b32.xlu0 %v4334_v9, %s9665_s28 }
 0xf79   : > { %v5108_v7 = vpop.xlane.xlu1 %5107 }
 0xf7a   : > { %4366 = vrot.lane.b32.xlu1 %v4327_v49, %s9665_s28  ;;  %9351 = vrcp.f32 %v5108_v7  ;;  %v12468_v49 = vpop.permute.xlu0 %5932  ;;  %v14017_v7 = vld [vmem:[#allocation81_spill] sm:$0xff] }
 0xf7b   : > { %v3578_v14 = vpack.c.bf16 %v14017_v7, %v14017_v7 }
 0xf7f   : > { %3611 = vrot.lane.b32.xlu2 %v3573_v6, %s9666_s5  ;;  %8682 = vmatmul.msk.bf16.vlgmr.msra.gmra.mxu1 %vm1724_vm6, %v5306_v28 }
 0xf80   : > { %5562 = vmatpush.bf16.xpose.msra.mxu1 %v5553_v10  ;;  %4382 = vrot.lane.b32.xlu0 %v4335_v47, %s9665_s28  ;;  %v9352_v43 = vpop.eup %9351 }
 0xf81   : > { %v5138_v34 = vpop.xlane.xlu1 %5137  ;;  %v5111_v20 = vpop.xlane.xlu2 %5110  ;;  %v5162_v13 = vmul.f32 %v9352_v43, %v12336_v60  ;;  %v5497_v60 = vunpack.c.l.b16 %v5479_v39  ;;  %v5621_v39 = vunpack.c.l.b16 %v5488_v24  ;;  %v5760_v24 = vsub.f32 %v12305_v4, %v12403_v35  ;;  %v14021_v4 = vld [vmem:[#allocation80_spill] sm:$0xff] }
 0xf82   : > { %2862 = vrot.lane.b32.xlu1 %v2822_v29, %s9667_s6  ;;  %9353 = vrcp.f32 %v5111_v20  ;;  %v2825_v35 = vpack.c.bf16 %v14021_v4, %v14021_v4 }
 0xf83   : > { %9355 = vrcp.f32 %v5138_v34  ;;  %v5178_v55 = vpack.c.bf16 %v5162_v13, %v5162_v13  ;;  %v5498_v30 = vpack.c.b16 %v5497_v60, %v5496_v51 }
 0xf85   : > { %v5248_v6 = vunpack.c.l.b16 %v5178_v55  ;;  %v5503_v20 = vsel %vm1491_vm4, %v5498_v30, 0 }
 0xf87   : > { %4370 = vrot.lane.b32.xlu2 %v4329_v54, %s9665_s28  ;;  %v5622_v54 = vunpack.c.l.b16 %v5489_v31  ;;  %v12481_v16 = vpop.xlane.xlu0 %5756  ;;  %v14020_v31 = vld [vmem:[#allocation28_spill] sm:$0xff] }
 0xf88   : > { %6214 = vrot.lane.b32.xlu0 %v14016_v62, %s9666_s5  ;;  %v9354_v9 = vpop.eup %9353 }
 0xf89   : > { %v5126_v3 = vpop.xlane.xlu1 %5125  ;;  %v5141_v17 = vpop.xlane.xlu2 %5140  ;;  %v5163_v33 = vmul.f32 %v9354_v9, %v12344_v8  ;;  %v14018_v8 = vld [vmem:[#allocation70_spill] sm:$0xff]  ;;  %v5485_v9 = vrot.slane %v12061_v15, 4 }
 0xf8a   : > { %2864 = vrot.lane.b32.xlu1 %v2823_v2, %s9667_s6  ;;  %v9356_v40 = vpop.eup %9355  ;;  %9357 = vrcp.f32 %v5141_v17  ;;  %v3575_v10 = vpack.c.bf16 %v14018_v8, %v14018_v8  ;;  %v5623_v2 = vpack.c.b16 %v5622_v54, %v5621_v39  ;;  %v5490_v54 = vrot.slane %v12094_v56, 4 }
 0xf8b   : > { %v5179_v59 = vpack.c.bf16 %v5163_v33, %v5163_v33  ;;  %9359 = vrcp.f32 %v5126_v3  ;;  %v5172_v28 = vmul.f32 %v9356_v40, %v12341_v63  ;;  %v5484_v33 = vrot.slane %v11992_v38, 4 }
 0xf8c   : > { %v5628_v15 = vsel %vm1491_vm4, %v5623_v2, 0 }
 0xf8d   : > { %v5249_v47 = vunpack.c.l.b16 %v5179_v59  ;;  %v5188_v13 = vpack.c.bf16 %v5172_v28, %v5172_v28  ;;  %v5571_v38 = vunpack.c.l.b16 %v5484_v33 }
 0xf8f   : > { %3621 = vrot.lane.b32.xlu2 %v3578_v14, %s9666_s5  ;;  %v5250_v29 = vpack.c.b16 %v5249_v47, %v5248_v6  ;;  %v5388_v51 = vunpack.c.l.b16 %v5188_v13  ;;  %v3579_v6 = vpack.c.bf16 %v14020_v31, %v14020_v31  ;;  %v5761_v13 = vsub.f32 %v12312_v41, %v12434_v27  ;;  %v14023_v41 = vld [vmem:[#allocation63_spill] sm:$0xff] }
 0xf90   : > { %v9358_v34 = vpop.eup %9357  ;;  %v5427_v27 = vpack.c.bf16 %v12295_v23, %v12295_v23 }
 0xf91   : > { %v5129_v43 = vpop.xlane.xlu2 %5128  ;;  %v9360_v42 = vpop.eup %9359  ;;  %v5173_v63 = vmul.f32 %v9358_v34, %v12352_v25  ;;  %8680 = vmatmul.msk.bf16.vlgmr.msrb.gmra.mxu2 %vm1724_vm6, %v5250_v29  ;;  %v14019_v25 = vld [vmem:[#allocation69_spill] sm:$0xff]  ;;  %v5780_v56 = vmul.f32 1.442695, %v5761_v13 }
 0xf92   : > { %9361 = vrcp.f32 %v5129_v43  ;;  %3615 = vrot.lane.b32.xlu1 %v3575_v10, %s9666_s5  ;;  %5512 = vmatpush.bf16.xpose.msrb.mxu2 %v5503_v20  ;;  %v5168_v11 = vmul.f32 %v9360_v42, %v12357_v22  ;;  %v3576_v55 = vpack.c.bf16 %v14019_v25, %v14019_v25  ;;  %v5572_v22 = vunpack.c.l.b16 %v5485_v9 }
 0xf93   : > { %v5189_v12 = vpack.c.bf16 %v5173_v63, %v5173_v63  ;;  %v4328_v10 = vpack.c.bf16 %v12265_v44, %v12265_v44  ;;  %v5778_v44 = vmul.f32 1.442695, %v5760_v24  ;;  %v5491_v42 = vrot.slane %v12013_v50, 4 }
 0xf94   : > { %v5184_v60 = vpack.c.bf16 %v5168_v11, %v5168_v11  ;;  %v5573_v47 = vpack.c.b16 %v5572_v22, %v5571_v38  ;;  %v14022_v11 = vld [vmem:[#allocation19_spill] sm:$0xff]  ;;  %v12569_v38 = vmul.f32 0.17677669, %v12333_v26 }
 0xf95   : > { %v5389_v3 = vunpack.c.l.b16 %v5189_v12  ;;  %9363 = vpow2.f32 %v5778_v44  ;;  %v5647_v63 = vunpack.c.l.b16 %v5491_v42  ;;  %v5646_v12 = vunpack.c.l.b16 %v5490_v54 }
 0xf96   : > { %v5578_v20 = vsel %vm1491_vm4, %v5573_v47, 0  ;;  %v2829_v2 = vpack.c.bf16 %v14022_v11, %v14022_v11  ;;  %9365 = vpow2.f32 %v5780_v56  ;;  %v5421_v42 = vpack.c.bf16 %v12278_v21, %v12278_v21 }
 0xf97   : > { %5907 = vrot.lane.b32.xlu2 %v12173_v52, %s9665_s28  ;;  %v5390_v40 = vpack.c.b16 %v5389_v3, %v5388_v51  ;;  %v5648_v9 = vpack.c.b16 %v5647_v63, %v5646_v12 }
 0xf98   : > { %v9362_v17 = vpop.eup %9361 }
 0xf99   : > { %v5169_v59 = vmul.f32 %v9362_v17, %v12363_v57  ;;  %v3608_v7 = vpop.permute.xlu2 %3607  ;;  %8685 = vmatmul.msk.bf16.vlgmr.msrb.gmra.mxu1 %vm1724_vm6, %v5390_v40  ;;  %v5332_v57 = vunpack.c.l.b16 %v5184_v60  ;;  %v5653_v17 = vsel %vm1491_vm4, %v5648_v9, 0  ;;  %v14024_v40 = vld [vmem:[#allocation77_spill] sm:$0xff]  ;;  %v14028_v9 = vld [vmem:[#allocation71_spill] sm:$0xff] }
 0xf9a   : > { %3652 = vst.msk [vmem:[#allocation2 + $0x10] sm:$0xf] %vm3647_vm2, %v3608_v7  ;;  %3617 = vrot.lane.b32.xlu1 %v3576_v55, %s9666_s5  ;;  %v2873_v14 = vpop.permute.xlu0 %2872  ;;  %5637 = vmatpush.bf16.xpose.msrb.mxu1 %v5628_v15 }
 0xf9b   : > { %v5185_v30 = vpack.c.bf16 %v5169_v59, %v5169_v59  ;;  %2908 = vst.msk [vmem:[#allocation2 + $0x34] sm:$0xf] %vm2894_vm0, %v2873_v14  ;;  %v12526_v51 = vpop.eup %9363 }
 0xf9c   : > { %v5812_v55 = vsel %vm1724_vm6, %v12526_v51, 0.0  ;;  %v12544_v23 = vpop.eup %9365 }
 0xf9d   : > { %v5333_v28 = vunpack.c.l.b16 %v5185_v30  ;;  %v5815_v33 = vsel %vm1724_vm6, %v12544_v23, 0.0 }
 0xf9f   : > { %v5334_v8 = vpack.c.b16 %v5333_v28, %v5332_v57  ;;  %3623 = vrot.lane.b32.xlu2 %v3579_v6, %s9666_s5  ;;  %v5752_v57 = vsel %vm1724_vm6, %v12569_v38, -inf }
 0xfa1   : > { %v4361_v29 = vpop.permute.xlu1 %4360  ;;  %v4363_v34 = vpop.permute.xlu2 %4362  ;;  %8683 = vmatmul.msk.bf16.vlgmr.msra.gmra.mxu2 %vm1724_vm6, %v5334_v8 }
 0xfa2   : > { %4405 = vst.msk [vmem:[#allocation2 + $0x10] sm:$0xf] %vm4400_vm1, %v4361_v29  ;;  %4368 = vrot.lane.b32.xlu1 %v4328_v10, %s9665_s28  ;;  %v3626_v43 = vpop.permute.xlu0 %3625  ;;  %5587 = vmatpush.bf16.xpose.msra.mxu2 %v5578_v20  ;;  %v5420_v10 = vpack.c.bf16 %v12275_v53, %v12275_v53 }
 0xfa3   : > { %4406 = vst.msk [vmem:[#allocation2 + $0x14] sm:$0xf] %vm4400_vm1, %v4363_v34 }
 0xfa4   : > { %3661 = vst.msk [vmem:[#allocation2 + $0x34] sm:$0xf] %vm3647_vm2, %v3626_v43 }
 0xfa7   : > { %5957 = vrot.lane.b32.xlu2 %v11903_v48, %s9665_s28 }
 0xfa9   : > { %8688 = vmatmul.msk.bf16.vlgmr.msra.gmra.mxu1 %vm1491_vm4, %v12073_v36  ;;  %v4331_v36 = vpack.c.bf16 %v14023_v41, %v14023_v41 }
 0xfaa   : > { %2868 = vrot.lane.b32.xlu1 %v2825_v35, %s9667_s6  ;;  %v4379_v39 = vpop.permute.xlu0 %4378  ;;  %v8926_v50 = vld [vmem:[#allocation2 + $0x10] sm:$0xff] }
 0xfab   : > { %4414 = vst.msk [vmem:[#allocation2 + $0x34] sm:$0xf] %vm4400_vm1, %v4379_v39  ;;  %4550 = vmatmul.bf16.gmra.mxu0 %v8926_v50  ;;  %v14027_v39 = vld [vmem:[#allocation58_spill] sm:$0xff] }
 0xfac   : > { %v4332_v50 = vpack.c.bf16 %v14027_v39, %v14027_v39 }
 0xfaf   : > { %2876 = vrot.lane.b32.xlu2 %v2829_v2, %s9667_s6 }
 0xfb1   : > { %8686 = vmatmul.msk.bf16.vlgmr.msrb.gmra.mxu2 %vm1491_vm4, %v12049_v5 }
 0xfb2   : > { %v12533_v3 = vld [vmem:[#allocation2 + $0x30] sm:$0xf0]  ;;  %4374 = vrot.lane.b32.xlu1 %v4331_v36, %s9665_s28  ;;  %v12539_v25 = vpop.permute.xlu0 %6007  ;;  %5662 = vmatpush.bf16.xpose.msrb.mxu2 %v5653_v17 }
 0xfb3   : > { %5443 = vst.msk [vmem:[#allocation2 + $0x34] sm:$0xf] %vm2141_vm10, %v5427_v27  ;;  %5813 = vadd.xlane.f32.xlu0 %v5812_v55  ;;  %v14029_v27 = vld [vmem:[#allocation30_spill] sm:$0xff] }
 0xfb4   : > { %v3581_v17 = vpack.c.bf16 %v14029_v27, %v14029_v27 }
 0xfb7   : > { %6057 = vrot.lane.b32.xlu2 %v12201_v37, %s9665_s28 }
 0xfb9   : > { %8691 = vmatmul.msk.bf16.vlgmr.msrb.gmra.mxu1 %vm1491_vm4, %v12107_v18  ;;  %v14025_v18 = vld [vmem:[#allocation78_spill] sm:$0xff] }
 0xfba   : > { %v12550_v5 = vpop.permute.xlu0 %6202 }
 0xfbb   : > { %5816 = vadd.xlane.f32.xlu0 %v5815_v33 }
 0xfc1   : > { %8689 = vmatmul.msk.bf16.vlgmr.msra.gmra.mxu2 %vm1491_vm4, %v14024_v40 }
 0xfc2   : > { %v12556_v60 = vpop.permute.xlu0 %6204  ;;  %5945 = vmatpush.bf16.msra.mxu2 %v12468_v49 }
 0xfca   : > { %v12559_v59 = vpop.permute.xlu0 %6198 }
 0xfcc   : > { %v5736_v7 = vpop.xlane.xlu1 %5735 }
 0xfcd   : > { %v5766_v22 = vsub.f32 %v12400_v58, %v5736_v7 }
 0xfcf   : > { %v5790_v15 = vmul.f32 1.442695, %v5766_v22 }
 0xfd1   : > { %9367 = vpow2.f32 %v5790_v15  ;;  %8692 = vmatmul.msk.bf16.vlgmr.msrb.gmra.mxu2 %vm1491_vm4, %v14025_v18  ;;  %v14030_v18 = vld [vmem:[#allocation75_spill] sm:$0xff] }
 0xfd2   : > { %v12564_v14 = vpop.permute.xlu0 %6200 }
 0xfd7   : > { %v12566_v30 = vpop.eup %9367 }
 0xfd8   : > { %v5830_v49 = vsel %vm1724_vm6, %v12566_v30, 0.0 }
 0xfd9   : > { %5831 = vadd.xlane.f32.xlu0 %v5830_v49 }
 0xfda   : > { %v2875_v31 = vpop.permute.xlu0 %2874  ;;  %v5739_v6 = vpop.xlane.xlu2 %5738 }
 0xfdb   : > { %2909 = vst.msk [vmem:[#allocation2 + $0x38] sm:$0xf] %vm2894_vm0, %v2875_v31  ;;  %v5767_v58 = vsub.f32 %v12414_v45, %v5739_v6 }
 0xfdc   : > { %5753 = vmax.xlane.f32.xlu1 %v5752_v57 }
 0xfdd   : > { %v5792_v28 = vmul.f32 1.442695, %v5767_v58 }
 0xfdf   : > { %9369 = vpow2.f32 %v5792_v28 }
 0xfe2   : > { %v3612_v47 = vpop.permute.xlu2 %3611  ;;  %v3630_v12 = vpop.permute.xlu0 %3629 }
 0xfe3   : > { %3654 = vst.msk [vmem:[#allocation2 + $0x18] sm:$0xf] %vm3647_vm2, %v3612_v47 }
 0xfe4   : > { %4407 = vst.msk [vmem:[#allocation2 + $0x18] sm:$0xf] %vm4400_vm1, %v12388_v0  ;;  %v2861_v26 = vpop.permute.xlu1 %2860 }
 0xfe5   : > { %v12580_v8 = vpop.eup %9369  ;;  %2902 = vst.msk [vmem:[#allocation2 + $0x1c] sm:$0xf] %vm2894_vm0, %v2861_v26 }
 0xfe6   : > { %3655 = vst.msk [vmem:[#allocation2 + $0x1c] sm:$0xf] %vm3647_vm2, %v12380_v61  ;;  %v5833_v45 = vsel %vm1724_vm6, %v12580_v8, 0.0  ;;  %v14026_v61 = vld [vmem:[#allocation17_spill] sm:$0xff] }
 0xfe7   : > { %5834 = vadd.xlane.f32.xlu2 %v5833_v45  ;;  %v2826_v44 = vpack.c.bf16 %v14026_v61, %v14026_v61  ;;  %v14031_v45 = vld [vmem:[#allocation12_spill] sm:$0xff] }
 0xfe8   : > { %v14032_v61 = vld [vmem:[#allocation36_spill] sm:$0xff] }
 0xfea   : > { %v4371_v24 = vpop.permute.xlu2 %4370  ;;  %v12610_v41 = vpop.permute.xlu0 %4380 }
 0xfeb   : > { %v8620_v29 = vld [vmem:[#allocation2 + $0x18] sm:$0xf] }
 0xfec   : > { %v4367_v34 = vpop.permute.xlu1 %4366  ;;  %v5241_v20 = vpop.f32.mrf.mxu1  ;;  %5436 = vst.msk [vmem:[#allocation2 + $0x18] sm:$0xf] %vm2141_vm10, %v5420_v10 }
 0xfed   : > { %4408 = vst.msk [vmem:[#allocation2 + $0x1c] sm:$0xf] %vm4400_vm1, %v4367_v34  ;;  %v5416_v0 = vpack.c.bf16 %v5241_v20, %v5241_v20 }
 0xfef   : > { %5432 = vst.msk [vmem:[#allocation2 + $0x8] sm:$0xf] %vm2141_vm10, %v5416_v0 }
 0xff2   : > { %v3622_v43 = vpop.permute.xlu2 %3621  ;;  %v4383_v40 = vpop.permute.xlu0 %4382 }
 0xff4   : > { %v8927_v4 = vld [vmem:[#allocation2 + $0x18] sm:$0xf0]  ;;  %v2863_v53 = vpop.permute.xlu1 %2862  ;;  %v5243_v35 = vpop.f32.mrf.mxu1 }
 0xff5   : > { %5437 = vst.msk [vmem:[#allocation2 + $0x1c] sm:$0xf] %vm2141_vm10, %v5421_v42  ;;  %v5417_v54 = vpack.c.bf16 %v5243_v35, %v5243_v35  ;;  %2870 = vrot.lane.b32.xlu1 %v2826_v44, %s9667_s6  ;;  %v8621_v13 = vor.u32 %v8927_v4, %v8620_v29 }
 0xff6   : > { %2903 = vst.msk [vmem:[#allocation2 + $0x20] sm:$0xf] %vm2894_vm0, %v2863_v53 }
 0xff7   : > { %5433 = vst.msk [vmem:[#allocation2 + $0xc] sm:$0xf] %vm2141_vm10, %v5417_v54  ;;  %4555 = vmatmul.bf16.gmra.mxu0 %v8621_v13 }
 0xffa   : > { %v5908_v63 = vpop.permute.xlu2 %5907  ;;  %v12630_v10 = vpop.permute.xlu0 %6214 }
 0xffb   : > { %5920 = vmatpush.bf16.msra.mxu1 %v5908_v63  ;;  %v14033_v63 = vld [vmem:[#allocation9_spill] sm:$0xff] }
 0xffc   : > { %v2865_v21 = vpop.permute.xlu1 %2864  ;;  %v5325_v56 = vpop.f32.mrf.mxu1 }
 0xffd   : > { %2904 = vst.msk [vmem:[#allocation2 + $0x24] sm:$0xf] %vm2894_vm0, %v2865_v21  ;;  %4376 = vrot.lane.b32.xlu1 %v4332_v50, %s9665_s28  ;;  %v5422_v57 = vpack.c.bf16 %v5325_v56, %v5325_v56 }
 0xfff   : > { %6020 = vmatpush.bf16.msrb.mxu1 %v12539_v25 }
0x1002   : > { %v12605_v11 = vpop.permute.xlu2 %3623 }
0x1004   : > { %v3616_v2 = vpop.permute.xlu1 %3615  ;;  %v5327_v55 = vpop.f32.mrf.mxu1 }
0x1005   : > { %3656 = vst.msk [vmem:[#allocation2 + $0x20] sm:$0xf] %vm3647_vm2, %v3616_v2  ;;  %6032 = vrot.lane.b32.xlu1 %v14028_v9, %s9665_s28  ;;  %v5423_v22 = vpack.c.bf16 %v5327_v55, %v5327_v55 }
0x100a   : > { %v5958_v36 = vpop.permute.xlu2 %5957 }
0x100b   : > { %5970 = vmatpush.bf16.msra.mxu3 %v5958_v36 }
0x100c   : > { %v3618_v25 = vpop.permute.xlu1 %3617 }
0x100d   : > { %3657 = vst.msk [vmem:[#allocation2 + $0x24] sm:$0xf] %vm3647_vm2, %v3618_v25  ;;  %3627 = vrot.lane.b32.xlu1 %v3581_v17, %s9666_s5 }
0x100e   : > { %4410 = vst.msk [vmem:[#allocation2 + $0x24] sm:$0xf] %vm4400_vm1, %v4371_v24 }
0x1012   : > { %v2877_v33 = vpop.permute.xlu2 %2876 }
0x1013   : > { %2910 = vst.msk [vmem:[#allocation2 + $0x3c] sm:$0xf] %vm2894_vm0, %v2877_v33 }
0x1014   : > { %3663 = vst.msk [vmem:[#allocation2 + $0x3c] sm:$0xf] %vm3647_vm2, %v3630_v12  ;;  %v4369_v7 = vpop.permute.xlu1 %4368  ;;  %v5269_v15 = vpop.f32.mrf.mxu2 }
0x1015   : > { %4416 = vst.msk [vmem:[#allocation2 + $0x3c] sm:$0xf] %vm4400_vm1, %v4383_v40  ;;  %6271 = vrot.lane.b32.xlu1 %v14030_v18, %s9666_s5  ;;  %v8928_v49 = vld [vmem:[#allocation2 + $0x20] sm:$0xf0]  ;;  %v5418_v31 = vpack.c.bf16 %v5269_v15, %v5269_v15 }
0x1016   : > { %4409 = vst.msk [vmem:[#allocation2 + $0x20] sm:$0xf] %vm4400_vm1, %v4369_v7  ;;  %v12623_v6 = vpop.f32.mrf.mxu1  ;;  %v14034_v7 = vld [vmem:[#allocation46_spill] sm:$0xff] }
0x1017   : > { %5439 = vst.msk [vmem:[#allocation2 + $0x24] sm:$0xf] %vm2141_vm10, %v5423_v22 }
0x1018   : > { %5434 = vst.msk [vmem:[#allocation2 + $0x10] sm:$0xf] %vm2141_vm10, %v5418_v31 }
0x101a   : > { %v6058_v58 = vpop.permute.xlu2 %6057 }
0x101b   : > { %6070 = vmatpush.bf16.msrb.mxu3 %v6058_v58 }
0x101c   : > { %v2869_v28 = vpop.permute.xlu1 %2868  ;;  %v5271_v26 = vpop.f32.mrf.mxu2 }
0x101d   : > { %v8624_v47 = vld [vmem:[#allocation2 + $0x20] sm:$0xf]  ;;  %2906 = vst.msk [vmem:[#allocation2 + $0x2c] sm:$0xf] %vm2894_vm0, %v2869_v28  ;;  %6206 = vrot.lane.b32.xlu1 %v14031_v45, %s9666_s5  ;;  %v5419_v24 = vpack.c.bf16 %v5271_v26, %v5271_v26 }
0x101e   : > { %5438 = vst.msk [vmem:[#allocation2 + $0x20] sm:$0xf] %vm2141_vm10, %v5422_v57  ;;  %v8625_v29 = vor.u32 %v8928_v49, %v8624_v47  ;;  %v12634_v34 = vpop.f32.mrf.mxu1 }
0x101f   : > { %3659 = vst.msk [vmem:[#allocation2 + $0x2c] sm:$0xf] %vm3647_vm2, %v3622_v43 }
0x1020   : > { %5435 = vst.msk [vmem:[#allocation2 + $0x14] sm:$0xf] %vm2141_vm10, %v5419_v24  ;;  %4560 = vmatmul.bf16.gmra.mxu0 %v8625_v29 }
0x1024   : > { %v4375_v20 = vpop.permute.xlu1 %4374  ;;  %v5353_v0 = vpop.f32.mrf.mxu2 }
0x1025   : > { %4412 = vst.msk [vmem:[#allocation2 + $0x2c] sm:$0xf] %vm4400_vm1, %v4375_v20  ;;  %6208 = vrot.lane.b32.xlu1 %v14032_v61, %s9666_s5  ;;  %v5424_v44 = vpack.c.bf16 %v5353_v0, %v5353_v0 }
0x1026   : > { %v5814_v42 = vpop.xlane.xlu0 %5813  ;;  %v5564_v4 = vpop.f32.mrf.mxu1 }
0x1027   : > { %9371 = vrcp.f32 %v5814_v42  ;;  %v12640_v53 = vmul.f32 0.17677669, %v5564_v4  ;;  %5440 = vst.msk [vmem:[#allocation2 + $0x28] sm:$0xf] %vm2141_vm10, %v5424_v44 }
0x1028   : > { %v4551_v43 = vpop.f32.mrf.mxu0 }
0x1029   : > { %v5722_v35 = vsel %vm1724_vm6, %v12640_v53, -inf  ;;  %v4552_v36 = vadd.f32 %v12284_v1, %v4551_v43  ;;  %v14035_v43 = vld [vmem:[#allocation42_spill] sm:$0xff] }
0x102a   : > { %5723 = vmax.xlane.f32.xlu0 %v5722_v35 }
0x102c   : > { %v5355_v13 = vpop.f32.mrf.mxu2 }
0x102d   : > { %6218 = vrot.lane.b32.xlu1 %v14033_v63, %s9666_s5  ;;  %v9372_v39 = vpop.eup %9371  ;;  %v5425_v50 = vpack.c.bf16 %v5355_v13, %v5355_v13 }
0x102e   : > { %v8929_v54 = vld [vmem:[#allocation2 + $0x28] sm:$0xff]  ;;  %v5817_v21 = vpop.xlane.xlu0 %5816  ;;  %v12647_v12 = vpop.f32.mrf.mxu1  ;;  %v5872_v2 = vmul.f32 %v9372_v39, %v12526_v51 }
0x102f   : > { %9373 = vrcp.f32 %v5817_v21  ;;  %5441 = vst.msk [vmem:[#allocation2 + $0x2c] sm:$0xf] %vm2141_vm10, %v5425_v50 }
0x1030   : > { %4565 = vmatmul.bf16.gmra.mxu0 %v8929_v54  ;;  %v4553_v56 = vpop.f32.mrf.mxu0  ;;  %v5888_v33 = vpack.c.bf16 %v5872_v2, %v5872_v2 }
0x1031   : > { %v4554_v27 = vadd.f32 %v12284_v1, %v4553_v56 }
0x1032   : > { %v5929_v1 = vunpack.c.l.b16 %v5888_v33 }
0x1033   : > { %v4595_v17 = vmax.f32 %v4552_v36, %v4554_v27  ;;  %v4651_v25 = vmin.f32 %v4552_v36, %v4554_v27 }
0x1034   : > { %v5514_v40 = vpop.f32.mrf.mxu2 }
0x1035   : > { %v9374_v55 = vpop.eup %9373  ;;  %6220 = vrot.lane.b32.xlu1 %v14034_v7, %s9666_s5  ;;  %v4596_v15 = vrot.slane %v4595_v17, 4  ;;  %v4652_v49 = vrot.slane %v4651_v25, 4  ;;  %v12656_v31 = vmul.f32 0.17677669, %v5514_v40 }
0x1036   : > { %v5873_v22 = vmul.f32 %v9374_v55, %v12544_v23  ;;  %v5639_v51 = vpop.f32.mrf.mxu1 }
0x1037   : > { %v4597_v57 = vmax.f32 %v4595_v17, %v4596_v15  ;;  %v4653_v28 = vmin.f32 %v4651_v25, %v4652_v49  ;;  %v12658_v47 = vmul.f32 0.17677669, %v5639_v51  ;;  %v5710_v26 = vsel %vm1724_vm6, %v12656_v31, -inf }
0x1038   : > { %v5889_v58 = vpack.c.bf16 %v5873_v22, %v5873_v22  ;;  %5711 = vmax.xlane.f32.xlu0 %v5710_v26 }
0x1039   : > { %v4598_v29 = vrot.slane %v4597_v57, 2  ;;  %v4654_v20 = vrot.slane %v4653_v28, 2  ;;  %v5740_v23 = vsel %vm1724_vm6, %v12658_v47, -inf }
0x103a   : > { %v5930_v24 = vunpack.c.l.b16 %v5889_v58  ;;  %5741 = vmax.xlane.f32.xlu2 %v5740_v23 }
0x103b   : > { %v4599_v44 = vmax.f32 %v4597_v57, %v4598_v29  ;;  %v4655_v42 = vmin.f32 %v4653_v28, %v4654_v20 }
0x103c   : > { %v5931_v0 = vpack.c.b16 %v5930_v24, %v5929_v1  ;;  %v5516_v4 = vpop.f32.mrf.mxu2  ;;  %v12694_v24 = vmul.f32 0.17677669, %v12647_v12 }
0x103d   : > { %6246 = vrot.lane.b32.xlu1 %v14035_v43, %s9666_s5  ;;  %v4600_v35 = vrot.slane %v4599_v44, 1  ;;  %v4656_v54 = vrot.slane %v4655_v42, 1  ;;  %v12666_v13 = vmul.f32 0.17677669, %v5516_v4 }
0x103e   : > { %8695 = vmatmul.msk.bf16.vlgmr.msra.gmra.mxu2 %vm1724_vm6, %v5931_v0  ;;  %v5641_v39 = vpop.f32.mrf.mxu1  ;;  %v5725_v29 = vsel %vm1724_vm6, %v12694_v24, -inf  ;;  %v6233_v0 = vrot.slane %v12556_v60, 4 }
0x103f   : > { %v4657_v50 = vmin.f32 %v4655_v42, %v4656_v54  ;;  %v12669_v21 = vmul.f32 0.17677669, %v5641_v39  ;;  %v4601_v2 = vmax.f32 %v4599_v44, %v4600_v35  ;;  %v5713_v27 = vsel %vm1724_vm6, %v12666_v13, -inf }
0x1040   : > { %v6232_v44 = vrot.slane %v12550_v5, 4  ;;  %v6274_v4 = vunpack.c.l.b16 %v6233_v0 }
0x1041   : > { %v4695_v56 = vsub.f32 0.0, %v4657_v50  ;;  %v5743_v36 = vsel %vm1724_vm6, %v12669_v21, -inf }
0x1042   : > { %5744 = vmax.xlane.f32.xlu0 %v5743_v36  ;;  %5714 = vmax.xlane.f32.xlu2 %v5713_v27  ;;  %v6273_v35 = vunpack.c.l.b16 %v6232_v44  ;;  %v12716_v27 = vld [vmem:[%s13656_s3 + $0x6] ss:$0 sm:$0xff] }
0x1043   : > { %vm4703_vm7 = vcmp.ge.f32.partialorder %v4601_v2, %v4695_v56 }
0x1044   : > { %v4711_v17 = vsel %vm4703_vm7, %v4601_v2, %v4657_v50  ;;  %v5589_v25 = vpop.f32.mrf.mxu2  ;;  %v6275_v54 = vpack.c.b16 %v6274_v4, %v6273_v35  ;;  %v14036_v50 = vld [vmem:[#allocation68_spill] sm:$0xff] }
0x1045   : > { %v4719_v55 = vpack.c.bf16 %v4711_v17, %v4711_v17  ;;  %v12701_v23 = vmul.f32 0.17677669, %v5589_v25 }
0x1046   : > { %v6280_v5 = vsel %vm1491_vm4, %v6275_v54, 0 }
0x1047   : > { %v8145_v33 = vunpack.c.l.b16 %v4719_v55  ;;  %v5728_v12 = vsel %vm1724_vm6, %v12701_v23, -inf }
0x1049   : > { %v12677_v40 = vsel %vm8060_vm12, %v8145_v33, %v12327_v19 }
0x104c   : > { %v5591_v22 = vpop.f32.mrf.mxu2 }
0x104d   : > { %v12679_v15 = vmul.f32 0.17677669, %v5591_v22 }
0x104f   : > { %v5731_v49 = vsel %vm1724_vm6, %v12679_v15, -inf  ;;  %v12689_v26 = vpop.xlane.xlu1 %5753 }
0x1050   : > { %5732 = vmax.xlane.f32.xlu0 %v5731_v49  ;;  %v5428_v49 = vpack.c.bf16 %v12623_v6, %v12623_v6 }
0x1054   : > { %v5664_v51 = vpop.f32.mrf.mxu2 }
0x1055   : > { %v12683_v58 = vmul.f32 0.17677669, %v5664_v51 }
0x1057   : > { %v5746_v57 = vsel %vm1724_vm6, %v12683_v58, -inf }
0x1058   : > { %5747 = vmax.xlane.f32.xlu2 %v5746_v57 }
0x105c   : > { %v5666_v28 = vpop.f32.mrf.mxu2 }
0x105d   : > { %v12687_v1 = vmul.f32 0.17677669, %v5666_v28 }
0x105f   : > { %v5749_v19 = vsel %vm1724_vm6, %v12687_v1, -inf }
0x1060   : > { %5750 = vmax.xlane.f32.xlu0 %v5749_v19 }
0x1067   : > { %v2871_v20 = vpop.permute.xlu1 %2870  ;;  %5726 = vmax.xlane.f32.xlu1 %v5725_v29 }
0x1068   : > { %2907 = vst.msk [vmem:[#allocation2 + $0x30] sm:$0xf] %vm2894_vm0, %v2871_v20  ;;  %v5429_v20 = vpack.c.bf16 %v12634_v34, %v12634_v34  ;;  %v12733_v34 = vpop.xlane.xlu0 %5831 }
0x1069   : > { %3660 = vst.msk [vmem:[#allocation2 + $0x30] sm:$0xf] %vm3647_vm2, %v12605_v11  ;;  %v5426_v11 = vpack.c.bf16 %v14036_v50, %v14036_v50 }
0x106f   : > { %v4377_v42 = vpop.permute.xlu1 %4376  ;;  %5729 = vmax.xlane.f32.xlu1 %v5728_v12 }
0x1070   : > { %4413 = vst.msk [vmem:[#allocation2 + $0x30] sm:$0xf] %vm4400_vm1, %v4377_v42 }
0x1074   : > { %v4556_v39 = vpop.f32.mrf.mxu0 }
0x1075   : > { %v4557_v17 = vadd.f32 %v12716_v27, %v4556_v39 }
0x1077   : > { %v8632_v2 = vld [vmem:[#allocation2 + $0x30] sm:$0xf]  ;;  %v6033_v56 = vpop.permute.xlu1 %6032 }
0x1078   : > { %5442 = vst.msk [vmem:[#allocation2 + $0x30] sm:$0xf] %vm2141_vm10, %v5426_v11  ;;  %6045 = vmatpush.bf16.msrb.mxu2 %v6033_v56  ;;  %v8633_v60 = vor.u32 %v12533_v3, %v8632_v2 }
0x107a   : > { %4570 = vmatmul.bf16.gmra.mxu0 %v8633_v60 }
0x107c   : > { %6289 = vmatpush.bf16.xpose.msra.mxu2 %v6280_v5  ;;  %v4558_v36 = vpop.f32.mrf.mxu0 }
0x107d   : > { %v4559_v25 = vadd.f32 %v12716_v27, %v4558_v36 }
0x107f   : > { %v4602_v55 = vmax.f32 %v4557_v17, %v4559_v25  ;;  %v4658_v33 = vmin.f32 %v4557_v17, %v4559_v25  ;;  %v3628_v22 = vpop.permute.xlu1 %3627  ;;  %v12738_v25 = vpop.xlane.xlu2 %5834 }
0x1080   : > { %3662 = vst.msk [vmem:[#allocation2 + $0x38] sm:$0xf] %vm3647_vm2, %v3628_v22 }
0x1081   : > { %v4603_v3 = vrot.slane %v4602_v55, 4  ;;  %v4659_v51 = vrot.slane %v4658_v33, 4  ;;  %4415 = vst.msk [vmem:[#allocation2 + $0x38] sm:$0xf] %vm4400_vm1, %v12610_v41 }
0x1082   : > { %5444 = vst.msk [vmem:[#allocation2 + $0x38] sm:$0xf] %vm2141_vm10, %v5428_v49 }
0x1083   : > { %v4604_v57 = vmax.f32 %v4602_v55, %v4603_v3  ;;  %v4660_v28 = vmin.f32 %v4658_v33, %v4659_v51 }
0x1085   : > { %v4605_v19 = vrot.slane %v4604_v57, 2  ;;  %v4661_v29 = vrot.slane %v4660_v28, 2 }
0x1087   : > { %v4606_v0 = vmax.f32 %v4604_v57, %v4605_v19  ;;  %v4662_v44 = vmin.f32 %v4660_v28, %v4661_v29  ;;  %v12736_v60 = vpop.permute.xlu1 %6271 }
0x1089   : > { %v8931_v12 = vld [vmem:[#allocation2 + $0x38] sm:$0xff]  ;;  %v4607_v6 = vrot.slane %v4606_v0, 1  ;;  %v4663_v42 = vrot.slane %v4662_v44, 1 }
0x108a   : > { %5445 = vst.msk [vmem:[#allocation2 + $0x3c] sm:$0xf] %vm2141_vm10, %v5429_v20  ;;  %4575 = vmatmul.bf16.gmra.mxu0 %v8931_v12  ;;  %vm8066_vm10 = vcmask 1045509  }
0x108b   : > { %v4664_v4 = vmin.f32 %v4662_v44, %v4663_v42  ;;  %v4608_v35 = vmax.f32 %v4606_v0, %v4607_v6 }
0x108d   : > { %v4696_v41 = vsub.f32 0.0, %v4664_v4 }
0x108f   : > { %vm4704_vm9 = vcmp.ge.f32.partialorder %v4608_v35, %v4696_v41  ;;  %v12744_v3 = vpop.permute.xlu1 %6206 }
0x1090   : > { %v4712_v54 = vsel %vm4704_vm9, %v4608_v35, %v4664_v4  ;;  %vm8070_vm9 = vcmask 1047559  }
0x1091   : > { %v4720_v39 = vpack.c.bf16 %v4712_v54, %v4712_v54 }
0x1093   : > { %v8146_v50 = vunpack.c.l.b16 %v4720_v39 }
0x1095   : > { %v12731_v11 = vsel %vm8062_vm5, %v8146_v50, %v12677_v40 }
0x109d   : > { %v4561_v2 = vpop.f32.mrf.mxu0  ;;  %v5724_v56 = vpop.xlane.xlu0 %5723 }
0x109e   : > { %v5762_v5 = vsub.f32 %v12640_v53, %v5724_v56  ;;  %v4562_v55 = vadd.f32 %v12716_v27, %v4561_v2  ;;  %v12750_v2 = vpop.permute.xlu1 %6208 }
0x10a0   : > { %v5782_v36 = vmul.f32 1.442695, %v5762_v5 }
0x10a2   : > { %9375 = vpow2.f32 %v5782_v36 }
0x10a5   : > { %v4563_v17 = vpop.f32.mrf.mxu0 }
0x10a6   : > { %v4564_v33 = vadd.f32 %v12716_v27, %v4563_v17 }
0x10a8   : > { %v4609_v22 = vmax.f32 %v4562_v55, %v4564_v33  ;;  %v4665_v40 = vmin.f32 %v4562_v55, %v4564_v33  ;;  %v12742_v49 = vpop.eup %9375 }
0x10a9   : > { %v5818_v53 = vsel %vm1724_vm6, %v12742_v49, 0.0 }
0x10aa   : > { %v4610_v51 = vrot.slane %v4609_v22, 4  ;;  %v4666_v57 = vrot.slane %v4665_v40, 4  ;;  %5819 = vadd.xlane.f32.xlu2 %v5818_v53 }
0x10ab   : > { %v5712_v29 = vpop.xlane.xlu0 %5711 }
0x10ac   : > { %v4611_v28 = vmax.f32 %v4609_v22, %v4610_v51  ;;  %v4667_v19 = vmin.f32 %v4665_v40, %v4666_v57  ;;  %v5758_v12 = vsub.f32 %v12656_v31, %v5712_v29 }
0x10ad   : > { %v4566_v20 = vpop.f32.mrf.mxu0  ;;  %v5742_v6 = vpop.xlane.xlu2 %5741 }
0x10ae   : > { %v4612_v0 = vrot.slane %v4611_v28, 2  ;;  %v4668_v44 = vrot.slane %v4667_v19, 2  ;;  %v5768_v42 = vsub.f32 %v12658_v47, %v5742_v6  ;;  %v5774_v41 = vmul.f32 1.442695, %v5758_v12 }
0x10af   : > { %v4567_v55 = vadd.f32 %v12716_v27, %v4566_v20 }
0x10b0   : > { %v4613_v4 = vmax.f32 %v4611_v28, %v4612_v0  ;;  %v4669_v35 = vmin.f32 %v4667_v19, %v4668_v44  ;;  %v5794_v54 = vmul.f32 1.442695, %v5768_v42  ;;  %9377 = vpow2.f32 %v5774_v41 }
0x10b2   : > { %v4614_v39 = vrot.slane %v4613_v4, 1  ;;  %v4670_v50 = vrot.slane %v4669_v35, 1  ;;  %9379 = vpow2.f32 %v5794_v54 }
0x10b4   : > { %v4671_v56 = vmin.f32 %v4669_v35, %v4670_v50  ;;  %v4615_v36 = vmax.f32 %v4613_v4, %v4614_v39  ;;  %v12763_v4 = vpop.permute.xlu1 %6218 }
0x10b5   : > { %v4568_v5 = vpop.f32.mrf.mxu0  ;;  %v5715_v33 = vpop.xlane.xlu2 %5714 }
0x10b6   : > { %v4697_v17 = vsub.f32 0.0, %v4671_v56  ;;  %v4569_v31 = vadd.f32 %v12716_v27, %v4568_v5  ;;  %v5759_v47 = vsub.f32 %v12666_v13, %v5715_v33  ;;  %v12755_v22 = vpop.eup %9377  ;;  %v5745_v42 = vpop.xlane.xlu0 %5744 }
0x10b7   : > { %v5806_v19 = vsel %vm1724_vm6, %v12755_v22, 0.0 }
0x10b8   : > { %vm4705_vm3 = vcmp.ge.f32.partialorder %v4615_v36, %v4697_v17  ;;  %v4616_v40 = vmax.f32 %v4567_v55, %v4569_v31  ;;  %v4672_v51 = vmin.f32 %v4567_v55, %v4569_v31  ;;  %v12757_v57 = vpop.eup %9379  ;;  %v5776_v28 = vmul.f32 1.442695, %v5759_v47  ;;  %5807 = vadd.xlane.f32.xlu2 %v5806_v19 }
0x10b9   : > { %v4713_v53 = vsel %vm4705_vm3, %v4615_v36, %v4671_v56  ;;  %v5836_v44 = vsel %vm1724_vm6, %v12757_v57, 0.0 }
0x10ba   : > { %v4721_v29 = vpack.c.bf16 %v4713_v53, %v4713_v53  ;;  %v4617_v0 = vrot.slane %v4616_v40, 4  ;;  %v4673_v20 = vrot.slane %v4672_v51, 4  ;;  %5837 = vadd.xlane.f32.xlu0 %v5836_v44  ;;  %9381 = vpow2.f32 %v5776_v28 }
0x10bc   : > { %v8147_v13 = vunpack.c.l.b16 %v4721_v29  ;;  %v4618_v12 = vmax.f32 %v4616_v40, %v4617_v0  ;;  %v4674_v6 = vmin.f32 %v4672_v51, %v4673_v20  ;;  %v12772_v53 = vpop.permute.xlu1 %6220 }
0x10be   : > { %v4619_v35 = vrot.slane %v4618_v12, 2  ;;  %v4675_v41 = vrot.slane %v4674_v6, 2  ;;  %v8154_v54 = vsel %vm8064_vm14, %v8147_v13, %v12731_v11 }
0x10c0   : > { %v4620_v39 = vmax.f32 %v4618_v12, %v4619_v35  ;;  %v4676_v50 = vmin.f32 %v4674_v6, %v4675_v41  ;;  %v12767_v56 = vpop.eup %9381 }
0x10c1   : > { %v5809_v17 = vsel %vm1724_vm6, %v12767_v56, 0.0 }
0x10c2   : > { %v4621_v5 = vrot.slane %v4620_v39, 1  ;;  %v4677_v36 = vrot.slane %v4676_v50, 1  ;;  %5810 = vadd.xlane.f32.xlu0 %v5809_v17 }
0x10c3   : > { %v5733_v31 = vpop.xlane.xlu0 %5732 }
0x10c4   : > { %v4678_v55 = vmin.f32 %v4676_v50, %v4677_v36  ;;  %v5765_v33 = vsub.f32 %v12679_v15, %v5733_v31  ;;  %v4622_v47 = vmax.f32 %v4620_v39, %v4621_v5  ;;  %v12782_v12 = vpop.permute.xlu1 %6246 }
0x10c6   : > { %v4698_v40 = vsub.f32 0.0, %v4678_v55  ;;  %v5788_v51 = vmul.f32 1.442695, %v5765_v33 }
0x10c8   : > { %vm4706_vm11 = vcmp.ge.f32.partialorder %v4622_v47, %v4698_v40  ;;  %9383 = vpow2.f32 %v5788_v51 }
0x10c9   : > { %v4714_v11 = vsel %vm4706_vm11, %v4622_v47, %v4678_v55 }
0x10ca   : > { %v4722_v28 = vpack.c.bf16 %v4714_v11, %v4714_v11 }
0x10cb   : > { %v5748_v29 = vpop.xlane.xlu2 %5747 }
0x10cc   : > { %v8148_v19 = vunpack.c.l.b16 %v4722_v28  ;;  %v5770_v0 = vsub.f32 %v12683_v58, %v5748_v29  ;;  %v14038_v29 = vld [vmem:[#allocation66_spill] sm:$0xff] }
0x10ce   : > { %v12776_v20 = vsel %vm8066_vm10, %v8148_v19, %v8154_v54  ;;  %v12778_v44 = vpop.eup %9383  ;;  %v5798_v15 = vmul.f32 1.442695, %v5770_v0  ;;  %v5769_v54 = vsub.f32 %v12669_v21, %v5745_v42 }
0x10cf   : > { %v5827_v13 = vsel %vm1724_vm6, %v12778_v44, 0.0 }
0x10d0   : > { %9385 = vpow2.f32 %v5798_v15  ;;  %5828 = vadd.xlane.f32.xlu2 %v5827_v13  ;;  %v5796_v50 = vmul.f32 1.442695, %v5769_v54 }
0x10d6   : > { %v12784_v6 = vpop.eup %9385 }
0x10d7   : > { %v5842_v35 = vsel %vm1724_vm6, %v12784_v6, 0.0 }
0x10d8   : > { %5843 = vadd.xlane.f32.xlu2 %v5842_v35 }
0x10da   : > { %v5727_v58 = vpop.xlane.xlu1 %5726 }
0x10db   : > { %v5763_v41 = vsub.f32 %v12694_v24, %v5727_v58  ;;  %v5773_v58 = vsub.f32 %v12350_v32, %v12481_v16 }
0x10dd   : > { %v5784_v39 = vmul.f32 1.442695, %v5763_v41 }
0x10df   : > { %9387 = vpow2.f32 %v5784_v39 }
0x10e0   : > { %9389 = vpow2.f32 %v5796_v50  ;;  %v14039_v50 = vld [vmem:[#allocation57_spill] sm:$0xff] }
0x10e2   : > { %v5730_v5 = vpop.xlane.xlu1 %5729 }
0x10e3   : > { %v5764_v36 = vsub.f32 %v12701_v23, %v5730_v5  ;;  %v14037_v23 = vld [vmem:[#allocation41_spill] sm:$0xff] }
0x10e5   : > { %v12791_v17 = vpop.eup %9387  ;;  %v5786_v55 = vmul.f32 1.442695, %v5764_v36 }
0x10e6   : > { %v5821_v31 = vsel %vm1724_vm6, %v12791_v17, 0.0  ;;  %v12795_v33 = vpop.eup %9389 }
0x10e7   : > { %9391 = vpow2.f32 %v5786_v55  ;;  %5822 = vadd.xlane.f32.xlu1 %v5821_v31  ;;  %v5839_v21 = vsel %vm1724_vm6, %v12795_v33, 0.0  ;;  %v5804_v55 = vmul.f32 1.442695, %v5773_v58  ;;  %v14040_v31 = vld [vmem:[#allocation25_spill] sm:$0xff] }
0x10e9   : > { %9393 = vpow2.f32 %v5804_v55 }
0x10ed   : > { %v12797_v24 = vpop.eup %9391 }
0x10ee   : > { %v5824_v42 = vsel %vm1724_vm6, %v12797_v24, 0.0 }
0x10ef   : > { %5840 = vadd.xlane.f32.xlu1 %v5839_v21  ;;  %5825 = vadd.xlane.f32.xlu0 %v5824_v42 }
0x10f0   : > { %6216 = vrot.lane.b32.xlu2 %v14037_v23, %s9666_s5 }
0x10f7   : > { %v4571_v47 = vpop.f32.mrf.mxu0 }
0x10f8   : > { %v4572_v51 = vadd.f32 %v12716_v27, %v4571_v47 }
0x10ff   : > { %v4573_v40 = vpop.f32.mrf.mxu0 }
0x1100   : > { %v4574_v11 = vadd.f32 %v12716_v27, %v4573_v40 }
0x1102   : > { %v4623_v28 = vmax.f32 %v4572_v51, %v4574_v11  ;;  %v4679_v19 = vmin.f32 %v4572_v51, %v4574_v11 }
0x1103   : > { %6371 = vrot.lane.b32.xlu0 %v14038_v29, %s9666_s5 }
0x1104   : > { %v4624_v0 = vrot.slane %v4623_v28, 4  ;;  %v4680_v15 = vrot.slane %v4679_v19, 4 }
0x1106   : > { %v4625_v13 = vmax.f32 %v4623_v28, %v4624_v0  ;;  %v4681_v35 = vmin.f32 %v4679_v19, %v4680_v15  ;;  %v14041_v15 = vld [vmem:[#allocation26_spill] sm:$0xff] }
0x1107   : > { %v4576_v41 = vpop.f32.mrf.mxu0 }
0x1108   : > { %v4626_v54 = vrot.slane %v4625_v13, 2  ;;  %v4682_v39 = vrot.slane %v4681_v35, 2  ;;  %5982 = vrot.lane.b32.xlu1 %v14039_v50, %s9665_s28  ;;  %v4577_v32 = vadd.f32 %v12716_v27, %v4576_v41 }
0x110a   : > { %v4627_v5 = vmax.f32 %v4625_v13, %v4626_v54  ;;  %v4683_v36 = vmin.f32 %v4681_v35, %v4682_v39  ;;  %v12819_v54 = vpop.eup %9393 }
0x110b   : > { %6222 = vrot.lane.b32.xlu0 %v14040_v31, %s9666_s5 }
0x110c   : > { %v4628_v21 = vrot.slane %v4627_v5, 1  ;;  %v4684_v42 = vrot.slane %v4683_v36, 1 }
0x110e   : > { %v4685_v47 = vmin.f32 %v4683_v36, %v4684_v42  ;;  %v4629_v51 = vmax.f32 %v4627_v5, %v4628_v21  ;;  %v5851_v21 = vsel %vm1724_vm6, %v12819_v54, 0.0 }
0x110f   : > { %v4578_v40 = vpop.f32.mrf.mxu0 }
0x1110   : > { %v4699_v11 = vsub.f32 0.0, %v4685_v47  ;;  %v4579_v16 = vadd.f32 %v12716_v27, %v4578_v40  ;;  %v14042_v40 = vld [vmem:[#allocation72_spill] sm:$0xff] }
0x1112   : > { %vm4707_vm15 = vcmp.ge.f32.partialorder %v4629_v51, %v4699_v11  ;;  %v4630_v28 = vmax.f32 %v4577_v32, %v4579_v16  ;;  %v4686_v19 = vmin.f32 %v4577_v32, %v4579_v16  ;;  %v5751_v32 = vpop.xlane.xlu0 %5750 }
0x1113   : > { %v4715_v0 = vsel %vm4707_vm15, %v4629_v51, %v4685_v47  ;;  %6224 = vrot.lane.b32.xlu0 %v14041_v15, %s9666_s5 }
0x1114   : > { %v4723_v13 = vpack.c.bf16 %v4715_v0, %v4715_v0  ;;  %v4631_v35 = vrot.slane %v4630_v28, 4  ;;  %v4687_v58 = vrot.slane %v4686_v19, 4 }
0x1116   : > { %v8149_v39 = vunpack.c.l.b16 %v4723_v13  ;;  %v4632_v5 = vmax.f32 %v4630_v28, %v4631_v35  ;;  %v4688_v36 = vmin.f32 %v4686_v19, %v4687_v58  ;;  %v5771_v28 = vsub.f32 %v12687_v1, %v5751_v32 }
0x1117   : > { %v6231_v32 = vrot.slane %v12564_v14, 4  ;;  %v14049_v14 = vld [vmem:[#allocation34_spill] sm:$0xff] }
0x1118   : > { %v4633_v55 = vrot.slane %v4632_v5, 2  ;;  %v4689_v41 = vrot.slane %v4688_v36, 2  ;;  %v8156_v27 = vsel %vm8068_vm13, %v8149_v39, %v12776_v20  ;;  %v5800_v20 = vmul.f32 1.442695, %v5771_v28  ;;  %v14048_v28 = vld [vmem:[#allocation31_spill] sm:$0xff] }
0x1119   : > { %5852 = vadd.xlane.f32.xlu2 %v5851_v21 }
0x111a   : > { %v4634_v42 = vmax.f32 %v4632_v5, %v4633_v55  ;;  %v4690_v47 = vmin.f32 %v4688_v36, %v4689_v41  ;;  %9395 = vpow2.f32 %v5800_v20  ;;  %v14044_v36 = vld [vmem:[#allocation53_spill] sm:$0xff] }
0x111b   : > { %6346 = vrot.lane.b32.xlu0 %v14042_v40, %s9666_s5 }
0x111c   : > { %v4635_v51 = vrot.slane %v4634_v42, 1  ;;  %v4691_v11 = vrot.slane %v4690_v47, 1 }
0x111d   : > { %v5820_v39 = vpop.xlane.xlu2 %5819 }
0x111e   : > { %v4692_v16 = vmin.f32 %v4690_v47, %v4691_v11  ;;  %v4636_v19 = vmax.f32 %v4634_v42, %v4635_v51  ;;  %v14045_v42 = vld [vmem:[#allocation14_spill] sm:$0xff]  ;;  %v14046_v47 = vld [vmem:[#allocation52_spill] sm:$0xff] }
0x111f   : > { %v14047_v11 = vld [vmem:[#allocation48_spill] sm:$0xff] }
0x1120   : > { %v4700_v0 = vsub.f32 0.0, %v4692_v16  ;;  %v12835_v1 = vpop.eup %9395 }
0x1121   : > { %v5845_v21 = vsel %vm1724_vm6, %v12835_v1, 0.0 }
0x1122   : > { %vm4708_vm7 = vcmp.ge.f32.partialorder %v4636_v19, %v4700_v0 }
0x1123   : > { %v4716_v13 = vsel %vm4708_vm7, %v4636_v19, %v4692_v16  ;;  %6082 = vrot.lane.b32.xlu0 %v12425_v46, %s9665_s28  ;;  %v6230_v19 = vrot.slane %v12559_v59, 4 }
0x1124   : > { %v4724_v35 = vpack.c.bf16 %v4716_v13, %v4716_v13  ;;  %v6249_v13 = vunpack.c.l.b16 %v6231_v32 }
0x1126   : > { %v8150_v58 = vunpack.c.l.b16 %v4724_v35 }
0x1128   : > { %v12831_v5 = vsel %vm8070_vm9, %v8150_v58, %v8156_v27  ;;  %v6248_v58 = vunpack.c.l.b16 %v6230_v19 }
0x1129   : > { %14043 = vst [vmem:[#allocation67_spill] sm:$0xff] %v12831_v5 }
0x112b   : > { %6396 = vrot.lane.b32.xlu0 %v14044_v36, %s9666_s5  ;;  %v5808_v41 = vpop.xlane.xlu2 %5807 }
0x112c   : > { %9397 = vrcp.f32 %v5808_v41 }
0x112d   : > { %v5838_v55 = vpop.xlane.xlu0 %5837 }
0x1131   : > { %6212 = vrot.lane.b32.xlu2 %v14045_v42, %s9666_s5 }
0x1132   : > { %5846 = vadd.xlane.f32.xlu1 %v5845_v21  ;;  %v9398_v51 = vpop.eup %9397 }
0x1133   : > { %6321 = vrot.lane.b32.xlu0 %v14046_v47, %s9666_s5  ;;  %v5870_v16 = vmul.f32 %v9398_v51, %v12755_v22  ;;  %v6250_v22 = vpack.c.b16 %v6249_v13, %v6248_v58  ;;  %v14050_v51 = vld [vmem:[#allocation32_spill] sm:$0xff] }
0x1135   : > { %v5811_v27 = vpop.xlane.xlu0 %5810  ;;  %v5886_v20 = vpack.c.bf16 %v5870_v16, %v5870_v16 }
0x1136   : > { %9399 = vrcp.f32 %v5811_v27 }
0x1137   : > { %9401 = vrcp.f32 %v12738_v25  ;;  %v5904_v21 = vunpack.c.l.b16 %v5886_v20  ;;  %v6255_v25 = vsel %vm1491_vm4, %v6250_v22, 0 }
0x1138   : > { %9403 = vrcp.f32 %v12733_v34 }
0x1139   : > { %6684 = vrot.lane.b32.xlu2 %v14047_v11, %s9666_s5  ;;  %9405 = vrcp.f32 %v5820_v39 }
0x113b   : > { %6226 = vrot.lane.b32.xlu0 %v14048_v28, %s9666_s5 }
0x113c   : > { %v9400_v0 = vpop.eup %9399 }
0x113d   : > { %v5871_v35 = vmul.f32 %v9400_v0, %v12767_v56  ;;  %v9402_v16 = vpop.eup %9401  ;;  %v14051_v0 = vld [vmem:[#allocation47_spill] sm:$0xff] }
0x113e   : > { %v9404_v56 = vpop.eup %9403  ;;  %v5879_v34 = vmul.f32 %v9402_v16, %v12580_v8  ;;  %v6238_v8 = vrot.slane %v12630_v10, 4  ;;  %v6235_v10 = vrot.slane %v12750_v2, 4 }
0x113f   : > { %v5887_v41 = vpack.c.bf16 %v5871_v35, %v5871_v35  ;;  %v5878_v19 = vmul.f32 %v9404_v56, %v12566_v30 }
0x1140   : > { %v5895_v20 = vpack.c.bf16 %v5879_v34, %v5879_v34  ;;  %v6348_v16 = vunpack.c.l.b16 %v6238_v8 }
0x1141   : > { %6759 = vrot.lane.b32.xlu2 %v14049_v14, %s9666_s5  ;;  %v5905_v27 = vunpack.c.l.b16 %v5887_v41  ;;  %v5894_v35 = vpack.c.bf16 %v5878_v19, %v5878_v19  ;;  %v14052_v41 = vld [vmem:[#allocation10_spill] sm:$0xff]  ;;  %v9406_v19 = vpop.eup %9405 }
0x1142   : > { %v6005_v58 = vunpack.c.l.b16 %v5895_v20 }
0x1143   : > { %6228 = vrot.lane.b32.xlu0 %v14050_v51, %s9666_s5  ;;  %v5829_v59 = vpop.xlane.xlu2 %5828  ;;  %v5906_v32 = vpack.c.b16 %v5905_v27, %v5904_v21  ;;  %v6004_v22 = vunpack.c.l.b16 %v5894_v35  ;;  %v14053_v21 = vld [vmem:[#allocation27_spill] sm:$0xff]  ;;  %v5874_v35 = vmul.f32 %v9406_v19, %v12742_v49 }
0x1145   : > { %8694 = vmatmul.msk.bf16.vlgmr.msra.gmra.mxu1 %vm1724_vm6, %v5906_v32  ;;  %v6006_v27 = vpack.c.b16 %v6005_v58, %v6004_v22  ;;  %v6234_v58 = vrot.slane %v12744_v3, 4  ;;  %v5890_v8 = vpack.c.bf16 %v5874_v35, %v5874_v35 }
0x1146   : > { %6264 = vmatpush.bf16.xpose.msra.mxu1 %v6255_v25 }
0x1147   : > { %v5954_v49 = vunpack.c.l.b16 %v5890_v8 }
0x1149   : > { %6784 = vrot.lane.b32.xlu2 %v14028_v9, %s9666_s5 }
0x114b   : > { %6296 = vrot.lane.b32.xlu1 %v14051_v0, %s9666_s5  ;;  %6709 = vrot.lane.b32.xlu0 %v11903_v48, %s9666_s5  ;;  %v12867_v13 = vpop.xlane.xlu2 %5843 }
0x1151   : > { %6950 = vrot.lane.b32.xlu2 %v14052_v41, %s9667_s6  ;;  %v6299_v41 = vunpack.c.l.b16 %v6235_v10 }
0x1153   : > { %6952 = vrot.lane.b32.xlu0 %v14053_v21, %s9667_s6  ;;  %v6217_v30 = vpop.permute.xlu2 %6216 }
0x1154   : > { %v6239_v32 = vrot.slane %v6217_v30, 4 }
0x1155   : > { %8698 = vmatmul.msk.bf16.vlgmr.msrb.gmra.mxu1 %vm1724_vm6, %v6006_v27  ;;  %v5772_v27 = vsub.f32 %v12569_v38, %v12689_v26 }
0x1156   : > { %v6349_v25 = vunpack.c.l.b16 %v6239_v32  ;;  %v6298_v32 = vunpack.c.l.b16 %v6234_v58 }
0x1158   : > { %v6350_v56 = vpack.c.b16 %v6349_v25, %v6348_v16  ;;  %v6300_v2 = vpack.c.b16 %v6299_v41, %v6298_v32 }
0x115a   : > { %v5823_v34 = vpop.xlane.xlu1 %5822  ;;  %v6355_v20 = vsel %vm1491_vm4, %v6350_v56, 0 }
0x115b   : > { %9407 = vrcp.f32 %v5823_v34  ;;  %6364 = vmatpush.bf16.xpose.msrb.mxu1 %v6355_v20  ;;  %v5802_v34 = vmul.f32 1.442695, %v5772_v27 }
0x115c   : > { %9409 = vrcp.f32 %v5838_v55  ;;  %v6241_v55 = vrot.slane %v12772_v53, 4  ;;  %v6305_v53 = vsel %vm1491_vm4, %v6300_v2, 0 }
0x115e   : > { %v6374_v26 = vunpack.c.l.b16 %v6241_v55 }
0x1161   : > { %v9408_v39 = vpop.eup %9407 }
0x1162   : > { %v5875_v22 = vmul.f32 %v9408_v39, %v12791_v17  ;;  %v5841_v21 = vpop.xlane.xlu1 %5840  ;;  %v9410_v30 = vpop.eup %9409  ;;  %v6240_v17 = vrot.slane %v12763_v4, 4 }
0x1163   : > { %9411 = vrcp.f32 %v5841_v21  ;;  %v5826_v25 = vpop.xlane.xlu0 %5825  ;;  %v5880_v3 = vmul.f32 %v9410_v30, %v12757_v57 }
0x1164   : > { %v5891_v16 = vpack.c.bf16 %v5875_v22, %v5875_v22  ;;  %9413 = vrcp.f32 %v5826_v25  ;;  %v6373_v57 = vunpack.c.l.b16 %v6240_v17 }
0x1165   : > { %8702 = vmatmul.msk.bf16.vlgmr.msra.gmra.mxu1 %vm1491_vm4, %v12782_v12  ;;  %9415 = vrcp.f32 %v5829_v59  ;;  %v5896_v20 = vpack.c.bf16 %v5880_v3, %v5880_v3 }
0x1166   : > { %v5955_v56 = vunpack.c.l.b16 %v5891_v16  ;;  %9417 = vpow2.f32 %v5802_v34  ;;  %v6375_v39 = vpack.c.b16 %v6374_v26, %v6373_v57  ;;  %v14054_v34 = vld [vmem:[#allocation13_spill] sm:$0xff]  ;;  %v14056_v57 = vld [vmem:[#allocation11_spill] sm:$0xff] }
0x1167   : > { %v6029_v12 = vunpack.c.l.b16 %v5896_v20  ;;  %9419 = vrcp.f32 %v12867_v13 }
0x1168   : > { %v5956_v19 = vpack.c.b16 %v5955_v56, %v5954_v49  ;;  %v6380_v21 = vsel %vm1491_vm4, %v6375_v39, 0 }
0x1169   : > { %v9412_v38 = vpop.eup %9411 }
0x116a   : > { %v5881_v10 = vmul.f32 %v9412_v38, %v12795_v33  ;;  %8696 = vmatmul.msk.bf16.vlgmr.msra.gmra.mxu3 %vm1724_vm6, %v5956_v19  ;;  %v9414_v58 = vpop.eup %9413  ;;  %v14055_v38 = vld [vmem:[#allocation50_spill] sm:$0xff] }
0x116b   : > { %6314 = vmatpush.bf16.xpose.msra.mxu3 %v6305_v53  ;;  %v9416_v4 = vpop.eup %9415  ;;  %v5876_v59 = vmul.f32 %v9414_v58, %v12797_v24 }
0x116c   : > { %v5897_v35 = vpack.c.bf16 %v5881_v10, %v5881_v10  ;;  %v12891_v22 = vpop.eup %9417  ;;  %v5877_v33 = vmul.f32 %v9416_v4, %v12778_v44 }
0x116d   : > { %v5892_v30 = vpack.c.bf16 %v5876_v59, %v5876_v59  ;;  %v5848_v27 = vsel %vm1724_vm6, %v12891_v22, 0.0  ;;  %v9420_v53 = vpop.eup %9419 }
0x116e   : > { %v6030_v41 = vunpack.c.l.b16 %v5897_v35  ;;  %v5893_v16 = vpack.c.bf16 %v5877_v33, %v5877_v33  ;;  %v5882_v58 = vmul.f32 %v9420_v53, %v12784_v6 }
0x116f   : > { %v5979_v25 = vunpack.c.l.b16 %v5892_v30 }
0x1170   : > { %v6031_v8 = vpack.c.b16 %v6030_v41, %v6029_v12  ;;  %v5980_v2 = vunpack.c.l.b16 %v5893_v16  ;;  %v5898_v4 = vpack.c.bf16 %v5882_v58, %v5882_v58 }
0x1172   : > { %8699 = vmatmul.msk.bf16.vlgmr.msrb.gmra.mxu2 %vm1724_vm6, %v6031_v8  ;;  %v5981_v24 = vpack.c.b16 %v5980_v2, %v5979_v25  ;;  %v6054_v30 = vunpack.c.l.b16 %v5898_v4 }
0x1173   : > { %6389 = vmatpush.bf16.xpose.msrb.mxu2 %v6380_v21 }
0x1175   : > { %5849 = vadd.xlane.f32.xlu1 %v5848_v27  ;;  %v6372_v32 = vpop.permute.xlu0 %6371 }
0x117a   : > { %v5983_v55 = vpop.permute.xlu1 %5982 }
0x117b   : > { %5995 = vmatpush.bf16.msrb.mxu0 %v5983_v55 }
0x117d   : > { %v6223_v49 = vpop.permute.xlu0 %6222 }
0x117e   : > { %8697 = vmatmul.msk.bf16.vlgmr.msrb.gmra.mxu0 %vm1724_vm6, %v5981_v24  ;;  %v6242_v12 = vrot.slane %v6223_v49, 4 }
0x1180   : > { %v6398_v33 = vunpack.c.l.b16 %v6242_v12 }
0x1182   : > { %8703 = vmatmul.msk.bf16.vlgmr.msra.gmra.mxu2 %vm1491_vm4, %v12736_v60 }
0x1185   : > { %v6225_v44 = vpop.permute.xlu0 %6224 }
0x1186   : > { %v6243_v39 = vrot.slane %v6225_v44, 4 }
0x1188   : > { %v6399_v8 = vunpack.c.l.b16 %v6243_v39 }
0x118a   : > { %v6400_v27 = vpack.c.b16 %v6399_v8, %v6398_v33 }
0x118c   : > { %v5853_v3 = vpop.xlane.xlu2 %5852  ;;  %v6405_v6 = vsel %vm1491_vm4, %v6400_v27, 0 }
0x118d   : > { %v6347_v56 = vpop.permute.xlu0 %6346 }
0x118e   : > { %6210 = vrot.lane.b32.xlu1 %v14054_v34, %s9666_s5  ;;  %8706 = vmatmul.msk.bf16.vlgmr.msrb.gmra.mxu1 %vm1491_vm4, %v6347_v56 }
0x1192   : > { %8707 = vmatmul.msk.bf16.vlgmr.msrb.gmra.mxu2 %vm1491_vm4, %v6372_v32 }
0x1194   : > { %v12905_v17 = vpop.permute.xlu2 %6212 }
0x1195   : > { %v6083_v19 = vpop.permute.xlu0 %6082 }
0x1196   : > { %6421 = vrot.lane.b32.xlu1 %v14055_v38, %s9666_s5  ;;  %6095 = vmatpush.bf16.msra.mxu0 %v6083_v19  ;;  %v12932_v19 = vpop.f32.mrf.mxu2 }
0x1197   : > { %14059 = vst [vmem:[#allocation74_spill] sm:$0xff] %v12932_v19 }
0x119c   : > { %v6685_v26 = vpop.permute.xlu2 %6684 }
0x119d   : > { %v6397_v20 = vpop.permute.xlu0 %6396  ;;  %6697 = vmatpush.bf16.msra.mxu2 %v6685_v26 }
0x119e   : > { %6659 = vrot.lane.b32.xlu1 %v12173_v52, %s9666_s5  ;;  %v12935_v39 = vpop.f32.mrf.mxu2 }
0x119f   : > { %14060 = vst [vmem:[#allocation76_spill] sm:$0xff] %v12935_v39 }
0x11a4   : > { %v12912_v60 = vpop.permute.xlu2 %6759 }
0x11a5   : > { %v5847_v10 = vpop.xlane.xlu1 %5846  ;;  %v12916_v35 = vpop.permute.xlu0 %6321 }
0x11a6   : > { %9421 = vrcp.f32 %v5847_v10  ;;  %6954 = vrot.lane.b32.xlu1 %v14056_v57, %s9667_s6 }
0x11a7   : > { %9423 = vrcp.f32 %v5853_v3 }
0x11ac   : > { %v9422_v41 = vpop.eup %9421  ;;  %v6785_v13 = vpop.permute.xlu2 %6784 }
0x11ad   : > { %v5883_v59 = vmul.f32 %v9422_v41, %v12835_v1  ;;  %6797 = vmatpush.bf16.msrb.mxu2 %v6785_v13  ;;  %v6227_v16 = vpop.permute.xlu0 %6226  ;;  %v9424_v53 = vpop.eup %9423 }
0x11ae   : > { %v5885_v57 = vmul.f32 %v9424_v53, %v12819_v54  ;;  %v6244_v27 = vrot.slane %v6227_v16, 4 }
0x11af   : > { %v5899_v21 = vpack.c.bf16 %v5883_v59, %v5883_v59 }
0x11b0   : > { %v5901_v4 = vpack.c.bf16 %v5885_v57, %v5885_v57 }
0x11b1   : > { %v6055_v32 = vunpack.c.l.b16 %v5899_v21 }
0x11b2   : > { %v6080_v59 = vunpack.c.l.b16 %v5901_v4 }
0x11b3   : > { %v6056_v25 = vpack.c.b16 %v6055_v32, %v6054_v30  ;;  %v6237_v32 = vrot.slane %v12905_v17, 4 }
0x11b5   : > { %8700 = vmatmul.msk.bf16.vlgmr.msrb.gmra.mxu3 %vm1724_vm6, %v6056_v25  ;;  %v6229_v2 = vpop.permute.xlu0 %6228 }
0x11b6   : > { %6414 = vmatpush.bf16.xpose.msrb.mxu3 %v6405_v6  ;;  %v6245_v54 = vrot.slane %v6229_v2, 4 }
0x11b8   : > { %v6424_v25 = vunpack.c.l.b16 %v6245_v54 }
0x11bd   : > { %v6297_v55 = vpop.permute.xlu1 %6296  ;;  %v6710_v49 = vpop.permute.xlu0 %6709 }
0x11c2   : > { %v12922_v24 = vpop.f32.mrf.mxu1 }
0x11c5   : > { %8704 = vmatmul.msk.bf16.vlgmr.msra.gmra.mxu3 %vm1491_vm4, %v6297_v55 }
0x11c6   : > { %6722 = vmatpush.bf16.msra.mxu3 %v6710_v49  ;;  %v6423_v49 = vunpack.c.l.b16 %v6244_v27 }
0x11c8   : > { %v6425_v53 = vpack.c.b16 %v6424_v25, %v6423_v49 }
0x11ca   : > { %v12925_v1 = vpop.f32.mrf.mxu1  ;;  %v6430_v17 = vsel %vm1491_vm4, %v6425_v53, 0 }
0x11d2   : > { %v12927_v44 = vpop.f32.mrf.mxu1 }
0x11d3   : > { %14057 = vst [vmem:[#allocation55_spill] sm:$0xff] %v12927_v44 }
0x11d5   : > { %8708 = vmatmul.msk.bf16.vlgmr.msrb.gmra.mxu3 %vm1491_vm4, %v6397_v20 }
0x11da   : > { %v12930_v56 = vpop.f32.mrf.mxu1 }
0x11db   : > { %14058 = vst [vmem:[#allocation44_spill] sm:$0xff] %v12930_v56 }
0x11e2   : > { %v6266_v26 = vpop.f32.mrf.mxu1 }
0x11e3   : > { %v6446_v27 = vmul.f32 0.17677669, %v6266_v26 }
0x11e8   : > { %v5850_v10 = vpop.xlane.xlu1 %5849 }
0x11e9   : > { %9425 = vrcp.f32 %v5850_v10 }
0x11ea   : > { %v6268_v58 = vpop.f32.mrf.mxu1 }
0x11eb   : > { %v12937_v12 = vmul.f32 0.17677669, %v6268_v58 }
0x11ed   : > { %v6465_v20 = vsel %vm1724_vm6, %v12937_v12, -inf  ;;  %v12976_v53 = vpop.f32.mrf.mxu3 }
0x11ee   : > { %6466 = vmax.xlane.f32.xlu0 %v6465_v20  ;;  %14063 = vst [vmem:[#allocation65_spill] sm:$0xff] %v12976_v53 }
0x11ef   : > { %v9426_v41 = vpop.eup %9425 }
0x11f0   : > { %v5884_v8 = vmul.f32 %v9426_v41, %v12891_v22  ;;  %v6324_v22 = vunpack.c.l.b16 %v6237_v32 }
0x11f2   : > { %v5900_v3 = vpack.c.bf16 %v5884_v8, %v5884_v8 }
0x11f4   : > { %v6079_v13 = vunpack.c.l.b16 %v5900_v3 }
0x11f5   : > { %v12942_v33 = vpop.f32.mrf.mxu2 }
0x11f6   : > { %14061 = vst [vmem:[#allocation73_spill] sm:$0xff] %v12942_v33  ;;  %v6081_v21 = vpack.c.b16 %v6080_v59, %v6079_v13 }
0x11f8   : > { %8701 = vmatmul.msk.bf16.vlgmr.msra.gmra.mxu0 %vm1724_vm6, %v6081_v21 }
0x11fd   : > { %v12945_v30 = vpop.f32.mrf.mxu2 }
0x11fe   : > { %14062 = vst [vmem:[#allocation56_spill] sm:$0xff] %v12945_v30 }
0x1200   : > { %v6211_v6 = vpop.permute.xlu1 %6210 }
0x1201   : > { %v6236_v55 = vrot.slane %v6211_v6, 4 }
0x1203   : > { %v6323_v10 = vunpack.c.l.b16 %v6236_v55  ;;  %v6462_v55 = vsel %vm1724_vm6, %v6446_v27, -inf }
0x1205   : > { %v6325_v57 = vpack.c.b16 %v6324_v22, %v6323_v10  ;;  %v6291_v58 = vpop.f32.mrf.mxu2 }
0x1206   : > { %v12948_v41 = vmul.f32 0.17677669, %v6291_v58 }
0x1207   : > { %v6330_v20 = vsel %vm1491_vm4, %v6325_v57, 0  ;;  %v12978_v57 = vpop.f32.mrf.mxu3 }
0x1208   : > { %v6422_v4 = vpop.permute.xlu1 %6421  ;;  %6339 = vmatpush.bf16.xpose.msrb.mxu0 %v6330_v20  ;;  %v6468_v16 = vsel %vm1724_vm6, %v12948_v41, -inf  ;;  %14064 = vst [vmem:[#allocation40_spill] sm:$0xff] %v12978_v57 }
0x1209   : > { %6469 = vmax.xlane.f32.xlu1 %v6468_v16 }
0x120b   : > { %v6366_v2 = vpop.f32.mrf.mxu1 }
0x120c   : > { %v12954_v8 = vmul.f32 0.17677669, %v6366_v2 }
0x120d   : > { %v6293_v3 = vpop.f32.mrf.mxu2 }
0x120e   : > { %v6449_v59 = vmul.f32 0.17677669, %v6293_v3  ;;  %v6486_v13 = vsel %vm1724_vm6, %v12954_v8, -inf }
0x120f   : > { %6487 = vmax.xlane.f32.xlu0 %v6486_v13  ;;  %8705 = vmatmul.msk.bf16.vlgmr.msrb.gmra.mxu0 %vm1491_vm4, %v12916_v35 }
0x1210   : > { %6439 = vmatpush.bf16.xpose.msra.mxu0 %v6430_v17  ;;  %v6660_v21 = vpop.permute.xlu1 %6659  ;;  %v6471_v54 = vsel %vm1724_vm6, %v6449_v59, -inf }
0x1211   : > { %6472 = vmax.xlane.f32.xlu2 %v6471_v54  ;;  %6672 = vmatpush.bf16.msra.mxu1 %v6660_v21  ;;  %v12988_v21 = vpop.f32.mrf.mxu0 }
0x1212   : > { %14067 = vst [vmem:[#allocation54_spill] sm:$0xff] %v12988_v21 }
0x1213   : > { %v6368_v49 = vpop.f32.mrf.mxu1 }
0x1214   : > { %v12967_v35 = vmul.f32 0.17677669, %v6368_v49 }
0x1215   : > { %6772 = vmatpush.bf16.msrb.mxu1 %v12912_v60  ;;  %v6391_v32 = vpop.f32.mrf.mxu2 }
0x1216   : > { %v12962_v25 = vmul.f32 0.17677669, %v6391_v32  ;;  %v6489_v26 = vsel %vm1724_vm6, %v12967_v35, -inf }
0x1218   : > { %v6492_v6 = vsel %vm1724_vm6, %v12962_v25, -inf }
0x1219   : > { %6493 = vmax.xlane.f32.xlu1 %v6492_v6  ;;  %6463 = vmax.xlane.f32.xlu2 %v6462_v55  ;;  %v12990_v54 = vpop.f32.mrf.mxu0  ;;  %v12994_v6 = vpop.permute.xlu2 %6950 }
0x121a   : > { %14068 = vst [vmem:[#allocation51_spill] sm:$0xff] %v12990_v54 }
0x121d   : > { %v6393_v22 = vpop.f32.mrf.mxu2 }
0x121e   : > { %v12969_v10 = vmul.f32 0.17677669, %v6393_v22 }
0x121f   : > { %8709 = vmatmul.msk.bf16.vlgmr.msra.gmra.mxu0 %vm1491_vm4, %v6422_v4 }
0x1220   : > { %v6495_v60 = vsel %vm1724_vm6, %v12969_v10, -inf }
0x1221   : > { %6496 = vmax.xlane.f32.xlu2 %v6495_v60  ;;  %6490 = vmax.xlane.f32.xlu1 %v6489_v26 }
0x1238   : > { %v12980_v58 = vpop.f32.mrf.mxu3 }
0x1239   : > { %14065 = vst [vmem:[#allocation38_spill] sm:$0xff] %v12980_v58 }
0x1240   : > { %v12982_v20 = vpop.f32.mrf.mxu3 }
0x1241   : > { %14066 = vst [vmem:[#allocation35_spill] sm:$0xff] %v12982_v20 }
0x1248   : > { %v6316_v16 = vpop.f32.mrf.mxu3 }
0x1250   : > { %v6318_v17 = vpop.f32.mrf.mxu3 }
0x1258   : > { %v6416_v2 = vpop.f32.mrf.mxu3 }
0x1260   : > { %v6418_v4 = vpop.f32.mrf.mxu3 }
0x1261   : > { %v12984_v3 = vmul.f32 0.17677669, %v6418_v4 }
0x1263   : > { %v6501_v13 = vsel %vm1724_vm6, %v12984_v3, -inf }
0x1264   : > { %6502 = vmax.xlane.f32.xlu1 %v6501_v13 }
0x1275   : > { %v12992_v32 = vpop.f32.mrf.mxu0 }
0x1276   : > { %14069 = vst [vmem:[#allocation60_spill] sm:$0xff] %v12992_v32 }
0x127d   : > { %v12996_v55 = vpop.f32.mrf.mxu0 }
0x127e   : > { %14070 = vst [vmem:[#allocation59_spill] sm:$0xff] %v12996_v55 }
0x1284   : > { %v6473_v49 = vpop.xlane.xlu2 %6472 }
0x1285   : > { %v6513_v22 = vsub.f32 %v6449_v59, %v6473_v49  ;;  %v13006_v59 = vmul.f32 0.17677669, %v6316_v16  ;;  %v13020_v16 = vmul.f32 0.17677669, %v6318_v17 }
0x1287   : > { %v6532_v60 = vmul.f32 1.442695, %v6513_v22 }
0x1289   : > { %9427 = vpow2.f32 %v6532_v60 }
0x128c   : > { %v6341_v26 = vpop.f32.mrf.mxu0  ;;  %v6464_v20 = vpop.xlane.xlu2 %6463 }
0x128d   : > { %v12998_v4 = vmul.f32 0.17677669, %v6341_v26  ;;  %v6510_v30 = vsub.f32 %v6446_v27, %v6464_v20  ;;  %v6474_v27 = vsel %vm1724_vm6, %v13006_v59, -inf  ;;  %v6477_v26 = vsel %vm1724_vm6, %v13020_v16, -inf }
0x128f   : > { %v13000_v13 = vpop.eup %9427  ;;  %v6480_v56 = vsel %vm1724_vm6, %v12998_v4, -inf  ;;  %v6526_v54 = vmul.f32 1.442695, %v6510_v30  ;;  %v13018_v30 = vpop.permute.xlu1 %6954 }
0x1290   : > { %6481 = vmax.xlane.f32.xlu2 %v6480_v56  ;;  %v6567_v32 = vsel %vm1724_vm6, %v13000_v13, 0.0 }
0x1291   : > { %6568 = vadd.xlane.f32.xlu1 %v6567_v32  ;;  %9429 = vpow2.f32 %v6526_v54 }
0x1294   : > { %v6343_v49 = vpop.f32.mrf.mxu0 }
0x1295   : > { %v13008_v22 = vmul.f32 0.17677669, %v6343_v49 }
0x1297   : > { %v6483_v20 = vsel %vm1724_vm6, %v13008_v22, -inf  ;;  %v13014_v60 = vpop.eup %9429 }
0x1298   : > { %6475 = vmax.xlane.f32.xlu2 %v6474_v27  ;;  %6484 = vmax.xlane.f32.xlu0 %v6483_v20  ;;  %v6558_v56 = vsel %vm1724_vm6, %v13014_v60, 0.0  ;;  %v13028_v27 = vmul.f32 0.17677669, %v6416_v2  ;;  %v6470_v20 = vpop.xlane.xlu1 %6469 }
0x1299   : > { %6559 = vadd.xlane.f32.xlu1 %v6558_v56  ;;  %v6512_v56 = vsub.f32 %v12948_v41, %v6470_v20  ;;  %v13048_v20 = vpop.permute.xlu0 %6952 }
0x129a   : > { %v6498_v17 = vsel %vm1724_vm6, %v13028_v27, -inf }
0x129c   : > { %v6441_v54 = vpop.f32.mrf.mxu0 }
0x129d   : > { %v13022_v32 = vmul.f32 0.17677669, %v6441_v54  ;;  %v6530_v54 = vmul.f32 1.442695, %v6512_v56 }
0x129f   : > { %v6504_v49 = vsel %vm1724_vm6, %v13022_v32, -inf  ;;  %9431 = vpow2.f32 %v6530_v54 }
0x12a0   : > { %6478 = vmax.xlane.f32.xlu0 %v6477_v26  ;;  %6505 = vmax.xlane.f32.xlu2 %v6504_v49  ;;  %v14071_v26 = vld [vmem:[#allocation22_spill] sm:$0xff] }
0x12a1   : > { %v6467_v56 = vpop.xlane.xlu0 %6466 }
0x12a4   : > { %v6443_v55 = vpop.f32.mrf.mxu0 }
0x12a5   : > { %v13033_v58 = vmul.f32 0.17677669, %v6443_v55  ;;  %v13039_v2 = vpop.eup %9431  ;;  %v6494_v55 = vpop.xlane.xlu1 %6493 }
0x12a6   : > { %v6564_v41 = vsel %vm1724_vm6, %v13039_v2, 0.0  ;;  %v6520_v49 = vsub.f32 %v12962_v25, %v6494_v55 }
0x12a7   : > { %v6507_v33 = vsel %vm1724_vm6, %v13033_v58, -inf }
0x12a8   : > { %6499 = vmax.xlane.f32.xlu0 %v6498_v17  ;;  %v6511_v17 = vsub.f32 %v12937_v12, %v6467_v56 }
0x12b0   : > { %6508 = vmax.xlane.f32.xlu0 %v6507_v33  ;;  %v6546_v33 = vmul.f32 1.442695, %v6520_v49  ;;  %v6497_v49 = vpop.xlane.xlu2 %6496 }
0x12b1   : > { %v6521_v12 = vsub.f32 %v12969_v10, %v6497_v49  ;;  %v6491_v10 = vpop.xlane.xlu1 %6490 }
0x12b2   : > { %6956 = vrot.lane.b32.xlu1 %v14071_v26, %s9667_s6  ;;  %9433 = vpow2.f32 %v6546_v33  ;;  %v6528_v26 = vmul.f32 1.442695, %v6511_v17  ;;  %v6519_v44 = vsub.f32 %v12967_v35, %v6491_v10 }
0x12b3   : > { %v6548_v56 = vmul.f32 1.442695, %v6521_v12 }
0x12b4   : > { %9435 = vpow2.f32 %v6528_v26 }
0x12b8   : > { %6809 = vrot.lane.b32.xlu2 %v12201_v37, %s9666_s5  ;;  %6565 = vadd.xlane.f32.xlu0 %v6564_v41  ;;  %v13055_v54 = vpop.eup %9433 }
0x12b9   : > { %v6588_v25 = vsel %vm1724_vm6, %v13055_v54, 0.0 }
0x12ba   : > { %v13060_v55 = vpop.eup %9435 }
0x12c0   : > { %6958 = vrot.lane.b32.xlu2 %v14031_v45, %s9667_s6  ;;  %v6488_v45 = vpop.xlane.xlu0 %6487 }
0x12c1   : > { %v6518_v41 = vsub.f32 %v12954_v8, %v6488_v45 }
0x12cc   : > { %6998 = vrot.lane.b32.xlu0 %v14035_v43, %s9667_s6  ;;  %v6542_v43 = vmul.f32 1.442695, %v6518_v41 }
0x12ce   : > { %9437 = vpow2.f32 %v6542_v43 }
0x12cf   : > { %9439 = vpow2.f32 %v6548_v56 }
0x12d4   : > { %7023 = vrot.lane.b32.xlu0 %v14030_v18, %s9667_s6  ;;  %v6561_v18 = vsel %vm1724_vm6, %v13060_v55, 0.0  ;;  %v13065_v33 = vpop.eup %9437 }
0x12d5   : > { %v6582_v17 = vsel %vm1724_vm6, %v13065_v33, 0.0  ;;  %v13069_v8 = vpop.eup %9439 }
0x12d6   : > { %v6591_v26 = vsel %vm1724_vm6, %v13069_v8, 0.0 }
0x12dc   : > { %6589 = vadd.xlane.f32.xlu1 %v6588_v25 }
0x12e9   : > { %6562 = vadd.xlane.f32.xlu2 %v6561_v18 }
0x12f1   : > { %6583 = vadd.xlane.f32.xlu2 %v6582_v17 }
0x12fe   : > { %6592 = vadd.xlane.f32.xlu0 %v6591_v26 }
0x1303   : > { %v6482_v45 = vpop.xlane.xlu2 %6481 }
0x1304   : > { %v6516_v25 = vsub.f32 %v12998_v4, %v6482_v45  ;;  %v6503_v4 = vpop.xlane.xlu1 %6502  ;;  %v6544_v45 = vmul.f32 1.442695, %v6519_v44 }
0x1306   : > { %v6538_v41 = vmul.f32 1.442695, %v6516_v25 }
0x1308   : > { %9441 = vpow2.f32 %v6538_v41 }
0x130b   : > { %v6485_v43 = vpop.xlane.xlu0 %6484  ;;  %v6476_v18 = vpop.xlane.xlu2 %6475 }
0x130c   : > { %v6517_v49 = vsub.f32 %v13008_v22, %v6485_v43  ;;  %v6514_v12 = vsub.f32 %v13006_v59, %v6476_v18  ;;  %v6569_v44 = vpop.xlane.xlu1 %6568 }
0x130e   : > { %v13076_v17 = vpop.eup %9441  ;;  %v6540_v56 = vmul.f32 1.442695, %v6517_v49  ;;  %v6534_v5 = vmul.f32 1.442695, %v6514_v12 }
0x130f   : > { %v6576_v26 = vsel %vm1724_vm6, %v13076_v17, 0.0 }
0x1310   : > { %9443 = vpow2.f32 %v6540_v56  ;;  %6577 = vadd.xlane.f32.xlu2 %v6576_v26 }
0x1311   : > { %9445 = vpow2.f32 %v6534_v5 }
0x1312   : > { %9447 = vpow2.f32 %v6544_v45 }
0x1313   : > { %v6479_v25 = vpop.xlane.xlu0 %6478  ;;  %v6506_v41 = vpop.xlane.xlu2 %6505 }
0x1314   : > { %v6524_v22 = vsub.f32 %v13022_v32, %v6506_v41  ;;  %v6515_v35 = vsub.f32 %v13020_v16, %v6479_v25  ;;  %v6523_v25 = vsub.f32 %v12984_v3, %v6503_v4 }
0x1316   : > { %v13082_v43 = vpop.eup %9443  ;;  %v6554_v59 = vmul.f32 1.442695, %v6524_v22  ;;  %v6536_v49 = vmul.f32 1.442695, %v6515_v35  ;;  %v6560_v35 = vpop.xlane.xlu1 %6559 }
0x1317   : > { %v13084_v18 = vpop.eup %9445  ;;  %v6579_v10 = vsel %vm1724_vm6, %v13082_v43, 0.0 }
0x1318   : > { %6580 = vadd.xlane.f32.xlu1 %v6579_v10  ;;  %v6570_v5 = vsel %vm1724_vm6, %v13084_v18, 0.0  ;;  %9449 = vpow2.f32 %v6554_v59  ;;  %v13092_v26 = vpop.eup %9447  ;;  %v6552_v59 = vmul.f32 1.442695, %v6523_v25 }
0x1319   : > { %6571 = vadd.xlane.f32.xlu0 %v6570_v5  ;;  %9451 = vpow2.f32 %v6536_v49  ;;  %v6585_v41 = vsel %vm1724_vm6, %v13092_v26, 0.0 }
0x131b   : > { %v6500_v32 = vpop.xlane.xlu0 %6499  ;;  %v6810_v12 = vpop.permute.xlu2 %6809 }
0x131c   : > { %v6522_v56 = vsub.f32 %v13028_v27, %v6500_v32  ;;  %6822 = vmatpush.bf16.msrb.mxu3 %v6810_v12 }
0x131e   : > { %v6550_v45 = vmul.f32 1.442695, %v6522_v56  ;;  %v13094_v16 = vpop.eup %9449 }
0x131f   : > { %v6600_v22 = vsel %vm1724_vm6, %v13094_v16, 0.0  ;;  %v13101_v10 = vpop.eup %9451 }
0x1320   : > { %9453 = vpow2.f32 %v6550_v45  ;;  %6601 = vadd.xlane.f32.xlu1 %v6600_v22  ;;  %v6573_v4 = vsel %vm1724_vm6, %v13101_v10, 0.0 }
0x1321   : > { %6586 = vadd.xlane.f32.xlu0 %v6585_v41  ;;  %9455 = vrcp.f32 %v6569_v44  ;;  %v6984_v41 = vrot.slane %v13018_v30, 4 }
0x1322   : > { %9457 = vpow2.f32 %v6552_v59 }
0x1323   : > { %v6509_v27 = vpop.xlane.xlu0 %6508  ;;  %v7025_v21 = vunpack.c.l.b16 %v6984_v41 }
0x1324   : > { %v6957_v12 = vpop.permute.xlu1 %6956 }
0x1325   : > { %v6985_v25 = vrot.slane %v6957_v12, 4 }
0x1326   : > { %v13103_v5 = vpop.eup %9453 }
0x1327   : > { %v6594_v3 = vsel %vm1724_vm6, %v13103_v5, 0.0  ;;  %v9456_v32 = vpop.eup %9455 }
0x1328   : > { %6595 = vadd.xlane.f32.xlu2 %v6594_v3  ;;  %v13109_v56 = vpop.eup %9457  ;;  %v6625_v45 = vmul.f32 %v9456_v32, %v13000_v13  ;;  %v7026_v3 = vunpack.c.l.b16 %v6985_v25 }
0x1329   : > { %6574 = vadd.xlane.f32.xlu0 %v6573_v4  ;;  %v6597_v44 = vsel %vm1724_vm6, %v13109_v56, 0.0 }
0x132a   : > { %v6641_v59 = vpack.c.bf16 %v6625_v45, %v6625_v45 }
0x132b   : > { %v6566_v49 = vpop.xlane.xlu0 %6565 }
0x132c   : > { %9459 = vrcp.f32 %v6566_v49  ;;  %v6682_v53 = vunpack.c.l.b16 %v6641_v59  ;;  %v7027_v49 = vpack.c.b16 %v7026_v3, %v7025_v21 }
0x132d   : > { %9461 = vrcp.f32 %v6560_v35 }
0x132e   : > { %v7032_v13 = vsel %vm1491_vm4, %v7027_v49, 0 }
0x1331   : > { %6598 = vadd.xlane.f32.xlu0 %v6597_v44 }
0x1332   : > { %v9460_v22 = vpop.eup %9459 }
0x1333   : > { %v6624_v4 = vmul.f32 %v9460_v22, %v13039_v2 }
0x1335   : > { %v6640_v57 = vpack.c.bf16 %v6624_v4, %v6624_v4 }
0x1337   : > { %v6681_v39 = vunpack.c.l.b16 %v6640_v57 }
0x1339   : > { %v6683_v19 = vpack.c.b16 %v6682_v53, %v6681_v39  ;;  %6834 = vrot.lane.b32.xlu1 %v12425_v46, %s9666_s5 }
0x133b   : > { %8711 = vmatmul.msk.bf16.vlgmr.msra.gmra.mxu2 %vm1724_vm6, %v6683_v19  ;;  %v13134_v19 = vpop.permute.xlu2 %6958 }
0x133c   : > { %7041 = vmatpush.bf16.xpose.msra.mxu2 %v7032_v13 }
0x1340   : > { %6734 = vrot.lane.b32.xlu2 %v14039_v50, %s9666_s5 }
0x1341   : > { %6966 = vrot.lane.b32.xlu1 %v14016_v62, %s9667_s6 }
0x1345   : > { %6960 = vrot.lane.b32.xlu0 %v14032_v61, %s9667_s6  ;;  %v9462_v61 = vpop.eup %9461 }
0x1348   : > { %7048 = vrot.lane.b32.xlu2 %v14051_v0, %s9667_s6  ;;  %v6525_v0 = vsub.f32 %v13033_v58, %v6509_v27 }
0x1349   : > { %6970 = vrot.lane.b32.xlu1 %v14033_v63, %s9667_s6  ;;  %v13141_v63 = vpop.permute.xlu0 %6998 }
0x134a   : > { %v6556_v39 = vmul.f32 1.442695, %v6525_v0 }
0x134f   : > { %v6590_v27 = vpop.xlane.xlu1 %6589 }
0x1350   : > { %6962 = vrot.lane.b32.xlu2 %v14054_v34, %s9667_s6  ;;  %v6983_v34 = vrot.slane %v13048_v20, 4 }
0x1351   : > { %7123 = vrot.lane.b32.xlu1 %v14038_v29, %s9667_s6  ;;  %v6622_v29 = vmul.f32 %v9462_v61, %v13014_v60 }
0x1352   : > { %v7001_v53 = vunpack.c.l.b16 %v6983_v34 }
0x1353   : > { %v6638_v57 = vpack.c.bf16 %v6622_v29, %v6622_v29 }
0x1355   : > { %v6656_v20 = vunpack.c.l.b16 %v6638_v57 }
0x1358   : > { %6964 = vrot.lane.b32.xlu2 %v14045_v42, %s9667_s6  ;;  %v6982_v42 = vrot.slane %v12994_v6, 4 }
0x1359   : > { %6976 = vrot.lane.b32.xlu1 %v14041_v15, %s9667_s6 }
0x135a   : > { %v7000_v21 = vunpack.c.l.b16 %v6982_v42 }
0x135c   : > { %v6563_v62 = vpop.xlane.xlu2 %6562  ;;  %v7002_v2 = vpack.c.b16 %v7001_v53, %v7000_v21 }
0x135d   : > { %9463 = vrcp.f32 %v6563_v62 }
0x135e   : > { %9465 = vpow2.f32 %v6556_v39 }
0x135f   : > { %9467 = vrcp.f32 %v6590_v27 }
0x1360   : > { %7073 = vrot.lane.b32.xlu2 %v14046_v47, %s9667_s6  ;;  %v7024_v47 = vpop.permute.xlu0 %7023 }
0x1361   : > { %6980 = vrot.lane.b32.xlu1 %v14050_v51, %s9667_s6  ;;  %v7007_v51 = vsel %vm1491_vm4, %v7002_v2, 0 }
0x1363   : > { %v9464_v15 = vpop.eup %9463 }
0x1364   : > { %v6623_v58 = vmul.f32 %v9464_v15, %v13060_v55  ;;  %v13153_v35 = vpop.eup %9465 }
0x1365   : > { %v6603_v55 = vsel %vm1724_vm6, %v13153_v35, 0.0 }
0x1366   : > { %v6639_v30 = vpack.c.bf16 %v6623_v58, %v6623_v58 }
0x1368   : > { %v6657_v60 = vunpack.c.l.b16 %v6639_v30  ;;  %6968 = vrot.lane.b32.xlu2 %v14037_v23, %s9667_s6  ;;  %v9468_v23 = vpop.eup %9467 }
0x1369   : > { %v6632_v12 = vmul.f32 %v9468_v23, %v13055_v54 }
0x136a   : > { %v6658_v6 = vpack.c.b16 %v6657_v60, %v6656_v20 }
0x136b   : > { %v6648_v25 = vpack.c.bf16 %v6632_v12, %v6632_v12 }
0x136c   : > { %8710 = vmatmul.msk.bf16.vlgmr.msra.gmra.mxu1 %vm1724_vm6, %v6658_v6 }
0x136d   : > { %7016 = vmatpush.bf16.xpose.msra.mxu1 %v7007_v51  ;;  %v6781_v22 = vunpack.c.l.b16 %v6648_v25 }
0x136f   : > { %6604 = vadd.xlane.f32.xlu0 %v6603_v55 }
0x1370   : > { %7098 = vrot.lane.b32.xlu2 %v14042_v40, %s9667_s6  ;;  %v6584_v40 = vpop.xlane.xlu2 %6583 }
0x1371   : > { %v6593_v32 = vpop.xlane.xlu0 %6592 }
0x1372   : > { %9469 = vrcp.f32 %v6593_v32 }
0x1373   : > { %9471 = vrcp.f32 %v6584_v40 }
0x1378   : > { %v9470_v45 = vpop.eup %9469  ;;  %6974 = vrot.lane.b32.xlu2 %v14040_v31, %s9667_s6 }
0x1379   : > { %v6633_v44 = vmul.f32 %v9470_v45, %v13069_v8  ;;  %v9472_v4 = vpop.eup %9471 }
0x137a   : > { %v6630_v13 = vmul.f32 %v9472_v4, %v13065_v33 }
0x137b   : > { %v6649_v41 = vpack.c.bf16 %v6633_v44, %v6633_v44 }
0x137c   : > { %v6646_v0 = vpack.c.bf16 %v6630_v13, %v6630_v13 }
0x137d   : > { %v6782_v59 = vunpack.c.l.b16 %v6649_v41 }
0x137e   : > { %v6756_v57 = vunpack.c.l.b16 %v6646_v0 }
0x137f   : > { %v6783_v3 = vpack.c.b16 %v6782_v59, %v6781_v22  ;;  %v6986_v59 = vrot.slane %v13134_v19, 4 }
0x1380   : > { %7148 = vrot.lane.b32.xlu2 %v14044_v36, %s9667_s6 }
0x1381   : > { %8715 = vmatmul.msk.bf16.vlgmr.msrb.gmra.mxu2 %vm1724_vm6, %v6783_v3 }
0x1383   : > { %6972 = vrot.lane.b32.xlu0 %v14034_v7, %s9667_s6  ;;  %v6578_v8 = vpop.xlane.xlu2 %6577 }
0x1388   : > { %7173 = vrot.lane.b32.xlu2 %v14055_v38, %s9667_s6 }
0x138b   : > { %6978 = vrot.lane.b32.xlu0 %v14048_v28, %s9667_s6  ;;  %v6581_v54 = vpop.xlane.xlu1 %6580 }
0x138c   : > { %v6572_v31 = vpop.xlane.xlu0 %6571  ;;  %9473 = vrcp.f32 %v6581_v54 }
0x138d   : > { %9475 = vrcp.f32 %v6578_v8 }
0x1391   : > { %8719 = vmatmul.msk.bf16.vlgmr.msra.gmra.mxu2 %vm1491_vm4, %v7024_v47 }
0x1392   : > { %v9474_v49 = vpop.eup %9473 }
0x1393   : > { %v9476_v7 = vpop.eup %9475  ;;  %v6629_v38 = vmul.f32 %v9474_v49, %v13082_v43  ;;  %v13180_v60 = vpop.xlane.xlu1 %6601 }
0x1394   : > { %v6587_v36 = vpop.xlane.xlu0 %6586  ;;  %v6628_v28 = vmul.f32 %v9476_v7, %v13076_v17 }
0x1395   : > { %9477 = vrcp.f32 %v6587_v36  ;;  %v6645_v42 = vpack.c.bf16 %v6629_v38, %v6629_v38  ;;  %v7050_v36 = vunpack.c.l.b16 %v6986_v59 }
0x1396   : > { %9479 = vrcp.f32 %v6572_v31  ;;  %v6644_v53 = vpack.c.bf16 %v6628_v28, %v6628_v28 }
0x1397   : > { %v6732_v33 = vunpack.c.l.b16 %v6645_v42 }
0x1398   : > { %v6731_v2 = vunpack.c.l.b16 %v6644_v53 }
0x139a   : > { %v6733_v27 = vpack.c.b16 %v6732_v33, %v6731_v2 }
0x139b   : > { %v9478_v62 = vpop.eup %9477  ;;  %v6596_v61 = vpop.xlane.xlu2 %6595 }
0x139c   : > { %v6631_v34 = vmul.f32 %v9478_v62, %v13092_v26  ;;  %v6575_v29 = vpop.xlane.xlu0 %6574  ;;  %v9480_v39 = vpop.eup %9479 }
0x139d   : > { %9481 = vrcp.f32 %v6575_v29  ;;  %v6626_v58 = vmul.f32 %v9480_v39, %v13084_v18 }
0x139e   : > { %v6647_v15 = vpack.c.bf16 %v6631_v34, %v6631_v34 }
0x139f   : > { %v6642_v17 = vpack.c.bf16 %v6626_v58, %v6626_v58 }
0x13a0   : > { %v6757_v21 = vunpack.c.l.b16 %v6647_v15 }
0x13a1   : > { %v6706_v18 = vunpack.c.l.b16 %v6642_v17 }
0x13a2   : > { %v6758_v30 = vpack.c.b16 %v6757_v21, %v6756_v57 }
0x13a3   : > { %v9482_v43 = vpop.eup %9481  ;;  %v6735_v20 = vpop.permute.xlu2 %6734 }
0x13a4   : > { %v6627_v26 = vmul.f32 %v9482_v43, %v13101_v10  ;;  %v6599_v47 = vpop.xlane.xlu0 %6598  ;;  %8714 = vmatmul.msk.bf16.vlgmr.msrb.gmra.mxu1 %vm1724_vm6, %v6758_v30  ;;  %6747 = vmatpush.bf16.msrb.mxu0 %v6735_v20 }
0x13a5   : > { %9483 = vrcp.f32 %v6599_v47 }
0x13a6   : > { %v6643_v6 = vpack.c.bf16 %v6627_v26, %v6627_v26  ;;  %9485 = vrcp.f32 %v6596_v61 }
0x13a7   : > { %8713 = vmatmul.msk.bf16.vlgmr.msrb.gmra.mxu0 %vm1724_vm6, %v6733_v27  ;;  %9487 = vrcp.f32 %v13180_v60 }
0x13a8   : > { %v6707_v51 = vunpack.c.l.b16 %v6643_v6 }
0x13aa   : > { %v6708_v55 = vpack.c.b16 %v6707_v51, %v6706_v18 }
0x13ab   : > { %v9484_v32 = vpop.eup %9483  ;;  %v7049_v23 = vpop.permute.xlu2 %7048 }
0x13ac   : > { %8712 = vmatmul.msk.bf16.vlgmr.msra.gmra.mxu3 %vm1724_vm6, %v6708_v55  ;;  %v6835_v12 = vpop.permute.xlu1 %6834  ;;  %v9486_v45 = vpop.eup %9485  ;;  %v6635_v10 = vmul.f32 %v9484_v32, %v13109_v56 }
0x13ad   : > { %6847 = vmatpush.bf16.msra.mxu0 %v6835_v12  ;;  %v6634_v25 = vmul.f32 %v9486_v45, %v13103_v5  ;;  %v9488_v6 = vpop.eup %9487 }
0x13ae   : > { %v6651_v44 = vpack.c.bf16 %v6635_v10, %v6635_v10  ;;  %v6636_v18 = vmul.f32 %v9488_v6, %v13094_v16 }
0x13af   : > { %v6650_v22 = vpack.c.bf16 %v6634_v25, %v6634_v25 }
0x13b0   : > { %v6807_v3 = vunpack.c.l.b16 %v6651_v44  ;;  %v6652_v32 = vpack.c.bf16 %v6636_v18, %v6636_v18 }
0x13b1   : > { %v6806_v31 = vunpack.c.l.b16 %v6650_v22 }
0x13b2   : > { %v6831_v60 = vunpack.c.l.b16 %v6652_v32 }
0x13b3   : > { %v6963_v41 = vpop.permute.xlu2 %6962  ;;  %v6808_v4 = vpack.c.b16 %v6807_v3, %v6806_v31 }
0x13b4   : > { %8718 = vmatmul.msk.bf16.vlgmr.msra.gmra.mxu1 %vm1491_vm4, %v13141_v63  ;;  %v6967_v8 = vpop.permute.xlu1 %6966  ;;  %v6988_v49 = vrot.slane %v6963_v41, 4 }
0x13b5   : > { %v6990_v34 = vrot.slane %v6967_v8, 4 }
0x13b6   : > { %v7075_v38 = vunpack.c.l.b16 %v6988_v49 }
0x13b7   : > { %v6961_v40 = vpop.permute.xlu0 %6960  ;;  %v7100_v15 = vunpack.c.l.b16 %v6990_v34 }
0x13b8   : > { %v6987_v54 = vrot.slane %v6961_v40, 4 }
0x13ba   : > { %v7051_v7 = vunpack.c.l.b16 %v6987_v54 }
0x13bb   : > { %v6965_v56 = vpop.permute.xlu2 %6964 }
0x13bc   : > { %v7052_v13 = vpack.c.b16 %v7051_v7, %v7050_v36  ;;  %8716 = vmatmul.msk.bf16.vlgmr.msrb.gmra.mxu3 %vm1724_vm6, %v6808_v4  ;;  %v6989_v5 = vrot.slane %v6965_v56, 4  ;;  %v6971_v61 = vpop.permute.xlu1 %6970 }
0x13bd   : > { %v6992_v44 = vrot.slane %v6971_v61, 4 }
0x13be   : > { %v7076_v62 = vunpack.c.l.b16 %v6989_v5  ;;  %v7057_v63 = vsel %vm1491_vm4, %v7052_v13, 0  ;;  %v13202_v25 = vpop.f32.mrf.mxu2 }
0x13bf   : > { %7066 = vmatpush.bf16.xpose.msra.mxu3 %v7057_v63  ;;  %v7125_v59 = vunpack.c.l.b16 %v6992_v44 }
0x13c0   : > { %v7077_v19 = vpack.c.b16 %v7076_v62, %v7075_v38 }
0x13c2   : > { %v7082_v28 = vsel %vm1491_vm4, %v7077_v19, 0 }
0x13c3   : > { %7091 = vmatpush.bf16.xpose.msrb.mxu0 %v7082_v28  ;;  %v7074_v0 = vpop.permute.xlu2 %7073 }
0x13c4   : > { %v7124_v42 = vpop.permute.xlu1 %7123 }
0x13c6   : > { %v13205_v31 = vpop.f32.mrf.mxu2 }
0x13cb   : > { %v6969_v29 = vpop.permute.xlu2 %6968 }
0x13cc   : > { %8720 = vmatmul.msk.bf16.vlgmr.msra.gmra.mxu3 %vm1491_vm4, %v7049_v23  ;;  %v6991_v39 = vrot.slane %v6969_v29, 4  ;;  %v6977_v33 = vpop.permute.xlu1 %6976 }
0x13cd   : > { %v6995_v30 = vrot.slane %v6977_v33, 4 }
0x13ce   : > { %v7101_v53 = vunpack.c.l.b16 %v6991_v39 }
0x13cf   : > { %v7151_v20 = vunpack.c.l.b16 %v6995_v30 }
0x13d0   : > { %v7102_v57 = vpack.c.b16 %v7101_v53, %v7100_v15 }
0x13d2   : > { %v7107_v58 = vsel %vm1491_vm4, %v7102_v57, 0 }
0x13d3   : > { %7116 = vmatpush.bf16.xpose.msrb.mxu1 %v7107_v58  ;;  %v7099_v21 = vpop.permute.xlu2 %7098 }
0x13d4   : > { %v6981_v3 = vpop.permute.xlu1 %6980 }
0x13da   : > { %8722 = vmatmul.msk.bf16.vlgmr.msrb.gmra.mxu1 %vm1491_vm4, %v7099_v21 }
0x13db   : > { %v6975_v43 = vpop.permute.xlu2 %6974 }
0x13dc   : > { %v6994_v2 = vrot.slane %v6975_v43, 4 }
0x13de   : > { %v7150_v17 = vunpack.c.l.b16 %v6994_v2 }
0x13e0   : > { %v7152_v26 = vpack.c.b16 %v7151_v20, %v7150_v17 }
0x13e2   : > { %v6605_v47 = vpop.xlane.xlu0 %6604  ;;  %v7157_v27 = vsel %vm1491_vm4, %v7152_v26, 0 }
0x13e3   : > { %9489 = vrcp.f32 %v6605_v47  ;;  %7166 = vmatpush.bf16.xpose.msrb.mxu3 %v7157_v27  ;;  %v7149_v55 = vpop.permute.xlu2 %7148 }
0x13e9   : > { %v9490_v51 = vpop.eup %9489  ;;  %v13215_v38 = vpop.f32.mrf.mxu1 }
0x13ea   : > { %v6637_v23 = vmul.f32 %v9490_v51, %v13153_v35  ;;  %8724 = vmatmul.msk.bf16.vlgmr.msrb.gmra.mxu3 %vm1491_vm4, %v7149_v55  ;;  %v6997_v35 = vrot.slane %v6981_v3, 4 }
0x13eb   : > { %v7174_v62 = vpop.permute.xlu2 %7173 }
0x13ec   : > { %v6653_v12 = vpack.c.bf16 %v6637_v23, %v6637_v23  ;;  %v7176_v4 = vunpack.c.l.b16 %v6997_v35 }
0x13ee   : > { %v6832_v45 = vunpack.c.l.b16 %v6653_v12 }
0x13f0   : > { %v6833_v10 = vpack.c.b16 %v6832_v45, %v6831_v60 }
0x13f1   : > { %v13219_v61 = vpop.f32.mrf.mxu1 }
0x13f2   : > { %8717 = vmatmul.msk.bf16.vlgmr.msra.gmra.mxu0 %vm1724_vm6, %v6833_v10 }
0x13f5   : > { %v6973_v41 = vpop.permute.xlu0 %6972 }
0x13f6   : > { %v6993_v22 = vrot.slane %v6973_v41, 4 }
0x13f8   : > { %v7126_v16 = vunpack.c.l.b16 %v6993_v22 }
0x13fa   : > { %v7127_v40 = vpack.c.b16 %v7126_v16, %v7125_v59 }
0x13fc   : > { %v7132_v54 = vsel %vm1491_vm4, %v7127_v40, 0 }
0x13fd   : > { %v6979_v8 = vpop.permute.xlu0 %6978  ;;  %7141 = vmatpush.bf16.xpose.msrb.mxu2 %v7132_v54 }
0x13fe   : > { %v6996_v36 = vrot.slane %v6979_v8, 4 }
0x1400   : > { %v7175_v49 = vunpack.c.l.b16 %v6996_v36 }
0x1402   : > { %v7177_v7 = vpack.c.b16 %v7176_v4, %v7175_v49  ;;  %8721 = vmatmul.msk.bf16.vlgmr.msrb.gmra.mxu0 %vm1491_vm4, %v7074_v0 }
0x1404   : > { %8723 = vmatmul.msk.bf16.vlgmr.msrb.gmra.mxu2 %vm1491_vm4, %v7124_v42  ;;  %v13210_v56 = vpop.f32.mrf.mxu2  ;;  %v7182_v13 = vsel %vm1491_vm4, %v7177_v7, 0 }
0x1405   : > { %7191 = vmatpush.bf16.xpose.msra.mxu0 %v7182_v13 }
0x140c   : > { %v13213_v5 = vpop.f32.mrf.mxu2 }
0x1412   : > { %8725 = vmatmul.msk.bf16.vlgmr.msra.gmra.mxu0 %vm1491_vm4, %v7174_v62 }
0x1414   : > { %v7043_v63 = vpop.f32.mrf.mxu2 }
0x1415   : > { %v7200_v19 = vmul.f32 0.17677669, %v7043_v63 }
0x1417   : > { %v7220_v28 = vsel %vm1724_vm6, %v7200_v19, -inf }
0x1418   : > { %7221 = vmax.xlane.f32.xlu2 %v7220_v28 }
0x141c   : > { %v7045_v0 = vpop.f32.mrf.mxu2 }
0x141d   : > { %v7201_v34 = vmul.f32 0.17677669, %v7045_v0 }
0x141f   : > { %v7223_v29 = vsel %vm1724_vm6, %v7201_v34, -inf }
0x1420   : > { %7224 = vmax.xlane.f32.xlu0 %v7223_v29 }
0x1421   : > { %v13222_v39 = vpop.f32.mrf.mxu1 }
0x1424   : > { %v13246_v6 = vpop.f32.mrf.mxu0 }
0x1429   : > { %v13224_v42 = vpop.f32.mrf.mxu1 }
0x142c   : > { %v13248_v18 = vpop.f32.mrf.mxu0 }
0x142f   : > { %v13226_v15 = vpop.f32.mrf.mxu3 }
0x1431   : > { %v7018_v53 = vpop.f32.mrf.mxu1 }
0x1432   : > { %v13228_v57 = vmul.f32 0.17677669, %v7018_v53 }
0x1434   : > { %v7214_v58 = vsel %vm1724_vm6, %v13228_v57, -inf }
0x1435   : > { %7215 = vmax.xlane.f32.xlu0 %v7214_v58 }
0x1437   : > { %v13232_v21 = vpop.f32.mrf.mxu3 }
0x1439   : > { %v7020_v33 = vpop.f32.mrf.mxu1 }
0x143a   : > { %v13234_v30 = vmul.f32 0.17677669, %v7020_v33 }
0x143c   : > { %v7217_v43 = vsel %vm1724_vm6, %v13234_v30, -inf }
0x143d   : > { %7218 = vmax.xlane.f32.xlu1 %v7217_v43 }
0x143f   : > { %v13238_v2 = vpop.f32.mrf.mxu3 }
0x1447   : > { %v13240_v20 = vpop.f32.mrf.mxu3 }
0x144f   : > { %v7068_v17 = vpop.f32.mrf.mxu3 }
0x1450   : > { %v13274_v13 = vmul.f32 0.17677669, %v7068_v17 }
0x1452   : > { %v7226_v63 = vsel %vm1724_vm6, %v13274_v13, -inf }
0x1457   : > { %v7070_v26 = vpop.f32.mrf.mxu3  ;;  %v7118_v12 = vpop.f32.mrf.mxu1 }
0x1458   : > { %v13242_v47 = vmul.f32 0.17677669, %v7070_v26  ;;  %v13258_v45 = vmul.f32 0.17677669, %v7118_v12 }
0x145a   : > { %v7229_v27 = vsel %vm1724_vm6, %v13242_v47, -inf  ;;  %v7238_v22 = vsel %vm1724_vm6, %v13258_v45, -inf }
0x145b   : > { %7230 = vmax.xlane.f32.xlu2 %v7229_v27 }
0x145f   : > { %v7120_v59 = vpop.f32.mrf.mxu1 }
0x1460   : > { %v13266_v3 = vmul.f32 0.17677669, %v7120_v59 }
0x1462   : > { %v7241_v36 = vsel %vm1724_vm6, %v13266_v3, -inf }
0x146d   : > { %v7168_v29 = vpop.f32.mrf.mxu3 }
0x146f   : > { %v13250_v51 = vpop.f32.mrf.mxu0 }
0x1475   : > { %v7170_v26 = vpop.f32.mrf.mxu3 }
0x1477   : > { %v13252_v55 = vpop.f32.mrf.mxu0 }
0x147f   : > { %v7093_v32 = vpop.f32.mrf.mxu0 }
0x1480   : > { %v13254_v23 = vmul.f32 0.17677669, %v7093_v32  ;;  %v13293_v32 = vmul.f32 0.17677669, %v7170_v26 }
0x1482   : > { %v7232_v60 = vsel %vm1724_vm6, %v13254_v23, -inf }
0x1483   : > { %7233 = vmax.xlane.f32.xlu0 %v7232_v60  ;;  %v7253_v60 = vsel %vm1724_vm6, %v13293_v32, -inf }
0x1487   : > { %v7095_v10 = vpop.f32.mrf.mxu0  ;;  %v7143_v16 = vpop.f32.mrf.mxu2 }
0x1488   : > { %v13260_v44 = vmul.f32 0.17677669, %v7095_v10  ;;  %v13268_v40 = vmul.f32 0.17677669, %v7143_v16 }
0x148a   : > { %v7235_v41 = vsel %vm1724_vm6, %v13260_v44, -inf  ;;  %v7244_v8 = vsel %vm1724_vm6, %v13268_v40, -inf }
0x148b   : > { %7236 = vmax.xlane.f32.xlu1 %v7235_v41  ;;  %7239 = vmax.xlane.f32.xlu0 %v7238_v22  ;;  %v7222_v35 = vpop.xlane.xlu2 %7221 }
0x148c   : > { %v7264_v54 = vsub.f32 %v7200_v19, %v7222_v35 }
0x148e   : > { %v7282_v7 = vmul.f32 1.442695, %v7264_v54 }
0x148f   : > { %v7145_v53 = vpop.f32.mrf.mxu2  ;;  %v7193_v12 = vpop.f32.mrf.mxu0 }
0x1490   : > { %v13286_v58 = vmul.f32 0.17677669, %v7145_v53 }
0x1492   : > { %v7247_v17 = vsel %vm1724_vm6, %v13286_v58, -inf }
0x1493   : > { %7245 = vmax.xlane.f32.xlu0 %v7244_v8  ;;  %7242 = vmax.xlane.f32.xlu1 %v7241_v36  ;;  %v7225_v4 = vpop.xlane.xlu0 %7224 }
0x1494   : > { %v7265_v49 = vsub.f32 %v7201_v34, %v7225_v4 }
0x1496   : > { %v7284_v62 = vmul.f32 1.442695, %v7265_v49 }
0x1497   : > { %v7195_v22 = vpop.f32.mrf.mxu0 }
0x1498   : > { %9491 = vpow2.f32 %v7284_v62  ;;  %v13305_v16 = vmul.f32 0.17677669, %v7195_v22 }
0x1499   : > { %9493 = vpow2.f32 %v7282_v7 }
0x149a   : > { %v7259_v54 = vsel %vm1724_vm6, %v13305_v16, -inf }
0x149b   : > { %7227 = vmax.xlane.f32.xlu1 %v7226_v63 }
0x149e   : > { %v13278_v19 = vpop.eup %9491 }
0x149f   : > { %v13280_v28 = vpop.eup %9493  ;;  %v7319_v0 = vsel %vm1724_vm6, %v13278_v19, 0.0 }
0x14a0   : > { %7320 = vadd.xlane.f32.xlu2 %v7319_v0  ;;  %v7316_v34 = vsel %vm1724_vm6, %v13280_v28, 0.0 }
0x14a3   : > { %7317 = vadd.xlane.f32.xlu1 %v7316_v34 }
0x14a7   : > { %7436 = vrot.lane.b32.xlu0 %v14047_v11, %s9667_s6 }
0x14a8   : > { %v7216_v33 = vpop.xlane.xlu0 %7215 }
0x14a9   : > { %v7262_v43 = vsub.f32 %v13228_v57, %v7216_v33  ;;  %v13301_v57 = vmul.f32 0.17677669, %v7193_v12 }
0x14ab   : > { %v7278_v27 = vmul.f32 1.442695, %v7262_v43  ;;  %7248 = vmax.xlane.f32.xlu1 %v7247_v17  ;;  %v7256_v41 = vsel %vm1724_vm6, %v13301_v57, -inf }
0x14ad   : > { %9495 = vpow2.f32 %v7278_v27 }
0x14b0   : > { %v7219_v59 = vpop.xlane.xlu1 %7218 }
0x14b1   : > { %v7263_v35 = vsub.f32 %v13234_v30, %v7219_v59  ;;  %v13320_v30 = vmul.f32 0.17677669, %v7168_v29 }
0x14b3   : > { %v13297_v10 = vpop.eup %9495  ;;  %7254 = vmax.xlane.f32.xlu1 %v7253_v60  ;;  %v7280_v8 = vmul.f32 1.442695, %v7263_v35  ;;  %v7250_v49 = vsel %vm1724_vm6, %v13320_v30, -inf }
0x14b4   : > { %v7310_v11 = vsel %vm1724_vm6, %v13297_v10, 0.0 }
0x14b5   : > { %7311 = vadd.xlane.f32.xlu2 %v7310_v11  ;;  %9497 = vpow2.f32 %v7280_v8 }
0x14bb   : > { %7257 = vmax.xlane.f32.xlu1 %v7256_v41  ;;  %v13310_v36 = vpop.eup %9497 }
0x14bc   : > { %v7313_v4 = vsel %vm1724_vm6, %v13310_v36, 0.0 }
0x14c3   : > { %7260 = vmax.xlane.f32.xlu1 %v7259_v54 }
0x14cd   : > { %7411 = vrot.lane.b32.xlu2 %v12173_v52, %s9667_s6 }
0x14ce   : > { %v7231_v17 = vpop.xlane.xlu2 %7230 }
0x14cf   : > { %v7267_v60 = vsub.f32 %v13242_v47, %v7231_v17 }
0x14d1   : > { %7314 = vadd.xlane.f32.xlu0 %v7313_v4 }
0x14dc   : > { %7486 = vrot.lane.b32.xlu1 %v14039_v50, %s9667_s6 }
0x14e5   : > { %7461 = vrot.lane.b32.xlu0 %v11903_v48, %s9667_s6 }
0x14f6   : > { %v7234_v7 = vpop.xlane.xlu0 %7233  ;;  %7251 = vmax.xlane.f32.xlu2 %v7250_v49 }
0x14f7   : > { %v7268_v62 = vsub.f32 %v13254_v23, %v7234_v7 }
0x14f9   : > { %v7290_v52 = vmul.f32 1.442695, %v7268_v62 }
0x14fb   : > { %9499 = vpow2.f32 %v7290_v52 }
0x14fe   : > { %v7237_v63 = vpop.xlane.xlu1 %7236  ;;  %v7240_v0 = vpop.xlane.xlu0 %7239 }
0x14ff   : > { %v7269_v33 = vsub.f32 %v13260_v44, %v7237_v63  ;;  %v7288_v44 = vmul.f32 1.442695, %v7267_v60 }
0x1501   : > { %v13325_v34 = vpop.eup %9499  ;;  %v7292_v23 = vmul.f32 1.442695, %v7269_v33 }
0x1502   : > { %v7328_v50 = vsel %vm1724_vm6, %v13325_v34, 0.0 }
0x1506   : > { %v7246_v53 = vpop.xlane.xlu0 %7245  ;;  %v7243_v48 = vpop.xlane.xlu1 %7242  ;;  %7329 = vadd.xlane.f32.xlu1 %v7328_v50 }
0x1507   : > { %v7272_v29 = vsub.f32 %v13268_v40, %v7246_v53 }
0x1509   : > { %v7298_v43 = vmul.f32 1.442695, %v7272_v29  ;;  %v7270_v29 = vsub.f32 %v13258_v45, %v7240_v0 }
0x150b   : > { %9501 = vpow2.f32 %v7298_v43 }
0x150c   : > { %9503 = vpow2.f32 %v7292_v23 }
0x150e   : > { %v7228_v26 = vpop.xlane.xlu1 %7227 }
0x150f   : > { %v7266_v27 = vsub.f32 %v13274_v13, %v7228_v26  ;;  %v7294_v26 = vmul.f32 1.442695, %v7270_v29 }
0x1511   : > { %v13332_v12 = vpop.eup %9501  ;;  %v7286_v11 = vmul.f32 1.442695, %v7266_v27 }
0x1512   : > { %v7340_v41 = vsel %vm1724_vm6, %v13332_v12, 0.0  ;;  %v13337_v59 = vpop.eup %9503 }
0x1513   : > { %9505 = vpow2.f32 %v7286_v11  ;;  %7341 = vadd.xlane.f32.xlu0 %v7340_v41  ;;  %v7321_v40 = vpop.xlane.xlu2 %7320  ;;  %v7331_v47 = vsel %vm1724_vm6, %v13337_v59, 0.0 }
0x1514   : > { %9507 = vrcp.f32 %v7321_v40 }
0x1516   : > { %v7318_v22 = vpop.xlane.xlu1 %7317 }
0x1517   : > { %9509 = vrcp.f32 %v7318_v22 }
0x1518   : > { %9511 = vpow2.f32 %v7288_v44 }
0x1519   : > { %v13339_v35 = vpop.eup %9505  ;;  %v7437_v13 = vpop.permute.xlu0 %7436 }
0x151a   : > { %v9508_v54 = vpop.eup %9507  ;;  %7449 = vmatpush.bf16.msra.mxu2 %v7437_v13  ;;  %v7322_v8 = vsel %vm1724_vm6, %v13339_v35, 0.0 }
0x151b   : > { %v7377_v4 = vmul.f32 %v9508_v54, %v13278_v19  ;;  %7332 = vadd.xlane.f32.xlu0 %v7331_v47  ;;  %7323 = vadd.xlane.f32.xlu1 %v7322_v8 }
0x151d   : > { %v9510_v49 = vpop.eup %9509  ;;  %v7393_v7 = vpack.c.bf16 %v7377_v4, %v7377_v4 }
0x151e   : > { %v7376_v62 = vmul.f32 %v9510_v49, %v13280_v28  ;;  %v7249_v52 = vpop.xlane.xlu1 %7248  ;;  %v13347_v63 = vpop.eup %9511 }
0x151f   : > { %v7273_v50 = vsub.f32 %v13286_v58, %v7249_v52  ;;  %v7434_v43 = vunpack.c.l.b16 %v7393_v7  ;;  %v7325_v19 = vsel %vm1724_vm6, %v13347_v63, 0.0  ;;  %v7271_v58 = vsub.f32 %v13266_v3, %v7243_v48 }
0x1520   : > { %v7392_v53 = vpack.c.bf16 %v7376_v62, %v7376_v62 }
0x1521   : > { %v7300_v33 = vmul.f32 1.442695, %v7273_v50  ;;  %v7296_v0 = vmul.f32 1.442695, %v7271_v58 }
0x1522   : > { %v7433_v17 = vunpack.c.l.b16 %v7392_v53 }
0x1523   : > { %9513 = vpow2.f32 %v7300_v33  ;;  %7326 = vadd.xlane.f32.xlu1 %v7325_v19 }
0x1524   : > { %v7435_v23 = vpack.c.b16 %v7434_v43, %v7433_v17  ;;  %9515 = vpow2.f32 %v7294_v26 }
0x1525   : > { %9517 = vpow2.f32 %v7296_v0 }
0x1526   : > { %8727 = vmatmul.msk.bf16.vlgmr.msra.gmra.mxu2 %vm1724_vm6, %v7435_v23  ;;  %v7255_v41 = vpop.xlane.xlu1 %7254  ;;  %v6102_v23 = vpack.c.bf16 %v12922_v24, %v12922_v24  ;;  %v6855_v24 = vpack.c.bf16 %v13219_v61, %v13219_v61 }
0x1527   : > { %v7275_v29 = vsub.f32 %v13293_v32, %v7255_v41 }
0x1528   : > { %v7312_v28 = vpop.xlane.xlu2 %7311 }
0x1529   : > { %v13354_v27 = vpop.eup %9513  ;;  %9519 = vrcp.f32 %v7312_v28 }
0x152a   : > { %v7343_v45 = vsel %vm1724_vm6, %v13354_v27, 0.0  ;;  %v13359_v60 = vpop.eup %9515 }
0x152b   : > { %7344 = vadd.xlane.f32.xlu2 %v7343_v45  ;;  %v7334_v40 = vsel %vm1724_vm6, %v13359_v60, 0.0  ;;  %v13365_v44 = vpop.eup %9517  ;;  %v6103_v45 = vpack.c.bf16 %v12925_v1, %v12925_v1 }
0x152c   : > { %v7337_v3 = vsel %vm1724_vm6, %v13365_v44, 0.0 }
0x152e   : > { %v7258_v48 = vpop.xlane.xlu1 %7257 }
0x152f   : > { %7536 = vrot.lane.b32.xlu0 %v14028_v9, %s9667_s6  ;;  %v9520_v22 = vpop.eup %9519  ;;  %v7276_v54 = vsub.f32 %v13301_v57, %v7258_v48 }
0x1530   : > { %v7412_v11 = vpop.permute.xlu2 %7411  ;;  %v7374_v47 = vmul.f32 %v9520_v22, %v13297_v10  ;;  %v7304_v10 = vmul.f32 1.442695, %v7275_v29 }
0x1531   : > { %7424 = vmatpush.bf16.msra.mxu1 %v7412_v11  ;;  %v7306_v4 = vmul.f32 1.442695, %v7276_v54 }
0x1532   : > { %v7390_v49 = vpack.c.bf16 %v7374_v47, %v7374_v47 }
0x1533   : > { %7335 = vadd.xlane.f32.xlu2 %v7334_v40 }
0x1536   : > { %v13371_v13 = vpop.xlane.xlu1 %7260 }
0x153b   : > { %7338 = vadd.xlane.f32.xlu2 %v7337_v3 }
0x153c   : > { %7511 = vrot.lane.b32.xlu1 %v14049_v14, %s9667_s6  ;;  %v7408_v14 = vunpack.c.l.b16 %v7390_v49 }
0x1544   : > { %v7315_v9 = vpop.xlane.xlu0 %7314 }
0x1545   : > { %9521 = vrcp.f32 %v7315_v9 }
0x1546   : > { %9523 = vpow2.f32 %v7306_v4 }
0x1547   : > { %9525 = vpow2.f32 %v7304_v10 }
0x154b   : > { %v9522_v8 = vpop.eup %9521 }
0x154c   : > { %v7375_v7 = vmul.f32 %v9522_v8, %v13310_v36  ;;  %v13378_v33 = vpop.eup %9523 }
0x154d   : > { %v7352_v43 = vsel %vm1724_vm6, %v13378_v33, 0.0  ;;  %v13382_v36 = vpop.eup %9525 }
0x154e   : > { %v7391_v62 = vpack.c.bf16 %v7375_v7, %v7375_v7  ;;  %v7487_v52 = vpop.permute.xlu1 %7486  ;;  %v7349_v17 = vsel %vm1724_vm6, %v13382_v36, 0.0 }
0x154f   : > { %7499 = vmatpush.bf16.msrb.mxu0 %v7487_v52 }
0x1550   : > { %v7409_v50 = vunpack.c.l.b16 %v7391_v62 }
0x1552   : > { %v7410_v53 = vpack.c.b16 %v7409_v50, %v7408_v14 }
0x1554   : > { %8726 = vmatmul.msk.bf16.vlgmr.msra.gmra.mxu1 %vm1724_vm6, %v7410_v53 }
0x1557   : > { %v7462_v57 = vpop.permute.xlu0 %7461 }
0x1558   : > { %7474 = vmatpush.bf16.msra.mxu3 %v7462_v57 }
0x1559   : > { %7353 = vadd.xlane.f32.xlu0 %v7352_v43 }
0x1566   : > { %7350 = vadd.xlane.f32.xlu1 %v7349_v17 }
0x1569   : > { %v7252_v19 = vpop.xlane.xlu2 %7251 }
0x156a   : > { %v7274_v32 = vsub.f32 %v13320_v30, %v7252_v19 }
0x156c   : > { %v7302_v26 = vmul.f32 1.442695, %v7274_v32 }
0x156d   : > { %6134 = vrot.lane.b32.xlu0 %v6102_v23, %s9667_s6 }
0x156e   : > { %9527 = vpow2.f32 %v7302_v26 }
0x1574   : > { %v13390_v28 = vpop.eup %9527 }
0x1575   : > { %v7346_v58 = vsel %vm1724_vm6, %v13390_v28, 0.0 }
0x1576   : > { %7347 = vadd.xlane.f32.xlu2 %v7346_v58 }
0x1579   : > { %v7330_v30 = vpop.xlane.xlu1 %7329 }
0x157a   : > { %9529 = vrcp.f32 %v7330_v30 }
0x157f   : > { %7586 = vrot.lane.b32.xlu1 %v12425_v46, %s9667_s6 }
0x1580   : > { %v9530_v40 = vpop.eup %9529 }
0x1581   : > { %v7380_v46 = vmul.f32 %v9530_v40, %v13325_v34 }
0x1583   : > { %v7396_v3 = vpack.c.bf16 %v7380_v46, %v7380_v46 }
0x1585   : > { %v7483_v54 = vunpack.c.l.b16 %v7396_v3 }
0x1586   : > { %v7342_v0 = vpop.xlane.xlu0 %7341 }
0x1587   : > { %6136 = vrot.lane.b32.xlu1 %v6103_v45, %s9667_s6 }
0x158e   : > { %v7333_v11 = vpop.xlane.xlu0 %7332  ;;  %v7324_v41 = vpop.xlane.xlu1 %7323  ;;  %7561 = vrot.lane.b32.xlu2 %v12201_v37, %s9667_s6 }
0x158f   : > { %9531 = vrcp.f32 %v7333_v11  ;;  %6888 = vrot.lane.b32.xlu1 %v6855_v24, %s9666_s5 }
0x1590   : > { %9533 = vrcp.f32 %v7324_v41 }
0x1595   : > { %v9532_v1 = vpop.eup %9531 }
0x1596   : > { %v7381_v48 = vmul.f32 %v9532_v1, %v13337_v59  ;;  %v7327_v9 = vpop.xlane.xlu1 %7326  ;;  %v9534_v22 = vpop.eup %9533  ;;  %v6854_v1 = vpack.c.bf16 %v13215_v38, %v13215_v38 }
0x1597   : > { %9535 = vrcp.f32 %v7327_v9  ;;  %v7378_v37 = vmul.f32 %v9534_v22, %v13339_v35  ;;  %v7277_v35 = vsub.f32 %v13305_v16, %v13371_v13 }
0x1598   : > { %v7397_v61 = vpack.c.bf16 %v7381_v48, %v7381_v48  ;;  %9537 = vrcp.f32 %v7342_v0 }
0x1599   : > { %v7394_v49 = vpack.c.bf16 %v7378_v37, %v7378_v37  ;;  %v7308_v19 = vmul.f32 1.442695, %v7277_v35 }
0x159a   : > { %v7484_v47 = vunpack.c.l.b16 %v7397_v61  ;;  %v14072_v61 = vld [vmem:[#allocation74_spill] sm:$0xff] }
0x159b   : > { %v7458_v50 = vunpack.c.l.b16 %v7394_v49 }
0x159c   : > { %v7485_v8 = vpack.c.b16 %v7484_v47, %v7483_v54  ;;  %v6104_v54 = vpack.c.bf16 %v14072_v61, %v14072_v61 }
0x159d   : > { %v9536_v4 = vpop.eup %9535 }
0x159e   : > { %v7379_v7 = vmul.f32 %v9536_v4, %v13347_v63  ;;  %8729 = vmatmul.msk.bf16.vlgmr.msrb.gmra.mxu0 %vm1724_vm6, %v7485_v8  ;;  %v7345_v34 = vpop.xlane.xlu2 %7344  ;;  %v9538_v62 = vpop.eup %9537  ;;  %v14073_v4 = vld [vmem:[#allocation76_spill] sm:$0xff] }
0x159f   : > { %9539 = vrcp.f32 %v7345_v34  ;;  %v7384_v14 = vmul.f32 %v9538_v62, %v13332_v12  ;;  %v6105_v49 = vpack.c.bf16 %v14073_v4, %v14073_v4  ;;  %v6858_v34 = vpack.c.bf16 %v13226_v15, %v13226_v15  ;;  %v8856_v15 = vld [vmem:[#allocation3 + $0x200] sm:$0xf] }
0x15a0   : > { %v7395_v59 = vpack.c.bf16 %v7379_v7, %v7379_v7  ;;  %v6857_v7 = vpack.c.bf16 %v13205_v31, %v13205_v31  ;;  %v8860_v31 = vld [vmem:[#allocation3 + $0x250] sm:$0xf] }
0x15a1   : > { %v7537_v52 = vpop.permute.xlu0 %7536  ;;  %v7400_v10 = vpack.c.bf16 %v7384_v14, %v7384_v14 }
0x15a2   : > { %v7459_v53 = vunpack.c.l.b16 %v7395_v59  ;;  %7549 = vmatpush.bf16.msrb.mxu2 %v7537_v52  ;;  %v14074_v52 = vld [vmem:[#allocation65_spill] sm:$0xff] }
0x15a3   : > { %v7533_v32 = vunpack.c.l.b16 %v7400_v10  ;;  %v6106_v14 = vpack.c.bf16 %v14074_v52, %v14074_v52  ;;  %v8954_v10 = vld [vmem:[#allocation3 + $0x224] sm:$0xf0] }
0x15a4   : > { %v7460_v29 = vpack.c.b16 %v7459_v53, %v7458_v50  ;;  %v8955_v53 = vld [vmem:[#allocation3 + $0x274] sm:$0xf0] }
0x15a5   : > { %v9540_v57 = vpop.eup %9539 }
0x15a6   : > { %v7385_v63 = vmul.f32 %v9540_v57, %v13354_v27  ;;  %8728 = vmatmul.msk.bf16.vlgmr.msra.gmra.mxu3 %vm1724_vm6, %v7460_v29  ;;  %v7336_v43 = vpop.xlane.xlu2 %7335  ;;  %v8861_v57 = vor.u32 %v8955_v53, %v8860_v31  ;;  %v8792_v31 = vld [vmem:[#allocation3 + $0x1fc] sm:$0xf]  ;;  %v8938_v53 = vld [vmem:[#allocation3 + $0x220] sm:$0xf0] }
0x15a7   : > { %9541 = vrcp.f32 %v7336_v43 }
0x15a8   : > { %v7401_v17 = vpack.c.bf16 %v7385_v63, %v7385_v63  ;;  %9543 = vpow2.f32 %v7308_v19 }
0x15aa   : > { %v7534_v23 = vunpack.c.l.b16 %v7401_v17 }
0x15ac   : > { %v7535_v12 = vpack.c.b16 %v7534_v23, %v7533_v32  ;;  %v14075_v32 = vld [vmem:[#allocation40_spill] sm:$0xff] }
0x15ad   : > { %v9542_v45 = vpop.eup %9541  ;;  %v6107_v23 = vpack.c.bf16 %v14075_v32, %v14075_v32 }
0x15ae   : > { %v7512_v26 = vpop.permute.xlu1 %7511  ;;  %8731 = vmatmul.msk.bf16.vlgmr.msrb.gmra.mxu2 %vm1724_vm6, %v7535_v12  ;;  %v7339_v58 = vpop.xlane.xlu2 %7338  ;;  %v7382_v16 = vmul.f32 %v9542_v45, %v13359_v60  ;;  %v6859_v12 = vpack.c.bf16 %v13232_v21, %v13232_v21  ;;  %v8953_v45 = vld [vmem:[#allocation3 + $0x1d4] sm:$0xf0] }
0x15af   : > { %9545 = vrcp.f32 %v7339_v58  ;;  %7524 = vmatpush.bf16.msrb.mxu1 %v7512_v26  ;;  %v13416_v27 = vpop.eup %9543  ;;  %v7451_v60 = vpop.f32.mrf.mxu2  ;;  %v8852_v58 = vld [vmem:[#allocation3 + $0x1b0] sm:$0xf]  ;;  %v14076_v21 = vld [vmem:[#allocation54_spill] sm:$0xff] }
0x15b0   : > { %v7398_v30 = vpack.c.bf16 %v7382_v16, %v7382_v16  ;;  %v7355_v24 = vsel %vm1724_vm6, %v13416_v27, 0.0  ;;  %v7608_v50 = vpack.c.bf16 %v7451_v60, %v7451_v60 }
0x15b2   : > { %v7508_v41 = vunpack.c.l.b16 %v7398_v30  ;;  %v8853_v30 = vor.u32 %v8953_v45, %v8852_v58 }
0x15b5   : > { %v9546_v13 = vpop.eup %9545 }
0x15b6   : > { %v7383_v0 = vmul.f32 %v9546_v13, %v13365_v44  ;;  %v6856_v44 = vpack.c.bf16 %v13202_v25, %v13202_v25 }
0x15b7   : > { %7356 = vadd.xlane.f32.xlu2 %v7355_v24  ;;  %v7453_v47 = vpop.f32.mrf.mxu2  ;;  %v8952_v24 = vld [vmem:[#allocation3 + $0x184] sm:$0xf0] }
0x15b8   : > { %v7399_v11 = vpack.c.bf16 %v7383_v0, %v7383_v0  ;;  %v7609_v37 = vpack.c.bf16 %v7453_v47, %v7453_v47  ;;  %v8848_v0 = vld [vmem:[#allocation3 + $0x160] sm:$0xf]  ;;  %v8949_v47 = vld [vmem:[#allocation3 + $0x94] sm:$0xf0] }
0x15ba   : > { %v7509_v40 = vunpack.c.l.b16 %v7399_v11 }
0x15bc   : > { %v7510_v46 = vpack.c.b16 %v7509_v40, %v7508_v41  ;;  %v6108_v41 = vpack.c.bf16 %v14076_v21, %v14076_v21  ;;  %v8849_v40 = vor.u32 %v8952_v24, %v8848_v0  ;;  %v14081_v24 = vld [vmem:[#allocation51_spill] sm:$0xff] }
0x15be   : > { %8730 = vmatmul.msk.bf16.vlgmr.msrb.gmra.mxu1 %vm1724_vm6, %v7510_v46  ;;  %v8844_v46 = vld [vmem:[#allocation3 + $0x110] sm:$0xf] }
0x15cc   : > { %v13428_v9 = vpop.xlane.xlu0 %7353 }
0x15cf   : > { %6886 = vrot.lane.b32.xlu2 %v6854_v1, %s9666_s5  ;;  %v8951_v1 = vld [vmem:[#allocation3 + $0x134] sm:$0xf0] }
0x15d0   : > { %v8845_v60 = vor.u32 %v8951_v1, %v8844_v46 }
0x15d1   : > { %v7426_v3 = vpop.f32.mrf.mxu1 }
0x15d2   : > { %v7606_v48 = vpack.c.bf16 %v7426_v3, %v7426_v3  ;;  %v8840_v3 = vld [vmem:[#allocation3 + $0xc0] sm:$0xf] }
0x15d4   : > { %7638 = vrot.lane.b32.xlu0 %v7606_v48, %s9665_s28  ;;  %v8950_v48 = vld [vmem:[#allocation3 + $0xe4] sm:$0xf0] }
0x15d5   : > { %v8841_v61 = vor.u32 %v8950_v48, %v8840_v3  ;;  %v8768_v48 = vld [vmem:[#allocation3 + $0x1c] sm:$0xf] }
0x15d7   : > { %6890 = vrot.lane.b32.xlu2 %v6856_v44, %s9666_s5 }
0x15d9   : > { %v7428_v22 = vpop.f32.mrf.mxu1  ;;  %v7351_v25 = vpop.xlane.xlu1 %7350 }
0x15da   : > { %v7607_v38 = vpack.c.bf16 %v7428_v22, %v7428_v22  ;;  %9547 = vrcp.f32 %v7351_v25  ;;  %v6861_v22 = vpack.c.bf16 %v13248_v18, %v13248_v18  ;;  %v14077_v25 = vld [vmem:[#allocation55_spill] sm:$0xff] }
0x15db   : > { %v6110_v4 = vpack.c.bf16 %v14077_v25, %v14077_v25  ;;  %v14078_v18 = vld [vmem:[#allocation67_spill] sm:$0xff] }
0x15dc   : > { %6138 = vrot.lane.b32.xlu0 %v6104_v54, %s9667_s6  ;;  %7640 = vrot.lane.b32.xlu1 %v7607_v38, %s9665_s28  ;;  %v8836_v54 = vld [vmem:[#allocation3 + $0x70] sm:$0xf] }
0x15dd   : > { %v8837_v38 = vor.u32 %v8949_v47, %v8836_v54  ;;  %v14082_v47 = vld [vmem:[#allocation60_spill] sm:$0xff] }
0x15df   : > { %v6135_v8 = vpop.permute.xlu0 %6134  ;;  %7644 = vrot.lane.b32.xlu2 %v7609_v37, %s9665_s28  ;;  %v8832_v37 = vld [vmem:[#allocation3 + $0x20] sm:$0xf] }
0x15e0   : > { %6182 = vst.msk [vmem:[#allocation2] sm:$0xf] %vm2894_vm0, %v6135_v8  ;;  %v9548_v59 = vpop.eup %9547  ;;  %v8948_v8 = vld [vmem:[#allocation3 + $0x44] sm:$0xf0] }
0x15e1   : > { %v7387_v29 = vmul.f32 %v9548_v59, %v13382_v36  ;;  %v8857_v36 = vor.u32 %v8954_v10, %v8856_v15  ;;  %v8939_v59 = vld [vmem:[#allocation3 + $0x270] sm:$0xf0]  ;;  %v8784_v10 = vld [vmem:[#allocation3 + $0x15c] sm:$0xf] }
0x15e3   : > { %v7403_v63 = vpack.c.bf16 %v7387_v29, %v7387_v29  ;;  %v8793_v29 = vor.u32 %v8938_v53, %v8792_v31  ;;  %v14084_v31 = vld [vmem:[#allocation56_spill] sm:$0xff] }
0x15e4   : > { %6892 = vrot.lane.b32.xlu0 %v6857_v7, %s9666_s5  ;;  %6140 = vrot.lane.b32.xlu1 %v6105_v49, %s9667_s6  ;;  %v8833_v49 = vor.u32 %v8948_v8, %v8832_v37  ;;  %v8158_v7 = vpack.c.b16 %v14078_v18, %v14078_v18  ;;  %v6860_v8 = vpack.c.bf16 %v13246_v6, %v13246_v6 }
0x15e5   : > { %v6869_v18 = vpack.c.bf16 %v13252_v55, %v13252_v55  ;;  %v6113_v53 = vpack.c.bf16 %v14084_v31, %v14084_v31  ;;  %v13582_v31 = vld [vmem:[%s13656_s3 + $0x7] ss:$0 sm:$0xff] }
0x15e7   : > { %6894 = vrot.lane.b32.xlu2 %v6858_v34, %s9666_s5  ;;  %v6863_v34 = vpack.c.bf16 %v13224_v42, %v13224_v42  ;;  %v6865_v42 = vpack.c.bf16 %v13213_v5, %v13213_v5  ;;  %v8776_v5 = vld [vmem:[#allocation3 + $0xbc] sm:$0xf] }
0x15e9   : > { %v7348_v62 = vpop.xlane.xlu2 %7347 }
0x15ea   : > { %9549 = vrcp.f32 %v7348_v62  ;;  %v8796_v62 = vld [vmem:[#allocation3 + $0x24c] sm:$0xf] }
0x15eb   : > { %v8797_v52 = vor.u32 %v8939_v59, %v8796_v62  ;;  %9551 = vrcp.f32 %v13428_v9  ;;  %v8934_v9 = vld [vmem:[#allocation3 + $0xe0] sm:$0xf0]  ;;  %v6862_v59 = vpack.c.bf16 %v13222_v39, %v13222_v39 }
0x15ec   : > { %6142 = vrot.lane.b32.xlu0 %v6106_v14, %s9667_s6  ;;  %7642 = vrot.lane.b32.xlu1 %v7608_v50, %s9665_s28  ;;  %v14079_v14 = vld [vmem:[#allocation73_spill] sm:$0xff] }
0x15ed   : > { %v6112_v50 = vpack.c.bf16 %v14079_v14, %v14079_v14  ;;  %7817 = vmatpush.bf16.msra.mxu1 %v8797_v52 }
0x15f0   : > { %v9550_v35 = vpop.eup %9549 }
0x15f1   : > { %v7386_v43 = vmul.f32 %v9550_v35, %v13390_v28  ;;  %v7587_v17 = vpop.permute.xlu1 %7586  ;;  %v7562_v19 = vpop.permute.xlu2 %7561  ;;  %v7559_v28 = vunpack.c.l.b16 %v7403_v63  ;;  %v8937_v35 = vld [vmem:[#allocation3 + $0x1d0] sm:$0xf0]  ;;  %7818 = vmatpush.bf16.msra.mxu1 %v8793_v29  ;;  %v8936_v63 = vld [vmem:[#allocation3 + $0x180] sm:$0xf0] }
0x15f2   : > { %7574 = vmatpush.bf16.msrb.mxu3 %v7562_v19  ;;  %7599 = vmatpush.bf16.msra.mxu0 %v7587_v17  ;;  %v8780_v17 = vld [vmem:[#allocation3 + $0x10c] sm:$0xf]  ;;  %v8935_v19 = vld [vmem:[#allocation3 + $0x130] sm:$0xf0]  ;;  %v9552_v45 = vpop.eup %9551 }
0x15f3   : > { %v7402_v26 = vpack.c.bf16 %v7386_v43, %v7386_v43  ;;  %v8785_v43 = vor.u32 %v8936_v63, %v8784_v10  ;;  %v8781_v32 = vor.u32 %v8935_v19, %v8780_v17  ;;  %v6864_v63 = vpack.c.bf16 %v13210_v56, %v13210_v56 }
0x15f4   : > { %6896 = vrot.lane.b32.xlu0 %v6859_v12, %s9666_s5  ;;  %6144 = vrot.lane.b32.xlu1 %v6107_v23, %s9667_s6  ;;  %v14080_v12 = vld [vmem:[#allocation38_spill] sm:$0xff] }
0x15f5   : > { %v7558_v16 = vunpack.c.l.b16 %v7402_v26  ;;  %v6114_v26 = vpack.c.bf16 %v14080_v12, %v14080_v12 }
0x15f6   : > { %8208 = vmatpush.bf16.msra.mxu3 %v8861_v57  ;;  %v8788_v57 = vld [vmem:[#allocation3 + $0x1ac] sm:$0xf] }
0x15f7   : > { %v7560_v13 = vpack.c.b16 %v7559_v28, %v7558_v16  ;;  %v8789_v15 = vor.u32 %v8937_v35, %v8788_v57  ;;  %v8777_v28 = vor.u32 %v8934_v9, %v8776_v5  ;;  %v7388_v16 = vmul.f32 %v9552_v45, %v13378_v33 }
0x15f8   : > { %v6866_v45 = vpack.c.bf16 %v13238_v2, %v13238_v2  ;;  %v6868_v2 = vpack.c.bf16 %v13250_v51, %v13250_v51 }
0x15f9   : > { %v6137_v11 = vpop.permute.xlu1 %6136  ;;  %8732 = vmatmul.msk.bf16.vlgmr.msrb.gmra.mxu3 %vm1724_vm6, %v7560_v13  ;;  %7819 = vmatpush.bf16.msra.mxu1 %v8789_v15  ;;  %v8772_v13 = vld [vmem:[#allocation3 + $0x6c] sm:$0xf]  ;;  %v7404_v46 = vpack.c.bf16 %v7388_v16, %v7388_v16 }
0x15fa   : > { %8209 = vmatpush.bf16.msra.mxu3 %v8857_v36  ;;  %6183 = vst.msk [vmem:[#allocation2 + $0x4] sm:$0xf] %vm2894_vm0, %v6137_v11  ;;  %v6109_v11 = vpack.c.bf16 %v14081_v24, %v14081_v24 }
0x15fc   : > { %6146 = vrot.lane.b32.xlu0 %v6108_v41, %s9667_s6 }
0x15fd   : > { %7820 = vmatpush.bf16.msra.mxu1 %v8785_v43 }
0x15fe   : > { %8210 = vmatpush.bf16.msra.mxu3 %v8853_v30  ;;  %v8933_v30 = vld [vmem:[#allocation3 + $0x90] sm:$0xf0] }
0x15ff   : > { %v8773_v41 = vor.u32 %v8933_v30, %v8772_v13 }
0x1601   : > { %v6889_v44 = vpop.permute.xlu1 %6888  ;;  %7821 = vmatpush.bf16.msra.mxu1 %v8781_v32 }
0x1602   : > { %8211 = vmatpush.bf16.msra.mxu3 %v8849_v40  ;;  %6935 = vst.msk [vmem:[#allocation2 + $0x4] sm:$0xf] %vm3647_vm2, %v6889_v44  ;;  %v6867_v40 = vpack.c.bf16 %v13240_v20, %v13240_v20  ;;  %v8932_v44 = vld [vmem:[#allocation3 + $0x40] sm:$0xf0] }
0x1604   : > { %6900 = vrot.lane.b32.xlu0 %v6861_v22, %s9666_s5  ;;  %v8769_v22 = vor.u32 %v8932_v44, %v8768_v48 }
0x1605   : > { %7822 = vmatpush.bf16.msra.mxu1 %v8777_v28 }
0x1606   : > { %8212 = vmatpush.bf16.msra.mxu3 %v8845_v60 }
0x1609   : > { %7823 = vmatpush.bf16.msra.mxu1 %v8773_v41 }
0x160a   : > { %8213 = vmatpush.bf16.msra.mxu3 %v8841_v61  ;;  %v7583_v61 = vunpack.c.l.b16 %v7404_v46 }
0x160c   : > { %6150 = vrot.lane.b32.xlu0 %v6110_v4, %s9667_s6  ;;  %v14083_v4 = vld [vmem:[#allocation44_spill] sm:$0xff] }
0x160d   : > { %7824 = vmatpush.bf16.msra.mxu1 %v8769_v22 }
0x160e   : > { %8214 = vmatpush.bf16.msra.mxu3 %v8837_v38  ;;  %v6116_v38 = vpack.c.bf16 %v14082_v47, %v14082_v47 }
0x1612   : > { %8215 = vmatpush.bf16.msra.mxu3 %v8833_v49  ;;  %v6111_v49 = vpack.c.bf16 %v14083_v4, %v14083_v4 }
0x1614   : > { %6904 = vrot.lane.b32.xlu0 %v6863_v34, %s9666_s5 }
0x1615   : > { %8216 = vmatmul.bf16.vlgmr.msra.gmra.mxu3 %v8158_v7 }
0x161b   : > { %v7501_v20 = vpop.f32.mrf.mxu0 }
0x161c   : > { %6154 = vrot.lane.b32.xlu0 %v6112_v50, %s9667_s6  ;;  %v7612_v37 = vpack.c.bf16 %v7501_v20, %v7501_v20 }
0x1623   : > { %v7503_v25 = vpop.f32.mrf.mxu0 }
0x1624   : > { %6908 = vrot.lane.b32.xlu0 %v6865_v42, %s9666_s5  ;;  %v7613_v7 = vpack.c.bf16 %v7503_v25, %v7503_v25 }
0x1629   : > { %v7476_v23 = vpop.f32.mrf.mxu3 }
0x162a   : > { %v7610_v36 = vpack.c.bf16 %v7476_v23, %v7476_v23  ;;  %v7357_v58 = vpop.xlane.xlu2 %7356  ;;  %v14085_v23 = vld [vmem:[#allocation35_spill] sm:$0xff] }
0x162b   : > { %9553 = vrcp.f32 %v7357_v58  ;;  %v6115_v12 = vpack.c.bf16 %v14085_v23, %v14085_v23 }
0x162c   : > { %6158 = vrot.lane.b32.xlu0 %v6114_v26, %s9667_s6  ;;  %7646 = vrot.lane.b32.xlu1 %v7610_v36, %s9665_s28 }
0x1631   : > { %v9554_v0 = vpop.eup %9553  ;;  %v7478_v21 = vpop.f32.mrf.mxu3 }
0x1632   : > { %v7389_v1 = vmul.f32 %v9554_v0, %v13416_v27  ;;  %v7611_v60 = vpack.c.bf16 %v7478_v21, %v7478_v21  ;;  %v6887_v3 = vpop.permute.xlu2 %6886  ;;  %v7551_v39 = vpop.f32.mrf.mxu2  ;;  %v14086_v0 = vld [vmem:[#allocation59_spill] sm:$0xff] }
0x1633   : > { %6934 = vst.msk [vmem:[#allocation2] sm:$0xf] %vm3647_vm2, %v6887_v3  ;;  %v7616_v10 = vpack.c.bf16 %v7551_v39, %v7551_v39  ;;  %v6117_v24 = vpack.c.bf16 %v14086_v0, %v14086_v0 }
0x1634   : > { %v7405_v33 = vpack.c.bf16 %v7389_v1, %v7389_v1  ;;  %6912 = vrot.lane.b32.xlu0 %v6867_v40, %s9666_s5  ;;  %6148 = vrot.lane.b32.xlu1 %v6109_v11, %s9667_s6 }
0x1635   : > { %7648 = vrot.lane.b32.xlu2 %v7611_v60, %s9665_s28 }
0x1636   : > { %v7584_v54 = vunpack.c.l.b16 %v7405_v33 }
0x1638   : > { %v7585_v27 = vpack.c.b16 %v7584_v54, %v7583_v61 }
0x163a   : > { %8733 = vmatmul.msk.bf16.vlgmr.msra.gmra.mxu0 %vm1724_vm6, %v7585_v27  ;;  %v6891_v52 = vpop.permute.xlu2 %6890  ;;  %v7553_v32 = vpop.f32.mrf.mxu2 }
0x163b   : > { %v7526_v6 = vpop.f32.mrf.mxu1  ;;  %v7617_v26 = vpack.c.bf16 %v7553_v32, %v7553_v32 }
0x163c   : > { %6162 = vrot.lane.b32.xlu0 %v6116_v38, %s9667_s6  ;;  %7650 = vrot.lane.b32.xlu1 %v7612_v37, %s9665_s28  ;;  %v7614_v62 = vpack.c.bf16 %v7526_v6, %v7526_v6 }
0x163d   : > { %6898 = vrot.lane.b32.xlu2 %v6860_v8, %s9666_s5 }
0x1642   : > { %v7645_v57 = vpop.permute.xlu2 %7644 }
0x1643   : > { %v7528_v50 = vpop.f32.mrf.mxu1 }
0x1644   : > { %6916 = vrot.lane.b32.xlu0 %v6869_v18, %s9666_s5  ;;  %6152 = vrot.lane.b32.xlu1 %v6111_v49, %s9667_s6  ;;  %v7615_v29 = vpack.c.bf16 %v7528_v50, %v7528_v50 }
0x1645   : > { %7652 = vrot.lane.b32.xlu2 %v7613_v7, %s9665_s28 }
0x1646   : > { %v7639_v34 = vpop.permute.xlu0 %7638 }
0x1647   : > { %7686 = vst.msk [vmem:[#allocation2] sm:$0xf] %vm4400_vm1, %v7639_v34 }
0x164a   : > { %v6895_v19 = vpop.permute.xlu2 %6894 }
0x164c   : > { %7654 = vrot.lane.b32.xlu1 %v7614_v62, %s9665_s28 }
0x164d   : > { %6902 = vrot.lane.b32.xlu2 %v6862_v59, %s9666_s5 }
0x164e   : > { %v6139_v55 = vpop.permute.xlu0 %6138  ;;  %v7641_v14 = vpop.permute.xlu1 %7640 }
0x164f   : > { %6184 = vst.msk [vmem:[#allocation2 + $0x8] sm:$0xf] %vm2894_vm0, %v6139_v55 }
0x1650   : > { %6936 = vst.msk [vmem:[#allocation2 + $0x8] sm:$0xf] %vm3647_vm2, %v6891_v52 }
0x1651   : > { %7687 = vst.msk [vmem:[#allocation2 + $0x4] sm:$0xf] %vm4400_vm1, %v7641_v14 }
0x1654   : > { %6156 = vrot.lane.b32.xlu1 %v6113_v53, %s9667_s6 }
0x1655   : > { %7656 = vrot.lane.b32.xlu2 %v7615_v29, %s9665_s28 }
0x1656   : > { %v6893_v35 = vpop.permute.xlu0 %6892  ;;  %v6141_v15 = vpop.permute.xlu1 %6140 }
0x1657   : > { %6185 = vst.msk [vmem:[#allocation2 + $0xc] sm:$0xf] %vm2894_vm0, %v6141_v15 }
0x1658   : > { %6937 = vst.msk [vmem:[#allocation2 + $0xc] sm:$0xf] %vm3647_vm2, %v6893_v35  ;;  %v8940_v42 = vld [vmem:[#allocation2] sm:$0xff] }
0x1659   : > { %7689 = vst.msk [vmem:[#allocation2 + $0xc] sm:$0xf] %vm4400_vm1, %v7645_v57  ;;  %7825 = vmatmul.bf16.vlgmr.msra.gmra.mxu1 %v8940_v42 }
0x165c   : > { %7658 = vrot.lane.b32.xlu1 %v7616_v10, %s9665_s28 }
0x165d   : > { %6906 = vrot.lane.b32.xlu2 %v6864_v63, %s9666_s5 }
0x165e   : > { %v6143_v43 = vpop.permute.xlu0 %6142  ;;  %v7643_v17 = vpop.permute.xlu1 %7642 }
0x165f   : > { %6186 = vst.msk [vmem:[#allocation2 + $0x10] sm:$0xf] %vm2894_vm0, %v6143_v43 }
0x1660   : > { %6938 = vst.msk [vmem:[#allocation2 + $0x10] sm:$0xf] %vm3647_vm2, %v6895_v19 }
0x1661   : > { %7688 = vst.msk [vmem:[#allocation2 + $0x8] sm:$0xf] %vm4400_vm1, %v7643_v17 }
0x1664   : > { %6160 = vrot.lane.b32.xlu1 %v6115_v12, %s9667_s6 }
0x1665   : > { %7660 = vrot.lane.b32.xlu2 %v7617_v26, %s9665_s28 }
0x1666   : > { %v6897_v56 = vpop.permute.xlu0 %6896  ;;  %v6145_v36 = vpop.permute.xlu1 %6144 }
0x1667   : > { %6187 = vst.msk [vmem:[#allocation2 + $0x14] sm:$0xf] %vm2894_vm0, %v6145_v36 }
0x1668   : > { %6939 = vst.msk [vmem:[#allocation2 + $0x14] sm:$0xf] %vm3647_vm2, %v6897_v56  ;;  %v8941_v58 = vld [vmem:[#allocation2 + $0x8] sm:$0xff] }
0x1669   : > { %7830 = vmatmul.bf16.gmra.mxu1 %v8941_v58 }
0x166d   : > { %6910 = vrot.lane.b32.xlu2 %v6866_v45, %s9666_s5 }
0x166e   : > { %v6147_v5 = vpop.permute.xlu0 %6146 }
0x166f   : > { %6188 = vst.msk [vmem:[#allocation2 + $0x18] sm:$0xf] %vm2894_vm0, %v6147_v5 }
0x1676   : > { %v6901_v9 = vpop.permute.xlu0 %6900 }
0x167c   : > { %v7576_v28 = vpop.f32.mrf.mxu3 }
0x167d   : > { %v7618_v16 = vpack.c.bf16 %v7576_v28, %v7576_v28 }
0x167e   : > { %v6151_v13 = vpop.permute.xlu0 %6150 }
0x167f   : > { %6190 = vst.msk [vmem:[#allocation2 + $0x20] sm:$0xf] %vm2894_vm0, %v6151_v13  ;;  %7662 = vrot.lane.b32.xlu1 %v7618_v16, %s9665_s28 }
0x1684   : > { %v7578_v30 = vpop.f32.mrf.mxu3 }
0x1685   : > { %v7619_v11 = vpack.c.bf16 %v7578_v30, %v7578_v30 }
0x1686   : > { %v6905_v21 = vpop.permute.xlu0 %6904 }
0x1687   : > { %6164 = vrot.lane.b32.xlu1 %v6117_v24, %s9667_s6  ;;  %7664 = vrot.lane.b32.xlu2 %v7619_v11, %s9665_s28  ;;  %s8249_s6 = scalar_lea.hbm %s13657_s4, %s9752_s8 }
0x1688   : > { %s8253_s10 = sshll.u32 %s8249_s6, 4  ;;  %s8254_s10 = int_to_ptr.hbm [resolvable:$true] %s8253_s10 }
0x1689   : > { %s9606_s12 = sshra.s32 %s8254_s10, 4  ;;  %s9607_s12 = int_to_ptr.hbm [resolvable:$true] %s9606_s12 }
0x168a   : > { %s9608_s13 = scalar_lea.hbm %s9607_s12, 8  ;;  %p9613_p3 = scmp.lt.s32.totalorder %s9607_s12, %s13657_s4 }
0x168b   : > { %p9609_p0 = scmp.ne.s32.totalorder %s9607_s12, %s9608_s13  ;;  %p9614_p4 = scmp.lt.s32.totalorder %s9612_s19, %s9608_s13 }
0x168d   : > { %p9610_p1 = pnand %p9609_p0, %p9731_p5  ;;  %p9615_p7 = por %p9614_p4, %p9613_p3 }
0x168e   : > { %v6155_v41 = vpop.permute.xlu0 %6154 }
0x168f   : > { %6192 = vst.msk [vmem:[#allocation2 + $0x28] sm:$0xf] %vm2894_vm0, %v6155_v41  ;;  %v7649_v40 = vpop.permute.xlu2 %7648  ;;  %6914 = vrot.lane.b32.xlu2 %v6868_v2, %s9666_s5  ;;  %p9611_p2 = pneg %p9610_p1 }
0x1690   : > { %7691 = vst.msk [vmem:[#allocation2 + $0x14] sm:$0xf] %vm4400_vm1, %v7649_v40 }
0x1691   : > { %p9616_p8 = pnand %p9615_p7, %p9611_p2 }
0x1696   : > { %v6909_v1 = vpop.permute.xlu0 %6908 }
0x1697   : > { %v6899_v60 = vpop.permute.xlu2 %6898 }
0x1698   : > { %v13554_v46 = vpop.f32.mrf.mxu3  ;;  %6940 = vst.msk [vmem:[#allocation2 + $0x18] sm:$0xf] %vm3647_vm2, %v6899_v60 }
0x169e   : > { %v6159_v33 = vpop.permute.xlu0 %6158  ;;  %v7647_v48 = vpop.permute.xlu1 %7646 }
0x169f   : > { %6194 = vst.msk [vmem:[#allocation2 + $0x30] sm:$0xf] %vm2894_vm0, %v6159_v33  ;;  %v7653_v51 = vpop.permute.xlu2 %7652 }
0x16a0   : > { %v8219_v3 = vpop.f32.mrf.mxu3  ;;  %7690 = vst.msk [vmem:[#allocation2 + $0x10] sm:$0xf] %vm4400_vm1, %v7647_v48 }
0x16a6   : > { %v6913_v44 = vpop.permute.xlu0 %6912  ;;  %v6149_v22 = vpop.permute.xlu1 %6148 }
0x16a7   : > { %6189 = vst.msk [vmem:[#allocation2 + $0x1c] sm:$0xf] %vm2894_vm0, %v6149_v22  ;;  %v6903_v61 = vpop.permute.xlu2 %6902  ;;  %v8942_v20 = vld [vmem:[#allocation2 + $0x10] sm:$0xff] }
0x16a8   : > { %6941 = vst.msk [vmem:[#allocation2 + $0x1c] sm:$0xf] %vm3647_vm2, %v6901_v9  ;;  %7835 = vmatmul.bf16.gmra.mxu1 %v8942_v20 }
0x16a9   : > { %7693 = vst.msk [vmem:[#allocation2 + $0x1c] sm:$0xf] %vm4400_vm1, %v7653_v51 }
0x16aa   : > { %6942 = vst.msk [vmem:[#allocation2 + $0x20] sm:$0xf] %vm3647_vm2, %v6903_v61 }
0x16ae   : > { %v6163_v54 = vpop.permute.xlu0 %6162  ;;  %v7651_v27 = vpop.permute.xlu1 %7650 }
0x16af   : > { %6196 = vst.msk [vmem:[#allocation2 + $0x38] sm:$0xf] %vm2894_vm0, %v6163_v54  ;;  %v7657_v47 = vpop.permute.xlu2 %7656 }
0x16b0   : > { %7692 = vst.msk [vmem:[#allocation2 + $0x18] sm:$0xf] %vm4400_vm1, %v7651_v27 }
0x16b6   : > { %v6153_v38 = vpop.permute.xlu1 %6152  ;;  %v6917_v33 = vpop.permute.xlu0 %6916 }
0x16b7   : > { %6191 = vst.msk [vmem:[#allocation2 + $0x24] sm:$0xf] %vm2894_vm0, %v6153_v38  ;;  %v6907_v37 = vpop.permute.xlu2 %6906  ;;  %v7601_v8 = vpop.f32.mrf.mxu0  ;;  %v8943_v25 = vld [vmem:[#allocation2 + $0x18] sm:$0xff] }
0x16b8   : > { %6943 = vst.msk [vmem:[#allocation2 + $0x24] sm:$0xf] %vm3647_vm2, %v6905_v21  ;;  %v7620_v4 = vpack.c.bf16 %v7601_v8, %v7601_v8  ;;  %7840 = vmatmul.bf16.gmra.mxu1 %v8943_v25 }
0x16b9   : > { %7695 = vst.msk [vmem:[#allocation2 + $0x24] sm:$0xf] %vm4400_vm1, %v7657_v47 }
0x16ba   : > { %6944 = vst.msk [vmem:[#allocation2 + $0x28] sm:$0xf] %vm3647_vm2, %v6907_v37  ;;  %7666 = vrot.lane.b32.xlu1 %v7620_v4, %s9665_s28 }
0x16be   : > { %v7655_v49 = vpop.permute.xlu1 %7654 }
0x16bf   : > { %7694 = vst.msk [vmem:[#allocation2 + $0x20] sm:$0xf] %vm4400_vm1, %v7655_v49  ;;  %v7661_v18 = vpop.permute.xlu2 %7660  ;;  %v7603_v7 = vpop.f32.mrf.mxu0 }
0x16c0   : > { %v7621_v6 = vpack.c.bf16 %v7603_v7, %v7603_v7 }
0x16c2   : > { %7668 = vrot.lane.b32.xlu2 %v7621_v6, %s9665_s28  ;;  %s226_s28 = sand.u32 1, %s9650_s16  }
0x16c3   : > { %s8343_s29 = sshll.u32 %s226_s28, 3  ;;  %s8239_s11 = scalar_lea.sflag [#allocation5], %s226_s28 }
0x16c4   : > { %s228_s7 = scalar_lea.vmem [#allocation6], %s8343_s29 }
0x16c5   : > { %s8251_s9 = sshll.u32 %s228_s7, 4  ;;  %s8252_s9 = int_to_ptr.vmem [resolvable:$true] %s8251_s9 }
0x16c6   : > { %v6157_v34 = vpop.permute.xlu1 %6156  ;;  %v8944_v62 = vld [vmem:[#allocation2 + $0x20] sm:$0xff] }
0x16c7   : > { %6193 = vst.msk [vmem:[#allocation2 + $0x2c] sm:$0xf] %vm2894_vm0, %v6157_v34  ;;  %v6911_v59 = vpop.permute.xlu2 %6910 }
0x16c8   : > { %6945 = vst.msk [vmem:[#allocation2 + $0x2c] sm:$0xf] %vm3647_vm2, %v6909_v1  ;;  %7845 = vmatmul.bf16.gmra.mxu1 %v8944_v62 }
0x16c9   : > { %7697 = vst.msk [vmem:[#allocation2 + $0x2c] sm:$0xf] %vm4400_vm1, %v7661_v18 }
0x16ca   : > { %6946 = vst.msk [vmem:[#allocation2 + $0x30] sm:$0xf] %vm3647_vm2, %v6911_v59 }
0x16ce   : > { %v7659_v52 = vpop.permute.xlu1 %7658 }
0x16cf   : > { %7696 = vst.msk [vmem:[#allocation2 + $0x28] sm:$0xf] %vm4400_vm1, %v7659_v52 }
0x16d6   : > { %v6161_v55 = vpop.permute.xlu1 %6160  ;;  %v8945_v14 = vld [vmem:[#allocation2 + $0x28] sm:$0xff]  ;;  %v7826_v50 = vpop.f32.mrf.mxu1 }
0x16d7   : > { %6195 = vst.msk [vmem:[#allocation2 + $0x34] sm:$0xf] %vm2894_vm0, %v6161_v55  ;;  %v7827_v29 = vadd.f32 %v13582_v31, %v7826_v50 }
0x16d8   : > { %6947 = vst.msk [vmem:[#allocation2 + $0x34] sm:$0xf] %vm3647_vm2, %v6913_v44  ;;  %7850 = vmatmul.bf16.gmra.mxu1 %v8945_v14 }
0x16de   : > { %v7828_v53 = vpop.f32.mrf.mxu1 }
0x16df   : > { %v7829_v39 = vadd.f32 %v13582_v31, %v7828_v53 }
0x16e1   : > { %v7665_v57 = vpop.permute.xlu2 %7664  ;;  %v7866_v35 = vmax.f32 %v7827_v29, %v7829_v39  ;;  %v7922_v15 = vmin.f32 %v7827_v29, %v7829_v39 }
0x16e2   : > { %7699 = vst.msk [vmem:[#allocation2 + $0x34] sm:$0xf] %vm4400_vm1, %v7665_v57 }
0x16e3   : > { %v7867_v42 = vrot.slane %v7866_v35, 4  ;;  %v7923_v10 = vrot.slane %v7922_v15, 4 }
0x16e5   : > { %v7868_v63 = vmax.f32 %v7866_v35, %v7867_v42  ;;  %v7924_v43 = vmin.f32 %v7922_v15, %v7923_v10 }
0x16e6   : > { %v7831_v17 = vpop.f32.mrf.mxu1 }
0x16e7   : > { %v7869_v19 = vrot.slane %v7868_v63, 2  ;;  %v7925_v32 = vrot.slane %v7924_v43, 2  ;;  %v7832_v28 = vadd.f32 %v13582_v31, %v7831_v17 }
0x16e9   : > { %v6915_v23 = vpop.permute.xlu2 %6914  ;;  %v7870_v12 = vmax.f32 %v7868_v63, %v7869_v19  ;;  %v7926_v26 = vmin.f32 %v7924_v43, %v7925_v32 }
0x16ea   : > { %6948 = vst.msk [vmem:[#allocation2 + $0x38] sm:$0xf] %vm3647_vm2, %v6915_v23 }
0x16eb   : > { %v7871_v56 = vrot.slane %v7870_v12, 1  ;;  %v7927_v36 = vrot.slane %v7926_v26, 1 }
0x16ed   : > { %v7928_v58 = vmin.f32 %v7926_v26, %v7927_v36  ;;  %v7872_v5 = vmax.f32 %v7870_v12, %v7871_v56 }
0x16ee   : > { %v7833_v45 = vpop.f32.mrf.mxu1 }
0x16ef   : > { %v7978_v9 = vsub.f32 0.0, %v7928_v58  ;;  %v7834_v16 = vadd.f32 %v13582_v31, %v7833_v45 }
0x16f1   : > { %v7663_v13 = vpop.permute.xlu1 %7662  ;;  %vm7986_vm4 = vcmp.ge.f32.partialorder %v7872_v5, %v7978_v9  ;;  %v7873_v30 = vmax.f32 %v7832_v28, %v7834_v16  ;;  %v7929_v0 = vmin.f32 %v7832_v28, %v7834_v16 }
0x16f2   : > { %7698 = vst.msk [vmem:[#allocation2 + $0x30] sm:$0xf] %vm4400_vm1, %v7663_v13  ;;  %v7994_v24 = vsel %vm7986_vm4, %v7872_v5, %v7928_v58 }
0x16f3   : > { %v7874_v11 = vrot.slane %v7873_v30, 4  ;;  %v7930_v21 = vrot.slane %v7929_v0, 4  ;;  %v8002_v27 = vpack.c.bf16 %v7994_v24, %v7994_v24 }
0x16f5   : > { %v7875_v2 = vmax.f32 %v7873_v30, %v7874_v11  ;;  %v7931_v41 = vmin.f32 %v7929_v0, %v7930_v21  ;;  %v8050_v37 = vunpack.c.l.b16 %v8002_v27 }
0x16f7   : > { %v7876_v40 = vrot.slane %v7875_v2, 2  ;;  %v7932_v1 = vrot.slane %v7931_v41, 2 }
0x16f9   : > { %v6165_v60 = vpop.permute.xlu1 %6164  ;;  %v8946_v3 = vld [vmem:[#allocation2 + $0x30] sm:$0xff]  ;;  %v7877_v48 = vmax.f32 %v7875_v2, %v7876_v40  ;;  %v7933_v51 = vmin.f32 %v7931_v41, %v7932_v1 }
0x16fa   : > { %6197 = vst.msk [vmem:[#allocation2 + $0x3c] sm:$0xf] %vm2894_vm0, %v6165_v60  ;;  %7855 = vmatmul.bf16.gmra.mxu1 %v8946_v3 }
0x16fb   : > { %6949 = vst.msk [vmem:[#allocation2 + $0x3c] sm:$0xf] %vm3647_vm2, %v6917_v33  ;;  %v7878_v44 = vrot.slane %v7877_v48, 1  ;;  %v7934_v22 = vrot.slane %v7933_v51, 1 }
0x16fd   : > { %v7935_v61 = vmin.f32 %v7933_v51, %v7934_v22  ;;  %v7879_v20 = vmax.f32 %v7877_v48, %v7878_v44 }
0x16ff   : > { %v7979_v54 = vsub.f32 0.0, %v7935_v61 }
0x1701   : > { %vm7987_vm6 = vcmp.ge.f32.partialorder %v7879_v20, %v7979_v54  ;;  %v8963_v54 = vld [vmem:[#allocation3 + $0x278] sm:$0xf0] }
0x1702   : > { %v7995_v47 = vsel %vm7987_vm6, %v7879_v20, %v7935_v61  ;;  %v8828_v20 = vld [vmem:[#allocation3 + $0x254] sm:$0xf] }
0x1703   : > { %v8003_v38 = vpack.c.bf16 %v7995_v47, %v7995_v47  ;;  %v8829_v27 = vor.u32 %v8963_v54, %v8828_v20  ;;  %v8824_v47 = vld [vmem:[#allocation3 + $0x204] sm:$0xf] }
0x1705   : > { %v8051_v8 = vunpack.c.l.b16 %v8003_v38  ;;  %8122 = vmatpush.bf16.msra.mxu2 %v8829_v27  ;;  %v8962_v38 = vld [vmem:[#allocation3 + $0x228] sm:$0xf0] }
0x1707   : > { %v8059_v25 = vsel %vm8058_vm8, %v8051_v8, %v8050_v37  ;;  %v8825_v37 = vor.u32 %v8962_v38, %v8824_v47 }
0x1709   : > { %8123 = vmatpush.bf16.msra.mxu2 %v8825_v37 }
0x171c   : > { %v7669_v4 = vpop.permute.xlu2 %7668 }
0x171d   : > { %7701 = vst.msk [vmem:[#allocation2 + $0x3c] sm:$0xf] %vm4400_vm1, %v7669_v4 }
0x1725   : > { %v7836_v49 = vpop.f32.mrf.mxu1 }
0x1726   : > { %v7837_v6 = vadd.f32 %v13582_v31, %v7836_v49  ;;  %v8820_v49 = vld [vmem:[#allocation3 + $0x1b4] sm:$0xf] }
0x172c   : > { %v7667_v18 = vpop.permute.xlu1 %7666 }
0x172d   : > { %7700 = vst.msk [vmem:[#allocation2 + $0x38] sm:$0xf] %vm4400_vm1, %v7667_v18  ;;  %v7838_v7 = vpop.f32.mrf.mxu1  ;;  %v8961_v18 = vld [vmem:[#allocation3 + $0x1d8] sm:$0xf0] }
0x172e   : > { %v7839_v34 = vadd.f32 %v13582_v31, %v7838_v7 }
0x1730   : > { %v7880_v62 = vmax.f32 %v7837_v6, %v7839_v34  ;;  %v7936_v59 = vmin.f32 %v7837_v6, %v7839_v34  ;;  %v8821_v34 = vor.u32 %v8961_v18, %v8820_v49 }
0x1732   : > { %v7881_v52 = vrot.slane %v7880_v62, 4  ;;  %v7937_v55 = vrot.slane %v7936_v59, 4  ;;  %8124 = vmatpush.bf16.msra.mxu2 %v8821_v34 }
0x1734   : > { %v8947_v14 = vld [vmem:[#allocation2 + $0x38] sm:$0xff]  ;;  %v7882_v50 = vmax.f32 %v7880_v62, %v7881_v52  ;;  %v7938_v53 = vmin.f32 %v7936_v59, %v7937_v55 }
0x1735   : > { %v7841_v29 = vpop.f32.mrf.mxu1  ;;  %7860 = vmatmul.bf16.gmra.mxu1 %v8947_v14  ;;  %v8816_v14 = vld [vmem:[#allocation3 + $0x164] sm:$0xf] }
0x1736   : > { %v7883_v39 = vrot.slane %v7882_v50, 2  ;;  %v7939_v57 = vrot.slane %v7938_v53, 2  ;;  %v7842_v32 = vadd.f32 %v13582_v31, %v7841_v29 }
0x1738   : > { %v7884_v35 = vmax.f32 %v7882_v50, %v7883_v39  ;;  %v7940_v15 = vmin.f32 %v7938_v53, %v7939_v57  ;;  %v8960_v50 = vld [vmem:[#allocation3 + $0x188] sm:$0xf0] }
0x1739   : > { %v8817_v29 = vor.u32 %v8960_v50, %v8816_v14 }
0x173a   : > { %v7885_v42 = vrot.slane %v7884_v35, 1  ;;  %v7941_v10 = vrot.slane %v7940_v15, 1 }
0x173b   : > { %8125 = vmatpush.bf16.msra.mxu2 %v8817_v29 }
0x173c   : > { %v7942_v63 = vmin.f32 %v7940_v15, %v7941_v10  ;;  %v7886_v17 = vmax.f32 %v7884_v35, %v7885_v42  ;;  %v8812_v35 = vld [vmem:[#allocation3 + $0x114] sm:$0xf]  ;;  %v8959_v15 = vld [vmem:[#allocation3 + $0x138] sm:$0xf0] }
0x173d   : > { %v7843_v43 = vpop.f32.mrf.mxu1 }
0x173e   : > { %v7980_v19 = vsub.f32 0.0, %v7942_v63  ;;  %v7844_v23 = vadd.f32 %v13582_v31, %v7843_v43 }
0x1740   : > { %vm7988_vm0 = vcmp.ge.f32.partialorder %v7886_v17, %v7980_v19  ;;  %v7887_v12 = vmax.f32 %v7842_v32, %v7844_v23  ;;  %v7943_v26 = vmin.f32 %v7842_v32, %v7844_v23  ;;  %v8808_v23 = vld [vmem:[#allocation3 + $0xc4] sm:$0xf] }
0x1741   : > { %v7996_v56 = vsel %vm7988_vm0, %v7886_v17, %v7942_v63  ;;  %v8813_v63 = vor.u32 %v8959_v15, %v8812_v35 }
0x1742   : > { %v8004_v36 = vpack.c.bf16 %v7996_v56, %v7996_v56  ;;  %v7888_v58 = vrot.slane %v7887_v12, 4  ;;  %v7944_v45 = vrot.slane %v7943_v26, 4 }
0x1743   : > { %8126 = vmatpush.bf16.msra.mxu2 %v8813_v63 }
0x1744   : > { %v8052_v5 = vunpack.c.l.b16 %v8004_v36  ;;  %v7889_v9 = vmax.f32 %v7887_v12, %v7888_v58  ;;  %v7945_v28 = vmin.f32 %v7943_v26, %v7944_v45  ;;  %v8958_v12 = vld [vmem:[#allocation3 + $0xe8] sm:$0xf0] }
0x1745   : > { %v7846_v48 = vpop.f32.mrf.mxu1  ;;  %v8809_v36 = vor.u32 %v8958_v12, %v8808_v23 }
0x1746   : > { %v8061_v16 = vsel %vm8060_vm12, %v8052_v5, %v8059_v25  ;;  %v7890_v13 = vrot.slane %v7889_v9, 2  ;;  %v7946_v30 = vrot.slane %v7945_v28, 2  ;;  %v7847_v7 = vadd.f32 %v13582_v31, %v7846_v48 }
0x1747   : > { %8127 = vmatpush.bf16.msra.mxu2 %v8809_v36 }
0x1748   : > { %v7891_v0 = vmax.f32 %v7889_v9, %v7890_v13  ;;  %v7947_v24 = vmin.f32 %v7945_v28, %v7946_v30  ;;  %v8804_v28 = vld [vmem:[#allocation3 + $0x74] sm:$0xf] }
0x174a   : > { %v7892_v11 = vrot.slane %v7891_v0, 1  ;;  %v7948_v21 = vrot.slane %v7947_v24, 1 }
0x174c   : > { %v7949_v2 = vmin.f32 %v7947_v24, %v7948_v21  ;;  %v7893_v41 = vmax.f32 %v7891_v0, %v7892_v11  ;;  %v8800_v11 = vld [vmem:[#allocation3 + $0x24] sm:$0xf]  ;;  %v8956_v21 = vld [vmem:[#allocation3 + $0x48] sm:$0xf0] }
0x174d   : > { %v7848_v51 = vpop.f32.mrf.mxu1 }
0x174e   : > { %v7981_v40 = vsub.f32 0.0, %v7949_v2  ;;  %v7849_v25 = vadd.f32 %v13582_v31, %v7848_v51 }
0x1750   : > { %vm7989_vm2 = vcmp.ge.f32.partialorder %v7893_v41, %v7981_v40  ;;  %v7950_v59 = vmin.f32 %v7847_v7, %v7849_v25  ;;  %v7894_v42 = vmax.f32 %v7847_v7, %v7849_v25 }
0x1751   : > { %v7997_v1 = vsel %vm7989_vm2, %v7893_v41, %v7949_v2 }
0x1752   : > { %v8005_v60 = vpack.c.bf16 %v7997_v1, %v7997_v1  ;;  %v7951_v39 = vrot.slane %v7950_v59, 4  ;;  %v7895_v26 = vrot.slane %v7894_v42, 4  ;;  %v8801_v1 = vor.u32 %v8956_v21, %v8800_v11 }
0x1754   : > { %v8053_v3 = vunpack.c.l.b16 %v8005_v60  ;;  %v7952_v17 = vmin.f32 %v7950_v59, %v7951_v39  ;;  %v7896_v13 = vmax.f32 %v7894_v42, %v7895_v26 }
0x1755   : > { %v7851_v44 = vpop.f32.mrf.mxu1 }
0x1756   : > { %v13602_v33 = vsel %vm8062_vm5, %v8053_v3, %v8061_v16  ;;  %v7852_v62 = vadd.f32 %v13582_v31, %v7851_v44  ;;  %v7953_v45 = vrot.slane %v7952_v17, 2  ;;  %v8957_v16 = vld [vmem:[#allocation3 + $0x98] sm:$0xf0]  ;;  %v7897_v3 = vrot.slane %v7896_v13, 2 }
0x1757   : > { %v8805_v0 = vor.u32 %v8957_v16, %v8804_v28 }
0x1758   : > { %v7954_v2 = vmin.f32 %v7952_v17, %v7953_v45  ;;  %v7898_v20 = vmax.f32 %v7896_v13, %v7897_v3 }
0x1759   : > { %8128 = vmatpush.bf16.msra.mxu2 %v8805_v0 }
0x175a   : > { %v7955_v44 = vrot.slane %v7954_v2, 1  ;;  %v7899_v49 = vrot.slane %v7898_v20, 1 }
0x175c   : > { %v7956_v47 = vmin.f32 %v7954_v2, %v7955_v44  ;;  %v7900_v50 = vmax.f32 %v7898_v20, %v7899_v49  ;;  %v9042_v2 = vld [vmem:[%s13656_s3 + $0x8] ss:$0 sm:$0xff] }
0x175d   : > { %v7853_v22 = vpop.f32.mrf.mxu1  ;;  %8129 = vmatpush.bf16.msra.mxu2 %v8801_v1 }
0x175e   : > { %v7854_v4 = vadd.f32 %v13582_v31, %v7853_v22 }
0x1760   : > { %v7957_v55 = vmin.f32 %v7852_v62, %v7854_v4  ;;  %v7901_v43 = vmax.f32 %v7852_v62, %v7854_v4  ;;  %v7982_v62 = vsub.f32 0.0, %v7956_v47 }
0x1762   : > { %v7958_v57 = vrot.slane %v7957_v55, 4  ;;  %v7902_v58 = vrot.slane %v7901_v43, 4  ;;  %vm7990_vm1 = vcmp.ge.f32.partialorder %v7900_v50, %v7982_v62 }
0x1763   : > { %v7998_v42 = vsel %vm7990_vm1, %v7900_v50, %v7956_v47 }
0x1764   : > { %v7959_v32 = vmin.f32 %v7957_v55, %v7958_v57  ;;  %v7903_v24 = vmax.f32 %v7901_v43, %v7902_v58  ;;  %v8006_v23 = vpack.c.bf16 %v7998_v42, %v7998_v42 }
0x1766   : > { %v7960_v9 = vrot.slane %v7959_v32, 2  ;;  %v7904_v51 = vrot.slane %v7903_v24, 2  ;;  %v8054_v45 = vunpack.c.l.b16 %v8006_v23 }
0x1768   : > { %v7961_v60 = vmin.f32 %v7959_v32, %v7960_v9  ;;  %v7905_v27 = vmax.f32 %v7903_v24, %v7904_v51  ;;  %v8065_v13 = vsel %vm8064_vm14, %v8054_v45, %v13602_v33 }
0x176a   : > { %v7906_v7 = vrot.slane %v7905_v27, 1 }
0x176c   : > { %v7907_v29 = vmax.f32 %v7905_v27, %v7906_v7 }
0x1777   : > { %v7856_v61 = vpop.f32.mrf.mxu1 }
0x1778   : > { %v7857_v52 = vadd.f32 %v13582_v31, %v7856_v61  ;;  %v7962_v61 = vrot.slane %v7961_v60, 1 }
0x177f   : > { %v7858_v8 = vpop.f32.mrf.mxu1 }
0x1780   : > { %v7859_v6 = vadd.f32 %v13582_v31, %v7858_v8  ;;  %v7963_v8 = vmin.f32 %v7961_v60, %v7962_v61 }
0x1782   : > { %v7964_v53 = vmin.f32 %v7857_v52, %v7859_v6  ;;  %v7908_v19 = vmax.f32 %v7857_v52, %v7859_v6  ;;  %v7983_v52 = vsub.f32 0.0, %v7963_v8 }
0x1784   : > { %v7965_v10 = vrot.slane %v7964_v53, 4  ;;  %v7909_v5 = vrot.slane %v7908_v19, 4  ;;  %vm7991_vm8 = vcmp.ge.f32.partialorder %v7907_v29, %v7983_v52 }
0x1785   : > { %v7999_v43 = vsel %vm7991_vm8, %v7907_v29, %v7963_v8 }
0x1786   : > { %v7966_v56 = vmin.f32 %v7964_v53, %v7965_v10  ;;  %v7910_v41 = vmax.f32 %v7908_v19, %v7909_v5  ;;  %v8007_v12 = vpack.c.bf16 %v7999_v43, %v7999_v43 }
0x1788   : > { %v7967_v30 = vrot.slane %v7966_v56, 2  ;;  %v7911_v22 = vrot.slane %v7910_v41, 2  ;;  %v8055_v5 = vunpack.c.l.b16 %v8007_v12 }
0x178a   : > { %v7968_v48 = vmin.f32 %v7966_v56, %v7967_v30  ;;  %v7912_v38 = vmax.f32 %v7910_v41, %v7911_v22  ;;  %v8067_v0 = vsel %vm8066_vm10, %v8055_v5, %v8065_v13 }
0x178c   : > { %v7969_v54 = vrot.slane %v7968_v48, 1  ;;  %v7913_v59 = vrot.slane %v7912_v38, 1 }
0x178e   : > { %v7970_v18 = vmin.f32 %v7968_v48, %v7969_v54  ;;  %v7914_v35 = vmax.f32 %v7912_v38, %v7913_v59 }
0x1790   : > { %v7984_v53 = vsub.f32 0.0, %v7970_v18 }
0x1792   : > { %vm7992_vm12 = vcmp.ge.f32.partialorder %v7914_v35, %v7984_v53 }
0x1793   : > { %v8000_v17 = vsel %vm7992_vm12, %v7914_v35, %v7970_v18 }
0x1794   : > { %v8008_v56 = vpack.c.bf16 %v8000_v17, %v8000_v17 }
0x1796   : > { %v8056_v9 = vunpack.c.l.b16 %v8008_v56 }
0x1798   : > { %v8069_v24 = vsel %vm8068_vm13, %v8056_v9, %v8067_v0 }
0x17b2   : > { %v7861_v40 = vpop.f32.mrf.mxu1 }
0x17b3   : > { %v7862_v25 = vadd.f32 %v13582_v31, %v7861_v40 }
0x17ba   : > { %v7863_v37 = vpop.f32.mrf.mxu1 }
0x17bb   : > { %v7864_v4 = vadd.f32 %v13582_v31, %v7863_v37 }
0x17bd   : > { %v7915_v6 = vmax.f32 %v7862_v25, %v7864_v4  ;;  %v7971_v34 = vmin.f32 %v7862_v25, %v7864_v4 }
0x17bf   : > { %v7916_v55 = vrot.slane %v7915_v6, 4  ;;  %v7972_v14 = vrot.slane %v7971_v34, 4 }
0x17c1   : > { %v7917_v39 = vmax.f32 %v7915_v6, %v7916_v55  ;;  %v7973_v57 = vmin.f32 %v7971_v34, %v7972_v14 }
0x17c3   : > { %v7918_v15 = vrot.slane %v7917_v39, 2  ;;  %v7974_v31 = vrot.slane %v7973_v57, 2 }
0x17c5   : > { %v7919_v10 = vmax.f32 %v7917_v39, %v7918_v15  ;;  %v7975_v63 = vmin.f32 %v7973_v57, %v7974_v31 }
0x17c7   : > { %v7920_v19 = vrot.slane %v7919_v10, 1  ;;  %v7976_v32 = vrot.slane %v7975_v63, 1 }
0x17c9   : > { %v7977_v26 = vmin.f32 %v7975_v63, %v7976_v32  ;;  %v7921_v36 = vmax.f32 %v7919_v10, %v7920_v19 }
0x17cb   : > { %v7985_v58 = vsub.f32 0.0, %v7977_v26 }
0x17cd   : > { %vm7993_vm5 = vcmp.ge.f32.partialorder %v7921_v36, %v7985_v58 }
0x17ce   : > { %v8001_v28 = vsel %vm7993_vm5, %v7921_v36, %v7977_v26 }
0x17cf   : > { %v8009_v16 = vpack.c.bf16 %v8001_v28, %v8001_v28 }
0x17d1   : > { %v8057_v30 = vunpack.c.l.b16 %v8009_v16 }
0x17d3   : > { %v8071_v11 = vsel %vm8070_vm9, %v8057_v30, %v8069_v24 }
0x17d4   : > { %v8072_v21 = vpack.c.b16 %v8071_v11, %v8071_v11 }
0x17d6   : > { %8130 = vmatmul.bf16.vlgmr.msra.gmra.mxu2 %v8072_v21 }
0x1859   : > { %v8131_v41 = vpop.f32.mrf.mxu2 }
0x185a   : > { %v8218_v40 = vadd.f32 %v13554_v46, %v8131_v41 }
0x185c   : > { %v8225_v1 = vadd.f32 %v9042_v2, %v8218_v40 }
0x185e   : > { %8226 = vmax.xlane.f32.xlu0 %v8225_v1 }
0x1861   : > { %v8133_v33 = vpop.f32.mrf.mxu2 }
0x18d1   : > { %v8227_v60 = vpop.xlane.xlu0 %8226 }
0x18d2   : > { %v8228_v3 = vsub.f32 %v8225_v1, %v8227_v60 }
0x18d4   : > { %v8229_v48 = vmul.f32 1.442695, %v8228_v3 }
0x18d6   : > { %9555 = vpow2.f32 %v8229_v48 }
0x18dc   : > { %v9556_v51 = vpop.eup %9555 }
0x18dd   : > { %8231 = vadd.xlane.f32.xlu1 %v9556_v51 }
0x1950   : > { %v8232_v44 = vpop.xlane.xlu1 %8231 }
0x1951   : > { %9557 = vlog2.f32 %v8232_v44 }
0x1957   : > { %v9558_v22 = vpop.eup %9557 }
0x1958   : > { %v8234_v46 = vmul.f32 0.6931472, %v9558_v22 }
0x195a   : > { %v8235_v61 = vadd.f32 %v8234_v46, %v8227_v60 }
0x195c   : > { %v8236_v20 = vsub.f32 %v8225_v1, %v8235_v61 }
0x195e   : > { %8237 = vst [vmem:[%s228_s7] sm:$0xff] %v8236_v20 }
0x195f   : > { %9619 = shalt.err (!%p9616_p8)
}
0x1960   : > { %8984 = dma.vmem_to_hbm [thread:$0]  (%p9731_p5), %s8252_s9, 128, %s8254_s10, %s8239_s11  }
0x1961 PF: > { %p8996_p9 = scmp.ge.s32.totalorder %s9658_s18, 2  ;;  %s8265_s23 = sand.u32 1, %s9646_s15  }
0x1962   : > { %s8266_s27 = scalar_lea.sflag [#allocation5], %s8265_s23 }
0x1963   : > { %p8991_p10 = pnand %p8996_p9, %p9735_p6 }
0x1965   : > { %p8992_p11 = pneg %p8991_p10 }
0x1967   : > { %9641 = dma.done.wait (%p8992_p11), %s8266_s27, 128  }
0x1968   : > { %9643 = vsyncadd (%p8992_p11), %s8266_s27, 4294967168  ;;  %p15_p12 = scmp.ge.s32.totalorder %s9718_s21, 4   ;;  %s14087_s15 = smov %s9650_s16 }
0x1969   : > { %s14088_s16 = smov %s9654_s17  ;;  %s14089_s17 = smov %s9729_s24 }
0x196a   : > { %s14090_s18 = smov %s9718_s21  ;;  %17 = sbr.rel (!%p15_p12) target bundleno = 4 (0x4), region = 79 }
0x196f   :  { %8272 = vsyncpa [#allocation4], 1 }
0x1970   :  { %8274 = vsyncpa [#allocation4 + $0x1], 1 }
0x1971   :  { %8275 = vsyncpa [#allocation5], 1 }
0x1972   :  { %8277 = vsyncpa [#allocation5 + $0x1], 1 }

</bundles_post_ra>
